<compile_context>
chip_gen: v5e
topology: v5e:2x2
jax: 0.10.0
libtpu: 0.0.40
codegen_flags: <defaults>
</compile_context>

<pallas_src>
import functools

import jax
import jax.numpy as jnp
from jax.experimental import pallas as pl
from jax.experimental.pallas import tpu as pltpu

BN_EPS = 1e-5
MIN_TILES = 4          # aim for >= 4 grid steps so pipelining / megacore work


def _vmem_capacity_bytes():
    try:
        return int(getattr(pltpu.get_tpu_info(), "vmem_capacity_bytes", 0))
    except Exception:
        return 0


_VMEM_CAP = _vmem_capacity_bytes()
if _VMEM_CAP >= 100 * 1024 * 1024:        # v5e / v6e: 128 MiB physical VMEM
    VMEM_LIMIT = 80 * 1024 * 1024
    MAX_TM = 1024
elif _VMEM_CAP > 0:                       # v7x: 64 MiB per TensorCore
    VMEM_LIMIT = 40 * 1024 * 1024
    MAX_TM = 512
else:                                     # unknown -> safe everywhere
    VMEM_LIMIT = 32 * 1024 * 1024
    MAX_TM = 512


def _round_up(x, m):
    return (x + m - 1) // m * m


def _choose_tile(M):
    """Pick an M tile: big for large M, but never fewer than ~MIN_TILES steps."""
    if M >= MIN_TILES * MAX_TM:
        TM = MAX_TM
    else:
        TM = max(16, _round_up(pl.cdiv(M, MIN_TILES), 16))   # bf16 sublane packing
    Mp = _round_up(M, TM)
    return TM, Mp


# ----------------------------------------------------------------------------
# Pallas kernels
# ----------------------------------------------------------------------------
def _gemm_stats_kernel(p_ref, w_ref, y_ref, stat_ref):
    # p_ref: (TM, K) bf16 patch tile; w_ref: (K, C) bf16 resident weights
    # y_ref: (TM, C) bf16 pre-BN output tile
    # stat_ref: (1, 2, C) f32 per-tile partial [sum, sum-of-squares]
    y = jnp.dot(p_ref[...], w_ref[...], preferred_element_type=jnp.float32)
    y_ref[...] = y.astype(y_ref.dtype)
    s = jnp.sum(y, axis=0, keepdims=True)
    ss = jnp.sum(y * y, axis=0, keepdims=True)
    stat_ref[...] = jnp.stack([s, ss], axis=1)


def _bn_relu_kernel(y_ref, mean_ref, msq_ref, g_ref, b_ref, a_ref):
    mean = mean_ref[...]
    var = msq_ref[...] - mean * mean
    scale = g_ref[...] * jax.lax.rsqrt(var + BN_EPS)
    shift = b_ref[...] - mean * scale
    act = jnp.maximum(y_ref[...].astype(jnp.float32) * scale + shift, 0.0)
    a_ref[...] = act.astype(a_ref.dtype)


def _bn_relu_heads_kernel(y_ref, mean_ref, msq_ref, g_ref, b_ref,
                          hw_ref, hb_ref, a_ref, heads_ref):
    # BN affine + ReLU, then both 1x1 heads from the already-resident tile.
    mean = mean_ref[...]
    var = msq_ref[...] - mean * mean
    scale = g_ref[...] * jax.lax.rsqrt(var + BN_EPS)
    shift = b_ref[...] - mean * scale
    act = jnp.maximum(y_ref[...].astype(jnp.float32) * scale + shift, 0.0)
    act_bf = act.astype(jnp.bfloat16)
    a_ref[...] = act_bf
    h = jnp.dot(act_bf, hw_ref[...], preferred_element_type=jnp.float32) + hb_ref[...]
    col = jax.lax.broadcasted_iota(jnp.int32, h.shape, 1)
    # column 0: linear `out` head; column 1: exact sigmoid `conf` head
    heads_ref[...] = jnp.where(col == 0, h, 1.0 / (1.0 + jnp.exp(-h)))


def _gemm_bias_kernel(p_ref, w_ref, b_ref, o_ref):
    y = jnp.dot(p_ref[...], w_ref[...], preferred_element_type=jnp.float32)
    o_ref[...] = (y + b_ref[...]).astype(o_ref.dtype)


# ----------------------------------------------------------------------------
# pallas_call wrappers (tiled over M)
# ----------------------------------------------------------------------------
def _gemm_stats(patches, wf, TM):
    """Tiled GEMM producing bf16 pre-BN output plus per-tile sum/ssq partials."""
    Mp, K = patches.shape
    C = wf.shape[1]
    nm = Mp // TM
    cost = pl.CostEstimate(
        flops=2 * Mp * K * C, transcendentals=0,
        bytes_accessed=Mp * K * 2 + K * C * 2 + Mp * C * 2 + 2 * nm * C * 4)
    y, stats = pl.pallas_call(
        _gemm_stats_kernel,
        out_shape=(jax.ShapeDtypeStruct((Mp, C), jnp.bfloat16),
                   jax.ShapeDtypeStruct((nm, 2, C), jnp.float32)),
        grid=(nm,),
        in_specs=[pl.BlockSpec((TM, K), lambda i: (i, 0)),
                  pl.BlockSpec((K, C), lambda i: (0, 0))],      # resident weights
        out_specs=(pl.BlockSpec((TM, C), lambda i: (i, 0)),
                   pl.BlockSpec((1, 2, C), lambda i: (i, 0, 0))),  # per-tile partials
        compiler_params=pltpu.CompilerParams(
            dimension_semantics=("parallel",),    # megacore-shardable on v7x
            vmem_limit_bytes=VMEM_LIMIT),
        cost_estimate=cost,
    )(patches, wf)
    tot = jnp.sum(stats, axis=0)                  # (2, C): [sum, sum-of-squares]
    return y, tot[0:1], tot[1:2]


def _bn_relu(y, mean, msq, gamma, beta, TM, out_dtype=jnp.bfloat16):
    Mp, C = y.shape
    nm = Mp // TM
    return pl.pallas_call(
        _bn_relu_kernel,
        out_shape=jax.ShapeDtypeStruct((Mp, C), out_dtype),
        grid=(nm,),
        in_specs=[pl.BlockSpec((TM, C), lambda i: (i, 0)),
                  pl.BlockSpec((1, C), lambda i: (0, 0)),
                  pl.BlockSpec((1, C), lambda i: (0, 0)),
                  pl.BlockSpec((1, C), lambda i: (0, 0)),
                  pl.BlockSpec((1, C), lambda i: (0, 0))],
        out_specs=pl.BlockSpec((TM, C), lambda i: (i, 0)),
        compiler_params=pltpu.CompilerParams(
            dimension_semantics=("parallel",), vmem_limit_bytes=VMEM_LIMIT),
    )(y, mean, msq, gamma, beta)


def _bn_relu_heads(y, mean, msq, gamma, beta, hw, hb, TM):
    Mp, C = y.shape
    nm = Mp // TM
    return pl.pallas_call(
        _bn_relu_heads_kernel,
        out_shape=(jax.ShapeDtypeStruct((Mp, C), jnp.bfloat16),
                   jax.ShapeDtypeStruct((Mp, 2), jnp.float32)),   # combined heads slab
        grid=(nm,),
        in_specs=[pl.BlockSpec((TM, C), lambda i: (i, 0)),
                  pl.BlockSpec((1, C), lambda i: (0, 0)),
                  pl.BlockSpec((1, C), lambda i: (0, 0)),
                  pl.BlockSpec((1, C), lambda i: (0, 0)),
                  pl.BlockSpec((1, C), lambda i: (0, 0)),
                  pl.BlockSpec((C, 2), lambda i: (0, 0)),
                  pl.BlockSpec((1, 2), lambda i: (0, 0))],
        out_specs=(pl.BlockSpec((TM, C), lambda i: (i, 0)),
                   pl.BlockSpec((TM, 2), lambda i: (i, 0))),
        compiler_params=pltpu.CompilerParams(
            dimension_semantics=("parallel",), vmem_limit_bytes=VMEM_LIMIT),
    )(y, mean, msq, gamma, beta, hw, hb)


def _gemm_bias(patches, wf, bias, TM, out_dtype):
    Mp, K = patches.shape
    C = wf.shape[1]
    nm = Mp // TM
    cost = pl.CostEstimate(
        flops=2 * Mp * K * C, transcendentals=0,
        bytes_accessed=Mp * K * 2 + K * C * 2 + Mp * C * jnp.dtype(out_dtype).itemsize)
    return pl.pallas_call(
        _gemm_bias_kernel,
        out_shape=jax.ShapeDtypeStruct((Mp, C), out_dtype),
        grid=(nm,),
        in_specs=[pl.BlockSpec((TM, K), lambda i: (i, 0)),
                  pl.BlockSpec((K, C), lambda i: (0, 0)),
                  pl.BlockSpec((1, C), lambda i: (0, 0))],
        out_specs=pl.BlockSpec((TM, C), lambda i: (i, 0)),
        compiler_params=pltpu.CompilerParams(
            dimension_semantics=("parallel",), vmem_limit_bytes=VMEM_LIMIT),
        cost_estimate=cost,
    )(patches, wf, bias)


# ----------------------------------------------------------------------------
# im2col (glue) and layer wrappers
# ----------------------------------------------------------------------------
def _im2col(x, KH, KW, stride, padding):
    # TODO(synk): glue-side im2col amplifies HBM reads by KH*KW; doing the tap
    #             loop in-kernel needs overlapping / BoundedSlice BlockSpecs.
    N, H, W, Cin = x.shape
    Ho = (H + 2 * padding - KH) // stride + 1
    Wo = (W + 2 * padding - KW) // stride + 1
    M = N * Ho * Wo
    TM, Mp = _choose_tile(M)
    x = x.astype(jnp.bfloat16)                       # cast BEFORE slicing (half traffic)
    if padding:
        x = jnp.pad(x, ((0, 0), (padding, padding), (padding, padding), (0, 0)))
    cols = []
    for kh in range(KH):
        for kw in range(KW):
            sl = jax.lax.slice(
                x, (0, kh, kw, 0),
                (N, kh + (Ho - 1) * stride + 1, kw + (Wo - 1) * stride + 1, Cin),
                (1, stride, stride, 1)).reshape(M, Cin)
            if Mp != M:                              # pad per-tap, before the concat
                sl = jnp.pad(sl, ((0, Mp - M), (0, 0)))
            cols.append(sl)
    patches = jnp.concatenate(cols, axis=-1)         # (Mp, KH*KW*Cin) bf16
    return patches, Ho, Wo, M, TM


def conv_bn_relu(x, w, gamma, beta, *, stride=1, padding=0, heads=None):
    """Conv2d(bias=False) + BatchNorm2d(training batch stats) + ReLU.
    Optionally fuses a (out: linear, conf: sigmoid) pair of 1x1 heads."""
    N, H, W, Cin = x.shape
    KH, KW, _, C = w.shape
    patches, Ho, Wo, M, TM = _im2col(x, KH, KW, stride, padding)
    wf = w.reshape(KH * KW * Cin, C).astype(jnp.bfloat16)
    y, s, ss = _gemm_stats(patches, wf, TM)
    inv_n = 1.0 / float(M)                            # padded rows contribute zeros
    mean, msq = s * inv_n, ss * inv_n                 # biased var (torch training BN)
    if heads is None:
        act = _bn_relu(y, mean, msq, gamma, beta, TM)
        return act[:M].reshape(N, Ho, Wo, C)
    hw, hb = heads
    act, hd = _bn_relu_heads(y, mean, msq, gamma, beta, hw, hb, TM)
    out = hd[:M, 0:1].reshape(N, Ho, Wo, 1)
    conf = hd[:M, 1:2].reshape(N, Ho, Wo, 1)
    return act[:M].reshape(N, Ho, Wo, C), out, conf


def deconv_bn_relu(x, wt, gamma, beta):
    """ConvTranspose2d(k=3, s=2, p=1, op=1, bias=False) + BN(train) + ReLU,
    lowered as a sub-pixel phase GEMM (K=4*Cin, N=4*Cout) + pixel shuffle.
    wt has PyTorch layout (Cin, Cout, KH, KW)."""
    N, H, W, Cin = x.shape
    Cout = wt.shape[1]
    M = N * H * W
    TM, Mp = _choose_tile(M)
    xb = x.astype(jnp.bfloat16)
    xp = jnp.pad(xb, ((0, 0), (0, 1), (0, 1), (0, 0)))          # high-side halo
    cols = []
    for dh in (0, 1):
        for dw in (0, 1):
            sl = jax.lax.slice(xp, (0, dh, dw, 0),
                               (N, dh + H, dw + W, Cin)).reshape(M, Cin)
            if Mp != M:
                sl = jnp.pad(sl, ((0, Mp - M), (0, 0)))
            cols.append(sl)
    patches = jnp.concatenate(cols, axis=-1)

    # phase p = 2a+b (output parity), tap offset (dh,dw) -> deconv kernel (kh,kw)
    kmap = {(0, 0): 1, (1, 0): 2, (1, 1): 0}
    Wb = jnp.zeros((4, Cin, 4, Cout), jnp.float32)
    for a in (0, 1):
        for b in (0, 1):
            p = 2 * a + b
            for dh in (0, 1):
                for dw in (0, 1):
                    if (a, dh) in kmap and (b, dw) in kmap:
                        Wb = Wb.at[2 * dh + dw, :, p, :].set(
                            wt[:, :, kmap[(a, dh)], kmap[(b, dw)]])
    wf = Wb.reshape(4 * Cin, 4 * Cout).astype(jnp.bfloat16)

    y, s, ss = _gemm_stats(patches, wf, TM)
    # BN stats per output channel = sum over the 4 phase column-groups
    inv_n = 1.0 / (4.0 * M)
    mean_c = s.reshape(4, Cout).sum(axis=0, keepdims=True) * inv_n
    msq_c = ss.reshape(4, Cout).sum(axis=0, keepdims=True) * inv_n
    mean = jnp.tile(mean_c, (1, 4))
    msq = jnp.tile(msq_c, (1, 4))
    g4 = jnp.tile(gamma, (1, 4))
    b4 = jnp.tile(beta, (1, 4))
    act = _bn_relu(y, mean, msq, g4, b4, TM)[:M]                 # (M, 4*Cout) bf16
    # pixel shuffle: (N,H,W,a,b,C) -> (N, 2H, 2W, C); the Deconv2dUnit crop to
    # [:2H, :2W] is exact for this lowering.
    act = act.reshape(N, H, W, 2, 2, Cout).transpose(0, 1, 3, 2, 4, 5)
    return act.reshape(N, 2 * H, 2 * W, Cout)


def conv_bias(x, w, bias, *, stride=1, padding=0, out_dtype=jnp.bfloat16):
    """Plain Conv2d with bias (no BN, no activation) -- fine_conv layers."""
    N, H, W, Cin = x.shape
    KH, KW, _, C = w.shape
    patches, Ho, Wo, M, TM = _im2col(x, KH, KW, stride, padding)
    out = _gemm_bias(patches, w.reshape(KH * KW * Cin, C).astype(jnp.bfloat16),
                     bias, TM, out_dtype)
    return out[:M].reshape(N, Ho, Wo, C)


def _stack_heads(w_out, w_conf, b_conf):
    # 1x1 heads stacked as (C, 2): col 0 = out (no bias), col 1 = conf (+bias)
    C = w_out.shape[2]
    hw = jnp.concatenate([w_out.reshape(C, 1), w_conf.reshape(C, 1)],
                         axis=1).astype(jnp.bfloat16)
    hb = jnp.concatenate([jnp.zeros((1, 1), jnp.float32), b_conf.reshape(1, 1)], axis=1)
    return hw, hb


# ----------------------------------------------------------------------------
# FeatExtNet forward (num_stage == 3)
# ----------------------------------------------------------------------------
def featextnet_forward(P, x_nchw, bc):
    x = jnp.transpose(x_nchw, (0, 2, 3, 1)).astype(jnp.float32)   # NHWC

    def cbr(h, name, stride, padding, heads=None):
        return conv_bn_relu(h, P[name + '.w'], P[name + '.g'], P[name + '.b'],
                            stride=stride, padding=padding, heads=heads)

    conv0 = cbr(x, 'conv0.0', 1, 1)
    conv0 = cbr(conv0, 'conv0.1', 1, 1)

    conv1 = cbr(conv0, 'conv1.0', 2, 2)
    conv1 = cbr(conv1, 'conv1.1', 1, 1)
    conv1 = cbr(conv1, 'conv1.2', 1, 1)

    conv2 = cbr(conv1, 'conv2.0', 2, 2)
    conv2 = cbr(conv2, 'conv2.1', 1, 1)
    conv2, out1, conf1 = cbr(
        conv2, 'conv2.2', 1, 1,
        heads=_stack_heads(P['out1.w'], P['conf1.w'], P['conf1.b']))

    outputs = {'stage1_f': out1, 'stage1_c': conf1}

    # stage 2
    y = deconv_bn_relu(conv2, P['deconv1.deconv.w'],
                       P['deconv1.deconv.g'], P['deconv1.deconv.b'])
    y = jnp.concatenate([y, conv1], axis=-1)
    intra, out2, conf2 = conv_bn_relu(
        y, P['deconv1.conv.w'], P['deconv1.conv.g'], P['deconv1.conv.b'],
        stride=1, padding=1,
        heads=_stack_heads(P['out2.w'], P['conf2.w'], P['conf2.b']))
    outputs['stage2_f'] = out2
    outputs['stage2_c'] = conf2

    # stage 3
    y = deconv_bn_relu(intra, P['deconv2.deconv.w'],
                       P['deconv2.deconv.g'], P['deconv2.deconv.b'])
    y = jnp.concatenate([y, conv0], axis=-1)
    intra, out3, conf3 = conv_bn_relu(
        y, P['deconv2.conv.w'], P['deconv2.conv.g'], P['deconv2.conv.b'],
        stride=1, padding=1,
        heads=_stack_heads(P['out3.w'], P['conf3.w'], P['conf3.b']))
    outputs['stage3_f'] = out3
    outputs['stage3_c'] = conf3

    # fine stage (bc + 1 + 3 input channels); keep intermediates bf16
    inp_fine = jnp.concatenate(
        [intra, out3.astype(jnp.bfloat16), x.astype(jnp.bfloat16)], axis=-1)
    h = conv_bias(inp_fine, P['fine.0.w'], P['fine.0.b'], padding=2)
    h = conv_bias(h, P['fine.1.w'], P['fine.1.b'], padding=2)
    out_fine = conv_bias(h, P['fine.2.w'], P['fine.2.b'], out_dtype=jnp.float32)
    outputs['stage_fine'] = out_fine

    # back to NCHW f32 for PyTorch-matching outputs
    return {k: jnp.transpose(v, (0, 3, 1, 2)).astype(jnp.float32)
            for k, v in outputs.items()}


# ----------------------------------------------------------------------------
# Deterministic parameter construction (shapes from FeatExtNet.__init__)
# ----------------------------------------------------------------------------
def init_params(bc, key):
    keys = iter(jax.random.split(key, 64))

    def w(kh, kw, cin, cout):  # Conv2d weight in HWIO
        return jax.random.normal(next(keys), (kh, kw, cin, cout), jnp.float32) / jnp.sqrt(kh * kw * cin)

    def wt(cin, cout, kh, kw):  # ConvTranspose2d weight, PyTorch (Cin, Cout, KH, KW)
        return jax.random.normal(next(keys), (cin, cout, kh, kw), jnp.float32) / jnp.sqrt(kh * kw * cin)

    def bias(c):
        return jax.random.normal(next(keys), (1, c), jnp.float32) * 0.01

    def bn(c):
        return jnp.ones((1, c), jnp.float32), jnp.zeros((1, c), jnp.float32)

    P = {}
    P['conv0.0.w'] = w(3, 3, 3, bc);          P['conv0.0.g'], P['conv0.0.b'] = bn(bc)
    P['conv0.1.w'] = w(3, 3, bc, bc);         P['conv0.1.g'], P['conv0.1.b'] = bn(bc)

    P['conv1.0.w'] = w(5, 5, bc, 2 * bc);     P['conv1.0.g'], P['conv1.0.b'] = bn(2 * bc)
    P['conv1.1.w'] = w(3, 3, 2 * bc, 2 * bc); P['conv1.1.g'], P['conv1.1.b'] = bn(2 * bc)
    P['conv1.2.w'] = w(3, 3, 2 * bc, 2 * bc); P['conv1.2.g'], P['conv1.2.b'] = bn(2 * bc)

    P['conv2.0.w'] = w(5, 5, 2 * bc, 4 * bc); P['conv2.0.g'], P['conv2.0.b'] = bn(4 * bc)
    P['conv2.1.w'] = w(3, 3, 4 * bc, 4 * bc); P['conv2.1.g'], P['conv2.1.b'] = bn(4 * bc)
    P['conv2.2.w'] = w(3, 3, 4 * bc, 4 * bc); P['conv2.2.g'], P['conv2.2.b'] = bn(4 * bc)

    P['out1.w'] = w(1, 1, 4 * bc, 1)
    P['conf1.w'] = w(1, 1, 4 * bc, 1);        P['conf1.b'] = bias(1)
    P['out2.w'] = w(1, 1, 2 * bc, 1)
    P['conf2.w'] = w(1, 1, 2 * bc, 1);        P['conf2.b'] = bias(1)
    P['out3.w'] = w(1, 1, bc, 1)
    P['conf3.w'] = w(1, 1, bc, 1);            P['conf3.b'] = bias(1)

    P['deconv1.deconv.w'] = wt(4 * bc, 2 * bc, 3, 3)
    P['deconv1.deconv.g'], P['deconv1.deconv.b'] = bn(2 * bc)
    P['deconv1.conv.w'] = w(3, 3, 4 * bc, 2 * bc)
    P['deconv1.conv.g'], P['deconv1.conv.b'] = bn(2 * bc)

    P['deconv2.deconv.w'] = wt(2 * bc, bc, 3, 3)
    P['deconv2.deconv.g'], P['deconv2.deconv.b'] = bn(bc)
    P['deconv2.conv.w'] = w(3, 3, 2 * bc, bc)
    P['deconv2.conv.g'], P['deconv2.conv.b'] = bn(bc)

    c = bc + 4
    P['fine.0.w'] = w(5, 5, c, 2 * c);        P['fine.0.b'] = bias(2 * c)
    P['fine.1.w'] = w(5, 5, 2 * c, c);        P['fine.1.b'] = bias(c)
    P['fine.2.w'] = w(1, 1, c, 1);            P['fine.2.b'] = bias(1)
    return P


# ----------------------------------------------------------------------------
if __name__ == "__main__":
    bc = 8  # base_channels
    key = jax.random.PRNGKey(0)
    kx, kp = jax.random.split(key)

    x = jax.random.normal(kx, (2, 3, 16, 16), jnp.float32)  # NCHW, RGB
    params = init_params(bc, kp)

    fwd = jax.jit(functools.partial(featextnet_forward, bc=bc))
    outs = fwd(params, x)
    jax.block_until_ready(outs)

    assert outs['stage1_f'].shape == (2, 1, 4, 4)
    assert outs['stage1_c'].shape == (2, 1, 4, 4)
    assert outs['stage2_f'].shape == (2, 1, 8, 8)
    assert outs['stage2_c'].shape == (2, 1, 8, 8)
    assert outs['stage3_f'].shape == (2, 1, 16, 16)
    assert outs['stage3_c'].shape == (2, 1, 16, 16)
    assert outs['stage_fine'].shape == (2, 1, 16, 16)
    print("KERNEL_OK")
</pallas_src>

<mosaic_0001>
module attributes {stable_mosaic.version = 11 : i64} {
  func.func @_gemm_stats_kernel(%arg0: i32, %arg1: memref<128x27xbf16, #tpu.memory_space<vmem>>, %arg2: memref<27x8xbf16, #tpu.memory_space<vmem>>, %arg3: memref<128x8xbf16, #tpu.memory_space<vmem>>, %arg4: memref<1x2x8xf32, #tpu.memory_space<vmem>>) attributes {dimension_semantics = [#tpu.dimension_semantics<parallel>], iteration_bounds = array<i64: 4>, scalar_prefetch = 0 : i64, scratch_operands = 0 : i64, tpu.core_type = #tpu.core_type<tc>, window_params = [{transform_indices = @transform_0, window_bounds = array<i64: 128, 27>}, {pipeline_mode = #tpu.pipeline_mode<synchronous>, transform_indices = @transform_1, window_bounds = array<i64: 27, 8>}, {transform_indices = @transform_2, window_bounds = array<i64: 128, 8>}, {transform_indices = @transform_3, window_bounds = array<i64: 1, 2, 8>}]} {
    %c0 = arith.constant 0 : index
    %c0_0 = arith.constant 0 : index
    %0 = vector.load %arg1[%c0, %c0_0] : memref<128x27xbf16, #tpu.memory_space<vmem>>, vector<128x27xbf16>
    %c0_1 = arith.constant 0 : index
    %c0_2 = arith.constant 0 : index
    %1 = vector.load %arg2[%c0_1, %c0_2] : memref<27x8xbf16, #tpu.memory_space<vmem>>, vector<27x8xbf16>
    %cst = arith.constant dense<0.000000e+00> : vector<128x8xf32>
    %2 = tpu.matmul %0, %1, %cst {dimension_numbers = #tpu.dot_dimension_numbers<[1], [0], [0], [1], [0, 0, 1, 1], [], []>} : vector<128x27xbf16>, vector<27x8xbf16>, vector<128x8xf32> -> vector<128x8xf32>
    %3 = arith.truncf %2 : vector<128x8xf32> to vector<128x8xbf16>
    %c0_3 = arith.constant 0 : index
    %c0_4 = arith.constant 0 : index
    %4 = vector.load %arg3[%c0_3, %c0_4] : memref<128x8xbf16, #tpu.memory_space<vmem>>, vector<128x8xbf16>
    tpu.vector_store %arg3[%c0_3, %c0_4], %3 {strides = array<i32>} : memref<128x8xbf16, #tpu.memory_space<vmem>>, vector<128x8xbf16>,
    %cst_5 = arith.constant dense<0.000000e+00> : vector<8xf32>
    %5 = vector.multi_reduction <add>, %2, %cst_5 [0] : vector<128x8xf32> to vector<8xf32>
    %6 = vector.shape_cast %5 : vector<8xf32> to vector<1x8xf32>
    %7 = arith.mulf %2, %2 : vector<128x8xf32>
    %cst_6 = arith.constant dense<0.000000e+00> : vector<8xf32>
    %8 = vector.multi_reduction <add>, %7, %cst_6 [0] : vector<128x8xf32> to vector<8xf32>
    %9 = vector.shape_cast %8 : vector<8xf32> to vector<1x8xf32>
    %10 = vector.shape_cast %6 : vector<1x8xf32> to vector<1x1x8xf32>
    %11 = vector.shape_cast %9 : vector<1x8xf32> to vector<1x1x8xf32>
    %12 = tpu.concatenate %10, %11 in 1 : vector<1x1x8xf32>, vector<1x1x8xf32> -> vector<1x2x8xf32>
    %c0_7 = arith.constant 0 : index
    %c0_8 = arith.constant 0 : index
    %c0_9 = arith.constant 0 : index
    %13 = vector.load %arg4[%c0_7, %c0_8, %c0_9] : memref<1x2x8xf32, #tpu.memory_space<vmem>>, vector<1x2x8xf32>
    tpu.vector_store %arg4[%c0_7, %c0_8, %c0_9], %12 {strides = array<i32>} : memref<1x2x8xf32, #tpu.memory_space<vmem>>, vector<1x2x8xf32>,
    return
  }
  func.func @transform_0(%arg0: i32) -> (i32, i32) {
    %c0_i32 = arith.constant 0 : i32
    %c0_i32_0 = arith.constant 0 : i32
    return %arg0, %c0_i32 : i32, i32
  }
  func.func @transform_1(%arg0: i32) -> (i32, i32) {
    %c0_i32 = arith.constant 0 : i32
    %c0_i32_0 = arith.constant 0 : i32
    %c0_i32_1 = arith.constant 0 : i32
    return %c0_i32, %c0_i32_0 : i32, i32
  }
  func.func @transform_2(%arg0: i32) -> (i32, i32) {
    %c0_i32 = arith.constant 0 : i32
    %c0_i32_0 = arith.constant 0 : i32
    return %arg0, %c0_i32 : i32, i32
  }
  func.func @transform_3(%arg0: i32) -> (i32, i32, i32) {
    %c0_i32 = arith.constant 0 : i32
    %c0_i32_0 = arith.constant 0 : i32
    %c0_i32_1 = arith.constant 0 : i32
    return %arg0, %c0_i32, %c0_i32_0 : i32, i32, i32
  }
}

module attributes {stable_mosaic.version = 11 : i64} {
  func.func @_bn_relu_kernel(%arg0: i32, %arg1: memref<128x8xbf16, #tpu.memory_space<vmem>>, %arg2: memref<1x8xf32, #tpu.memory_space<vmem>>, %arg3: memref<1x8xf32, #tpu.memory_space<vmem>>, %arg4: memref<1x8xf32, #tpu.memory_space<vmem>>, %arg5: memref<1x8xf32, #tpu.memory_space<vmem>>, %arg6: memref<128x8xbf16, #tpu.memory_space<vmem>>) attributes {dimension_semantics = [#tpu.dimension_semantics<parallel>], iteration_bounds = array<i64: 4>, scalar_prefetch = 0 : i64, scratch_operands = 0 : i64, tpu.core_type = #tpu.core_type<tc>, window_params = [{transform_indices = @transform_0, window_bounds = array<i64: 128, 8>}, {pipeline_mode = #tpu.pipeline_mode<synchronous>, transform_indices = @transform_1, window_bounds = array<i64: 1, 8>}, {pipeline_mode = #tpu.pipeline_mode<synchronous>, transform_indices = @transform_2, window_bounds = array<i64: 1, 8>}, {pipeline_mode = #tpu.pipeline_mode<synchronous>, transform_indices = @transform_3, window_bounds = array<i64: 1, 8>}, {pipeline_mode = #tpu.pipeline_mode<synchronous>, transform_indices = @transform_4, window_bounds = array<i64: 1, 8>}, {transform_indices = @transform_5, window_bounds = array<i64: 128, 8>}]} {
    %c0 = arith.constant 0 : index
    %c0_0 = arith.constant 0 : index
    %0 = vector.load %arg2[%c0, %c0_0] : memref<1x8xf32, #tpu.memory_space<vmem>>, vector<1x8xf32>
    %c0_1 = arith.constant 0 : index
    %c0_2 = arith.constant 0 : index
    %1 = vector.load %arg3[%c0_1, %c0_2] : memref<1x8xf32, #tpu.memory_space<vmem>>, vector<1x8xf32>
    %2 = arith.mulf %0, %0 : vector<1x8xf32>
    %3 = arith.subf %1, %2 : vector<1x8xf32>
    %c0_3 = arith.constant 0 : index
    %c0_4 = arith.constant 0 : index
    %4 = vector.load %arg4[%c0_3, %c0_4] : memref<1x8xf32, #tpu.memory_space<vmem>>, vector<1x8xf32>
    %cst = arith.constant 9.99999974E-6 : f32
    %5 = vector.broadcast %cst : f32 to vector<1x8xf32>
    %6 = arith.addf %3, %5 : vector<1x8xf32>
    %7 = math.rsqrt %6 : vector<1x8xf32>
    %8 = arith.mulf %4, %7 : vector<1x8xf32>
    %c0_5 = arith.constant 0 : index
    %c0_6 = arith.constant 0 : index
    %9 = vector.load %arg5[%c0_5, %c0_6] : memref<1x8xf32, #tpu.memory_space<vmem>>, vector<1x8xf32>
    %10 = arith.mulf %0, %8 : vector<1x8xf32>
    %11 = arith.subf %9, %10 : vector<1x8xf32>
    %c0_7 = arith.constant 0 : index
    %c0_8 = arith.constant 0 : index
    %12 = vector.load %arg1[%c0_7, %c0_8] : memref<128x8xbf16, #tpu.memory_space<vmem>>, vector<128x8xbf16>
    %13 = arith.extf %12 : vector<128x8xbf16> to vector<128x8xf32>
    %14 = vector.broadcast %8 : vector<1x8xf32> to vector<128x8xf32>
    %15 = arith.mulf %13, %14 : vector<128x8xf32>
    %16 = vector.broadcast %11 : vector<1x8xf32> to vector<128x8xf32>
    %17 = arith.addf %15, %16 : vector<128x8xf32>
    %cst_9 = arith.constant 0.000000e+00 : f32
    %18 = vector.broadcast %cst_9 : f32 to vector<128x8xf32>
    %19 = arith.maximumf %17, %18 : vector<128x8xf32>
    %20 = arith.truncf %19 : vector<128x8xf32> to vector<128x8xbf16>
    %c0_10 = arith.constant 0 : index
    %c0_11 = arith.constant 0 : index
    %21 = vector.load %arg6[%c0_10, %c0_11] : memref<128x8xbf16, #tpu.memory_space<vmem>>, vector<128x8xbf16>
    tpu.vector_store %arg6[%c0_10, %c0_11], %20 {strides = array<i32>} : memref<128x8xbf16, #tpu.memory_space<vmem>>, vector<128x8xbf16>,
    return
  }
  func.func @transform_0(%arg0: i32) -> (i32, i32) {
    %c0_i32 = arith.constant 0 : i32
    %c0_i32_0 = arith.constant 0 : i32
    return %arg0, %c0_i32 : i32, i32
  }
  func.func @transform_1(%arg0: i32) -> (i32, i32) {
    %c0_i32 = arith.constant 0 : i32
    %c0_i32_0 = arith.constant 0 : i32
    %c0_i32_1 = arith.constant 0 : i32
    return %c0_i32, %c0_i32_0 : i32, i32
  }
  func.func @transform_2(%arg0: i32) -> (i32, i32) {
    %c0_i32 = arith.constant 0 : i32
    %c0_i32_0 = arith.constant 0 : i32
    %c0_i32_1 = arith.constant 0 : i32
    return %c0_i32, %c0_i32_0 : i32, i32
  }
  func.func @transform_3(%arg0: i32) -> (i32, i32) {
    %c0_i32 = arith.constant 0 : i32
    %c0_i32_0 = arith.constant 0 : i32
    %c0_i32_1 = arith.constant 0 : i32
    return %c0_i32, %c0_i32_0 : i32, i32
  }
  func.func @transform_4(%arg0: i32) -> (i32, i32) {
    %c0_i32 = arith.constant 0 : i32
    %c0_i32_0 = arith.constant 0 : i32
    %c0_i32_1 = arith.constant 0 : i32
    return %c0_i32, %c0_i32_0 : i32, i32
  }
  func.func @transform_5(%arg0: i32) -> (i32, i32) {
    %c0_i32 = arith.constant 0 : i32
    %c0_i32_0 = arith.constant 0 : i32
    return %arg0, %c0_i32 : i32, i32
  }
}

module attributes {stable_mosaic.version = 11 : i64} {
  func.func @_gemm_stats_kernel(%arg0: i32, %arg1: memref<128x72xbf16, #tpu.memory_space<vmem>>, %arg2: memref<72x8xbf16, #tpu.memory_space<vmem>>, %arg3: memref<128x8xbf16, #tpu.memory_space<vmem>>, %arg4: memref<1x2x8xf32, #tpu.memory_space<vmem>>) attributes {dimension_semantics = [#tpu.dimension_semantics<parallel>], iteration_bounds = array<i64: 4>, scalar_prefetch = 0 : i64, scratch_operands = 0 : i64, tpu.core_type = #tpu.core_type<tc>, window_params = [{transform_indices = @transform_0, window_bounds = array<i64: 128, 72>}, {pipeline_mode = #tpu.pipeline_mode<synchronous>, transform_indices = @transform_1, window_bounds = array<i64: 72, 8>}, {transform_indices = @transform_2, window_bounds = array<i64: 128, 8>}, {transform_indices = @transform_3, window_bounds = array<i64: 1, 2, 8>}]} {
    %c0 = arith.constant 0 : index
    %c0_0 = arith.constant 0 : index
    %0 = vector.load %arg1[%c0, %c0_0] : memref<128x72xbf16, #tpu.memory_space<vmem>>, vector<128x72xbf16>
    %c0_1 = arith.constant 0 : index
    %c0_2 = arith.constant 0 : index
    %1 = vector.load %arg2[%c0_1, %c0_2] : memref<72x8xbf16, #tpu.memory_space<vmem>>, vector<72x8xbf16>
    %cst = arith.constant dense<0.000000e+00> : vector<128x8xf32>
    %2 = tpu.matmul %0, %1, %cst {dimension_numbers = #tpu.dot_dimension_numbers<[1], [0], [0], [1], [0, 0, 1, 1], [], []>} : vector<128x72xbf16>, vector<72x8xbf16>, vector<128x8xf32> -> vector<128x8xf32>
    %3 = arith.truncf %2 : vector<128x8xf32> to vector<128x8xbf16>
    %c0_3 = arith.constant 0 : index
    %c0_4 = arith.constant 0 : index
    %4 = vector.load %arg3[%c0_3, %c0_4] : memref<128x8xbf16, #tpu.memory_space<vmem>>, vector<128x8xbf16>
    tpu.vector_store %arg3[%c0_3, %c0_4], %3 {strides = array<i32>} : memref<128x8xbf16, #tpu.memory_space<vmem>>, vector<128x8xbf16>,
    %cst_5 = arith.constant dense<0.000000e+00> : vector<8xf32>
    %5 = vector.multi_reduction <add>, %2, %cst_5 [0] : vector<128x8xf32> to vector<8xf32>
    %6 = vector.shape_cast %5 : vector<8xf32> to vector<1x8xf32>
    %7 = arith.mulf %2, %2 : vector<128x8xf32>
    %cst_6 = arith.constant dense<0.000000e+00> : vector<8xf32>
    %8 = vector.multi_reduction <add>, %7, %cst_6 [0] : vector<128x8xf32> to vector<8xf32>
    %9 = vector.shape_cast %8 : vector<8xf32> to vector<1x8xf32>
    %10 = vector.shape_cast %6 : vector<1x8xf32> to vector<1x1x8xf32>
    %11 = vector.shape_cast %9 : vector<1x8xf32> to vector<1x1x8xf32>
    %12 = tpu.concatenate %10, %11 in 1 : vector<1x1x8xf32>, vector<1x1x8xf32> -> vector<1x2x8xf32>
    %c0_7 = arith.constant 0 : index
    %c0_8 = arith.constant 0 : index
    %c0_9 = arith.constant 0 : index
    %13 = vector.load %arg4[%c0_7, %c0_8, %c0_9] : memref<1x2x8xf32, #tpu.memory_space<vmem>>, vector<1x2x8xf32>
    tpu.vector_store %arg4[%c0_7, %c0_8, %c0_9], %12 {strides = array<i32>} : memref<1x2x8xf32, #tpu.memory_space<vmem>>, vector<1x2x8xf32>,
    return
  }
  func.func @transform_0(%arg0: i32) -> (i32, i32) {
    %c0_i32 = arith.constant 0 : i32
    %c0_i32_0 = arith.constant 0 : i32
    return %arg0, %c0_i32 : i32, i32
  }
  func.func @transform_1(%arg0: i32) -> (i32, i32) {
    %c0_i32 = arith.constant 0 : i32
    %c0_i32_0 = arith.constant 0 : i32
    %c0_i32_1 = arith.constant 0 : i32
    return %c0_i32, %c0_i32_0 : i32, i32
  }
  func.func @transform_2(%arg0: i32) -> (i32, i32) {
    %c0_i32 = arith.constant 0 : i32
    %c0_i32_0 = arith.constant 0 : i32
    return %arg0, %c0_i32 : i32, i32
  }
  func.func @transform_3(%arg0: i32) -> (i32, i32, i32) {
    %c0_i32 = arith.constant 0 : i32
    %c0_i32_0 = arith.constant 0 : i32
    %c0_i32_1 = arith.constant 0 : i32
    return %arg0, %c0_i32, %c0_i32_0 : i32, i32, i32
  }
}

module attributes {stable_mosaic.version = 11 : i64} {
  func.func @_gemm_stats_kernel(%arg0: i32, %arg1: memref<32x200xbf16, #tpu.memory_space<vmem>>, %arg2: memref<200x16xbf16, #tpu.memory_space<vmem>>, %arg3: memref<32x16xbf16, #tpu.memory_space<vmem>>, %arg4: memref<1x2x16xf32, #tpu.memory_space<vmem>>) attributes {dimension_semantics = [#tpu.dimension_semantics<parallel>], iteration_bounds = array<i64: 4>, scalar_prefetch = 0 : i64, scratch_operands = 0 : i64, tpu.core_type = #tpu.core_type<tc>, window_params = [{transform_indices = @transform_0, window_bounds = array<i64: 32, 200>}, {pipeline_mode = #tpu.pipeline_mode<synchronous>, transform_indices = @transform_1, window_bounds = array<i64: 200, 16>}, {transform_indices = @transform_2, window_bounds = array<i64: 32, 16>}, {transform_indices = @transform_3, window_bounds = array<i64: 1, 2, 16>}]} {
    %c0 = arith.constant 0 : index
    %c0_0 = arith.constant 0 : index
    %0 = vector.load %arg1[%c0, %c0_0] : memref<32x200xbf16, #tpu.memory_space<vmem>>, vector<32x200xbf16>
    %c0_1 = arith.constant 0 : index
    %c0_2 = arith.constant 0 : index
    %1 = vector.load %arg2[%c0_1, %c0_2] : memref<200x16xbf16, #tpu.memory_space<vmem>>, vector<200x16xbf16>
    %cst = arith.constant dense<0.000000e+00> : vector<32x16xf32>
    %2 = tpu.matmul %0, %1, %cst {dimension_numbers = #tpu.dot_dimension_numbers<[1], [0], [0], [1], [0, 0, 1, 1], [], []>} : vector<32x200xbf16>, vector<200x16xbf16>, vector<32x16xf32> -> vector<32x16xf32>
    %3 = arith.truncf %2 : vector<32x16xf32> to vector<32x16xbf16>
    %c0_3 = arith.constant 0 : index
    %c0_4 = arith.constant 0 : index
    %4 = vector.load %arg3[%c0_3, %c0_4] : memref<32x16xbf16, #tpu.memory_space<vmem>>, vector<32x16xbf16>
    tpu.vector_store %arg3[%c0_3, %c0_4], %3 {strides = array<i32>} : memref<32x16xbf16, #tpu.memory_space<vmem>>, vector<32x16xbf16>,
    %cst_5 = arith.constant dense<0.000000e+00> : vector<16xf32>
    %5 = vector.multi_reduction <add>, %2, %cst_5 [0] : vector<32x16xf32> to vector<16xf32>
    %6 = vector.shape_cast %5 : vector<16xf32> to vector<1x16xf32>
    %7 = arith.mulf %2, %2 : vector<32x16xf32>
    %cst_6 = arith.constant dense<0.000000e+00> : vector<16xf32>
    %8 = vector.multi_reduction <add>, %7, %cst_6 [0] : vector<32x16xf32> to vector<16xf32>
    %9 = vector.shape_cast %8 : vector<16xf32> to vector<1x16xf32>
    %10 = vector.shape_cast %6 : vector<1x16xf32> to vector<1x1x16xf32>
    %11 = vector.shape_cast %9 : vector<1x16xf32> to vector<1x1x16xf32>
    %12 = tpu.concatenate %10, %11 in 1 : vector<1x1x16xf32>, vector<1x1x16xf32> -> vector<1x2x16xf32>
    %c0_7 = arith.constant 0 : index
    %c0_8 = arith.constant 0 : index
    %c0_9 = arith.constant 0 : index
    %13 = vector.load %arg4[%c0_7, %c0_8, %c0_9] : memref<1x2x16xf32, #tpu.memory_space<vmem>>, vector<1x2x16xf32>
    tpu.vector_store %arg4[%c0_7, %c0_8, %c0_9], %12 {strides = array<i32>} : memref<1x2x16xf32, #tpu.memory_space<vmem>>, vector<1x2x16xf32>,
    return
  }
  func.func @transform_0(%arg0: i32) -> (i32, i32) {
    %c0_i32 = arith.constant 0 : i32
    %c0_i32_0 = arith.constant 0 : i32
    return %arg0, %c0_i32 : i32, i32
  }
  func.func @transform_1(%arg0: i32) -> (i32, i32) {
    %c0_i32 = arith.constant 0 : i32
    %c0_i32_0 = arith.constant 0 : i32
    %c0_i32_1 = arith.constant 0 : i32
    return %c0_i32, %c0_i32_0 : i32, i32
  }
  func.func @transform_2(%arg0: i32) -> (i32, i32) {
    %c0_i32 = arith.constant 0 : i32
    %c0_i32_0 = arith.constant 0 : i32
    return %arg0, %c0_i32 : i32, i32
  }
  func.func @transform_3(%arg0: i32) -> (i32, i32, i32) {
    %c0_i32 = arith.constant 0 : i32
    %c0_i32_0 = arith.constant 0 : i32
    %c0_i32_1 = arith.constant 0 : i32
    return %arg0, %c0_i32, %c0_i32_0 : i32, i32, i32
  }
}

module attributes {stable_mosaic.version = 11 : i64} {
  func.func @_bn_relu_kernel(%arg0: i32, %arg1: memref<32x16xbf16, #tpu.memory_space<vmem>>, %arg2: memref<1x16xf32, #tpu.memory_space<vmem>>, %arg3: memref<1x16xf32, #tpu.memory_space<vmem>>, %arg4: memref<1x16xf32, #tpu.memory_space<vmem>>, %arg5: memref<1x16xf32, #tpu.memory_space<vmem>>, %arg6: memref<32x16xbf16, #tpu.memory_space<vmem>>) attributes {dimension_semantics = [#tpu.dimension_semantics<parallel>], iteration_bounds = array<i64: 4>, scalar_prefetch = 0 : i64, scratch_operands = 0 : i64, tpu.core_type = #tpu.core_type<tc>, window_params = [{transform_indices = @transform_0, window_bounds = array<i64: 32, 16>}, {pipeline_mode = #tpu.pipeline_mode<synchronous>, transform_indices = @transform_1, window_bounds = array<i64: 1, 16>}, {pipeline_mode = #tpu.pipeline_mode<synchronous>, transform_indices = @transform_2, window_bounds = array<i64: 1, 16>}, {pipeline_mode = #tpu.pipeline_mode<synchronous>, transform_indices = @transform_3, window_bounds = array<i64: 1, 16>}, {pipeline_mode = #tpu.pipeline_mode<synchronous>, transform_indices = @transform_4, window_bounds = array<i64: 1, 16>}, {transform_indices = @transform_5, window_bounds = array<i64: 32, 16>}]} {
    %c0 = arith.constant 0 : index
    %c0_0 = arith.constant 0 : index
    %0 = vector.load %arg2[%c0, %c0_0] : memref<1x16xf32, #tpu.memory_space<vmem>>, vector<1x16xf32>
    %c0_1 = arith.constant 0 : index
    %c0_2 = arith.constant 0 : index
    %1 = vector.load %arg3[%c0_1, %c0_2] : memref<1x16xf32, #tpu.memory_space<vmem>>, vector<1x16xf32>
    %2 = arith.mulf %0, %0 : vector<1x16xf32>
    %3 = arith.subf %1, %2 : vector<1x16xf32>
    %c0_3 = arith.constant 0 : index
    %c0_4 = arith.constant 0 : index
    %4 = vector.load %arg4[%c0_3, %c0_4] : memref<1x16xf32, #tpu.memory_space<vmem>>, vector<1x16xf32>
    %cst = arith.constant 9.99999974E-6 : f32
    %5 = vector.broadcast %cst : f32 to vector<1x16xf32>
    %6 = arith.addf %3, %5 : vector<1x16xf32>
    %7 = math.rsqrt %6 : vector<1x16xf32>
    %8 = arith.mulf %4, %7 : vector<1x16xf32>
    %c0_5 = arith.constant 0 : index
    %c0_6 = arith.constant 0 : index
    %9 = vector.load %arg5[%c0_5, %c0_6] : memref<1x16xf32, #tpu.memory_space<vmem>>, vector<1x16xf32>
    %10 = arith.mulf %0, %8 : vector<1x16xf32>
    %11 = arith.subf %9, %10 : vector<1x16xf32>
    %c0_7 = arith.constant 0 : index
    %c0_8 = arith.constant 0 : index
    %12 = vector.load %arg1[%c0_7, %c0_8] : memref<32x16xbf16, #tpu.memory_space<vmem>>, vector<32x16xbf16>
    %13 = arith.extf %12 : vector<32x16xbf16> to vector<32x16xf32>
    %14 = vector.broadcast %8 : vector<1x16xf32> to vector<32x16xf32>
    %15 = arith.mulf %13, %14 : vector<32x16xf32>
    %16 = vector.broadcast %11 : vector<1x16xf32> to vector<32x16xf32>
    %17 = arith.addf %15, %16 : vector<32x16xf32>
    %cst_9 = arith.constant 0.000000e+00 : f32
    %18 = vector.broadcast %cst_9 : f32 to vector<32x16xf32>
    %19 = arith.maximumf %17, %18 : vector<32x16xf32>
    %20 = arith.truncf %19 : vector<32x16xf32> to vector<32x16xbf16>
    %c0_10 = arith.constant 0 : index
    %c0_11 = arith.constant 0 : index
    %21 = vector.load %arg6[%c0_10, %c0_11] : memref<32x16xbf16, #tpu.memory_space<vmem>>, vector<32x16xbf16>
    tpu.vector_store %arg6[%c0_10, %c0_11], %20 {strides = array<i32>} : memref<32x16xbf16, #tpu.memory_space<vmem>>, vector<32x16xbf16>,
    return
  }
  func.func @transform_0(%arg0: i32) -> (i32, i32) {
    %c0_i32 = arith.constant 0 : i32
    %c0_i32_0 = arith.constant 0 : i32
    return %arg0, %c0_i32 : i32, i32
  }
  func.func @transform_1(%arg0: i32) -> (i32, i32) {
    %c0_i32 = arith.constant 0 : i32
    %c0_i32_0 = arith.constant 0 : i32
    %c0_i32_1 = arith.constant 0 : i32
    return %c0_i32, %c0_i32_0 : i32, i32
  }
  func.func @transform_2(%arg0: i32) -> (i32, i32) {
    %c0_i32 = arith.constant 0 : i32
    %c0_i32_0 = arith.constant 0 : i32
    %c0_i32_1 = arith.constant 0 : i32
    return %c0_i32, %c0_i32_0 : i32, i32
  }
  func.func @transform_3(%arg0: i32) -> (i32, i32) {
    %c0_i32 = arith.constant 0 : i32
    %c0_i32_0 = arith.constant 0 : i32
    %c0_i32_1 = arith.constant 0 : i32
    return %c0_i32, %c0_i32_0 : i32, i32
  }
  func.func @transform_4(%arg0: i32) -> (i32, i32) {
    %c0_i32 = arith.constant 0 : i32
    %c0_i32_0 = arith.constant 0 : i32
    %c0_i32_1 = arith.constant 0 : i32
    return %c0_i32, %c0_i32_0 : i32, i32
  }
  func.func @transform_5(%arg0: i32) -> (i32, i32) {
    %c0_i32 = arith.constant 0 : i32
    %c0_i32_0 = arith.constant 0 : i32
    return %arg0, %c0_i32 : i32, i32
  }
}

module attributes {stable_mosaic.version = 11 : i64} {
  func.func @_gemm_stats_kernel(%arg0: i32, %arg1: memref<32x144xbf16, #tpu.memory_space<vmem>>, %arg2: memref<144x16xbf16, #tpu.memory_space<vmem>>, %arg3: memref<32x16xbf16, #tpu.memory_space<vmem>>, %arg4: memref<1x2x16xf32, #tpu.memory_space<vmem>>) attributes {dimension_semantics = [#tpu.dimension_semantics<parallel>], iteration_bounds = array<i64: 4>, scalar_prefetch = 0 : i64, scratch_operands = 0 : i64, tpu.core_type = #tpu.core_type<tc>, window_params = [{transform_indices = @transform_0, window_bounds = array<i64: 32, 144>}, {pipeline_mode = #tpu.pipeline_mode<synchronous>, transform_indices = @transform_1, window_bounds = array<i64: 144, 16>}, {transform_indices = @transform_2, window_bounds = array<i64: 32, 16>}, {transform_indices = @transform_3, window_bounds = array<i64: 1, 2, 16>}]} {
    %c0 = arith.constant 0 : index
    %c0_0 = arith.constant 0 : index
    %0 = vector.load %arg1[%c0, %c0_0] : memref<32x144xbf16, #tpu.memory_space<vmem>>, vector<32x144xbf16>
    %c0_1 = arith.constant 0 : index
    %c0_2 = arith.constant 0 : index
    %1 = vector.load %arg2[%c0_1, %c0_2] : memref<144x16xbf16, #tpu.memory_space<vmem>>, vector<144x16xbf16>
    %cst = arith.constant dense<0.000000e+00> : vector<32x16xf32>
    %2 = tpu.matmul %0, %1, %cst {dimension_numbers = #tpu.dot_dimension_numbers<[1], [0], [0], [1], [0, 0, 1, 1], [], []>} : vector<32x144xbf16>, vector<144x16xbf16>, vector<32x16xf32> -> vector<32x16xf32>
    %3 = arith.truncf %2 : vector<32x16xf32> to vector<32x16xbf16>
    %c0_3 = arith.constant 0 : index
    %c0_4 = arith.constant 0 : index
    %4 = vector.load %arg3[%c0_3, %c0_4] : memref<32x16xbf16, #tpu.memory_space<vmem>>, vector<32x16xbf16>
    tpu.vector_store %arg3[%c0_3, %c0_4], %3 {strides = array<i32>} : memref<32x16xbf16, #tpu.memory_space<vmem>>, vector<32x16xbf16>,
    %cst_5 = arith.constant dense<0.000000e+00> : vector<16xf32>
    %5 = vector.multi_reduction <add>, %2, %cst_5 [0] : vector<32x16xf32> to vector<16xf32>
    %6 = vector.shape_cast %5 : vector<16xf32> to vector<1x16xf32>
    %7 = arith.mulf %2, %2 : vector<32x16xf32>
    %cst_6 = arith.constant dense<0.000000e+00> : vector<16xf32>
    %8 = vector.multi_reduction <add>, %7, %cst_6 [0] : vector<32x16xf32> to vector<16xf32>
    %9 = vector.shape_cast %8 : vector<16xf32> to vector<1x16xf32>
    %10 = vector.shape_cast %6 : vector<1x16xf32> to vector<1x1x16xf32>
    %11 = vector.shape_cast %9 : vector<1x16xf32> to vector<1x1x16xf32>
    %12 = tpu.concatenate %10, %11 in 1 : vector<1x1x16xf32>, vector<1x1x16xf32> -> vector<1x2x16xf32>
    %c0_7 = arith.constant 0 : index
    %c0_8 = arith.constant 0 : index
    %c0_9 = arith.constant 0 : index
    %13 = vector.load %arg4[%c0_7, %c0_8, %c0_9] : memref<1x2x16xf32, #tpu.memory_space<vmem>>, vector<1x2x16xf32>
    tpu.vector_store %arg4[%c0_7, %c0_8, %c0_9], %12 {strides = array<i32>} : memref<1x2x16xf32, #tpu.memory_space<vmem>>, vector<1x2x16xf32>,
    return
  }
  func.func @transform_0(%arg0: i32) -> (i32, i32) {
    %c0_i32 = arith.constant 0 : i32
    %c0_i32_0 = arith.constant 0 : i32
    return %arg0, %c0_i32 : i32, i32
  }
  func.func @transform_1(%arg0: i32) -> (i32, i32) {
    %c0_i32 = arith.constant 0 : i32
    %c0_i32_0 = arith.constant 0 : i32
    %c0_i32_1 = arith.constant 0 : i32
    return %c0_i32, %c0_i32_0 : i32, i32
  }
  func.func @transform_2(%arg0: i32) -> (i32, i32) {
    %c0_i32 = arith.constant 0 : i32
    %c0_i32_0 = arith.constant 0 : i32
    return %arg0, %c0_i32 : i32, i32
  }
  func.func @transform_3(%arg0: i32) -> (i32, i32, i32) {
    %c0_i32 = arith.constant 0 : i32
    %c0_i32_0 = arith.constant 0 : i32
    %c0_i32_1 = arith.constant 0 : i32
    return %arg0, %c0_i32, %c0_i32_0 : i32, i32, i32
  }
}

module attributes {stable_mosaic.version = 11 : i64} {
  func.func @_bn_relu_kernel(%arg0: i32, %arg1: memref<16x32xbf16, #tpu.memory_space<vmem>>, %arg2: memref<1x32xf32, #tpu.memory_space<vmem>>, %arg3: memref<1x32xf32, #tpu.memory_space<vmem>>, %arg4: memref<1x32xf32, #tpu.memory_space<vmem>>, %arg5: memref<1x32xf32, #tpu.memory_space<vmem>>, %arg6: memref<16x32xbf16, #tpu.memory_space<vmem>>) attributes {dimension_semantics = [#tpu.dimension_semantics<parallel>], iteration_bounds = array<i64: 2>, scalar_prefetch = 0 : i64, scratch_operands = 0 : i64, tpu.core_type = #tpu.core_type<tc>, window_params = [{transform_indices = @transform_0, window_bounds = array<i64: 16, 32>}, {pipeline_mode = #tpu.pipeline_mode<synchronous>, transform_indices = @transform_1, window_bounds = array<i64: 1, 32>}, {pipeline_mode = #tpu.pipeline_mode<synchronous>, transform_indices = @transform_2, window_bounds = array<i64: 1, 32>}, {pipeline_mode = #tpu.pipeline_mode<synchronous>, transform_indices = @transform_3, window_bounds = array<i64: 1, 32>}, {pipeline_mode = #tpu.pipeline_mode<synchronous>, transform_indices = @transform_4, window_bounds = array<i64: 1, 32>}, {transform_indices = @transform_5, window_bounds = array<i64: 16, 32>}]} {
    %c0 = arith.constant 0 : index
    %c0_0 = arith.constant 0 : index
    %0 = vector.load %arg2[%c0, %c0_0] : memref<1x32xf32, #tpu.memory_space<vmem>>, vector<1x32xf32>
    %c0_1 = arith.constant 0 : index
    %c0_2 = arith.constant 0 : index
    %1 = vector.load %arg3[%c0_1, %c0_2] : memref<1x32xf32, #tpu.memory_space<vmem>>, vector<1x32xf32>
    %2 = arith.mulf %0, %0 : vector<1x32xf32>
    %3 = arith.subf %1, %2 : vector<1x32xf32>
    %c0_3 = arith.constant 0 : index
    %c0_4 = arith.constant 0 : index
    %4 = vector.load %arg4[%c0_3, %c0_4] : memref<1x32xf32, #tpu.memory_space<vmem>>, vector<1x32xf32>
    %cst = arith.constant 9.99999974E-6 : f32
    %5 = vector.broadcast %cst : f32 to vector<1x32xf32>
    %6 = arith.addf %3, %5 : vector<1x32xf32>
    %7 = math.rsqrt %6 : vector<1x32xf32>
    %8 = arith.mulf %4, %7 : vector<1x32xf32>
    %c0_5 = arith.constant 0 : index
    %c0_6 = arith.constant 0 : index
    %9 = vector.load %arg5[%c0_5, %c0_6] : memref<1x32xf32, #tpu.memory_space<vmem>>, vector<1x32xf32>
    %10 = arith.mulf %0, %8 : vector<1x32xf32>
    %11 = arith.subf %9, %10 : vector<1x32xf32>
    %c0_7 = arith.constant 0 : index
    %c0_8 = arith.constant 0 : index
    %12 = vector.load %arg1[%c0_7, %c0_8] : memref<16x32xbf16, #tpu.memory_space<vmem>>, vector<16x32xbf16>
    %13 = arith.extf %12 : vector<16x32xbf16> to vector<16x32xf32>
    %14 = vector.broadcast %8 : vector<1x32xf32> to vector<16x32xf32>
    %15 = arith.mulf %13, %14 : vector<16x32xf32>
    %16 = vector.broadcast %11 : vector<1x32xf32> to vector<16x32xf32>
    %17 = arith.addf %15, %16 : vector<16x32xf32>
    %cst_9 = arith.constant 0.000000e+00 : f32
    %18 = vector.broadcast %cst_9 : f32 to vector<16x32xf32>
    %19 = arith.maximumf %17, %18 : vector<16x32xf32>
    %20 = arith.truncf %19 : vector<16x32xf32> to vector<16x32xbf16>
    %c0_10 = arith.constant 0 : index
    %c0_11 = arith.constant 0 : index
    %21 = vector.load %arg6[%c0_10, %c0_11] : memref<16x32xbf16, #tpu.memory_space<vmem>>, vector<16x32xbf16>
    tpu.vector_store %arg6[%c0_10, %c0_11], %20 {strides = array<i32>} : memref<16x32xbf16, #tpu.memory_space<vmem>>, vector<16x32xbf16>,
    return
  }
  func.func @transform_0(%arg0: i32) -> (i32, i32) {
    %c0_i32 = arith.constant 0 : i32
    %c0_i32_0 = arith.constant 0 : i32
    return %arg0, %c0_i32 : i32, i32
  }
  func.func @transform_1(%arg0: i32) -> (i32, i32) {
    %c0_i32 = arith.constant 0 : i32
    %c0_i32_0 = arith.constant 0 : i32
    %c0_i32_1 = arith.constant 0 : i32
    return %c0_i32, %c0_i32_0 : i32, i32
  }
  func.func @transform_2(%arg0: i32) -> (i32, i32) {
    %c0_i32 = arith.constant 0 : i32
    %c0_i32_0 = arith.constant 0 : i32
    %c0_i32_1 = arith.constant 0 : i32
    return %c0_i32, %c0_i32_0 : i32, i32
  }
  func.func @transform_3(%arg0: i32) -> (i32, i32) {
    %c0_i32 = arith.constant 0 : i32
    %c0_i32_0 = arith.constant 0 : i32
    %c0_i32_1 = arith.constant 0 : i32
    return %c0_i32, %c0_i32_0 : i32, i32
  }
  func.func @transform_4(%arg0: i32) -> (i32, i32) {
    %c0_i32 = arith.constant 0 : i32
    %c0_i32_0 = arith.constant 0 : i32
    %c0_i32_1 = arith.constant 0 : i32
    return %c0_i32, %c0_i32_0 : i32, i32
  }
  func.func @transform_5(%arg0: i32) -> (i32, i32) {
    %c0_i32 = arith.constant 0 : i32
    %c0_i32_0 = arith.constant 0 : i32
    return %arg0, %c0_i32 : i32, i32
  }
}

module attributes {stable_mosaic.version = 11 : i64} {
  func.func @_gemm_stats_kernel(%arg0: i32, %arg1: memref<16x400xbf16, #tpu.memory_space<vmem>>, %arg2: memref<400x32xbf16, #tpu.memory_space<vmem>>, %arg3: memref<16x32xbf16, #tpu.memory_space<vmem>>, %arg4: memref<1x2x32xf32, #tpu.memory_space<vmem>>) attributes {dimension_semantics = [#tpu.dimension_semantics<parallel>], iteration_bounds = array<i64: 2>, scalar_prefetch = 0 : i64, scratch_operands = 0 : i64, tpu.core_type = #tpu.core_type<tc>, window_params = [{transform_indices = @transform_0, window_bounds = array<i64: 16, 400>}, {pipeline_mode = #tpu.pipeline_mode<synchronous>, transform_indices = @transform_1, window_bounds = array<i64: 400, 32>}, {transform_indices = @transform_2, window_bounds = array<i64: 16, 32>}, {transform_indices = @transform_3, window_bounds = array<i64: 1, 2, 32>}]} {
    %c0 = arith.constant 0 : index
    %c0_0 = arith.constant 0 : index
    %0 = vector.load %arg1[%c0, %c0_0] : memref<16x400xbf16, #tpu.memory_space<vmem>>, vector<16x400xbf16>
    %c0_1 = arith.constant 0 : index
    %c0_2 = arith.constant 0 : index
    %1 = vector.load %arg2[%c0_1, %c0_2] : memref<400x32xbf16, #tpu.memory_space<vmem>>, vector<400x32xbf16>
    %cst = arith.constant dense<0.000000e+00> : vector<16x32xf32>
    %2 = tpu.matmul %0, %1, %cst {dimension_numbers = #tpu.dot_dimension_numbers<[1], [0], [0], [1], [0, 0, 1, 1], [], []>} : vector<16x400xbf16>, vector<400x32xbf16>, vector<16x32xf32> -> vector<16x32xf32>
    %3 = arith.truncf %2 : vector<16x32xf32> to vector<16x32xbf16>
    %c0_3 = arith.constant 0 : index
    %c0_4 = arith.constant 0 : index
    %4 = vector.load %arg3[%c0_3, %c0_4] : memref<16x32xbf16, #tpu.memory_space<vmem>>, vector<16x32xbf16>
    tpu.vector_store %arg3[%c0_3, %c0_4], %3 {strides = array<i32>} : memref<16x32xbf16, #tpu.memory_space<vmem>>, vector<16x32xbf16>,
    %cst_5 = arith.constant dense<0.000000e+00> : vector<32xf32>
    %5 = vector.multi_reduction <add>, %2, %cst_5 [0] : vector<16x32xf32> to vector<32xf32>
    %6 = vector.shape_cast %5 : vector<32xf32> to vector<1x32xf32>
    %7 = arith.mulf %2, %2 : vector<16x32xf32>
    %cst_6 = arith.constant dense<0.000000e+00> : vector<32xf32>
    %8 = vector.multi_reduction <add>, %7, %cst_6 [0] : vector<16x32xf32> to vector<32xf32>
    %9 = vector.shape_cast %8 : vector<32xf32> to vector<1x32xf32>
    %10 = vector.shape_cast %6 : vector<1x32xf32> to vector<1x1x32xf32>
    %11 = vector.shape_cast %9 : vector<1x32xf32> to vector<1x1x32xf32>
    %12 = tpu.concatenate %10, %11 in 1 : vector<1x1x32xf32>, vector<1x1x32xf32> -> vector<1x2x32xf32>
    %c0_7 = arith.constant 0 : index
    %c0_8 = arith.constant 0 : index
    %c0_9 = arith.constant 0 : index
    %13 = vector.load %arg4[%c0_7, %c0_8, %c0_9] : memref<1x2x32xf32, #tpu.memory_space<vmem>>, vector<1x2x32xf32>
    tpu.vector_store %arg4[%c0_7, %c0_8, %c0_9], %12 {strides = array<i32>} : memref<1x2x32xf32, #tpu.memory_space<vmem>>, vector<1x2x32xf32>,
    return
  }
  func.func @transform_0(%arg0: i32) -> (i32, i32) {
    %c0_i32 = arith.constant 0 : i32
    %c0_i32_0 = arith.constant 0 : i32
    return %arg0, %c0_i32 : i32, i32
  }
  func.func @transform_1(%arg0: i32) -> (i32, i32) {
    %c0_i32 = arith.constant 0 : i32
    %c0_i32_0 = arith.constant 0 : i32
    %c0_i32_1 = arith.constant 0 : i32
    return %c0_i32, %c0_i32_0 : i32, i32
  }
  func.func @transform_2(%arg0: i32) -> (i32, i32) {
    %c0_i32 = arith.constant 0 : i32
    %c0_i32_0 = arith.constant 0 : i32
    return %arg0, %c0_i32 : i32, i32
  }
  func.func @transform_3(%arg0: i32) -> (i32, i32, i32) {
    %c0_i32 = arith.constant 0 : i32
    %c0_i32_0 = arith.constant 0 : i32
    %c0_i32_1 = arith.constant 0 : i32
    return %arg0, %c0_i32, %c0_i32_0 : i32, i32, i32
  }
}

module attributes {stable_mosaic.version = 11 : i64} {
  func.func @_gemm_stats_kernel(%arg0: i32, %arg1: memref<16x288xbf16, #tpu.memory_space<vmem>>, %arg2: memref<288x32xbf16, #tpu.memory_space<vmem>>, %arg3: memref<16x32xbf16, #tpu.memory_space<vmem>>, %arg4: memref<1x2x32xf32, #tpu.memory_space<vmem>>) attributes {dimension_semantics = [#tpu.dimension_semantics<parallel>], iteration_bounds = array<i64: 2>, scalar_prefetch = 0 : i64, scratch_operands = 0 : i64, tpu.core_type = #tpu.core_type<tc>, window_params = [{transform_indices = @transform_0, window_bounds = array<i64: 16, 288>}, {pipeline_mode = #tpu.pipeline_mode<synchronous>, transform_indices = @transform_1, window_bounds = array<i64: 288, 32>}, {transform_indices = @transform_2, window_bounds = array<i64: 16, 32>}, {transform_indices = @transform_3, window_bounds = array<i64: 1, 2, 32>}]} {
    %c0 = arith.constant 0 : index
    %c0_0 = arith.constant 0 : index
    %0 = vector.load %arg1[%c0, %c0_0] : memref<16x288xbf16, #tpu.memory_space<vmem>>, vector<16x288xbf16>
    %c0_1 = arith.constant 0 : index
    %c0_2 = arith.constant 0 : index
    %1 = vector.load %arg2[%c0_1, %c0_2] : memref<288x32xbf16, #tpu.memory_space<vmem>>, vector<288x32xbf16>
    %cst = arith.constant dense<0.000000e+00> : vector<16x32xf32>
    %2 = tpu.matmul %0, %1, %cst {dimension_numbers = #tpu.dot_dimension_numbers<[1], [0], [0], [1], [0, 0, 1, 1], [], []>} : vector<16x288xbf16>, vector<288x32xbf16>, vector<16x32xf32> -> vector<16x32xf32>
    %3 = arith.truncf %2 : vector<16x32xf32> to vector<16x32xbf16>
    %c0_3 = arith.constant 0 : index
    %c0_4 = arith.constant 0 : index
    %4 = vector.load %arg3[%c0_3, %c0_4] : memref<16x32xbf16, #tpu.memory_space<vmem>>, vector<16x32xbf16>
    tpu.vector_store %arg3[%c0_3, %c0_4], %3 {strides = array<i32>} : memref<16x32xbf16, #tpu.memory_space<vmem>>, vector<16x32xbf16>,
    %cst_5 = arith.constant dense<0.000000e+00> : vector<32xf32>
    %5 = vector.multi_reduction <add>, %2, %cst_5 [0] : vector<16x32xf32> to vector<32xf32>
    %6 = vector.shape_cast %5 : vector<32xf32> to vector<1x32xf32>
    %7 = arith.mulf %2, %2 : vector<16x32xf32>
    %cst_6 = arith.constant dense<0.000000e+00> : vector<32xf32>
    %8 = vector.multi_reduction <add>, %7, %cst_6 [0] : vector<16x32xf32> to vector<32xf32>
    %9 = vector.shape_cast %8 : vector<32xf32> to vector<1x32xf32>
    %10 = vector.shape_cast %6 : vector<1x32xf32> to vector<1x1x32xf32>
    %11 = vector.shape_cast %9 : vector<1x32xf32> to vector<1x1x32xf32>
    %12 = tpu.concatenate %10, %11 in 1 : vector<1x1x32xf32>, vector<1x1x32xf32> -> vector<1x2x32xf32>
    %c0_7 = arith.constant 0 : index
    %c0_8 = arith.constant 0 : index
    %c0_9 = arith.constant 0 : index
    %13 = vector.load %arg4[%c0_7, %c0_8, %c0_9] : memref<1x2x32xf32, #tpu.memory_space<vmem>>, vector<1x2x32xf32>
    tpu.vector_store %arg4[%c0_7, %c0_8, %c0_9], %12 {strides = array<i32>} : memref<1x2x32xf32, #tpu.memory_space<vmem>>, vector<1x2x32xf32>,
    return
  }
  func.func @transform_0(%arg0: i32) -> (i32, i32) {
    %c0_i32 = arith.constant 0 : i32
    %c0_i32_0 = arith.constant 0 : i32
    return %arg0, %c0_i32 : i32, i32
  }
  func.func @transform_1(%arg0: i32) -> (i32, i32) {
    %c0_i32 = arith.constant 0 : i32
    %c0_i32_0 = arith.constant 0 : i32
    %c0_i32_1 = arith.constant 0 : i32
    return %c0_i32, %c0_i32_0 : i32, i32
  }
  func.func @transform_2(%arg0: i32) -> (i32, i32) {
    %c0_i32 = arith.constant 0 : i32
    %c0_i32_0 = arith.constant 0 : i32
    return %arg0, %c0_i32 : i32, i32
  }
  func.func @transform_3(%arg0: i32) -> (i32, i32, i32) {
    %c0_i32 = arith.constant 0 : i32
    %c0_i32_0 = arith.constant 0 : i32
    %c0_i32_1 = arith.constant 0 : i32
    return %arg0, %c0_i32, %c0_i32_0 : i32, i32, i32
  }
}

module attributes {stable_mosaic.version = 11 : i64} {
  func.func @_bn_relu_heads_kernel(%arg0: i32, %arg1: memref<16x32xbf16, #tpu.memory_space<vmem>>, %arg2: memref<1x32xf32, #tpu.memory_space<vmem>>, %arg3: memref<1x32xf32, #tpu.memory_space<vmem>>, %arg4: memref<1x32xf32, #tpu.memory_space<vmem>>, %arg5: memref<1x32xf32, #tpu.memory_space<vmem>>, %arg6: memref<32x2xbf16, #tpu.memory_space<vmem>>, %arg7: memref<1x2xf32, #tpu.memory_space<vmem>>, %arg8: memref<16x32xbf16, #tpu.memory_space<vmem>>, %arg9: memref<16x2xf32, #tpu.memory_space<vmem>>) attributes {dimension_semantics = [#tpu.dimension_semantics<parallel>], iteration_bounds = array<i64: 2>, scalar_prefetch = 0 : i64, scratch_operands = 0 : i64, tpu.core_type = #tpu.core_type<tc>, window_params = [{transform_indices = @transform_0, window_bounds = array<i64: 16, 32>}, {pipeline_mode = #tpu.pipeline_mode<synchronous>, transform_indices = @transform_1, window_bounds = array<i64: 1, 32>}, {pipeline_mode = #tpu.pipeline_mode<synchronous>, transform_indices = @transform_2, window_bounds = array<i64: 1, 32>}, {pipeline_mode = #tpu.pipeline_mode<synchronous>, transform_indices = @transform_3, window_bounds = array<i64: 1, 32>}, {pipeline_mode = #tpu.pipeline_mode<synchronous>, transform_indices = @transform_4, window_bounds = array<i64: 1, 32>}, {pipeline_mode = #tpu.pipeline_mode<synchronous>, transform_indices = @transform_5, window_bounds = array<i64: 32, 2>}, {pipeline_mode = #tpu.pipeline_mode<synchronous>, transform_indices = @transform_6, window_bounds = array<i64: 1, 2>}, {transform_indices = @transform_7, window_bounds = array<i64: 16, 32>}, {transform_indices = @transform_8, window_bounds = array<i64: 16, 2>}]} {
    %c0 = arith.constant 0 : index
    %c0_0 = arith.constant 0 : index
    %0 = vector.load %arg2[%c0, %c0_0] : memref<1x32xf32, #tpu.memory_space<vmem>>, vector<1x32xf32>
    %c0_1 = arith.constant 0 : index
    %c0_2 = arith.constant 0 : index
    %1 = vector.load %arg3[%c0_1, %c0_2] : memref<1x32xf32, #tpu.memory_space<vmem>>, vector<1x32xf32>
    %2 = arith.mulf %0, %0 : vector<1x32xf32>
    %3 = arith.subf %1, %2 : vector<1x32xf32>
    %c0_3 = arith.constant 0 : index
    %c0_4 = arith.constant 0 : index
    %4 = vector.load %arg4[%c0_3, %c0_4] : memref<1x32xf32, #tpu.memory_space<vmem>>, vector<1x32xf32>
    %cst = arith.constant 9.99999974E-6 : f32
    %5 = vector.broadcast %cst : f32 to vector<1x32xf32>
    %6 = arith.addf %3, %5 : vector<1x32xf32>
    %7 = math.rsqrt %6 : vector<1x32xf32>
    %8 = arith.mulf %4, %7 : vector<1x32xf32>
    %c0_5 = arith.constant 0 : index
    %c0_6 = arith.constant 0 : index
    %9 = vector.load %arg5[%c0_5, %c0_6] : memref<1x32xf32, #tpu.memory_space<vmem>>, vector<1x32xf32>
    %10 = arith.mulf %0, %8 : vector<1x32xf32>
    %11 = arith.subf %9, %10 : vector<1x32xf32>
    %c0_7 = arith.constant 0 : index
    %c0_8 = arith.constant 0 : index
    %12 = vector.load %arg1[%c0_7, %c0_8] : memref<16x32xbf16, #tpu.memory_space<vmem>>, vector<16x32xbf16>
    %13 = arith.extf %12 : vector<16x32xbf16> to vector<16x32xf32>
    %14 = vector.broadcast %8 : vector<1x32xf32> to vector<16x32xf32>
    %15 = arith.mulf %13, %14 : vector<16x32xf32>
    %16 = vector.broadcast %11 : vector<1x32xf32> to vector<16x32xf32>
    %17 = arith.addf %15, %16 : vector<16x32xf32>
    %cst_9 = arith.constant 0.000000e+00 : f32
    %18 = vector.broadcast %cst_9 : f32 to vector<16x32xf32>
    %19 = arith.maximumf %17, %18 : vector<16x32xf32>
    %20 = arith.truncf %19 : vector<16x32xf32> to vector<16x32xbf16>
    %c0_10 = arith.constant 0 : index
    %c0_11 = arith.constant 0 : index
    %21 = vector.load %arg8[%c0_10, %c0_11] : memref<16x32xbf16, #tpu.memory_space<vmem>>, vector<16x32xbf16>
    tpu.vector_store %arg8[%c0_10, %c0_11], %20 {strides = array<i32>} : memref<16x32xbf16, #tpu.memory_space<vmem>>, vector<16x32xbf16>,
    %c0_12 = arith.constant 0 : index
    %c0_13 = arith.constant 0 : index
    %22 = vector.load %arg6[%c0_12, %c0_13] : memref<32x2xbf16, #tpu.memory_space<vmem>>, vector<32x2xbf16>
    %cst_14 = arith.constant dense<0.000000e+00> : vector<16x2xf32>
    %23 = tpu.matmul %20, %22, %cst_14 {dimension_numbers = #tpu.dot_dimension_numbers<[1], [0], [0], [1], [0, 0, 1, 1], [], []>} : vector<16x32xbf16>, vector<32x2xbf16>, vector<16x2xf32> -> vector<16x2xf32>
    %c0_15 = arith.constant 0 : index
    %c0_16 = arith.constant 0 : index
    %24 = vector.load %arg7[%c0_15, %c0_16] : memref<1x2xf32, #tpu.memory_space<vmem>>, vector<1x2xf32>
    %25 = vector.broadcast %24 : vector<1x2xf32> to vector<16x2xf32>
    %26 = arith.addf %23, %25 : vector<16x2xf32>
    %27 = tpu.iota {dimensions = array<i32: 1>} : vector<16x2xi32>
    %c0_i32 = arith.constant 0 : i32
    %28 = vector.broadcast %c0_i32 : i32 to vector<16x2xi32>
    %29 = arith.cmpi eq, %27, %28 : vector<16x2xi32>
    %cst_17 = arith.constant 0.000000e+00 : f32
    %30 = vector.broadcast %cst_17 : f32 to vector<16x2xf32>
    %31 = arith.subf %30, %26 : vector<16x2xf32>
    %32 = math.exp %31 : vector<16x2xf32>
    %cst_18 = arith.constant 1.000000e+00 : f32
    %33 = vector.broadcast %cst_18 : f32 to vector<16x2xf32>
    %34 = arith.addf %33, %32 : vector<16x2xf32>
    %cst_19 = arith.constant 1.000000e+00 : f32
    %35 = vector.broadcast %cst_19 : f32 to vector<16x2xf32>
    %36 = arith.divf %35, %34 : vector<16x2xf32>
    %37 = arith.select %29, %26, %36 : vector<16x2xi1>, vector<16x2xf32>
    %c0_20 = arith.constant 0 : index
    %c0_21 = arith.constant 0 : index
    %38 = vector.load %arg9[%c0_20, %c0_21] : memref<16x2xf32, #tpu.memory_space<vmem>>, vector<16x2xf32>
    tpu.vector_store %arg9[%c0_20, %c0_21], %37 {strides = array<i32>} : memref<16x2xf32, #tpu.memory_space<vmem>>, vector<16x2xf32>,
    return
  }
  func.func @transform_0(%arg0: i32) -> (i32, i32) {
    %c0_i32 = arith.constant 0 : i32
    %c0_i32_0 = arith.constant 0 : i32
    return %arg0, %c0_i32 : i32, i32
  }
  func.func @transform_1(%arg0: i32) -> (i32, i32) {
    %c0_i32 = arith.constant 0 : i32
    %c0_i32_0 = arith.constant 0 : i32
    %c0_i32_1 = arith.constant 0 : i32
    return %c0_i32, %c0_i32_0 : i32, i32
  }
  func.func @transform_2(%arg0: i32) -> (i32, i32) {
    %c0_i32 = arith.constant 0 : i32
    %c0_i32_0 = arith.constant 0 : i32
    %c0_i32_1 = arith.constant 0 : i32
    return %c0_i32, %c0_i32_0 : i32, i32
  }
  func.func @transform_3(%arg0: i32) -> (i32, i32) {
    %c0_i32 = arith.constant 0 : i32
    %c0_i32_0 = arith.constant 0 : i32
    %c0_i32_1 = arith.constant 0 : i32
    return %c0_i32, %c0_i32_0 : i32, i32
  }
  func.func @transform_4(%arg0: i32) -> (i32, i32) {
    %c0_i32 = arith.constant 0 : i32
    %c0_i32_0 = arith.constant 0 : i32
    %c0_i32_1 = arith.constant 0 : i32
    return %c0_i32, %c0_i32_0 : i32, i32
  }
  func.func @transform_5(%arg0: i32) -> (i32, i32) {
    %c0_i32 = arith.constant 0 : i32
    %c0_i32_0 = arith.constant 0 : i32
    %c0_i32_1 = arith.constant 0 : i32
    return %c0_i32, %c0_i32_0 : i32, i32
  }
  func.func @transform_6(%arg0: i32) -> (i32, i32) {
    %c0_i32 = arith.constant 0 : i32
    %c0_i32_0 = arith.constant 0 : i32
    %c0_i32_1 = arith.constant 0 : i32
    return %c0_i32, %c0_i32_0 : i32, i32
  }
  func.func @transform_7(%arg0: i32) -> (i32, i32) {
    %c0_i32 = arith.constant 0 : i32
    %c0_i32_0 = arith.constant 0 : i32
    return %arg0, %c0_i32 : i32, i32
  }
  func.func @transform_8(%arg0: i32) -> (i32, i32) {
    %c0_i32 = arith.constant 0 : i32
    %c0_i32_0 = arith.constant 0 : i32
    return %arg0, %c0_i32 : i32, i32
  }
}

module attributes {stable_mosaic.version = 11 : i64} {
  func.func @_gemm_stats_kernel(%arg0: i32, %arg1: memref<16x128xbf16, #tpu.memory_space<vmem>>, %arg2: memref<128x64xbf16, #tpu.memory_space<vmem>>, %arg3: memref<16x64xbf16, #tpu.memory_space<vmem>>, %arg4: memref<1x2x64xf32, #tpu.memory_space<vmem>>) attributes {dimension_semantics = [#tpu.dimension_semantics<parallel>], iteration_bounds = array<i64: 2>, scalar_prefetch = 0 : i64, scratch_operands = 0 : i64, tpu.core_type = #tpu.core_type<tc>, window_params = [{transform_indices = @transform_0, window_bounds = array<i64: 16, 128>}, {pipeline_mode = #tpu.pipeline_mode<synchronous>, transform_indices = @transform_1, window_bounds = array<i64: 128, 64>}, {transform_indices = @transform_2, window_bounds = array<i64: 16, 64>}, {transform_indices = @transform_3, window_bounds = array<i64: 1, 2, 64>}]} {
    %c0 = arith.constant 0 : index
    %c0_0 = arith.constant 0 : index
    %0 = vector.load %arg1[%c0, %c0_0] : memref<16x128xbf16, #tpu.memory_space<vmem>>, vector<16x128xbf16>
    %c0_1 = arith.constant 0 : index
    %c0_2 = arith.constant 0 : index
    %1 = vector.load %arg2[%c0_1, %c0_2] : memref<128x64xbf16, #tpu.memory_space<vmem>>, vector<128x64xbf16>
    %cst = arith.constant dense<0.000000e+00> : vector<16x64xf32>
    %2 = tpu.matmul %0, %1, %cst {dimension_numbers = #tpu.dot_dimension_numbers<[1], [0], [0], [1], [0, 0, 1, 1], [], []>} : vector<16x128xbf16>, vector<128x64xbf16>, vector<16x64xf32> -> vector<16x64xf32>
    %3 = arith.truncf %2 : vector<16x64xf32> to vector<16x64xbf16>
    %c0_3 = arith.constant 0 : index
    %c0_4 = arith.constant 0 : index
    %4 = vector.load %arg3[%c0_3, %c0_4] : memref<16x64xbf16, #tpu.memory_space<vmem>>, vector<16x64xbf16>
    tpu.vector_store %arg3[%c0_3, %c0_4], %3 {strides = array<i32>} : memref<16x64xbf16, #tpu.memory_space<vmem>>, vector<16x64xbf16>,
    %cst_5 = arith.constant dense<0.000000e+00> : vector<64xf32>
    %5 = vector.multi_reduction <add>, %2, %cst_5 [0] : vector<16x64xf32> to vector<64xf32>
    %6 = vector.shape_cast %5 : vector<64xf32> to vector<1x64xf32>
    %7 = arith.mulf %2, %2 : vector<16x64xf32>
    %cst_6 = arith.constant dense<0.000000e+00> : vector<64xf32>
    %8 = vector.multi_reduction <add>, %7, %cst_6 [0] : vector<16x64xf32> to vector<64xf32>
    %9 = vector.shape_cast %8 : vector<64xf32> to vector<1x64xf32>
    %10 = vector.shape_cast %6 : vector<1x64xf32> to vector<1x1x64xf32>
    %11 = vector.shape_cast %9 : vector<1x64xf32> to vector<1x1x64xf32>
    %12 = tpu.concatenate %10, %11 in 1 : vector<1x1x64xf32>, vector<1x1x64xf32> -> vector<1x2x64xf32>
    %c0_7 = arith.constant 0 : index
    %c0_8 = arith.constant 0 : index
    %c0_9 = arith.constant 0 : index
    %13 = vector.load %arg4[%c0_7, %c0_8, %c0_9] : memref<1x2x64xf32, #tpu.memory_space<vmem>>, vector<1x2x64xf32>
    tpu.vector_store %arg4[%c0_7, %c0_8, %c0_9], %12 {strides = array<i32>} : memref<1x2x64xf32, #tpu.memory_space<vmem>>, vector<1x2x64xf32>,
    return
  }
  func.func @transform_0(%arg0: i32) -> (i32, i32) {
    %c0_i32 = arith.constant 0 : i32
    %c0_i32_0 = arith.constant 0 : i32
    return %arg0, %c0_i32 : i32, i32
  }
  func.func @transform_1(%arg0: i32) -> (i32, i32) {
    %c0_i32 = arith.constant 0 : i32
    %c0_i32_0 = arith.constant 0 : i32
    %c0_i32_1 = arith.constant 0 : i32
    return %c0_i32, %c0_i32_0 : i32, i32
  }
  func.func @transform_2(%arg0: i32) -> (i32, i32) {
    %c0_i32 = arith.constant 0 : i32
    %c0_i32_0 = arith.constant 0 : i32
    return %arg0, %c0_i32 : i32, i32
  }
  func.func @transform_3(%arg0: i32) -> (i32, i32, i32) {
    %c0_i32 = arith.constant 0 : i32
    %c0_i32_0 = arith.constant 0 : i32
    %c0_i32_1 = arith.constant 0 : i32
    return %arg0, %c0_i32, %c0_i32_0 : i32, i32, i32
  }
}

module attributes {stable_mosaic.version = 11 : i64} {
  func.func @_bn_relu_kernel(%arg0: i32, %arg1: memref<16x64xbf16, #tpu.memory_space<vmem>>, %arg2: memref<1x64xf32, #tpu.memory_space<vmem>>, %arg3: memref<1x64xf32, #tpu.memory_space<vmem>>, %arg4: memref<1x64xf32, #tpu.memory_space<vmem>>, %arg5: memref<1x64xf32, #tpu.memory_space<vmem>>, %arg6: memref<16x64xbf16, #tpu.memory_space<vmem>>) attributes {dimension_semantics = [#tpu.dimension_semantics<parallel>], iteration_bounds = array<i64: 2>, scalar_prefetch = 0 : i64, scratch_operands = 0 : i64, tpu.core_type = #tpu.core_type<tc>, window_params = [{transform_indices = @transform_0, window_bounds = array<i64: 16, 64>}, {pipeline_mode = #tpu.pipeline_mode<synchronous>, transform_indices = @transform_1, window_bounds = array<i64: 1, 64>}, {pipeline_mode = #tpu.pipeline_mode<synchronous>, transform_indices = @transform_2, window_bounds = array<i64: 1, 64>}, {pipeline_mode = #tpu.pipeline_mode<synchronous>, transform_indices = @transform_3, window_bounds = array<i64: 1, 64>}, {pipeline_mode = #tpu.pipeline_mode<synchronous>, transform_indices = @transform_4, window_bounds = array<i64: 1, 64>}, {transform_indices = @transform_5, window_bounds = array<i64: 16, 64>}]} {
    %c0 = arith.constant 0 : index
    %c0_0 = arith.constant 0 : index
    %0 = vector.load %arg2[%c0, %c0_0] : memref<1x64xf32, #tpu.memory_space<vmem>>, vector<1x64xf32>
    %c0_1 = arith.constant 0 : index
    %c0_2 = arith.constant 0 : index
    %1 = vector.load %arg3[%c0_1, %c0_2] : memref<1x64xf32, #tpu.memory_space<vmem>>, vector<1x64xf32>
    %2 = arith.mulf %0, %0 : vector<1x64xf32>
    %3 = arith.subf %1, %2 : vector<1x64xf32>
    %c0_3 = arith.constant 0 : index
    %c0_4 = arith.constant 0 : index
    %4 = vector.load %arg4[%c0_3, %c0_4] : memref<1x64xf32, #tpu.memory_space<vmem>>, vector<1x64xf32>
    %cst = arith.constant 9.99999974E-6 : f32
    %5 = vector.broadcast %cst : f32 to vector<1x64xf32>
    %6 = arith.addf %3, %5 : vector<1x64xf32>
    %7 = math.rsqrt %6 : vector<1x64xf32>
    %8 = arith.mulf %4, %7 : vector<1x64xf32>
    %c0_5 = arith.constant 0 : index
    %c0_6 = arith.constant 0 : index
    %9 = vector.load %arg5[%c0_5, %c0_6] : memref<1x64xf32, #tpu.memory_space<vmem>>, vector<1x64xf32>
    %10 = arith.mulf %0, %8 : vector<1x64xf32>
    %11 = arith.subf %9, %10 : vector<1x64xf32>
    %c0_7 = arith.constant 0 : index
    %c0_8 = arith.constant 0 : index
    %12 = vector.load %arg1[%c0_7, %c0_8] : memref<16x64xbf16, #tpu.memory_space<vmem>>, vector<16x64xbf16>
    %13 = arith.extf %12 : vector<16x64xbf16> to vector<16x64xf32>
    %14 = vector.broadcast %8 : vector<1x64xf32> to vector<16x64xf32>
    %15 = arith.mulf %13, %14 : vector<16x64xf32>
    %16 = vector.broadcast %11 : vector<1x64xf32> to vector<16x64xf32>
    %17 = arith.addf %15, %16 : vector<16x64xf32>
    %cst_9 = arith.constant 0.000000e+00 : f32
    %18 = vector.broadcast %cst_9 : f32 to vector<16x64xf32>
    %19 = arith.maximumf %17, %18 : vector<16x64xf32>
    %20 = arith.truncf %19 : vector<16x64xf32> to vector<16x64xbf16>
    %c0_10 = arith.constant 0 : index
    %c0_11 = arith.constant 0 : index
    %21 = vector.load %arg6[%c0_10, %c0_11] : memref<16x64xbf16, #tpu.memory_space<vmem>>, vector<16x64xbf16>
    tpu.vector_store %arg6[%c0_10, %c0_11], %20 {strides = array<i32>} : memref<16x64xbf16, #tpu.memory_space<vmem>>, vector<16x64xbf16>,
    return
  }
  func.func @transform_0(%arg0: i32) -> (i32, i32) {
    %c0_i32 = arith.constant 0 : i32
    %c0_i32_0 = arith.constant 0 : i32
    return %arg0, %c0_i32 : i32, i32
  }
  func.func @transform_1(%arg0: i32) -> (i32, i32) {
    %c0_i32 = arith.constant 0 : i32
    %c0_i32_0 = arith.constant 0 : i32
    %c0_i32_1 = arith.constant 0 : i32
    return %c0_i32, %c0_i32_0 : i32, i32
  }
  func.func @transform_2(%arg0: i32) -> (i32, i32) {
    %c0_i32 = arith.constant 0 : i32
    %c0_i32_0 = arith.constant 0 : i32
    %c0_i32_1 = arith.constant 0 : i32
    return %c0_i32, %c0_i32_0 : i32, i32
  }
  func.func @transform_3(%arg0: i32) -> (i32, i32) {
    %c0_i32 = arith.constant 0 : i32
    %c0_i32_0 = arith.constant 0 : i32
    %c0_i32_1 = arith.constant 0 : i32
    return %c0_i32, %c0_i32_0 : i32, i32
  }
  func.func @transform_4(%arg0: i32) -> (i32, i32) {
    %c0_i32 = arith.constant 0 : i32
    %c0_i32_0 = arith.constant 0 : i32
    %c0_i32_1 = arith.constant 0 : i32
    return %c0_i32, %c0_i32_0 : i32, i32
  }
  func.func @transform_5(%arg0: i32) -> (i32, i32) {
    %c0_i32 = arith.constant 0 : i32
    %c0_i32_0 = arith.constant 0 : i32
    return %arg0, %c0_i32 : i32, i32
  }
}

module attributes {stable_mosaic.version = 11 : i64} {
  func.func @_gemm_stats_kernel(%arg0: i32, %arg1: memref<32x288xbf16, #tpu.memory_space<vmem>>, %arg2: memref<288x16xbf16, #tpu.memory_space<vmem>>, %arg3: memref<32x16xbf16, #tpu.memory_space<vmem>>, %arg4: memref<1x2x16xf32, #tpu.memory_space<vmem>>) attributes {dimension_semantics = [#tpu.dimension_semantics<parallel>], iteration_bounds = array<i64: 4>, scalar_prefetch = 0 : i64, scratch_operands = 0 : i64, tpu.core_type = #tpu.core_type<tc>, window_params = [{transform_indices = @transform_0, window_bounds = array<i64: 32, 288>}, {pipeline_mode = #tpu.pipeline_mode<synchronous>, transform_indices = @transform_1, window_bounds = array<i64: 288, 16>}, {transform_indices = @transform_2, window_bounds = array<i64: 32, 16>}, {transform_indices = @transform_3, window_bounds = array<i64: 1, 2, 16>}]} {
    %c0 = arith.constant 0 : index
    %c0_0 = arith.constant 0 : index
    %0 = vector.load %arg1[%c0, %c0_0] : memref<32x288xbf16, #tpu.memory_space<vmem>>, vector<32x288xbf16>
    %c0_1 = arith.constant 0 : index
    %c0_2 = arith.constant 0 : index
    %1 = vector.load %arg2[%c0_1, %c0_2] : memref<288x16xbf16, #tpu.memory_space<vmem>>, vector<288x16xbf16>
    %cst = arith.constant dense<0.000000e+00> : vector<32x16xf32>
    %2 = tpu.matmul %0, %1, %cst {dimension_numbers = #tpu.dot_dimension_numbers<[1], [0], [0], [1], [0, 0, 1, 1], [], []>} : vector<32x288xbf16>, vector<288x16xbf16>, vector<32x16xf32> -> vector<32x16xf32>
    %3 = arith.truncf %2 : vector<32x16xf32> to vector<32x16xbf16>
    %c0_3 = arith.constant 0 : index
    %c0_4 = arith.constant 0 : index
    %4 = vector.load %arg3[%c0_3, %c0_4] : memref<32x16xbf16, #tpu.memory_space<vmem>>, vector<32x16xbf16>
    tpu.vector_store %arg3[%c0_3, %c0_4], %3 {strides = array<i32>} : memref<32x16xbf16, #tpu.memory_space<vmem>>, vector<32x16xbf16>,
    %cst_5 = arith.constant dense<0.000000e+00> : vector<16xf32>
    %5 = vector.multi_reduction <add>, %2, %cst_5 [0] : vector<32x16xf32> to vector<16xf32>
    %6 = vector.shape_cast %5 : vector<16xf32> to vector<1x16xf32>
    %7 = arith.mulf %2, %2 : vector<32x16xf32>
    %cst_6 = arith.constant dense<0.000000e+00> : vector<16xf32>
    %8 = vector.multi_reduction <add>, %7, %cst_6 [0] : vector<32x16xf32> to vector<16xf32>
    %9 = vector.shape_cast %8 : vector<16xf32> to vector<1x16xf32>
    %10 = vector.shape_cast %6 : vector<1x16xf32> to vector<1x1x16xf32>
    %11 = vector.shape_cast %9 : vector<1x16xf32> to vector<1x1x16xf32>
    %12 = tpu.concatenate %10, %11 in 1 : vector<1x1x16xf32>, vector<1x1x16xf32> -> vector<1x2x16xf32>
    %c0_7 = arith.constant 0 : index
    %c0_8 = arith.constant 0 : index
    %c0_9 = arith.constant 0 : index
    %13 = vector.load %arg4[%c0_7, %c0_8, %c0_9] : memref<1x2x16xf32, #tpu.memory_space<vmem>>, vector<1x2x16xf32>
    tpu.vector_store %arg4[%c0_7, %c0_8, %c0_9], %12 {strides = array<i32>} : memref<1x2x16xf32, #tpu.memory_space<vmem>>, vector<1x2x16xf32>,
    return
  }
  func.func @transform_0(%arg0: i32) -> (i32, i32) {
    %c0_i32 = arith.constant 0 : i32
    %c0_i32_0 = arith.constant 0 : i32
    return %arg0, %c0_i32 : i32, i32
  }
  func.func @transform_1(%arg0: i32) -> (i32, i32) {
    %c0_i32 = arith.constant 0 : i32
    %c0_i32_0 = arith.constant 0 : i32
    %c0_i32_1 = arith.constant 0 : i32
    return %c0_i32, %c0_i32_0 : i32, i32
  }
  func.func @transform_2(%arg0: i32) -> (i32, i32) {
    %c0_i32 = arith.constant 0 : i32
    %c0_i32_0 = arith.constant 0 : i32
    return %arg0, %c0_i32 : i32, i32
  }
  func.func @transform_3(%arg0: i32) -> (i32, i32, i32) {
    %c0_i32 = arith.constant 0 : i32
    %c0_i32_0 = arith.constant 0 : i32
    %c0_i32_1 = arith.constant 0 : i32
    return %arg0, %c0_i32, %c0_i32_0 : i32, i32, i32
  }
}

module attributes {stable_mosaic.version = 11 : i64} {
  func.func @_bn_relu_heads_kernel(%arg0: i32, %arg1: memref<32x16xbf16, #tpu.memory_space<vmem>>, %arg2: memref<1x16xf32, #tpu.memory_space<vmem>>, %arg3: memref<1x16xf32, #tpu.memory_space<vmem>>, %arg4: memref<1x16xf32, #tpu.memory_space<vmem>>, %arg5: memref<1x16xf32, #tpu.memory_space<vmem>>, %arg6: memref<16x2xbf16, #tpu.memory_space<vmem>>, %arg7: memref<1x2xf32, #tpu.memory_space<vmem>>, %arg8: memref<32x16xbf16, #tpu.memory_space<vmem>>, %arg9: memref<32x2xf32, #tpu.memory_space<vmem>>) attributes {dimension_semantics = [#tpu.dimension_semantics<parallel>], iteration_bounds = array<i64: 4>, scalar_prefetch = 0 : i64, scratch_operands = 0 : i64, tpu.core_type = #tpu.core_type<tc>, window_params = [{transform_indices = @transform_0, window_bounds = array<i64: 32, 16>}, {pipeline_mode = #tpu.pipeline_mode<synchronous>, transform_indices = @transform_1, window_bounds = array<i64: 1, 16>}, {pipeline_mode = #tpu.pipeline_mode<synchronous>, transform_indices = @transform_2, window_bounds = array<i64: 1, 16>}, {pipeline_mode = #tpu.pipeline_mode<synchronous>, transform_indices = @transform_3, window_bounds = array<i64: 1, 16>}, {pipeline_mode = #tpu.pipeline_mode<synchronous>, transform_indices = @transform_4, window_bounds = array<i64: 1, 16>}, {pipeline_mode = #tpu.pipeline_mode<synchronous>, transform_indices = @transform_5, window_bounds = array<i64: 16, 2>}, {pipeline_mode = #tpu.pipeline_mode<synchronous>, transform_indices = @transform_6, window_bounds = array<i64: 1, 2>}, {transform_indices = @transform_7, window_bounds = array<i64: 32, 16>}, {transform_indices = @transform_8, window_bounds = array<i64: 32, 2>}]} {
    %c0 = arith.constant 0 : index
    %c0_0 = arith.constant 0 : index
    %0 = vector.load %arg2[%c0, %c0_0] : memref<1x16xf32, #tpu.memory_space<vmem>>, vector<1x16xf32>
    %c0_1 = arith.constant 0 : index
    %c0_2 = arith.constant 0 : index
    %1 = vector.load %arg3[%c0_1, %c0_2] : memref<1x16xf32, #tpu.memory_space<vmem>>, vector<1x16xf32>
    %2 = arith.mulf %0, %0 : vector<1x16xf32>
    %3 = arith.subf %1, %2 : vector<1x16xf32>
    %c0_3 = arith.constant 0 : index
    %c0_4 = arith.constant 0 : index
    %4 = vector.load %arg4[%c0_3, %c0_4] : memref<1x16xf32, #tpu.memory_space<vmem>>, vector<1x16xf32>
    %cst = arith.constant 9.99999974E-6 : f32
    %5 = vector.broadcast %cst : f32 to vector<1x16xf32>
    %6 = arith.addf %3, %5 : vector<1x16xf32>
    %7 = math.rsqrt %6 : vector<1x16xf32>
    %8 = arith.mulf %4, %7 : vector<1x16xf32>
    %c0_5 = arith.constant 0 : index
    %c0_6 = arith.constant 0 : index
    %9 = vector.load %arg5[%c0_5, %c0_6] : memref<1x16xf32, #tpu.memory_space<vmem>>, vector<1x16xf32>
    %10 = arith.mulf %0, %8 : vector<1x16xf32>
    %11 = arith.subf %9, %10 : vector<1x16xf32>
    %c0_7 = arith.constant 0 : index
    %c0_8 = arith.constant 0 : index
    %12 = vector.load %arg1[%c0_7, %c0_8] : memref<32x16xbf16, #tpu.memory_space<vmem>>, vector<32x16xbf16>
    %13 = arith.extf %12 : vector<32x16xbf16> to vector<32x16xf32>
    %14 = vector.broadcast %8 : vector<1x16xf32> to vector<32x16xf32>
    %15 = arith.mulf %13, %14 : vector<32x16xf32>
    %16 = vector.broadcast %11 : vector<1x16xf32> to vector<32x16xf32>
    %17 = arith.addf %15, %16 : vector<32x16xf32>
    %cst_9 = arith.constant 0.000000e+00 : f32
    %18 = vector.broadcast %cst_9 : f32 to vector<32x16xf32>
    %19 = arith.maximumf %17, %18 : vector<32x16xf32>
    %20 = arith.truncf %19 : vector<32x16xf32> to vector<32x16xbf16>
    %c0_10 = arith.constant 0 : index
    %c0_11 = arith.constant 0 : index
    %21 = vector.load %arg8[%c0_10, %c0_11] : memref<32x16xbf16, #tpu.memory_space<vmem>>, vector<32x16xbf16>
    tpu.vector_store %arg8[%c0_10, %c0_11], %20 {strides = array<i32>} : memref<32x16xbf16, #tpu.memory_space<vmem>>, vector<32x16xbf16>,
    %c0_12 = arith.constant 0 : index
    %c0_13 = arith.constant 0 : index
    %22 = vector.load %arg6[%c0_12, %c0_13] : memref<16x2xbf16, #tpu.memory_space<vmem>>, vector<16x2xbf16>
    %cst_14 = arith.constant dense<0.000000e+00> : vector<32x2xf32>
    %23 = tpu.matmul %20, %22, %cst_14 {dimension_numbers = #tpu.dot_dimension_numbers<[1], [0], [0], [1], [0, 0, 1, 1], [], []>} : vector<32x16xbf16>, vector<16x2xbf16>, vector<32x2xf32> -> vector<32x2xf32>
    %c0_15 = arith.constant 0 : index
    %c0_16 = arith.constant 0 : index
    %24 = vector.load %arg7[%c0_15, %c0_16] : memref<1x2xf32, #tpu.memory_space<vmem>>, vector<1x2xf32>
    %25 = vector.broadcast %24 : vector<1x2xf32> to vector<32x2xf32>
    %26 = arith.addf %23, %25 : vector<32x2xf32>
    %27 = tpu.iota {dimensions = array<i32: 1>} : vector<32x2xi32>
    %c0_i32 = arith.constant 0 : i32
    %28 = vector.broadcast %c0_i32 : i32 to vector<32x2xi32>
    %29 = arith.cmpi eq, %27, %28 : vector<32x2xi32>
    %cst_17 = arith.constant 0.000000e+00 : f32
    %30 = vector.broadcast %cst_17 : f32 to vector<32x2xf32>
    %31 = arith.subf %30, %26 : vector<32x2xf32>
    %32 = math.exp %31 : vector<32x2xf32>
    %cst_18 = arith.constant 1.000000e+00 : f32
    %33 = vector.broadcast %cst_18 : f32 to vector<32x2xf32>
    %34 = arith.addf %33, %32 : vector<32x2xf32>
    %cst_19 = arith.constant 1.000000e+00 : f32
    %35 = vector.broadcast %cst_19 : f32 to vector<32x2xf32>
    %36 = arith.divf %35, %34 : vector<32x2xf32>
    %37 = arith.select %29, %26, %36 : vector<32x2xi1>, vector<32x2xf32>
    %c0_20 = arith.constant 0 : index
    %c0_21 = arith.constant 0 : index
    %38 = vector.load %arg9[%c0_20, %c0_21] : memref<32x2xf32, #tpu.memory_space<vmem>>, vector<32x2xf32>
    tpu.vector_store %arg9[%c0_20, %c0_21], %37 {strides = array<i32>} : memref<32x2xf32, #tpu.memory_space<vmem>>, vector<32x2xf32>,
    return
  }
  func.func @transform_0(%arg0: i32) -> (i32, i32) {
    %c0_i32 = arith.constant 0 : i32
    %c0_i32_0 = arith.constant 0 : i32
    return %arg0, %c0_i32 : i32, i32
  }
  func.func @transform_1(%arg0: i32) -> (i32, i32) {
    %c0_i32 = arith.constant 0 : i32
    %c0_i32_0 = arith.constant 0 : i32
    %c0_i32_1 = arith.constant 0 : i32
    return %c0_i32, %c0_i32_0 : i32, i32
  }
  func.func @transform_2(%arg0: i32) -> (i32, i32) {
    %c0_i32 = arith.constant 0 : i32
    %c0_i32_0 = arith.constant 0 : i32
    %c0_i32_1 = arith.constant 0 : i32
    return %c0_i32, %c0_i32_0 : i32, i32
  }
  func.func @transform_3(%arg0: i32) -> (i32, i32) {
    %c0_i32 = arith.constant 0 : i32
    %c0_i32_0 = arith.constant 0 : i32
    %c0_i32_1 = arith.constant 0 : i32
    return %c0_i32, %c0_i32_0 : i32, i32
  }
  func.func @transform_4(%arg0: i32) -> (i32, i32) {
    %c0_i32 = arith.constant 0 : i32
    %c0_i32_0 = arith.constant 0 : i32
    %c0_i32_1 = arith.constant 0 : i32
    return %c0_i32, %c0_i32_0 : i32, i32
  }
  func.func @transform_5(%arg0: i32) -> (i32, i32) {
    %c0_i32 = arith.constant 0 : i32
    %c0_i32_0 = arith.constant 0 : i32
    %c0_i32_1 = arith.constant 0 : i32
    return %c0_i32, %c0_i32_0 : i32, i32
  }
  func.func @transform_6(%arg0: i32) -> (i32, i32) {
    %c0_i32 = arith.constant 0 : i32
    %c0_i32_0 = arith.constant 0 : i32
    %c0_i32_1 = arith.constant 0 : i32
    return %c0_i32, %c0_i32_0 : i32, i32
  }
  func.func @transform_7(%arg0: i32) -> (i32, i32) {
    %c0_i32 = arith.constant 0 : i32
    %c0_i32_0 = arith.constant 0 : i32
    return %arg0, %c0_i32 : i32, i32
  }
  func.func @transform_8(%arg0: i32) -> (i32, i32) {
    %c0_i32 = arith.constant 0 : i32
    %c0_i32_0 = arith.constant 0 : i32
    return %arg0, %c0_i32 : i32, i32
  }
}

module attributes {stable_mosaic.version = 11 : i64} {
  func.func @_gemm_stats_kernel(%arg0: i32, %arg1: memref<32x64xbf16, #tpu.memory_space<vmem>>, %arg2: memref<64x32xbf16, #tpu.memory_space<vmem>>, %arg3: memref<32x32xbf16, #tpu.memory_space<vmem>>, %arg4: memref<1x2x32xf32, #tpu.memory_space<vmem>>) attributes {dimension_semantics = [#tpu.dimension_semantics<parallel>], iteration_bounds = array<i64: 4>, scalar_prefetch = 0 : i64, scratch_operands = 0 : i64, tpu.core_type = #tpu.core_type<tc>, window_params = [{transform_indices = @transform_0, window_bounds = array<i64: 32, 64>}, {pipeline_mode = #tpu.pipeline_mode<synchronous>, transform_indices = @transform_1, window_bounds = array<i64: 64, 32>}, {transform_indices = @transform_2, window_bounds = array<i64: 32, 32>}, {transform_indices = @transform_3, window_bounds = array<i64: 1, 2, 32>}]} {
    %c0 = arith.constant 0 : index
    %c0_0 = arith.constant 0 : index
    %0 = vector.load %arg1[%c0, %c0_0] : memref<32x64xbf16, #tpu.memory_space<vmem>>, vector<32x64xbf16>
    %c0_1 = arith.constant 0 : index
    %c0_2 = arith.constant 0 : index
    %1 = vector.load %arg2[%c0_1, %c0_2] : memref<64x32xbf16, #tpu.memory_space<vmem>>, vector<64x32xbf16>
    %cst = arith.constant dense<0.000000e+00> : vector<32x32xf32>
    %2 = tpu.matmul %0, %1, %cst {dimension_numbers = #tpu.dot_dimension_numbers<[1], [0], [0], [1], [0, 0, 1, 1], [], []>} : vector<32x64xbf16>, vector<64x32xbf16>, vector<32x32xf32> -> vector<32x32xf32>
    %3 = arith.truncf %2 : vector<32x32xf32> to vector<32x32xbf16>
    %c0_3 = arith.constant 0 : index
    %c0_4 = arith.constant 0 : index
    %4 = vector.load %arg3[%c0_3, %c0_4] : memref<32x32xbf16, #tpu.memory_space<vmem>>, vector<32x32xbf16>
    tpu.vector_store %arg3[%c0_3, %c0_4], %3 {strides = array<i32>} : memref<32x32xbf16, #tpu.memory_space<vmem>>, vector<32x32xbf16>,
    %cst_5 = arith.constant dense<0.000000e+00> : vector<32xf32>
    %5 = vector.multi_reduction <add>, %2, %cst_5 [0] : vector<32x32xf32> to vector<32xf32>
    %6 = vector.shape_cast %5 : vector<32xf32> to vector<1x32xf32>
    %7 = arith.mulf %2, %2 : vector<32x32xf32>
    %cst_6 = arith.constant dense<0.000000e+00> : vector<32xf32>
    %8 = vector.multi_reduction <add>, %7, %cst_6 [0] : vector<32x32xf32> to vector<32xf32>
    %9 = vector.shape_cast %8 : vector<32xf32> to vector<1x32xf32>
    %10 = vector.shape_cast %6 : vector<1x32xf32> to vector<1x1x32xf32>
    %11 = vector.shape_cast %9 : vector<1x32xf32> to vector<1x1x32xf32>
    %12 = tpu.concatenate %10, %11 in 1 : vector<1x1x32xf32>, vector<1x1x32xf32> -> vector<1x2x32xf32>
    %c0_7 = arith.constant 0 : index
    %c0_8 = arith.constant 0 : index
    %c0_9 = arith.constant 0 : index
    %13 = vector.load %arg4[%c0_7, %c0_8, %c0_9] : memref<1x2x32xf32, #tpu.memory_space<vmem>>, vector<1x2x32xf32>
    tpu.vector_store %arg4[%c0_7, %c0_8, %c0_9], %12 {strides = array<i32>} : memref<1x2x32xf32, #tpu.memory_space<vmem>>, vector<1x2x32xf32>,
    return
  }
  func.func @transform_0(%arg0: i32) -> (i32, i32) {
    %c0_i32 = arith.constant 0 : i32
    %c0_i32_0 = arith.constant 0 : i32
    return %arg0, %c0_i32 : i32, i32
  }
  func.func @transform_1(%arg0: i32) -> (i32, i32) {
    %c0_i32 = arith.constant 0 : i32
    %c0_i32_0 = arith.constant 0 : i32
    %c0_i32_1 = arith.constant 0 : i32
    return %c0_i32, %c0_i32_0 : i32, i32
  }
  func.func @transform_2(%arg0: i32) -> (i32, i32) {
    %c0_i32 = arith.constant 0 : i32
    %c0_i32_0 = arith.constant 0 : i32
    return %arg0, %c0_i32 : i32, i32
  }
  func.func @transform_3(%arg0: i32) -> (i32, i32, i32) {
    %c0_i32 = arith.constant 0 : i32
    %c0_i32_0 = arith.constant 0 : i32
    %c0_i32_1 = arith.constant 0 : i32
    return %arg0, %c0_i32, %c0_i32_0 : i32, i32, i32
  }
}

module attributes {stable_mosaic.version = 11 : i64} {
  func.func @_bn_relu_kernel(%arg0: i32, %arg1: memref<32x32xbf16, #tpu.memory_space<vmem>>, %arg2: memref<1x32xf32, #tpu.memory_space<vmem>>, %arg3: memref<1x32xf32, #tpu.memory_space<vmem>>, %arg4: memref<1x32xf32, #tpu.memory_space<vmem>>, %arg5: memref<1x32xf32, #tpu.memory_space<vmem>>, %arg6: memref<32x32xbf16, #tpu.memory_space<vmem>>) attributes {dimension_semantics = [#tpu.dimension_semantics<parallel>], iteration_bounds = array<i64: 4>, scalar_prefetch = 0 : i64, scratch_operands = 0 : i64, tpu.core_type = #tpu.core_type<tc>, window_params = [{transform_indices = @transform_0, window_bounds = array<i64: 32, 32>}, {pipeline_mode = #tpu.pipeline_mode<synchronous>, transform_indices = @transform_1, window_bounds = array<i64: 1, 32>}, {pipeline_mode = #tpu.pipeline_mode<synchronous>, transform_indices = @transform_2, window_bounds = array<i64: 1, 32>}, {pipeline_mode = #tpu.pipeline_mode<synchronous>, transform_indices = @transform_3, window_bounds = array<i64: 1, 32>}, {pipeline_mode = #tpu.pipeline_mode<synchronous>, transform_indices = @transform_4, window_bounds = array<i64: 1, 32>}, {transform_indices = @transform_5, window_bounds = array<i64: 32, 32>}]} {
    %c0 = arith.constant 0 : index
    %c0_0 = arith.constant 0 : index
    %0 = vector.load %arg2[%c0, %c0_0] : memref<1x32xf32, #tpu.memory_space<vmem>>, vector<1x32xf32>
    %c0_1 = arith.constant 0 : index
    %c0_2 = arith.constant 0 : index
    %1 = vector.load %arg3[%c0_1, %c0_2] : memref<1x32xf32, #tpu.memory_space<vmem>>, vector<1x32xf32>
    %2 = arith.mulf %0, %0 : vector<1x32xf32>
    %3 = arith.subf %1, %2 : vector<1x32xf32>
    %c0_3 = arith.constant 0 : index
    %c0_4 = arith.constant 0 : index
    %4 = vector.load %arg4[%c0_3, %c0_4] : memref<1x32xf32, #tpu.memory_space<vmem>>, vector<1x32xf32>
    %cst = arith.constant 9.99999974E-6 : f32
    %5 = vector.broadcast %cst : f32 to vector<1x32xf32>
    %6 = arith.addf %3, %5 : vector<1x32xf32>
    %7 = math.rsqrt %6 : vector<1x32xf32>
    %8 = arith.mulf %4, %7 : vector<1x32xf32>
    %c0_5 = arith.constant 0 : index
    %c0_6 = arith.constant 0 : index
    %9 = vector.load %arg5[%c0_5, %c0_6] : memref<1x32xf32, #tpu.memory_space<vmem>>, vector<1x32xf32>
    %10 = arith.mulf %0, %8 : vector<1x32xf32>
    %11 = arith.subf %9, %10 : vector<1x32xf32>
    %c0_7 = arith.constant 0 : index
    %c0_8 = arith.constant 0 : index
    %12 = vector.load %arg1[%c0_7, %c0_8] : memref<32x32xbf16, #tpu.memory_space<vmem>>, vector<32x32xbf16>
    %13 = arith.extf %12 : vector<32x32xbf16> to vector<32x32xf32>
    %14 = vector.broadcast %8 : vector<1x32xf32> to vector<32x32xf32>
    %15 = arith.mulf %13, %14 : vector<32x32xf32>
    %16 = vector.broadcast %11 : vector<1x32xf32> to vector<32x32xf32>
    %17 = arith.addf %15, %16 : vector<32x32xf32>
    %cst_9 = arith.constant 0.000000e+00 : f32
    %18 = vector.broadcast %cst_9 : f32 to vector<32x32xf32>
    %19 = arith.maximumf %17, %18 : vector<32x32xf32>
    %20 = arith.truncf %19 : vector<32x32xf32> to vector<32x32xbf16>
    %c0_10 = arith.constant 0 : index
    %c0_11 = arith.constant 0 : index
    %21 = vector.load %arg6[%c0_10, %c0_11] : memref<32x32xbf16, #tpu.memory_space<vmem>>, vector<32x32xbf16>
    tpu.vector_store %arg6[%c0_10, %c0_11], %20 {strides = array<i32>} : memref<32x32xbf16, #tpu.memory_space<vmem>>, vector<32x32xbf16>,
    return
  }
  func.func @transform_0(%arg0: i32) -> (i32, i32) {
    %c0_i32 = arith.constant 0 : i32
    %c0_i32_0 = arith.constant 0 : i32
    return %arg0, %c0_i32 : i32, i32
  }
  func.func @transform_1(%arg0: i32) -> (i32, i32) {
    %c0_i32 = arith.constant 0 : i32
    %c0_i32_0 = arith.constant 0 : i32
    %c0_i32_1 = arith.constant 0 : i32
    return %c0_i32, %c0_i32_0 : i32, i32
  }
  func.func @transform_2(%arg0: i32) -> (i32, i32) {
    %c0_i32 = arith.constant 0 : i32
    %c0_i32_0 = arith.constant 0 : i32
    %c0_i32_1 = arith.constant 0 : i32
    return %c0_i32, %c0_i32_0 : i32, i32
  }
  func.func @transform_3(%arg0: i32) -> (i32, i32) {
    %c0_i32 = arith.constant 0 : i32
    %c0_i32_0 = arith.constant 0 : i32
    %c0_i32_1 = arith.constant 0 : i32
    return %c0_i32, %c0_i32_0 : i32, i32
  }
  func.func @transform_4(%arg0: i32) -> (i32, i32) {
    %c0_i32 = arith.constant 0 : i32
    %c0_i32_0 = arith.constant 0 : i32
    %c0_i32_1 = arith.constant 0 : i32
    return %c0_i32, %c0_i32_0 : i32, i32
  }
  func.func @transform_5(%arg0: i32) -> (i32, i32) {
    %c0_i32 = arith.constant 0 : i32
    %c0_i32_0 = arith.constant 0 : i32
    return %arg0, %c0_i32 : i32, i32
  }
}

module attributes {stable_mosaic.version = 11 : i64} {
  func.func @_gemm_stats_kernel(%arg0: i32, %arg1: memref<128x144xbf16, #tpu.memory_space<vmem>>, %arg2: memref<144x8xbf16, #tpu.memory_space<vmem>>, %arg3: memref<128x8xbf16, #tpu.memory_space<vmem>>, %arg4: memref<1x2x8xf32, #tpu.memory_space<vmem>>) attributes {dimension_semantics = [#tpu.dimension_semantics<parallel>], iteration_bounds = array<i64: 4>, scalar_prefetch = 0 : i64, scratch_operands = 0 : i64, tpu.core_type = #tpu.core_type<tc>, window_params = [{transform_indices = @transform_0, window_bounds = array<i64: 128, 144>}, {pipeline_mode = #tpu.pipeline_mode<synchronous>, transform_indices = @transform_1, window_bounds = array<i64: 144, 8>}, {transform_indices = @transform_2, window_bounds = array<i64: 128, 8>}, {transform_indices = @transform_3, window_bounds = array<i64: 1, 2, 8>}]} {
    %c0 = arith.constant 0 : index
    %c0_0 = arith.constant 0 : index
    %0 = vector.load %arg1[%c0, %c0_0] : memref<128x144xbf16, #tpu.memory_space<vmem>>, vector<128x144xbf16>
    %c0_1 = arith.constant 0 : index
    %c0_2 = arith.constant 0 : index
    %1 = vector.load %arg2[%c0_1, %c0_2] : memref<144x8xbf16, #tpu.memory_space<vmem>>, vector<144x8xbf16>
    %cst = arith.constant dense<0.000000e+00> : vector<128x8xf32>
    %2 = tpu.matmul %0, %1, %cst {dimension_numbers = #tpu.dot_dimension_numbers<[1], [0], [0], [1], [0, 0, 1, 1], [], []>} : vector<128x144xbf16>, vector<144x8xbf16>, vector<128x8xf32> -> vector<128x8xf32>
    %3 = arith.truncf %2 : vector<128x8xf32> to vector<128x8xbf16>
    %c0_3 = arith.constant 0 : index
    %c0_4 = arith.constant 0 : index
    %4 = vector.load %arg3[%c0_3, %c0_4] : memref<128x8xbf16, #tpu.memory_space<vmem>>, vector<128x8xbf16>
    tpu.vector_store %arg3[%c0_3, %c0_4], %3 {strides = array<i32>} : memref<128x8xbf16, #tpu.memory_space<vmem>>, vector<128x8xbf16>,
    %cst_5 = arith.constant dense<0.000000e+00> : vector<8xf32>
    %5 = vector.multi_reduction <add>, %2, %cst_5 [0] : vector<128x8xf32> to vector<8xf32>
    %6 = vector.shape_cast %5 : vector<8xf32> to vector<1x8xf32>
    %7 = arith.mulf %2, %2 : vector<128x8xf32>
    %cst_6 = arith.constant dense<0.000000e+00> : vector<8xf32>
    %8 = vector.multi_reduction <add>, %7, %cst_6 [0] : vector<128x8xf32> to vector<8xf32>
    %9 = vector.shape_cast %8 : vector<8xf32> to vector<1x8xf32>
    %10 = vector.shape_cast %6 : vector<1x8xf32> to vector<1x1x8xf32>
    %11 = vector.shape_cast %9 : vector<1x8xf32> to vector<1x1x8xf32>
    %12 = tpu.concatenate %10, %11 in 1 : vector<1x1x8xf32>, vector<1x1x8xf32> -> vector<1x2x8xf32>
    %c0_7 = arith.constant 0 : index
    %c0_8 = arith.constant 0 : index
    %c0_9 = arith.constant 0 : index
    %13 = vector.load %arg4[%c0_7, %c0_8, %c0_9] : memref<1x2x8xf32, #tpu.memory_space<vmem>>, vector<1x2x8xf32>
    tpu.vector_store %arg4[%c0_7, %c0_8, %c0_9], %12 {strides = array<i32>} : memref<1x2x8xf32, #tpu.memory_space<vmem>>, vector<1x2x8xf32>,
    return
  }
  func.func @transform_0(%arg0: i32) -> (i32, i32) {
    %c0_i32 = arith.constant 0 : i32
    %c0_i32_0 = arith.constant 0 : i32
    return %arg0, %c0_i32 : i32, i32
  }
  func.func @transform_1(%arg0: i32) -> (i32, i32) {
    %c0_i32 = arith.constant 0 : i32
    %c0_i32_0 = arith.constant 0 : i32
    %c0_i32_1 = arith.constant 0 : i32
    return %c0_i32, %c0_i32_0 : i32, i32
  }
  func.func @transform_2(%arg0: i32) -> (i32, i32) {
    %c0_i32 = arith.constant 0 : i32
    %c0_i32_0 = arith.constant 0 : i32
    return %arg0, %c0_i32 : i32, i32
  }
  func.func @transform_3(%arg0: i32) -> (i32, i32, i32) {
    %c0_i32 = arith.constant 0 : i32
    %c0_i32_0 = arith.constant 0 : i32
    %c0_i32_1 = arith.constant 0 : i32
    return %arg0, %c0_i32, %c0_i32_0 : i32, i32, i32
  }
}

module attributes {stable_mosaic.version = 11 : i64} {
  func.func @_bn_relu_heads_kernel(%arg0: i32, %arg1: memref<128x8xbf16, #tpu.memory_space<vmem>>, %arg2: memref<1x8xf32, #tpu.memory_space<vmem>>, %arg3: memref<1x8xf32, #tpu.memory_space<vmem>>, %arg4: memref<1x8xf32, #tpu.memory_space<vmem>>, %arg5: memref<1x8xf32, #tpu.memory_space<vmem>>, %arg6: memref<8x2xbf16, #tpu.memory_space<vmem>>, %arg7: memref<1x2xf32, #tpu.memory_space<vmem>>, %arg8: memref<128x8xbf16, #tpu.memory_space<vmem>>, %arg9: memref<128x2xf32, #tpu.memory_space<vmem>>) attributes {dimension_semantics = [#tpu.dimension_semantics<parallel>], iteration_bounds = array<i64: 4>, scalar_prefetch = 0 : i64, scratch_operands = 0 : i64, tpu.core_type = #tpu.core_type<tc>, window_params = [{transform_indices = @transform_0, window_bounds = array<i64: 128, 8>}, {pipeline_mode = #tpu.pipeline_mode<synchronous>, transform_indices = @transform_1, window_bounds = array<i64: 1, 8>}, {pipeline_mode = #tpu.pipeline_mode<synchronous>, transform_indices = @transform_2, window_bounds = array<i64: 1, 8>}, {pipeline_mode = #tpu.pipeline_mode<synchronous>, transform_indices = @transform_3, window_bounds = array<i64: 1, 8>}, {pipeline_mode = #tpu.pipeline_mode<synchronous>, transform_indices = @transform_4, window_bounds = array<i64: 1, 8>}, {pipeline_mode = #tpu.pipeline_mode<synchronous>, transform_indices = @transform_5, window_bounds = array<i64: 8, 2>}, {pipeline_mode = #tpu.pipeline_mode<synchronous>, transform_indices = @transform_6, window_bounds = array<i64: 1, 2>}, {transform_indices = @transform_7, window_bounds = array<i64: 128, 8>}, {transform_indices = @transform_8, window_bounds = array<i64: 128, 2>}]} {
    %c0 = arith.constant 0 : index
    %c0_0 = arith.constant 0 : index
    %0 = vector.load %arg2[%c0, %c0_0] : memref<1x8xf32, #tpu.memory_space<vmem>>, vector<1x8xf32>
    %c0_1 = arith.constant 0 : index
    %c0_2 = arith.constant 0 : index
    %1 = vector.load %arg3[%c0_1, %c0_2] : memref<1x8xf32, #tpu.memory_space<vmem>>, vector<1x8xf32>
    %2 = arith.mulf %0, %0 : vector<1x8xf32>
    %3 = arith.subf %1, %2 : vector<1x8xf32>
    %c0_3 = arith.constant 0 : index
    %c0_4 = arith.constant 0 : index
    %4 = vector.load %arg4[%c0_3, %c0_4] : memref<1x8xf32, #tpu.memory_space<vmem>>, vector<1x8xf32>
    %cst = arith.constant 9.99999974E-6 : f32
    %5 = vector.broadcast %cst : f32 to vector<1x8xf32>
    %6 = arith.addf %3, %5 : vector<1x8xf32>
    %7 = math.rsqrt %6 : vector<1x8xf32>
    %8 = arith.mulf %4, %7 : vector<1x8xf32>
    %c0_5 = arith.constant 0 : index
    %c0_6 = arith.constant 0 : index
    %9 = vector.load %arg5[%c0_5, %c0_6] : memref<1x8xf32, #tpu.memory_space<vmem>>, vector<1x8xf32>
    %10 = arith.mulf %0, %8 : vector<1x8xf32>
    %11 = arith.subf %9, %10 : vector<1x8xf32>
    %c0_7 = arith.constant 0 : index
    %c0_8 = arith.constant 0 : index
    %12 = vector.load %arg1[%c0_7, %c0_8] : memref<128x8xbf16, #tpu.memory_space<vmem>>, vector<128x8xbf16>
    %13 = arith.extf %12 : vector<128x8xbf16> to vector<128x8xf32>
    %14 = vector.broadcast %8 : vector<1x8xf32> to vector<128x8xf32>
    %15 = arith.mulf %13, %14 : vector<128x8xf32>
    %16 = vector.broadcast %11 : vector<1x8xf32> to vector<128x8xf32>
    %17 = arith.addf %15, %16 : vector<128x8xf32>
    %cst_9 = arith.constant 0.000000e+00 : f32
    %18 = vector.broadcast %cst_9 : f32 to vector<128x8xf32>
    %19 = arith.maximumf %17, %18 : vector<128x8xf32>
    %20 = arith.truncf %19 : vector<128x8xf32> to vector<128x8xbf16>
    %c0_10 = arith.constant 0 : index
    %c0_11 = arith.constant 0 : index
    %21 = vector.load %arg8[%c0_10, %c0_11] : memref<128x8xbf16, #tpu.memory_space<vmem>>, vector<128x8xbf16>
    tpu.vector_store %arg8[%c0_10, %c0_11], %20 {strides = array<i32>} : memref<128x8xbf16, #tpu.memory_space<vmem>>, vector<128x8xbf16>,
    %c0_12 = arith.constant 0 : index
    %c0_13 = arith.constant 0 : index
    %22 = vector.load %arg6[%c0_12, %c0_13] : memref<8x2xbf16, #tpu.memory_space<vmem>>, vector<8x2xbf16>
    %cst_14 = arith.constant dense<0.000000e+00> : vector<128x2xf32>
    %23 = tpu.matmul %20, %22, %cst_14 {dimension_numbers = #tpu.dot_dimension_numbers<[1], [0], [0], [1], [0, 0, 1, 1], [], []>} : vector<128x8xbf16>, vector<8x2xbf16>, vector<128x2xf32> -> vector<128x2xf32>
    %c0_15 = arith.constant 0 : index
    %c0_16 = arith.constant 0 : index
    %24 = vector.load %arg7[%c0_15, %c0_16] : memref<1x2xf32, #tpu.memory_space<vmem>>, vector<1x2xf32>
    %25 = vector.broadcast %24 : vector<1x2xf32> to vector<128x2xf32>
    %26 = arith.addf %23, %25 : vector<128x2xf32>
    %27 = tpu.iota {dimensions = array<i32: 1>} : vector<128x2xi32>
    %c0_i32 = arith.constant 0 : i32
    %28 = vector.broadcast %c0_i32 : i32 to vector<128x2xi32>
    %29 = arith.cmpi eq, %27, %28 : vector<128x2xi32>
    %cst_17 = arith.constant 0.000000e+00 : f32
    %30 = vector.broadcast %cst_17 : f32 to vector<128x2xf32>
    %31 = arith.subf %30, %26 : vector<128x2xf32>
    %32 = math.exp %31 : vector<128x2xf32>
    %cst_18 = arith.constant 1.000000e+00 : f32
    %33 = vector.broadcast %cst_18 : f32 to vector<128x2xf32>
    %34 = arith.addf %33, %32 : vector<128x2xf32>
    %cst_19 = arith.constant 1.000000e+00 : f32
    %35 = vector.broadcast %cst_19 : f32 to vector<128x2xf32>
    %36 = arith.divf %35, %34 : vector<128x2xf32>
    %37 = arith.select %29, %26, %36 : vector<128x2xi1>, vector<128x2xf32>
    %c0_20 = arith.constant 0 : index
    %c0_21 = arith.constant 0 : index
    %38 = vector.load %arg9[%c0_20, %c0_21] : memref<128x2xf32, #tpu.memory_space<vmem>>, vector<128x2xf32>
    tpu.vector_store %arg9[%c0_20, %c0_21], %37 {strides = array<i32>} : memref<128x2xf32, #tpu.memory_space<vmem>>, vector<128x2xf32>,
    return
  }
  func.func @transform_0(%arg0: i32) -> (i32, i32) {
    %c0_i32 = arith.constant 0 : i32
    %c0_i32_0 = arith.constant 0 : i32
    return %arg0, %c0_i32 : i32, i32
  }
  func.func @transform_1(%arg0: i32) -> (i32, i32) {
    %c0_i32 = arith.constant 0 : i32
    %c0_i32_0 = arith.constant 0 : i32
    %c0_i32_1 = arith.constant 0 : i32
    return %c0_i32, %c0_i32_0 : i32, i32
  }
  func.func @transform_2(%arg0: i32) -> (i32, i32) {
    %c0_i32 = arith.constant 0 : i32
    %c0_i32_0 = arith.constant 0 : i32
    %c0_i32_1 = arith.constant 0 : i32
    return %c0_i32, %c0_i32_0 : i32, i32
  }
  func.func @transform_3(%arg0: i32) -> (i32, i32) {
    %c0_i32 = arith.constant 0 : i32
    %c0_i32_0 = arith.constant 0 : i32
    %c0_i32_1 = arith.constant 0 : i32
    return %c0_i32, %c0_i32_0 : i32, i32
  }
  func.func @transform_4(%arg0: i32) -> (i32, i32) {
    %c0_i32 = arith.constant 0 : i32
    %c0_i32_0 = arith.constant 0 : i32
    %c0_i32_1 = arith.constant 0 : i32
    return %c0_i32, %c0_i32_0 : i32, i32
  }
  func.func @transform_5(%arg0: i32) -> (i32, i32) {
    %c0_i32 = arith.constant 0 : i32
    %c0_i32_0 = arith.constant 0 : i32
    %c0_i32_1 = arith.constant 0 : i32
    return %c0_i32, %c0_i32_0 : i32, i32
  }
  func.func @transform_6(%arg0: i32) -> (i32, i32) {
    %c0_i32 = arith.constant 0 : i32
    %c0_i32_0 = arith.constant 0 : i32
    %c0_i32_1 = arith.constant 0 : i32
    return %c0_i32, %c0_i32_0 : i32, i32
  }
  func.func @transform_7(%arg0: i32) -> (i32, i32) {
    %c0_i32 = arith.constant 0 : i32
    %c0_i32_0 = arith.constant 0 : i32
    return %arg0, %c0_i32 : i32, i32
  }
  func.func @transform_8(%arg0: i32) -> (i32, i32) {
    %c0_i32 = arith.constant 0 : i32
    %c0_i32_0 = arith.constant 0 : i32
    return %arg0, %c0_i32 : i32, i32
  }
}

module attributes {stable_mosaic.version = 11 : i64} {
  func.func @_gemm_bias_kernel(%arg0: i32, %arg1: memref<128x300xbf16, #tpu.memory_space<vmem>>, %arg2: memref<300x24xbf16, #tpu.memory_space<vmem>>, %arg3: memref<1x24xf32, #tpu.memory_space<vmem>>, %arg4: memref<128x24xbf16, #tpu.memory_space<vmem>>) attributes {dimension_semantics = [#tpu.dimension_semantics<parallel>], iteration_bounds = array<i64: 4>, scalar_prefetch = 0 : i64, scratch_operands = 0 : i64, tpu.core_type = #tpu.core_type<tc>, window_params = [{transform_indices = @transform_0, window_bounds = array<i64: 128, 300>}, {pipeline_mode = #tpu.pipeline_mode<synchronous>, transform_indices = @transform_1, window_bounds = array<i64: 300, 24>}, {pipeline_mode = #tpu.pipeline_mode<synchronous>, transform_indices = @transform_2, window_bounds = array<i64: 1, 24>}, {transform_indices = @transform_3, window_bounds = array<i64: 128, 24>}]} {
    %c0 = arith.constant 0 : index
    %c0_0 = arith.constant 0 : index
    %0 = vector.load %arg1[%c0, %c0_0] : memref<128x300xbf16, #tpu.memory_space<vmem>>, vector<128x300xbf16>
    %c0_1 = arith.constant 0 : index
    %c0_2 = arith.constant 0 : index
    %1 = vector.load %arg2[%c0_1, %c0_2] : memref<300x24xbf16, #tpu.memory_space<vmem>>, vector<300x24xbf16>
    %cst = arith.constant dense<0.000000e+00> : vector<128x24xf32>
    %2 = tpu.matmul %0, %1, %cst {dimension_numbers = #tpu.dot_dimension_numbers<[1], [0], [0], [1], [0, 0, 1, 1], [], []>} : vector<128x300xbf16>, vector<300x24xbf16>, vector<128x24xf32> -> vector<128x24xf32>
    %c0_3 = arith.constant 0 : index
    %c0_4 = arith.constant 0 : index
    %3 = vector.load %arg3[%c0_3, %c0_4] : memref<1x24xf32, #tpu.memory_space<vmem>>, vector<1x24xf32>
    %4 = vector.broadcast %3 : vector<1x24xf32> to vector<128x24xf32>
    %5 = arith.addf %2, %4 : vector<128x24xf32>
    %6 = arith.truncf %5 : vector<128x24xf32> to vector<128x24xbf16>
    %c0_5 = arith.constant 0 : index
    %c0_6 = arith.constant 0 : index
    %7 = vector.load %arg4[%c0_5, %c0_6] : memref<128x24xbf16, #tpu.memory_space<vmem>>, vector<128x24xbf16>
    tpu.vector_store %arg4[%c0_5, %c0_6], %6 {strides = array<i32>} : memref<128x24xbf16, #tpu.memory_space<vmem>>, vector<128x24xbf16>,
    return
  }
  func.func @transform_0(%arg0: i32) -> (i32, i32) {
    %c0_i32 = arith.constant 0 : i32
    %c0_i32_0 = arith.constant 0 : i32
    return %arg0, %c0_i32 : i32, i32
  }
  func.func @transform_1(%arg0: i32) -> (i32, i32) {
    %c0_i32 = arith.constant 0 : i32
    %c0_i32_0 = arith.constant 0 : i32
    %c0_i32_1 = arith.constant 0 : i32
    return %c0_i32, %c0_i32_0 : i32, i32
  }
  func.func @transform_2(%arg0: i32) -> (i32, i32) {
    %c0_i32 = arith.constant 0 : i32
    %c0_i32_0 = arith.constant 0 : i32
    %c0_i32_1 = arith.constant 0 : i32
    return %c0_i32, %c0_i32_0 : i32, i32
  }
  func.func @transform_3(%arg0: i32) -> (i32, i32) {
    %c0_i32 = arith.constant 0 : i32
    %c0_i32_0 = arith.constant 0 : i32
    return %arg0, %c0_i32 : i32, i32
  }
}

module attributes {stable_mosaic.version = 11 : i64} {
  func.func @_gemm_bias_kernel(%arg0: i32, %arg1: memref<128x600xbf16, #tpu.memory_space<vmem>>, %arg2: memref<600x12xbf16, #tpu.memory_space<vmem>>, %arg3: memref<1x12xf32, #tpu.memory_space<vmem>>, %arg4: memref<128x12xbf16, #tpu.memory_space<vmem>>) attributes {dimension_semantics = [#tpu.dimension_semantics<parallel>], iteration_bounds = array<i64: 4>, scalar_prefetch = 0 : i64, scratch_operands = 0 : i64, tpu.core_type = #tpu.core_type<tc>, window_params = [{transform_indices = @transform_0, window_bounds = array<i64: 128, 600>}, {pipeline_mode = #tpu.pipeline_mode<synchronous>, transform_indices = @transform_1, window_bounds = array<i64: 600, 12>}, {pipeline_mode = #tpu.pipeline_mode<synchronous>, transform_indices = @transform_2, window_bounds = array<i64: 1, 12>}, {transform_indices = @transform_3, window_bounds = array<i64: 128, 12>}]} {
    %c0 = arith.constant 0 : index
    %c0_0 = arith.constant 0 : index
    %0 = vector.load %arg1[%c0, %c0_0] : memref<128x600xbf16, #tpu.memory_space<vmem>>, vector<128x600xbf16>
    %c0_1 = arith.constant 0 : index
    %c0_2 = arith.constant 0 : index
    %1 = vector.load %arg2[%c0_1, %c0_2] : memref<600x12xbf16, #tpu.memory_space<vmem>>, vector<600x12xbf16>
    %cst = arith.constant dense<0.000000e+00> : vector<128x12xf32>
    %2 = tpu.matmul %0, %1, %cst {dimension_numbers = #tpu.dot_dimension_numbers<[1], [0], [0], [1], [0, 0, 1, 1], [], []>} : vector<128x600xbf16>, vector<600x12xbf16>, vector<128x12xf32> -> vector<128x12xf32>
    %c0_3 = arith.constant 0 : index
    %c0_4 = arith.constant 0 : index
    %3 = vector.load %arg3[%c0_3, %c0_4] : memref<1x12xf32, #tpu.memory_space<vmem>>, vector<1x12xf32>
    %4 = vector.broadcast %3 : vector<1x12xf32> to vector<128x12xf32>
    %5 = arith.addf %2, %4 : vector<128x12xf32>
    %6 = arith.truncf %5 : vector<128x12xf32> to vector<128x12xbf16>
    %c0_5 = arith.constant 0 : index
    %c0_6 = arith.constant 0 : index
    %7 = vector.load %arg4[%c0_5, %c0_6] : memref<128x12xbf16, #tpu.memory_space<vmem>>, vector<128x12xbf16>
    tpu.vector_store %arg4[%c0_5, %c0_6], %6 {strides = array<i32>} : memref<128x12xbf16, #tpu.memory_space<vmem>>, vector<128x12xbf16>,
    return
  }
  func.func @transform_0(%arg0: i32) -> (i32, i32) {
    %c0_i32 = arith.constant 0 : i32
    %c0_i32_0 = arith.constant 0 : i32
    return %arg0, %c0_i32 : i32, i32
  }
  func.func @transform_1(%arg0: i32) -> (i32, i32) {
    %c0_i32 = arith.constant 0 : i32
    %c0_i32_0 = arith.constant 0 : i32
    %c0_i32_1 = arith.constant 0 : i32
    return %c0_i32, %c0_i32_0 : i32, i32
  }
  func.func @transform_2(%arg0: i32) -> (i32, i32) {
    %c0_i32 = arith.constant 0 : i32
    %c0_i32_0 = arith.constant 0 : i32
    %c0_i32_1 = arith.constant 0 : i32
    return %c0_i32, %c0_i32_0 : i32, i32
  }
  func.func @transform_3(%arg0: i32) -> (i32, i32) {
    %c0_i32 = arith.constant 0 : i32
    %c0_i32_0 = arith.constant 0 : i32
    return %arg0, %c0_i32 : i32, i32
  }
}

module attributes {stable_mosaic.version = 11 : i64} {
  func.func @_gemm_bias_kernel(%arg0: i32, %arg1: memref<128x12xbf16, #tpu.memory_space<vmem>>, %arg2: memref<12x1xbf16, #tpu.memory_space<vmem>>, %arg3: memref<1x1xf32, #tpu.memory_space<vmem>>, %arg4: memref<128x1xf32, #tpu.memory_space<vmem>>) attributes {dimension_semantics = [#tpu.dimension_semantics<parallel>], iteration_bounds = array<i64: 4>, scalar_prefetch = 0 : i64, scratch_operands = 0 : i64, tpu.core_type = #tpu.core_type<tc>, window_params = [{transform_indices = @transform_0, window_bounds = array<i64: 128, 12>}, {pipeline_mode = #tpu.pipeline_mode<synchronous>, transform_indices = @transform_1, window_bounds = array<i64: 12, 1>}, {pipeline_mode = #tpu.pipeline_mode<synchronous>, transform_indices = @transform_2, window_bounds = array<i64: 1, 1>}, {transform_indices = @transform_3, window_bounds = array<i64: 128, 1>}]} {
    %c0 = arith.constant 0 : index
    %c0_0 = arith.constant 0 : index
    %0 = vector.load %arg1[%c0, %c0_0] : memref<128x12xbf16, #tpu.memory_space<vmem>>, vector<128x12xbf16>
    %c0_1 = arith.constant 0 : index
    %c0_2 = arith.constant 0 : index
    %1 = vector.load %arg2[%c0_1, %c0_2] : memref<12x1xbf16, #tpu.memory_space<vmem>>, vector<12x1xbf16>
    %cst = arith.constant dense<0.000000e+00> : vector<128x1xf32>
    %2 = tpu.matmul %0, %1, %cst {dimension_numbers = #tpu.dot_dimension_numbers<[1], [0], [0], [1], [0, 0, 1, 1], [], []>} : vector<128x12xbf16>, vector<12x1xbf16>, vector<128x1xf32> -> vector<128x1xf32>
    %c0_3 = arith.constant 0 : index
    %c0_4 = arith.constant 0 : index
    %3 = vector.load %arg3[%c0_3, %c0_4] : memref<1x1xf32, #tpu.memory_space<vmem>>, vector<1x1xf32>
    %4 = vector.broadcast %3 : vector<1x1xf32> to vector<128x1xf32>
    %5 = arith.addf %2, %4 : vector<128x1xf32>
    %c0_5 = arith.constant 0 : index
    %c0_6 = arith.constant 0 : index
    %6 = vector.load %arg4[%c0_5, %c0_6] : memref<128x1xf32, #tpu.memory_space<vmem>>, vector<128x1xf32>
    tpu.vector_store %arg4[%c0_5, %c0_6], %5 {strides = array<i32>} : memref<128x1xf32, #tpu.memory_space<vmem>>, vector<128x1xf32>,
    return
  }
  func.func @transform_0(%arg0: i32) -> (i32, i32) {
    %c0_i32 = arith.constant 0 : i32
    %c0_i32_0 = arith.constant 0 : i32
    return %arg0, %c0_i32 : i32, i32
  }
  func.func @transform_1(%arg0: i32) -> (i32, i32) {
    %c0_i32 = arith.constant 0 : i32
    %c0_i32_0 = arith.constant 0 : i32
    %c0_i32_1 = arith.constant 0 : i32
    return %c0_i32, %c0_i32_0 : i32, i32
  }
  func.func @transform_2(%arg0: i32) -> (i32, i32) {
    %c0_i32 = arith.constant 0 : i32
    %c0_i32_0 = arith.constant 0 : i32
    %c0_i32_1 = arith.constant 0 : i32
    return %c0_i32, %c0_i32_0 : i32, i32
  }
  func.func @transform_3(%arg0: i32) -> (i32, i32) {
    %c0_i32 = arith.constant 0 : i32
    %c0_i32_0 = arith.constant 0 : i32
    return %arg0, %c0_i32 : i32, i32
  }
}

</mosaic_0001>

<bundles_post_ra>
// kernel: featextnet_forward.28
= control target key start
LH: loop header
LB: loop body
LE: loop exit
PB: predicated region body
PF: predicated region fallthrough
CT: control target
= control target key end

     0   :  { %s521_s18 = smov 0   ;;  %s601_s0 = inlined_call_operand.vmem [shape: bf16[512,8], index: 0, kind: input, shape index: {}]   ;;  %s602_s1 = inlined_call_operand.vmem [shape: f32[1,8], index: 1, kind: input, shape index: {}]   ;;  %s603_s2 = inlined_call_operand.vmem [shape: f32[1,8], index: 2, kind: input, shape index: {}]   ;;  %s604_s3 = inlined_call_operand.vmem [shape: f32[1,8], index: 3, kind: input, shape index: {}]   ;;  %s605_s4 = inlined_call_operand.vmem [shape: f32[1,8], index: 4, kind: input, shape index: {}]   ;;  %s606_s5 = inlined_call_operand.vmem [shape: bf16[512,8], index: 5, kind: output, shape index: {}]  }
   0x1 LB: > { %s423_s19 = sadd.s32 4294967295, %s489_s18   ;;  %p427_p0 = scmp.ge.s32.totalorder %s489_s18, 1  ;;  %s489_s18 = sphi %s521_s18, %s15_s18  }
   0x2   : > { %p188_p1 = scmp.lt.s32.totalorder %s489_s18, 5 }
   0x4   : > { %p189_p2 = pnand %p427_p0, %p188_p1 }
   0x5   : > { %s428_s24 = sshll.u32 (!%p189_p2), %s423_s19, 4 }
   0x6   : > { %192 = sbr.rel (%p189_p2) target bundleno = 66 (0x42), region = 40  ;;  %p217_p3 = scmp.lt.s32.totalorder (!%p189_p2), %s428_s24, 63 }
   0xb   : > { %v228_v0 = vld [vmem:[%s602_s1] sm:$0x1]  ;;  %s608_s24 = smov (!%p217_p3, %s428_s24), 63  ;;  %vm350_vm3 = vcmask 60416  }
   0xc   : > { %v229_v1 = vld [vmem:[%s603_s2] sm:$0x1]  ;;  %v230_v2 = vmul.f32 %v228_v0, %v228_v0  ;;  %s429_s25 = sshll.u32 %s608_s24, 2 }
   0xd   : > { %s543_s28 = scalar_lea.vmem %s601_s0, %s429_s25  ;;  %v232_v11 = vld [vmem:[%s604_s3] sm:$0x1]  ;;  %s564_s10 = scalar_lea.vmem %s606_s5, %s429_s25 }
   0xe   : > { %v231_v3 = vsub.f32 %v229_v1, %v230_v2  ;;  %v435_v10 = vld [vmem:[%s543_s28] sm:$0xff]   ;;  %v466_v13 = vld [vmem:[%s543_s28 + $0x8] sm:$0xff]   ;;  %v467_v14 = vld [vmem:[%s543_s28 + $0x10] sm:$0xff]  }
   0xf   : > { %v468_v15 = vld [vmem:[%s543_s28 + $0x18] sm:$0xff]   ;;  %v436_v17 = vunpack.c.l.bf16 %v435_v10  ;;  %v469_v18 = vld [vmem:[%s543_s28 + $0x20] sm:$0xff]   ;;  %v437_v20 = vunpack.c.h.bf16 %v435_v10  ;;  %v440_v21 = vunpack.c.l.bf16 %v466_v13  ;;  %v441_v22 = vunpack.c.h.bf16 %v466_v13  ;;  %v470_v23 = vld [vmem:[%s543_s28 + $0x28] sm:$0xff]  }
  0x10   : > { %v233_v4 = vadd.f32 1e-05, %v231_v3  ;;  %v471_v24 = vld [vmem:[%s543_s28 + $0x30] sm:$0xff]   ;;  %v245_v25 = vld [vmem:[%s605_s4] sm:$0x1]  ;;  %v444_v26 = vunpack.c.l.bf16 %v467_v14  ;;  %v445_v27 = vunpack.c.h.bf16 %v467_v14  ;;  %v448_v28 = vunpack.c.l.bf16 %v468_v15  ;;  %v472_v38 = vld [vmem:[%s543_s28 + $0x38] sm:$0xff]  }
  0x11   : > { %v449_v29 = vunpack.c.h.bf16 %v468_v15  ;;  %v452_v32 = vunpack.c.l.bf16 %v469_v18  ;;  %v453_v33 = vunpack.c.h.bf16 %v469_v18  ;;  %v456_v34 = vunpack.c.l.bf16 %v470_v23 }
  0x12   : > { %481 = vrsqrt.f32 %v233_v4  ;;  %vm240_vm0 = vweird.f32 %v233_v4  ;;  %v457_v35 = vunpack.c.h.bf16 %v470_v23  ;;  %v460_v36 = vunpack.c.l.bf16 %v471_v24 }
  0x13   : > { %v461_v37 = vunpack.c.h.bf16 %v471_v24  ;;  %v464_v49 = vunpack.c.l.bf16 %v472_v38  ;;  %v465_v50 = vunpack.c.h.bf16 %v472_v38 }
  0x18   : > { %v482_v5 = vpop.eup %481 }
  0x19   : > { %v235_v6 = vmul.f32 %v482_v5, %v233_v4  ;;  %vm241_vm1 = vweird.f32 %v482_v5 }
  0x1a   : > { %vm242_vm2 = vmor %vm240_vm0, %vm241_vm1 }
  0x1b   : > { %v236_v7 = vmul.f32 %v482_v5, %v235_v6 }
  0x1d   : > { %v237_v8 = vmul.f32 0.5, %v236_v7 }
  0x1f   : > { %v238_v9 = vsub.f32 1.5, %v237_v8 }
  0x21   : > { %v239_v12 = vmul.f32 %v482_v5, %v238_v9 }
  0x23   : > { %v243_v16 = vsel %vm242_vm2, %v482_v5, %v239_v12 }
  0x24   : > { %v244_v19 = vmul.f32 %v243_v16, %v232_v11 }
  0x26   : > { %v246_v30 = vmul.f32 %v244_v19, %v228_v0  ;;  %v281_v31 = vperm.slane %v244_v19, 0 }
  0x28   : > { %v247_v39 = vsub.f32 %v245_v25, %v246_v30  ;;  %v283_v40 = vmul.f32 %v436_v17, %v281_v31  ;;  %v284_v41 = vmul.f32 %v437_v20, %v281_v31  ;;  %v285_v42 = vmul.f32 %v440_v21, %v281_v31 }
  0x29   : > { %v286_v43 = vmul.f32 %v441_v22, %v281_v31  ;;  %v287_v44 = vmul.f32 %v444_v26, %v281_v31  ;;  %v288_v45 = vmul.f32 %v445_v27, %v281_v31  ;;  %v289_v46 = vmul.f32 %v448_v28, %v281_v31 }
  0x2a   : > { %v300_v47 = vperm.slane %v247_v39, 0  ;;  %v290_v48 = vmul.f32 %v449_v29, %v281_v31  ;;  %v291_v51 = vmul.f32 %v452_v32, %v281_v31  ;;  %v292_v52 = vmul.f32 %v453_v33, %v281_v31 }
  0x2b   : > { %v293_v53 = vmul.f32 %v456_v34, %v281_v31  ;;  %v294_v54 = vmul.f32 %v457_v35, %v281_v31  ;;  %v295_v5 = vmul.f32 %v460_v36, %v281_v31  ;;  %v296_v6 = vmul.f32 %v461_v37, %v281_v31 }
  0x2c   : > { %v302_v55 = vadd.f32 %v300_v47, %v283_v40  ;;  %v303_v56 = vadd.f32 %v300_v47, %v284_v41  ;;  %v304_v57 = vadd.f32 %v300_v47, %v285_v42  ;;  %v305_v58 = vadd.f32 %v300_v47, %v286_v43 }
  0x2d   : > { %v306_v59 = vadd.f32 %v300_v47, %v287_v44  ;;  %v307_v60 = vadd.f32 %v300_v47, %v288_v45  ;;  %v308_v61 = vadd.f32 %v300_v47, %v289_v46  ;;  %v309_v62 = vadd.f32 %v300_v47, %v290_v48 }
  0x2e   : > { %v318_v63 = vmax.f32 %v302_v55, 0.0  ;;  %v319_v0 = vmax.f32 %v303_v56, 0.0  ;;  %v320_v1 = vmax.f32 %v304_v57, 0.0  ;;  %v321_v2 = vmax.f32 %v305_v58, 0.0 }
  0x2f   : > { %v322_v3 = vmax.f32 %v306_v59, 0.0  ;;  %v323_v4 = vmax.f32 %v307_v60, 0.0  ;;  %v324_v10 = vmax.f32 %v308_v61, 0.0  ;;  %v325_v14 = vmax.f32 %v309_v62, 0.0 }
  0x30   : > { %v334_v7 = vpack.c.bf16 %v318_v63, %v318_v63  ;;  %v335_v8 = vpack.c.bf16 %v319_v0, %v319_v0  ;;  %v336_v9 = vpack.c.bf16 %v320_v1, %v320_v1  ;;  %v337_v11 = vpack.c.bf16 %v321_v2, %v321_v2 }
  0x31   : > { %v338_v12 = vpack.c.bf16 %v322_v3, %v322_v3  ;;  %v339_v13 = vpack.c.bf16 %v323_v4, %v323_v4  ;;  %v310_v15 = vadd.f32 %v300_v47, %v291_v51  ;;  %v311_v16 = vadd.f32 %v300_v47, %v292_v52 }
  0x32   : > { %351 = vst.msk [vmem:[%s564_s10] sm:$0xf] %vm350_vm3, %v334_v7  ;;  %v312_v17 = vadd.f32 %v300_v47, %v293_v53  ;;  %v313_v18 = vadd.f32 %v300_v47, %v294_v54  ;;  %v314_v19 = vadd.f32 %v300_v47, %v295_v5  ;;  %v315_v20 = vadd.f32 %v300_v47, %v296_v6 }
  0x33   : > { %352 = vst.msk [vmem:[%s564_s10 + $0x4] sm:$0xf] %vm350_vm3, %v335_v8  ;;  %v297_v21 = vmul.f32 %v464_v49, %v281_v31  ;;  %v298_v22 = vmul.f32 %v465_v50, %v281_v31  ;;  %v340_v23 = vpack.c.bf16 %v324_v10, %v324_v10  ;;  %v326_v24 = vmax.f32 %v310_v15, 0.0 }
  0x34   : > { %353 = vst.msk [vmem:[%s564_s10 + $0x8] sm:$0xf] %vm350_vm3, %v336_v9  ;;  %v327_v25 = vmax.f32 %v311_v16, 0.0  ;;  %v328_v26 = vmax.f32 %v312_v17, 0.0  ;;  %v341_v27 = vpack.c.bf16 %v325_v14, %v325_v14  ;;  %v329_v28 = vmax.f32 %v313_v18, 0.0 }
  0x35   : > { %354 = vst.msk [vmem:[%s564_s10 + $0xc] sm:$0xf] %vm350_vm3, %v337_v11  ;;  %v316_v29 = vadd.f32 %v300_v47, %v297_v21  ;;  %v317_v30 = vadd.f32 %v300_v47, %v298_v22  ;;  %v342_v31 = vpack.c.bf16 %v326_v24, %v326_v24  ;;  %v330_v32 = vmax.f32 %v314_v19, 0.0 }
  0x36   : > { %355 = vst.msk [vmem:[%s564_s10 + $0x10] sm:$0xf] %vm350_vm3, %v338_v12  ;;  %v343_v33 = vpack.c.bf16 %v327_v25, %v327_v25  ;;  %v331_v34 = vmax.f32 %v315_v20, 0.0  ;;  %v344_v35 = vpack.c.bf16 %v328_v26, %v328_v26  ;;  %v345_v37 = vpack.c.bf16 %v329_v28, %v329_v28 }
  0x37   : > { %356 = vst.msk [vmem:[%s564_s10 + $0x14] sm:$0xf] %vm350_vm3, %v339_v13  ;;  %v332_v36 = vmax.f32 %v316_v29, 0.0  ;;  %v333_v38 = vmax.f32 %v317_v30, 0.0  ;;  %v346_v39 = vpack.c.bf16 %v330_v32, %v330_v32 }
  0x38   : > { %357 = vst.msk [vmem:[%s564_s10 + $0x18] sm:$0xf] %vm350_vm3, %v340_v23  ;;  %v347_v40 = vpack.c.bf16 %v331_v34, %v331_v34 }
  0x39   : > { %358 = vst.msk [vmem:[%s564_s10 + $0x1c] sm:$0xf] %vm350_vm3, %v341_v27  ;;  %v348_v41 = vpack.c.bf16 %v332_v36, %v332_v36  ;;  %v349_v42 = vpack.c.bf16 %v333_v38, %v333_v38 }
  0x3a   : > { %359 = vst.msk [vmem:[%s564_s10 + $0x20] sm:$0xf] %vm350_vm3, %v342_v31 }
  0x3b   : > { %360 = vst.msk [vmem:[%s564_s10 + $0x24] sm:$0xf] %vm350_vm3, %v343_v33 }
  0x3c   : > { %361 = vst.msk [vmem:[%s564_s10 + $0x28] sm:$0xf] %vm350_vm3, %v344_v35 }
  0x3d   : > { %362 = vst.msk [vmem:[%s564_s10 + $0x2c] sm:$0xf] %vm350_vm3, %v345_v37 }
  0x3e   : > { %363 = vst.msk [vmem:[%s564_s10 + $0x30] sm:$0xf] %vm350_vm3, %v346_v39 }
  0x3f   : > { %364 = vst.msk [vmem:[%s564_s10 + $0x34] sm:$0xf] %vm350_vm3, %v347_v40 }
  0x40   : > { %365 = vst.msk [vmem:[%s564_s10 + $0x38] sm:$0xf] %vm350_vm3, %v348_v41 }
  0x41   : > { %366 = vst.msk [vmem:[%s564_s10 + $0x3c] sm:$0xf] %vm350_vm3, %v349_v42 }
  0x42 PF: > { %s15_s18 = sadd.s32 1, %s489_s18  }
  0x43   : > { %p12_p4 = scmp.ge.s32.totalorder %s15_s18, 6  }
  0x45   :  { %14 = sbr.rel (!%p12_p4) target bundleno = 1 (0x1), region = 70 }

// kernel: featextnet_forward.27
= control target key start
LH: loop header
LB: loop body
LE: loop exit
PB: predicated region body
PF: predicated region fallthrough
CT: control target
= control target key end

     0   :  { %s667_s12 = smov 0   ;;  %s813_s0 = inlined_call_operand.vmem [shape: bf16[512,27], index: 0, kind: input, shape index: {}]   ;;  %s814_s1 = inlined_call_operand.vmem [shape: bf16[27,8], index: 1, kind: input, shape index: {}]   ;;  %s815_s2 = inlined_call_operand.vmem [shape: bf16[512,8], index: 2, kind: output, shape index: {0}]   ;;  %s816_s3 = inlined_call_operand.vmem [shape: f32[4,2,8], index: 3, kind: output, shape index: {1}]  }
   0x1 LB: > { %s673_s13 = sadd.s32 4294967295, %s644_s12   ;;  %p557_p0 = scmp.ge.s32.totalorder %s644_s12, 1  ;;  %s644_s12 = sphi %s667_s12, %s14_s12  }
   0x2   : > { %p141_p1 = scmp.lt.s32.totalorder %s644_s12, 5 }
   0x4   : > { %p142_p2 = pnand %p557_p0, %p141_p1 }
   0x5   : > { %s558_s18 = sshll.u32 (!%p142_p2), %s673_s13, 4  ;;  %p181_p4 = scmp.lt.s32.totalorder (!%p142_p2), %s673_s13, 3 }
   0x6   : > { %145 = sbr.rel (%p142_p2) target bundleno = 217 (0xd9), region = 28  ;;  %p170_p3 = scmp.lt.s32.totalorder (!%p142_p2), %s558_s18, 63 }
   0xb   : > { %v601_v0 = vld [vmem:[%s814_s1 + $0x8] sm:$0xf]  ;;  %v622_v1 = vld [vmem:[%s814_s1 + $0x8] sm:$0x30]  ;;  %vm282_vm0 = vcmask 1044480   ;;  %vm283_vm1 = vcmask 1045504  }
   0xc   : > { %v602_v2 = vor.u32 %v622_v1, %v601_v0  ;;  %v646_v3 = vmov 65535   ;;  %s818_s18 = smov (!%p170_p3, %s558_s18), 63  ;;  %v621_v7 = vld [vmem:[%s814_s1] sm:$0xff]  ;;  %vm257_vm2 = vcmask 220160   ;;  %vm354_vm3 = vcmask 60416   ;;  %s820_s13 = smov (!%p181_p4, %s673_s13), 3 }
   0xd   : > { %v284_v4 = vsel %vm282_vm0, 4294967295, %v646_v3  ;;  %s559_s21 = sshll.u32 %s818_s18, 2  ;;  %vm371_vm4 = vcmask 64512   ;;  %s562_s28 = sshll.u32 %s820_s13, 1  ;;  %vm462_vm5 = vcmask 1040384   ;;  %vm464_vm6 = vcmask 58368  }
   0xe   : > { %v285_v5 = vsel %vm283_vm1, %v284_v4, 0  ;;  %s173_s24 = scalar_lea.vmem %s813_s0, %s559_s21  ;;  %s704_s27 = scalar_lea.vmem %s815_s2, %s559_s21 }
   0xf   : > { %v287_v6 = vand.u32 %v602_v2, %v285_v5  ;;  %v613_v8 = vld [vmem:[%s173_s24] sm:$0xff]  ;;  %v615_v9 = vld [vmem:[%s173_s24 + $0x10] sm:$0xff]  ;;  %v614_v12 = vld [vmem:[%s173_s24 + $0x8] sm:$0xff]  ;;  %s184_s4 = scalar_lea.vmem %s816_s3, %s562_s28 }
  0x10   : > { %v617_v10 = vld [vmem:[%s173_s24 + $0x20] sm:$0xff]  ;;  %v619_v11 = vld [vmem:[%s173_s24 + $0x30] sm:$0xff]  ;;  %v616_v13 = vld [vmem:[%s173_s24 + $0x18] sm:$0xff] }
  0x11   : > { %295 = vmatpush.bf16.msra.mxu0 %v287_v6  ;;  %623 = vmatpush.bf16.msra.mxu1 %v287_v6  ;;  %v618_v14 = vld [vmem:[%s173_s24 + $0x28] sm:$0xff]  ;;  %v620_v15 = vld [vmem:[%s173_s24 + $0x38] sm:$0xff] }
  0x12   : > { %624 = vmatpush.bf16.msra.mxu2 %v287_v6  ;;  %625 = vmatpush.bf16.msra.mxu3 %v287_v6 }
  0x15   : > { %296 = vmatpush.bf16.msra.mxu0 %v621_v7  ;;  %626 = vmatpush.bf16.msra.mxu1 %v621_v7 }
  0x16   : > { %627 = vmatpush.bf16.msra.mxu2 %v621_v7  ;;  %628 = vmatpush.bf16.msra.mxu3 %v621_v7 }
  0x18   : > { %603 = vmatmul.msk.bf16.vlgmr.msra.gmra.mxu0 %vm257_vm2, %v613_v8  ;;  %605 = vmatmul.msk.bf16.vlgmr.msra.gmra.mxu1 %vm257_vm2, %v615_v9 }
  0x19   : > { %607 = vmatmul.msk.bf16.vlgmr.msra.gmra.mxu2 %vm257_vm2, %v617_v10  ;;  %609 = vmatmul.msk.bf16.vlgmr.msra.gmra.mxu3 %vm257_vm2, %v619_v11 }
  0x28   : > { %604 = vmatmul.msk.bf16.gmra.mxu0 %vm257_vm2, %v614_v12  ;;  %606 = vmatmul.msk.bf16.gmra.mxu1 %vm257_vm2, %v616_v13 }
  0x29   : > { %608 = vmatmul.msk.bf16.gmra.mxu2 %vm257_vm2, %v618_v14  ;;  %610 = vmatmul.msk.bf16.gmra.mxu3 %vm257_vm2, %v620_v15 }
  0x95   : > { %v298_v16 = vpop.f32.mrf.mxu0  ;;  %v308_v17 = vpop.f32.mrf.mxu1 }
  0x96   : > { %v338_v18 = vpack.c.bf16 %v298_v16, %v298_v16  ;;  %v342_v19 = vpack.c.bf16 %v308_v17, %v308_v17  ;;  %v409_v37 = vmul.f32 %v298_v16, %v298_v16  ;;  %v372_v40 = vsel %vm371_vm4, %v298_v16, 0.0 }
  0x97   : > { %v413_v45 = vmul.f32 %v308_v17, %v308_v17  ;;  %v379_v61 = vsel %vm371_vm4, %v308_v17, 0.0 }
  0x98   : > { %355 = vst.msk [vmem:[%s704_s27] sm:$0xf] %vm354_vm3, %v338_v18  ;;  %v425_v44 = vsel %vm371_vm4, %v409_v37, 0.0 }
  0x99   : > { %359 = vst.msk [vmem:[%s704_s27 + $0x10] sm:$0xf] %vm354_vm3, %v342_v19  ;;  %v432_v2 = vsel %vm371_vm4, %v413_v45, 0.0 }
  0x9c   : > { %v710_v20 = vpop.f32.mrf.mxu2  ;;  %v712_v21 = vpop.f32.mrf.mxu3 }
  0x9d   : > { %v300_v22 = vpop.f32.mrf.mxu0  ;;  %v310_v23 = vpop.f32.mrf.mxu1  ;;  %v346_v24 = vpack.c.bf16 %v710_v20, %v710_v20  ;;  %v350_v27 = vpack.c.bf16 %v712_v21, %v712_v21  ;;  %v417_v15 = vmul.f32 %v710_v20, %v710_v20 }
  0x9e   : > { %v339_v25 = vpack.c.bf16 %v300_v22, %v300_v22  ;;  %v343_v26 = vpack.c.bf16 %v310_v23, %v310_v23  ;;  %v410_v33 = vmul.f32 %v300_v22, %v300_v22  ;;  %v373_v38 = vsel %vm371_vm4, %v300_v22, 0.0 }
  0x9f   : > { %363 = vst.msk [vmem:[%s704_s27 + $0x20] sm:$0xf] %vm354_vm3, %v346_v24  ;;  %v374_v43 = vadd.f32 %v373_v38, %v372_v40  ;;  %v414_v62 = vmul.f32 %v310_v23, %v310_v23  ;;  %v381_v3 = vsel %vm371_vm4, %v310_v23, 0.0  ;;  %v387_v23 = vsel %vm371_vm4, %v710_v20, 0.0 }
  0xa0   : > { %356 = vst.msk [vmem:[%s704_s27 + $0x4] sm:$0xf] %vm354_vm3, %v339_v25  ;;  %v426_v41 = vsel %vm371_vm4, %v410_v33, 0.0 }
  0xa1   : > { %360 = vst.msk [vmem:[%s704_s27 + $0x14] sm:$0xf] %vm354_vm3, %v343_v26  ;;  %v427_v49 = vadd.f32 %v426_v41, %v425_v44  ;;  %v434_v7 = vsel %vm371_vm4, %v414_v62, 0.0 }
  0xa2   : > { %367 = vst.msk [vmem:[%s704_s27 + $0x30] sm:$0xf] %vm354_vm3, %v350_v27 }
  0xa4   : > { %v726_v28 = vpop.f32.mrf.mxu2  ;;  %v728_v29 = vpop.f32.mrf.mxu3 }
  0xa5   : > { %v303_v30 = vpop.f32.mrf.mxu0  ;;  %v313_v31 = vpop.f32.mrf.mxu1  ;;  %v347_v32 = vpack.c.bf16 %v726_v28, %v726_v28  ;;  %v351_v36 = vpack.c.bf16 %v728_v29, %v728_v29  ;;  %v418_v24 = vmul.f32 %v726_v28, %v726_v28  ;;  %v422_v44 = vmul.f32 %v728_v29, %v728_v29 }
  0xa6   : > { %v340_v34 = vpack.c.bf16 %v303_v30, %v303_v30  ;;  %v344_v35 = vpack.c.bf16 %v313_v31, %v313_v31  ;;  %v411_v39 = vmul.f32 %v303_v30, %v303_v30  ;;  %v375_v42 = vsel %vm371_vm4, %v303_v30, 0.0 }
  0xa7   : > { %364 = vst.msk [vmem:[%s704_s27 + $0x24] sm:$0xf] %vm354_vm3, %v347_v32  ;;  %v376_v50 = vadd.f32 %v375_v42, %v374_v43  ;;  %v415_v4 = vmul.f32 %v313_v31, %v313_v31  ;;  %v383_v8 = vsel %vm371_vm4, %v313_v31, 0.0  ;;  %v440_v30 = vsel %vm371_vm4, %v417_v15, 0.0 }
  0xa8   : > { %357 = vst.msk [vmem:[%s704_s27 + $0x8] sm:$0xf] %vm354_vm3, %v340_v34  ;;  %v428_v46 = vsel %vm371_vm4, %v411_v39, 0.0  ;;  %v389_v31 = vsel %vm371_vm4, %v726_v28, 0.0  ;;  %v421_v39 = vmul.f32 %v712_v21, %v712_v21  ;;  %v395_v28 = vsel %vm371_vm4, %v712_v21, 0.0 }
  0xa9   : > { %361 = vst.msk [vmem:[%s704_s27 + $0x18] sm:$0xf] %vm354_vm3, %v344_v35  ;;  %v429_v59 = vadd.f32 %v428_v46, %v427_v49  ;;  %v436_v16 = vsel %vm371_vm4, %v415_v4, 0.0  ;;  %v442_v35 = vsel %vm371_vm4, %v418_v24, 0.0  ;;  %v450_v21 = vsel %vm371_vm4, %v422_v44, 0.0 }
  0xaa   : > { %368 = vst.msk [vmem:[%s704_s27 + $0x34] sm:$0xf] %vm354_vm3, %v351_v36  ;;  %v448_v49 = vsel %vm371_vm4, %v421_v39, 0.0 }
  0xac   : > { %v323_v47 = vpop.f32.mrf.mxu2  ;;  %v748_v48 = vpop.f32.mrf.mxu3 }
  0xad   : > { %v305_v51 = vpop.f32.mrf.mxu0  ;;  %v315_v52 = vpop.f32.mrf.mxu1  ;;  %v348_v53 = vpack.c.bf16 %v323_v47, %v323_v47  ;;  %v352_v54 = vpack.c.bf16 %v748_v48, %v748_v48  ;;  %v419_v32 = vmul.f32 %v323_v47, %v323_v47  ;;  %v391_v20 = vsel %vm371_vm4, %v323_v47, 0.0 }
  0xae   : > { %v341_v55 = vpack.c.bf16 %v305_v51, %v305_v51  ;;  %v377_v56 = vsel %vm371_vm4, %v305_v51, 0.0  ;;  %v412_v57 = vmul.f32 %v305_v51, %v305_v51  ;;  %v345_v58 = vpack.c.bf16 %v315_v52, %v315_v52 }
  0xaf   : > { %v378_v60 = vadd.f32 %v377_v56, %v376_v50  ;;  %365 = vst.msk [vmem:[%s704_s27 + $0x28] sm:$0xf] %vm354_vm3, %v348_v53  ;;  %v416_v9 = vmul.f32 %v315_v52, %v315_v52  ;;  %v385_v17 = vsel %vm371_vm4, %v315_v52, 0.0  ;;  %v444_v40 = vsel %vm371_vm4, %v419_v32, 0.0 }
  0xb0   : > { %358 = vst.msk [vmem:[%s704_s27 + $0xc] sm:$0xf] %vm354_vm3, %v341_v55  ;;  %v430_v63 = vsel %vm371_vm4, %v412_v57, 0.0  ;;  %v397_v50 = vsel %vm371_vm4, %v728_v29, 0.0  ;;  %v423_v51 = vmul.f32 %v748_v48, %v748_v48 }
  0xb1   : > { %v380_v0 = vadd.f32 %v379_v61, %v378_v60  ;;  %v431_v1 = vadd.f32 %v430_v63, %v429_v59  ;;  %362 = vst.msk [vmem:[%s704_s27 + $0x1c] sm:$0xf] %vm354_vm3, %v345_v58  ;;  %v438_v25 = vsel %vm371_vm4, %v416_v9, 0.0 }
  0xb2   : > { %369 = vst.msk [vmem:[%s704_s27 + $0x38] sm:$0xf] %vm354_vm3, %v352_v54  ;;  %v399_v54 = vsel %vm371_vm4, %v748_v48, 0.0  ;;  %v452_v58 = vsel %vm371_vm4, %v423_v51, 0.0 }
  0xb3   : > { %v433_v5 = vadd.f32 %v432_v2, %v431_v1  ;;  %v382_v6 = vadd.f32 %v381_v3, %v380_v0 }
  0xb4   : > { %v325_v10 = vpop.f32.mrf.mxu2  ;;  %v335_v11 = vpop.f32.mrf.mxu3 }
  0xb5   : > { %v384_v12 = vadd.f32 %v383_v8, %v382_v6  ;;  %v435_v13 = vadd.f32 %v434_v7, %v433_v5  ;;  %v349_v14 = vpack.c.bf16 %v325_v10, %v325_v10  ;;  %v353_v18 = vpack.c.bf16 %v335_v11, %v335_v11 }
  0xb6   : > { %v420_v36 = vmul.f32 %v325_v10, %v325_v10  ;;  %v393_v41 = vsel %vm371_vm4, %v325_v10, 0.0  ;;  %v424_v55 = vmul.f32 %v335_v11, %v335_v11  ;;  %v401_v59 = vsel %vm371_vm4, %v335_v11, 0.0 }
  0xb7   : > { %v386_v19 = vadd.f32 %v385_v17, %v384_v12  ;;  %v437_v22 = vadd.f32 %v436_v16, %v435_v13  ;;  %366 = vst.msk [vmem:[%s704_s27 + $0x2c] sm:$0xf] %vm354_vm3, %v349_v14 }
  0xb8   : > { %370 = vst.msk [vmem:[%s704_s27 + $0x3c] sm:$0xf] %vm354_vm3, %v353_v18  ;;  %v446_v45 = vsel %vm371_vm4, %v420_v36, 0.0  ;;  %v454_v61 = vsel %vm371_vm4, %v424_v55, 0.0 }
  0xb9   : > { %v388_v26 = vadd.f32 %v387_v23, %v386_v19  ;;  %v439_v27 = vadd.f32 %v438_v25, %v437_v22 }
  0xbb   : > { %v441_v33 = vadd.f32 %v440_v30, %v439_v27  ;;  %v390_v34 = vadd.f32 %v389_v31, %v388_v26 }
  0xbd   : > { %v392_v37 = vadd.f32 %v391_v20, %v390_v34  ;;  %v443_v38 = vadd.f32 %v442_v35, %v441_v33 }
  0xbf   : > { %v445_v42 = vadd.f32 %v444_v40, %v443_v38  ;;  %v394_v43 = vadd.f32 %v393_v41, %v392_v37 }
  0xc1   : > { %v396_v46 = vadd.f32 %v395_v28, %v394_v43  ;;  %v447_v47 = vadd.f32 %v446_v45, %v445_v42 }
  0xc3   : > { %v449_v52 = vadd.f32 %v448_v49, %v447_v47  ;;  %v398_v53 = vadd.f32 %v397_v50, %v396_v46 }
  0xc5   : > { %v400_v56 = vadd.f32 %v399_v54, %v398_v53  ;;  %v451_v57 = vadd.f32 %v450_v21, %v449_v52 }
  0xc7   : > { %v453_v29 = vadd.f32 %v452_v58, %v451_v57  ;;  %v402_v60 = vadd.f32 %v401_v59, %v400_v56 }
  0xc9   : > { %v403_v62 = vrot.slane %v402_v60, 4  ;;  %v455_v63 = vadd.f32 %v454_v61, %v453_v29 }
  0xcb   : > { %v404_v0 = vadd.f32 %v403_v62, %v402_v60  ;;  %v456_v1 = vrot.slane %v455_v63, 4 }
  0xcd   : > { %v405_v2 = vrot.slane %v404_v0, 2  ;;  %v457_v3 = vadd.f32 %v456_v1, %v455_v63 }
  0xcf   : > { %v406_v48 = vadd.f32 %v405_v2, %v404_v0  ;;  %v458_v4 = vrot.slane %v457_v3, 2 }
  0xd1   : > { %v407_v5 = vrot.slane %v406_v48, 1  ;;  %v459_v6 = vadd.f32 %v458_v4, %v457_v3 }
  0xd3   : > { %v460_v7 = vrot.slane %v459_v6, 1  ;;  %v408_v8 = vadd.f32 %v407_v5, %v406_v48 }
  0xd5   : > { %v461_v9 = vadd.f32 %v460_v7, %v459_v6 }
  0xd7   : > { %v463_v10 = vsel %vm462_vm5, %v408_v8, %v461_v9 }
  0xd8   : > { %465 = vst.msk [vmem:[%s184_s4] sm:$0x3] %vm464_vm6, %v463_v10 }
  0xd9 PF: > { %s14_s12 = sadd.s32 1, %s644_s12  }
  0xda   : > { %p11_p5 = scmp.ge.s32.totalorder %s14_s12, 6  }
  0xdc   :  { %13 = sbr.rel (!%p11_p5) target bundleno = 1 (0x1), region = 70 }

// kernel: featextnet_forward.29
= control target key start
LH: loop header
LB: loop body
LE: loop exit
PB: predicated region body
PF: predicated region fallthrough
CT: control target
= control target key end

     0   :  { %s702_s12 = smov 0   ;;  %s854_s0 = inlined_call_operand.vmem [shape: bf16[512,72], index: 0, kind: input, shape index: {}]   ;;  %s855_s1 = inlined_call_operand.vmem [shape: bf16[72,8], index: 1, kind: input, shape index: {}]   ;;  %s856_s2 = inlined_call_operand.vmem [shape: bf16[512,8], index: 2, kind: output, shape index: {0}]   ;;  %s857_s3 = inlined_call_operand.vmem [shape: f32[4,2,8], index: 3, kind: output, shape index: {1}]  }
   0x1 LB: > { %s708_s13 = sadd.s32 4294967295, %s680_s12   ;;  %p575_p0 = scmp.ge.s32.totalorder %s680_s12, 1  ;;  %s680_s12 = sphi %s702_s12, %s14_s12  }
   0x2   : > { %p141_p1 = scmp.lt.s32.totalorder %s680_s12, 5 }
   0x4   : > { %p142_p2 = pnand %p575_p0, %p141_p1 }
   0x5   : > { %s576_s16 = sshll.u32 (!%p142_p2), %s708_s13, 4  ;;  %p181_p4 = scmp.lt.s32.totalorder (!%p142_p2), %s708_s13, 3 }
   0x6   : > { %145 = sbr.rel (%p142_p2) target bundleno = 229 (0xe5), region = 28  ;;  %p170_p3 = scmp.lt.s32.totalorder (!%p142_p2), %s576_s16, 63 }
   0xb   : > { %v210_v0 = vld [vmem:[%s855_s1 + $0x20] sm:$0xf]  ;;  %vm303_vm0 = vcmask 1043456   ;;  %v650_v4 = vld [vmem:[%s855_s1 + $0x18] sm:$0xff]  ;;  %v649_v5 = vld [vmem:[%s855_s1 + $0x10] sm:$0xff]  ;;  %s859_s16 = smov (!%p170_p3, %s576_s16), 63 }
   0xc   : > { %v268_v1 = vunpack.c.l.b16 %v210_v0  ;;  %v648_v6 = vld [vmem:[%s855_s1 + $0x8] sm:$0xff]  ;;  %s577_s23 = sshll.u32 %s859_s16, 2  ;;  %v647_v7 = vld [vmem:[%s855_s1] sm:$0xff]  ;;  %vm278_vm1 = vcmask 588800   ;;  %vm372_vm2 = vcmask 60416   ;;  %vm389_vm3 = vcmask 64512  }
   0xd   : > { %s173_s28 = scalar_lea.vmem %s854_s0, %s577_s23  ;;  %s745_s4 = scalar_lea.vmem %s856_s2, %s577_s23  ;;  %vm480_vm4 = vcmask 1040384   ;;  %vm482_vm5 = vcmask 58368  }
   0xe   : > { %v273_v2 = vpack.c.b16 %v268_v1, %v268_v1  ;;  %v639_v8 = vld [vmem:[%s173_s28] sm:$0xff]  ;;  %v641_v9 = vld [vmem:[%s173_s28 + $0x10] sm:$0xff]  ;;  %v640_v12 = vld [vmem:[%s173_s28 + $0x8] sm:$0xff]  ;;  %s861_s13 = smov (!%p181_p4, %s708_s13), 3 }
   0xf   : > { %v643_v10 = vld [vmem:[%s173_s28 + $0x20] sm:$0xff]  ;;  %v645_v11 = vld [vmem:[%s173_s28 + $0x30] sm:$0xff]  ;;  %v642_v13 = vld [vmem:[%s173_s28 + $0x18] sm:$0xff]  ;;  %s580_s5 = sshll.u32 %s861_s13, 1 }
  0x10   : > { %v305_v3 = vsel %vm303_vm0, %v273_v2, 0  ;;  %v644_v14 = vld [vmem:[%s173_s28 + $0x28] sm:$0xff]  ;;  %v646_v15 = vld [vmem:[%s173_s28 + $0x38] sm:$0xff]  ;;  %s184_s8 = scalar_lea.vmem %s857_s3, %s580_s5 }
  0x11   : > { %310 = vmatpush.bf16.msra.mxu0 %v305_v3  ;;  %651 = vmatpush.bf16.msra.mxu1 %v305_v3 }
  0x12   : > { %652 = vmatpush.bf16.msra.mxu2 %v305_v3  ;;  %653 = vmatpush.bf16.msra.mxu3 %v305_v3 }
  0x15   : > { %311 = vmatpush.bf16.msra.mxu0 %v650_v4  ;;  %654 = vmatpush.bf16.msra.mxu1 %v650_v4 }
  0x16   : > { %655 = vmatpush.bf16.msra.mxu2 %v650_v4  ;;  %656 = vmatpush.bf16.msra.mxu3 %v650_v4 }
  0x19   : > { %312 = vmatpush.bf16.msra.mxu0 %v649_v5  ;;  %657 = vmatpush.bf16.msra.mxu1 %v649_v5 }
  0x1a   : > { %658 = vmatpush.bf16.msra.mxu2 %v649_v5  ;;  %659 = vmatpush.bf16.msra.mxu3 %v649_v5 }
  0x1d   : > { %313 = vmatpush.bf16.msra.mxu0 %v648_v6  ;;  %660 = vmatpush.bf16.msra.mxu1 %v648_v6 }
  0x1e   : > { %661 = vmatpush.bf16.msra.mxu2 %v648_v6  ;;  %662 = vmatpush.bf16.msra.mxu3 %v648_v6 }
  0x21   : > { %314 = vmatpush.bf16.msra.mxu0 %v647_v7  ;;  %663 = vmatpush.bf16.msra.mxu1 %v647_v7 }
  0x22   : > { %664 = vmatpush.bf16.msra.mxu2 %v647_v7  ;;  %665 = vmatpush.bf16.msra.mxu3 %v647_v7 }
  0x24   : > { %629 = vmatmul.msk.bf16.vlgmr.msra.gmra.mxu0 %vm278_vm1, %v639_v8  ;;  %631 = vmatmul.msk.bf16.vlgmr.msra.gmra.mxu1 %vm278_vm1, %v641_v9 }
  0x25   : > { %633 = vmatmul.msk.bf16.vlgmr.msra.gmra.mxu2 %vm278_vm1, %v643_v10  ;;  %635 = vmatmul.msk.bf16.vlgmr.msra.gmra.mxu3 %vm278_vm1, %v645_v11 }
  0x34   : > { %630 = vmatmul.msk.bf16.gmra.mxu0 %vm278_vm1, %v640_v12  ;;  %632 = vmatmul.msk.bf16.gmra.mxu1 %vm278_vm1, %v642_v13 }
  0x35   : > { %634 = vmatmul.msk.bf16.gmra.mxu2 %vm278_vm1, %v644_v14  ;;  %636 = vmatmul.msk.bf16.gmra.mxu3 %vm278_vm1, %v646_v15 }
  0xa1   : > { %v316_v16 = vpop.f32.mrf.mxu0  ;;  %v326_v17 = vpop.f32.mrf.mxu1 }
  0xa2   : > { %v356_v18 = vpack.c.bf16 %v316_v16, %v316_v16  ;;  %v360_v19 = vpack.c.bf16 %v326_v17, %v326_v17  ;;  %v427_v37 = vmul.f32 %v316_v16, %v316_v16  ;;  %v390_v40 = vsel %vm389_vm3, %v316_v16, 0.0 }
  0xa3   : > { %v431_v45 = vmul.f32 %v326_v17, %v326_v17  ;;  %v397_v61 = vsel %vm389_vm3, %v326_v17, 0.0 }
  0xa4   : > { %373 = vst.msk [vmem:[%s745_s4] sm:$0xf] %vm372_vm2, %v356_v18  ;;  %v443_v44 = vsel %vm389_vm3, %v427_v37, 0.0 }
  0xa5   : > { %377 = vst.msk [vmem:[%s745_s4 + $0x10] sm:$0xf] %vm372_vm2, %v360_v19  ;;  %v450_v2 = vsel %vm389_vm3, %v431_v45, 0.0 }
  0xa8   : > { %v751_v20 = vpop.f32.mrf.mxu2  ;;  %v753_v21 = vpop.f32.mrf.mxu3 }
  0xa9   : > { %v318_v22 = vpop.f32.mrf.mxu0  ;;  %v328_v23 = vpop.f32.mrf.mxu1  ;;  %v364_v24 = vpack.c.bf16 %v751_v20, %v751_v20  ;;  %v368_v27 = vpack.c.bf16 %v753_v21, %v753_v21  ;;  %v435_v15 = vmul.f32 %v751_v20, %v751_v20 }
  0xaa   : > { %v357_v25 = vpack.c.bf16 %v318_v22, %v318_v22  ;;  %v361_v26 = vpack.c.bf16 %v328_v23, %v328_v23  ;;  %v428_v33 = vmul.f32 %v318_v22, %v318_v22  ;;  %v391_v38 = vsel %vm389_vm3, %v318_v22, 0.0 }
  0xab   : > { %381 = vst.msk [vmem:[%s745_s4 + $0x20] sm:$0xf] %vm372_vm2, %v364_v24  ;;  %v392_v43 = vadd.f32 %v391_v38, %v390_v40  ;;  %v432_v62 = vmul.f32 %v328_v23, %v328_v23  ;;  %v399_v3 = vsel %vm389_vm3, %v328_v23, 0.0  ;;  %v405_v23 = vsel %vm389_vm3, %v751_v20, 0.0 }
  0xac   : > { %374 = vst.msk [vmem:[%s745_s4 + $0x4] sm:$0xf] %vm372_vm2, %v357_v25  ;;  %v444_v41 = vsel %vm389_vm3, %v428_v33, 0.0 }
  0xad   : > { %378 = vst.msk [vmem:[%s745_s4 + $0x14] sm:$0xf] %vm372_vm2, %v361_v26  ;;  %v445_v49 = vadd.f32 %v444_v41, %v443_v44  ;;  %v452_v7 = vsel %vm389_vm3, %v432_v62, 0.0 }
  0xae   : > { %385 = vst.msk [vmem:[%s745_s4 + $0x30] sm:$0xf] %vm372_vm2, %v368_v27 }
  0xb0   : > { %v767_v28 = vpop.f32.mrf.mxu2  ;;  %v769_v29 = vpop.f32.mrf.mxu3 }
  0xb1   : > { %v321_v30 = vpop.f32.mrf.mxu0  ;;  %v331_v31 = vpop.f32.mrf.mxu1  ;;  %v365_v32 = vpack.c.bf16 %v767_v28, %v767_v28  ;;  %v369_v36 = vpack.c.bf16 %v769_v29, %v769_v29  ;;  %v436_v24 = vmul.f32 %v767_v28, %v767_v28  ;;  %v440_v44 = vmul.f32 %v769_v29, %v769_v29 }
  0xb2   : > { %v358_v34 = vpack.c.bf16 %v321_v30, %v321_v30  ;;  %v362_v35 = vpack.c.bf16 %v331_v31, %v331_v31  ;;  %v429_v39 = vmul.f32 %v321_v30, %v321_v30  ;;  %v393_v42 = vsel %vm389_vm3, %v321_v30, 0.0 }
  0xb3   : > { %382 = vst.msk [vmem:[%s745_s4 + $0x24] sm:$0xf] %vm372_vm2, %v365_v32  ;;  %v394_v50 = vadd.f32 %v393_v42, %v392_v43  ;;  %v433_v4 = vmul.f32 %v331_v31, %v331_v31  ;;  %v401_v8 = vsel %vm389_vm3, %v331_v31, 0.0  ;;  %v458_v30 = vsel %vm389_vm3, %v435_v15, 0.0 }
  0xb4   : > { %375 = vst.msk [vmem:[%s745_s4 + $0x8] sm:$0xf] %vm372_vm2, %v358_v34  ;;  %v446_v46 = vsel %vm389_vm3, %v429_v39, 0.0  ;;  %v407_v31 = vsel %vm389_vm3, %v767_v28, 0.0  ;;  %v439_v39 = vmul.f32 %v753_v21, %v753_v21  ;;  %v413_v28 = vsel %vm389_vm3, %v753_v21, 0.0 }
  0xb5   : > { %379 = vst.msk [vmem:[%s745_s4 + $0x18] sm:$0xf] %vm372_vm2, %v362_v35  ;;  %v447_v59 = vadd.f32 %v446_v46, %v445_v49  ;;  %v454_v16 = vsel %vm389_vm3, %v433_v4, 0.0  ;;  %v460_v35 = vsel %vm389_vm3, %v436_v24, 0.0  ;;  %v468_v21 = vsel %vm389_vm3, %v440_v44, 0.0 }
  0xb6   : > { %386 = vst.msk [vmem:[%s745_s4 + $0x34] sm:$0xf] %vm372_vm2, %v369_v36  ;;  %v466_v49 = vsel %vm389_vm3, %v439_v39, 0.0 }
  0xb8   : > { %v341_v47 = vpop.f32.mrf.mxu2  ;;  %v789_v48 = vpop.f32.mrf.mxu3 }
  0xb9   : > { %v323_v51 = vpop.f32.mrf.mxu0  ;;  %v333_v52 = vpop.f32.mrf.mxu1  ;;  %v366_v53 = vpack.c.bf16 %v341_v47, %v341_v47  ;;  %v370_v54 = vpack.c.bf16 %v789_v48, %v789_v48  ;;  %v437_v32 = vmul.f32 %v341_v47, %v341_v47  ;;  %v409_v20 = vsel %vm389_vm3, %v341_v47, 0.0 }
  0xba   : > { %v359_v55 = vpack.c.bf16 %v323_v51, %v323_v51  ;;  %v395_v56 = vsel %vm389_vm3, %v323_v51, 0.0  ;;  %v430_v57 = vmul.f32 %v323_v51, %v323_v51  ;;  %v363_v58 = vpack.c.bf16 %v333_v52, %v333_v52 }
  0xbb   : > { %v396_v60 = vadd.f32 %v395_v56, %v394_v50  ;;  %383 = vst.msk [vmem:[%s745_s4 + $0x28] sm:$0xf] %vm372_vm2, %v366_v53  ;;  %v434_v9 = vmul.f32 %v333_v52, %v333_v52  ;;  %v403_v17 = vsel %vm389_vm3, %v333_v52, 0.0  ;;  %v462_v40 = vsel %vm389_vm3, %v437_v32, 0.0 }
  0xbc   : > { %376 = vst.msk [vmem:[%s745_s4 + $0xc] sm:$0xf] %vm372_vm2, %v359_v55  ;;  %v448_v63 = vsel %vm389_vm3, %v430_v57, 0.0  ;;  %v415_v50 = vsel %vm389_vm3, %v769_v29, 0.0  ;;  %v441_v51 = vmul.f32 %v789_v48, %v789_v48 }
  0xbd   : > { %v398_v0 = vadd.f32 %v397_v61, %v396_v60  ;;  %v449_v1 = vadd.f32 %v448_v63, %v447_v59  ;;  %380 = vst.msk [vmem:[%s745_s4 + $0x1c] sm:$0xf] %vm372_vm2, %v363_v58  ;;  %v456_v25 = vsel %vm389_vm3, %v434_v9, 0.0 }
  0xbe   : > { %387 = vst.msk [vmem:[%s745_s4 + $0x38] sm:$0xf] %vm372_vm2, %v370_v54  ;;  %v417_v54 = vsel %vm389_vm3, %v789_v48, 0.0  ;;  %v470_v58 = vsel %vm389_vm3, %v441_v51, 0.0 }
  0xbf   : > { %v451_v5 = vadd.f32 %v450_v2, %v449_v1  ;;  %v400_v6 = vadd.f32 %v399_v3, %v398_v0 }
  0xc0   : > { %v343_v10 = vpop.f32.mrf.mxu2  ;;  %v353_v11 = vpop.f32.mrf.mxu3 }
  0xc1   : > { %v402_v12 = vadd.f32 %v401_v8, %v400_v6  ;;  %v453_v13 = vadd.f32 %v452_v7, %v451_v5  ;;  %v367_v14 = vpack.c.bf16 %v343_v10, %v343_v10  ;;  %v371_v18 = vpack.c.bf16 %v353_v11, %v353_v11 }
  0xc2   : > { %v438_v36 = vmul.f32 %v343_v10, %v343_v10  ;;  %v411_v41 = vsel %vm389_vm3, %v343_v10, 0.0  ;;  %v442_v55 = vmul.f32 %v353_v11, %v353_v11  ;;  %v419_v59 = vsel %vm389_vm3, %v353_v11, 0.0 }
  0xc3   : > { %v404_v19 = vadd.f32 %v403_v17, %v402_v12  ;;  %v455_v22 = vadd.f32 %v454_v16, %v453_v13  ;;  %384 = vst.msk [vmem:[%s745_s4 + $0x2c] sm:$0xf] %vm372_vm2, %v367_v14 }
  0xc4   : > { %388 = vst.msk [vmem:[%s745_s4 + $0x3c] sm:$0xf] %vm372_vm2, %v371_v18  ;;  %v464_v45 = vsel %vm389_vm3, %v438_v36, 0.0  ;;  %v472_v61 = vsel %vm389_vm3, %v442_v55, 0.0 }
  0xc5   : > { %v406_v26 = vadd.f32 %v405_v23, %v404_v19  ;;  %v457_v27 = vadd.f32 %v456_v25, %v455_v22 }
  0xc7   : > { %v459_v33 = vadd.f32 %v458_v30, %v457_v27  ;;  %v408_v34 = vadd.f32 %v407_v31, %v406_v26 }
  0xc9   : > { %v410_v37 = vadd.f32 %v409_v20, %v408_v34  ;;  %v461_v38 = vadd.f32 %v460_v35, %v459_v33 }
  0xcb   : > { %v463_v42 = vadd.f32 %v462_v40, %v461_v38  ;;  %v412_v43 = vadd.f32 %v411_v41, %v410_v37 }
  0xcd   : > { %v414_v46 = vadd.f32 %v413_v28, %v412_v43  ;;  %v465_v47 = vadd.f32 %v464_v45, %v463_v42 }
  0xcf   : > { %v467_v52 = vadd.f32 %v466_v49, %v465_v47  ;;  %v416_v53 = vadd.f32 %v415_v50, %v414_v46 }
  0xd1   : > { %v418_v56 = vadd.f32 %v417_v54, %v416_v53  ;;  %v469_v57 = vadd.f32 %v468_v21, %v467_v52 }
  0xd3   : > { %v471_v29 = vadd.f32 %v470_v58, %v469_v57  ;;  %v420_v60 = vadd.f32 %v419_v59, %v418_v56 }
  0xd5   : > { %v421_v62 = vrot.slane %v420_v60, 4  ;;  %v473_v63 = vadd.f32 %v472_v61, %v471_v29 }
  0xd7   : > { %v422_v0 = vadd.f32 %v421_v62, %v420_v60  ;;  %v474_v1 = vrot.slane %v473_v63, 4 }
  0xd9   : > { %v423_v2 = vrot.slane %v422_v0, 2  ;;  %v475_v3 = vadd.f32 %v474_v1, %v473_v63 }
  0xdb   : > { %v424_v48 = vadd.f32 %v423_v2, %v422_v0  ;;  %v476_v4 = vrot.slane %v475_v3, 2 }
  0xdd   : > { %v425_v5 = vrot.slane %v424_v48, 1  ;;  %v477_v6 = vadd.f32 %v476_v4, %v475_v3 }
  0xdf   : > { %v478_v7 = vrot.slane %v477_v6, 1  ;;  %v426_v8 = vadd.f32 %v425_v5, %v424_v48 }
  0xe1   : > { %v479_v9 = vadd.f32 %v478_v7, %v477_v6 }
  0xe3   : > { %v481_v10 = vsel %vm480_vm4, %v426_v8, %v479_v9 }
  0xe4   : > { %483 = vst.msk [vmem:[%s184_s8] sm:$0x3] %vm482_vm5, %v481_v10 }
  0xe5 PF: > { %s14_s12 = sadd.s32 1, %s680_s12  }
  0xe6   : > { %p11_p5 = scmp.ge.s32.totalorder %s14_s12, 6  }
  0xe8   :  { %13 = sbr.rel (!%p11_p5) target bundleno = 1 (0x1), region = 70 }

// kernel: featextnet_forward.31
= control target key start
LH: loop header
LB: loop body
LE: loop exit
PB: predicated region body
PF: predicated region fallthrough
CT: control target
= control target key end

     0   :  { %s636_s12 = smov 0   ;;  %s722_s0 = inlined_call_operand.vmem [shape: bf16[128,200], index: 0, kind: input, shape index: {}]   ;;  %s723_s1 = inlined_call_operand.vmem [shape: bf16[200,16], index: 1, kind: input, shape index: {}]   ;;  %s724_s2 = inlined_call_operand.vmem [shape: bf16[128,16], index: 2, kind: output, shape index: {0}]   ;;  %s725_s3 = inlined_call_operand.vmem [shape: f32[4,2,16], index: 3, kind: output, shape index: {1}]  }
   0x1 LB: > { %s642_s13 = sadd.s32 4294967295, %s614_s12   ;;  %p495_p0 = scmp.ge.s32.totalorder %s614_s12, 1  ;;  %s614_s12 = sphi %s636_s12, %s14_s12  }
   0x2   : > { %p142_p1 = scmp.lt.s32.totalorder %s614_s12, 5 }
   0x4   : > { %p143_p2 = pnand %p495_p0, %p142_p1 }
   0x5   : > { %s496_s20 = sshll.u32 (!%p143_p2), %s642_s13, 2  ;;  %p184_p4 = scmp.lt.s32.totalorder (!%p143_p2), %s642_s13, 3 }
   0x6   : > { %146 = sbr.rel (%p143_p2) target bundleno = 205 (0xcd), region = 28  ;;  %p172_p3 = scmp.lt.s32.totalorder (!%p143_p2), %s496_s20, 15 }
   0xb   : > { %v582_v0 = vld [vmem:[%s723_s1 + $0x38] sm:$0xff]  ;;  %v217_v1 = vld [vmem:[%s723_s1 + $0x60] sm:$0xf]  ;;  %v581_v3 = vld [vmem:[%s723_s1 + $0x30] sm:$0xff]  ;;  %vm318_vm0 = vcmask 1043456   ;;  %s727_s20 = smov (!%p172_p3, %s496_s20), 15 }
   0xc   : > { %v285_v2 = vunpack.c.l.b16 %v217_v1  ;;  %322 = vmatpush.bf16.msra.mxu0 %v582_v0  ;;  %587 = vmatpush.bf16.msra.mxu2 %v582_v0  ;;  %v580_v6 = vld [vmem:[%s723_s1 + $0x28] sm:$0xff]  ;;  %v586_v7 = vld [vmem:[%s723_s1 + $0x58] sm:$0xff]  ;;  %v579_v8 = vld [vmem:[%s723_s1 + $0x20] sm:$0xff]  ;;  %s570_s29 = sshll.u32 %s727_s20, 3  ;;  %vm311_vm1 = vcmask 588800   ;;  %s500_s21 = sshll.u32 %s727_s20, 2 }
   0xd   : > { %v585_v9 = vld [vmem:[%s723_s1 + $0x50] sm:$0xff]  ;;  %v578_v10 = vld [vmem:[%s723_s1 + $0x18] sm:$0xff]  ;;  %v584_v11 = vld [vmem:[%s723_s1 + $0x48] sm:$0xff]  ;;  %s176_s9 = scalar_lea.vmem %s722_s0, %s570_s29  ;;  %s696_s24 = scalar_lea.vmem %s724_s2, %s500_s21  ;;  %vm364_vm2 = vcmask 125952   ;;  %vm369_vm3 = vcmask 130048   ;;  %vm400_vm4 = vcmask 1040384  }
   0xe   : > { %v298_v4 = vpack.c.b16 %v285_v2, %v285_v2  ;;  %v577_v12 = vld [vmem:[%s723_s1 + $0x10] sm:$0xff]  ;;  %v583_v13 = vld [vmem:[%s723_s1 + $0x40] sm:$0xff]  ;;  %v514_v15 = vld [vmem:[%s176_s9 + $0x18] sm:$0xf0]  ;;  %s729_s13 = smov (!%p184_p4, %s642_s13), 3  ;;  %vm402_vm5 = vcmask 123904  }
   0xf   : > { %v573_v14 = vld [vmem:[%s176_s9 + $0x14] sm:$0xf]  ;;  %v571_v16 = vld [vmem:[%s176_s9 + $0x4] sm:$0xf]  ;;  %v506_v17 = vld [vmem:[%s176_s9 + $0x8] sm:$0xf0] }
  0x10   : > { %v320_v5 = vsel %vm318_vm0, %v298_v4, 0  ;;  %323 = vmatpush.bf16.msra.mxu0 %v581_v3  ;;  %588 = vmatpush.bf16.msra.mxu2 %v581_v3  ;;  %v517_v18 = vor.u32 %v573_v14, %v514_v15  ;;  %v576_v19 = vld [vmem:[%s723_s1 + $0x8] sm:$0xff]  ;;  %v509_v20 = vor.u32 %v571_v16, %v506_v17  ;;  %v575_v21 = vld [vmem:[%s723_s1] sm:$0xff]  ;;  %v512_v24 = vld [vmem:[%s176_s9 + $0x10] sm:$0xf]  ;;  %s501_s20 = sshll.u32 %s729_s13, 1 }
  0x11   : > { %595 = vmatpush.bf16.msra.mxu3 %v320_v5  ;;  %344 = vmatpush.bf16.msra.mxu1 %v320_v5  ;;  %v504_v22 = vld [vmem:[%s176_s9] sm:$0xf]  ;;  %v572_v23 = vld [vmem:[%s176_s9 + $0x4] sm:$0xf0]  ;;  %v574_v25 = vld [vmem:[%s176_s9 + $0x14] sm:$0xf0]  ;;  %s187_s27 = scalar_lea.vmem %s725_s3, %s501_s20 }
  0x12   : > { %v505_v26 = vor.u32 %v572_v23, %v504_v22  ;;  %v513_v27 = vor.u32 %v574_v25, %v512_v24 }
  0x14   : > { %324 = vmatpush.bf16.msra.mxu0 %v580_v6  ;;  %589 = vmatpush.bf16.msra.mxu2 %v580_v6 }
  0x15   : > { %596 = vmatpush.bf16.msra.mxu3 %v586_v7  ;;  %345 = vmatpush.bf16.msra.mxu1 %v586_v7 }
  0x18   : > { %325 = vmatpush.bf16.msra.mxu0 %v579_v8  ;;  %590 = vmatpush.bf16.msra.mxu2 %v579_v8 }
  0x19   : > { %597 = vmatpush.bf16.msra.mxu3 %v585_v9  ;;  %346 = vmatpush.bf16.msra.mxu1 %v585_v9 }
  0x1c   : > { %326 = vmatpush.bf16.msra.mxu0 %v578_v10  ;;  %591 = vmatpush.bf16.msra.mxu2 %v578_v10 }
  0x1d   : > { %598 = vmatpush.bf16.msra.mxu3 %v584_v11  ;;  %347 = vmatpush.bf16.msra.mxu1 %v584_v11 }
  0x20   : > { %327 = vmatpush.bf16.msra.mxu0 %v577_v12  ;;  %592 = vmatpush.bf16.msra.mxu2 %v577_v12 }
  0x21   : > { %599 = vmatpush.bf16.msra.mxu3 %v583_v13  ;;  %348 = vmatpush.bf16.msra.mxu1 %v583_v13 }
  0x24   : > { %567 = vmatmul.msk.bf16.vlgmr.msra.gmra.mxu3 %vm311_vm1, %v517_v18  ;;  %328 = vmatpush.bf16.msra.mxu0 %v576_v19 }
  0x25   : > { %593 = vmatpush.bf16.msra.mxu2 %v576_v19  ;;  %566 = vmatmul.msk.bf16.vlgmr.msra.gmra.mxu1 %vm311_vm1, %v509_v20 }
  0x28   : > { %329 = vmatpush.bf16.msra.mxu0 %v575_v21 }
  0x29   : > { %594 = vmatpush.bf16.msra.mxu2 %v575_v21 }
  0x2b   : > { %330 = vmatmul.bf16.vlgmr.msra.gmra.mxu0 %v505_v26 }
  0x2c   : > { %335 = vmatmul.bf16.vlgmr.msra.gmra.mxu2 %v513_v27 }
  0xa2   : > { %v350_v28 = vpop.f32.mrf.mxu1 }
  0xa7   : > { %v355_v32 = vpop.f32.mrf.mxu3 }
  0xa8   : > { %v331_v29 = vpop.f32.mrf.mxu0 }
  0xa9   : > { %v351_v30 = vadd.f32 %v350_v28, %v331_v29 }
  0xaa   : > { %v352_v34 = vpop.f32.mrf.mxu1 }
  0xab   : > { %v360_v31 = vpack.c.bf16 %v351_v30, %v351_v30  ;;  %v383_v38 = vmul.f32 %v351_v30, %v351_v30  ;;  %v370_v43 = vsel %vm369_vm3, %v351_v30, 0.0 }
  0xad   : > { %365 = vst.msk [vmem:[%s696_s24] sm:$0xf] %vm364_vm2, %v360_v31  ;;  %v387_v46 = vsel %vm369_vm3, %v383_v38, 0.0 }
  0xaf   : > { %v336_v33 = vpop.f32.mrf.mxu2  ;;  %v357_v48 = vpop.f32.mrf.mxu3 }
  0xb0   : > { %v356_v35 = vadd.f32 %v355_v32, %v336_v33  ;;  %v333_v36 = vpop.f32.mrf.mxu0 }
  0xb1   : > { %v353_v37 = vadd.f32 %v352_v34, %v333_v36 }
  0xb2   : > { %v362_v39 = vpack.c.bf16 %v356_v35, %v356_v35  ;;  %v385_v47 = vmul.f32 %v356_v35, %v356_v35  ;;  %v373_v51 = vsel %vm369_vm3, %v356_v35, 0.0 }
  0xb3   : > { %v361_v40 = vpack.c.bf16 %v353_v37, %v353_v37  ;;  %v371_v41 = vsel %vm369_vm3, %v353_v37, 0.0  ;;  %v384_v42 = vmul.f32 %v353_v37, %v353_v37 }
  0xb4   : > { %367 = vst.msk [vmem:[%s696_s24 + $0x8] sm:$0xf] %vm364_vm2, %v362_v39  ;;  %v372_v44 = vadd.f32 %v371_v41, %v370_v43  ;;  %v390_v54 = vsel %vm369_vm3, %v385_v47, 0.0 }
  0xb5   : > { %366 = vst.msk [vmem:[%s696_s24 + $0x4] sm:$0xf] %vm364_vm2, %v361_v40  ;;  %v388_v45 = vsel %vm369_vm3, %v384_v42, 0.0 }
  0xb6   : > { %v389_v49 = vadd.f32 %v388_v45, %v387_v46  ;;  %v374_v53 = vadd.f32 %v373_v51, %v372_v44 }
  0xb7   : > { %v338_v50 = vpop.f32.mrf.mxu2 }
  0xb8   : > { %v358_v52 = vadd.f32 %v357_v48, %v338_v50  ;;  %v391_v59 = vadd.f32 %v390_v54, %v389_v49 }
  0xba   : > { %v363_v55 = vpack.c.bf16 %v358_v52, %v358_v52  ;;  %v375_v56 = vsel %vm369_vm3, %v358_v52, 0.0  ;;  %v386_v57 = vmul.f32 %v358_v52, %v358_v52 }
  0xbb   : > { %v376_v58 = vadd.f32 %v375_v56, %v374_v53 }
  0xbc   : > { %368 = vst.msk [vmem:[%s696_s24 + $0xc] sm:$0xf] %vm364_vm2, %v363_v55  ;;  %v392_v60 = vsel %vm369_vm3, %v386_v57, 0.0 }
  0xbd   : > { %v377_v61 = vrot.slane %v376_v58, 4  ;;  %v393_v62 = vadd.f32 %v392_v60, %v391_v59 }
  0xbf   : > { %v378_v63 = vadd.f32 %v377_v61, %v376_v58  ;;  %v394_v0 = vrot.slane %v393_v62, 4 }
  0xc1   : > { %v379_v1 = vrot.slane %v378_v63, 2  ;;  %v395_v2 = vadd.f32 %v394_v0, %v393_v62 }
  0xc3   : > { %v380_v3 = vadd.f32 %v379_v1, %v378_v63  ;;  %v396_v4 = vrot.slane %v395_v2, 2 }
  0xc5   : > { %v381_v5 = vrot.slane %v380_v3, 1  ;;  %v397_v6 = vadd.f32 %v396_v4, %v395_v2 }
  0xc7   : > { %v398_v7 = vrot.slane %v397_v6, 1  ;;  %v382_v8 = vadd.f32 %v381_v5, %v380_v3 }
  0xc9   : > { %v399_v9 = vadd.f32 %v398_v7, %v397_v6 }
  0xcb   : > { %v401_v10 = vsel %vm400_vm4, %v382_v8, %v399_v9 }
  0xcc   : > { %403 = vst.msk [vmem:[%s187_s27] sm:$0x3] %vm402_vm5, %v401_v10 }
  0xcd PF: > { %s14_s12 = sadd.s32 1, %s614_s12  }
  0xce   : > { %p11_p5 = scmp.ge.s32.totalorder %s14_s12, 6  }
  0xd0   :  { %13 = sbr.rel (!%p11_p5) target bundleno = 1 (0x1), region = 70 }

// kernel: featextnet_forward.32
= control target key start
LH: loop header
LB: loop body
LE: loop exit
PB: predicated region body
PF: predicated region fallthrough
CT: control target
= control target key end

     0   :  { %s407_s18 = smov 0   ;;  %s443_s0 = inlined_call_operand.vmem [shape: bf16[128,16], index: 0, kind: input, shape index: {}]   ;;  %s444_s1 = inlined_call_operand.vmem [shape: f32[1,16], index: 1, kind: input, shape index: {}]   ;;  %s445_s2 = inlined_call_operand.vmem [shape: f32[1,16], index: 2, kind: input, shape index: {}]   ;;  %s446_s3 = inlined_call_operand.vmem [shape: f32[1,16], index: 3, kind: input, shape index: {}]   ;;  %s447_s4 = inlined_call_operand.vmem [shape: f32[1,16], index: 4, kind: input, shape index: {}]   ;;  %s448_s5 = inlined_call_operand.vmem [shape: bf16[128,16], index: 5, kind: output, shape index: {}]  }
   0x1 LB: > { %s339_s19 = sadd.s32 4294967295, %s375_s18   ;;  %p343_p0 = scmp.ge.s32.totalorder %s375_s18, 1  ;;  %s375_s18 = sphi %s407_s18, %s15_s18  }
   0x2   : > { %p188_p1 = scmp.lt.s32.totalorder %s375_s18, 5 }
   0x4   : > { %p189_p2 = pnand %p343_p0, %p188_p1 }
   0x5   : > { %s344_s24 = sshll.u32 (!%p189_p2), %s339_s19, 2 }
   0x6   : > { %192 = sbr.rel (%p189_p2) target bundleno = 54 (0x36), region = 40  ;;  %p217_p3 = scmp.lt.s32.totalorder (!%p189_p2), %s344_s24, 15 }
   0xb   : > { %v228_v0 = vld [vmem:[%s444_s1] sm:$0x1]  ;;  %s450_s24 = smov (!%p217_p3, %s344_s24), 15  ;;  %vm278_vm3 = vcmask 125952  }
   0xc   : > { %v229_v1 = vld [vmem:[%s445_s2] sm:$0x1]  ;;  %v230_v2 = vmul.f32 %v228_v0, %v228_v0  ;;  %s345_s25 = sshll.u32 %s450_s24, 2 }
   0xd   : > { %s220_s28 = scalar_lea.vmem %s443_s0, %s345_s25  ;;  %v232_v10 = vld [vmem:[%s446_s3] sm:$0x1]  ;;  %s226_s10 = scalar_lea.vmem %s448_s5, %s345_s25 }
   0xe   : > { %v231_v3 = vsub.f32 %v229_v1, %v230_v2  ;;  %v351_v12 = vld [vmem:[%s220_s28] sm:$0xff]   ;;  %v358_v13 = vld [vmem:[%s220_s28 + $0x8] sm:$0xff]  }
   0xf   : > { %v352_v16 = vunpack.c.l.bf16 %v351_v12  ;;  %v353_v17 = vunpack.c.h.bf16 %v351_v12  ;;  %v356_v18 = vunpack.c.l.bf16 %v358_v13  ;;  %v245_v19 = vld [vmem:[%s447_s4] sm:$0x1]  ;;  %v357_v20 = vunpack.c.h.bf16 %v358_v13 }
  0x10   : > { %v233_v4 = vadd.f32 1e-05, %v231_v3 }
  0x12   : > { %367 = vrsqrt.f32 %v233_v4  ;;  %vm240_vm0 = vweird.f32 %v233_v4 }
  0x18   : > { %v368_v5 = vpop.eup %367 }
  0x19   : > { %v235_v6 = vmul.f32 %v368_v5, %v233_v4  ;;  %vm241_vm1 = vweird.f32 %v368_v5 }
  0x1a   : > { %vm242_vm2 = vmor %vm240_vm0, %vm241_vm1 }
  0x1b   : > { %v236_v7 = vmul.f32 %v368_v5, %v235_v6 }
  0x1d   : > { %v237_v8 = vmul.f32 0.5, %v236_v7 }
  0x1f   : > { %v238_v9 = vsub.f32 1.5, %v237_v8 }
  0x21   : > { %v239_v11 = vmul.f32 %v368_v5, %v238_v9 }
  0x23   : > { %v243_v14 = vsel %vm242_vm2, %v368_v5, %v239_v11 }
  0x24   : > { %v244_v15 = vmul.f32 %v243_v14, %v232_v10 }
  0x26   : > { %v246_v21 = vmul.f32 %v244_v15, %v228_v0  ;;  %v257_v22 = vperm.slane %v244_v15, 0 }
  0x28   : > { %v247_v23 = vsub.f32 %v245_v19, %v246_v21  ;;  %v259_v24 = vmul.f32 %v352_v16, %v257_v22  ;;  %v260_v25 = vmul.f32 %v353_v17, %v257_v22  ;;  %v261_v26 = vmul.f32 %v356_v18, %v257_v22 }
  0x29   : > { %v262_v27 = vmul.f32 %v357_v20, %v257_v22 }
  0x2a   : > { %v264_v28 = vperm.slane %v247_v23, 0 }
  0x2c   : > { %v266_v29 = vadd.f32 %v264_v28, %v259_v24  ;;  %v267_v30 = vadd.f32 %v264_v28, %v260_v25  ;;  %v268_v31 = vadd.f32 %v264_v28, %v261_v26  ;;  %v269_v32 = vadd.f32 %v264_v28, %v262_v27 }
  0x2e   : > { %v270_v33 = vmax.f32 %v266_v29, 0.0  ;;  %v271_v34 = vmax.f32 %v267_v30, 0.0  ;;  %v272_v35 = vmax.f32 %v268_v31, 0.0  ;;  %v273_v36 = vmax.f32 %v269_v32, 0.0 }
  0x30   : > { %v274_v37 = vpack.c.bf16 %v270_v33, %v270_v33  ;;  %v275_v38 = vpack.c.bf16 %v271_v34, %v271_v34  ;;  %v276_v39 = vpack.c.bf16 %v272_v35, %v272_v35  ;;  %v277_v40 = vpack.c.bf16 %v273_v36, %v273_v36 }
  0x32   : > { %279 = vst.msk [vmem:[%s226_s10] sm:$0xf] %vm278_vm3, %v274_v37 }
  0x33   : > { %280 = vst.msk [vmem:[%s226_s10 + $0x4] sm:$0xf] %vm278_vm3, %v275_v38 }
  0x34   : > { %281 = vst.msk [vmem:[%s226_s10 + $0x8] sm:$0xf] %vm278_vm3, %v276_v39 }
  0x35   : > { %282 = vst.msk [vmem:[%s226_s10 + $0xc] sm:$0xf] %vm278_vm3, %v277_v40 }
  0x36 PF: > { %s15_s18 = sadd.s32 1, %s375_s18  }
  0x37   : > { %p12_p4 = scmp.ge.s32.totalorder %s15_s18, 6  }
  0x39   :  { %14 = sbr.rel (!%p12_p4) target bundleno = 1 (0x1), region = 70 }

// kernel: featextnet_forward.33
= control target key start
LH: loop header
LB: loop body
LE: loop exit
PB: predicated region body
PF: predicated region fallthrough
CT: control target
= control target key end

     0   :  { %s583_s12 = smov 0   ;;  %s659_s0 = inlined_call_operand.vmem [shape: bf16[128,144], index: 0, kind: input, shape index: {}]   ;;  %s660_s1 = inlined_call_operand.vmem [shape: bf16[144,16], index: 1, kind: input, shape index: {}]   ;;  %s661_s2 = inlined_call_operand.vmem [shape: bf16[128,16], index: 2, kind: output, shape index: {0}]   ;;  %s662_s3 = inlined_call_operand.vmem [shape: f32[4,2,16], index: 3, kind: output, shape index: {1}]  }
   0x1 LB: > { %s589_s13 = sadd.s32 4294967295, %s561_s12   ;;  %p462_p0 = scmp.ge.s32.totalorder %s561_s12, 1  ;;  %s561_s12 = sphi %s583_s12, %s14_s12  }
   0x2   : > { %p142_p1 = scmp.lt.s32.totalorder %s561_s12, 5 }
   0x4   : > { %p143_p2 = pnand %p462_p0, %p142_p1 }
   0x5   : > { %s463_s16 = sshll.u32 (!%p143_p2), %s589_s13, 2  ;;  %p184_p4 = scmp.lt.s32.totalorder (!%p143_p2), %s589_s13, 3 }
   0x6   : > { %146 = sbr.rel (%p143_p2) target bundleno = 204 (0xcc), region = 28  ;;  %p172_p3 = scmp.lt.s32.totalorder (!%p143_p2), %s463_s16, 15 }
   0xb   : > { %v537_v0 = vld [vmem:[%s660_s1 + $0x38] sm:$0xff]  ;;  %v538_v1 = vld [vmem:[%s660_s1 + $0x40] sm:$0xff]  ;;  %v536_v2 = vld [vmem:[%s660_s1 + $0x30] sm:$0xff]  ;;  %s664_s16 = smov (!%p172_p3, %s463_s16), 15  ;;  %vm283_vm0 = vcmask 130048   ;;  %vm332_vm1 = vcmask 125952  }
   0xc   : > { %290 = vmatpush.bf16.msra.mxu0 %v537_v0  ;;  %539 = vmatpush.bf16.msra.mxu2 %v537_v0  ;;  %s525_s21 = sshll.u32 %s664_s16, 3  ;;  %v535_v3 = vld [vmem:[%s660_s1 + $0x28] sm:$0xff]  ;;  %v534_v7 = vld [vmem:[%s660_s1 + $0x20] sm:$0xff]  ;;  %v533_v8 = vld [vmem:[%s660_s1 + $0x18] sm:$0xff]  ;;  %s467_s10 = sshll.u32 %s664_s16, 2  ;;  %vm367_vm2 = vcmask 1040384  }
   0xd   : > { %316 = vmatpush.bf16.msra.mxu1 %v538_v1  ;;  %s176_s26 = scalar_lea.vmem %s659_s0, %s525_s21  ;;  %v532_v9 = vld [vmem:[%s660_s1 + $0x10] sm:$0xff]  ;;  %v531_v12 = vld [vmem:[%s660_s1 + $0x8] sm:$0xff]  ;;  %v530_v14 = vld [vmem:[%s660_s1] sm:$0xff]  ;;  %s633_s15 = scalar_lea.vmem %s661_s2, %s467_s10  ;;  %vm369_vm3 = vcmask 123904  }
   0xe   : > { %v526_v4 = vld [vmem:[%s176_s26 + $0x4] sm:$0xf]  ;;  %v473_v5 = vld [vmem:[%s176_s26 + $0x8] sm:$0xf0]  ;;  %v528_v10 = vld [vmem:[%s176_s26 + $0x14] sm:$0xf] }
   0xf   : > { %v476_v6 = vor.u32 %v526_v4, %v473_v5  ;;  %v481_v11 = vld [vmem:[%s176_s26 + $0x18] sm:$0xf0]  ;;  %v471_v15 = vld [vmem:[%s176_s26] sm:$0xf]  ;;  %v527_v16 = vld [vmem:[%s176_s26 + $0x4] sm:$0xf0] }
  0x10   : > { %291 = vmatpush.bf16.msra.mxu0 %v536_v2  ;;  %540 = vmatpush.bf16.msra.mxu2 %v536_v2  ;;  %v484_v13 = vor.u32 %v528_v10, %v481_v11  ;;  %v479_v17 = vld [vmem:[%s176_s26 + $0x10] sm:$0xf]  ;;  %v529_v18 = vld [vmem:[%s176_s26 + $0x14] sm:$0xf0]  ;;  %v472_v19 = vor.u32 %v527_v16, %v471_v15  ;;  %s666_s13 = smov (!%p184_p4, %s589_s13), 3 }
  0x11   : > { %521 = vmatmul.msk.bf16.vlgmr.msra.gmra.mxu1 %vm283_vm0, %v476_v6  ;;  %v480_v20 = vor.u32 %v529_v18, %v479_v17  ;;  %s468_s16 = sshll.u32 %s666_s13, 1 }
  0x12   : > { %s187_s19 = scalar_lea.vmem %s662_s3, %s468_s16 }
  0x14   : > { %292 = vmatpush.bf16.msra.mxu0 %v535_v3  ;;  %541 = vmatpush.bf16.msra.mxu2 %v535_v3 }
  0x18   : > { %293 = vmatpush.bf16.msra.mxu0 %v534_v7  ;;  %542 = vmatpush.bf16.msra.mxu2 %v534_v7 }
  0x1c   : > { %294 = vmatpush.bf16.msra.mxu0 %v533_v8  ;;  %543 = vmatpush.bf16.msra.mxu2 %v533_v8 }
  0x20   : > { %295 = vmatpush.bf16.msra.mxu0 %v532_v9  ;;  %544 = vmatpush.bf16.msra.mxu2 %v532_v9 }
  0x21   : > { %522 = vmatmul.msk.bf16.gmra.mxu1 %vm283_vm0, %v484_v13 }
  0x24   : > { %296 = vmatpush.bf16.msra.mxu0 %v531_v12  ;;  %545 = vmatpush.bf16.msra.mxu2 %v531_v12 }
  0x28   : > { %297 = vmatpush.bf16.msra.mxu0 %v530_v14  ;;  %546 = vmatpush.bf16.msra.mxu2 %v530_v14 }
  0x2b   : > { %298 = vmatmul.bf16.vlgmr.msra.gmra.mxu0 %v472_v19  ;;  %303 = vmatmul.bf16.vlgmr.msra.gmra.mxu2 %v480_v20 }
  0x8e   : > { %v318_v21 = vpop.f32.mrf.mxu1 }
  0x96   : > { %v320_v22 = vpop.f32.mrf.mxu1 }
  0x9e   : > { %v323_v26 = vpop.f32.mrf.mxu1 }
  0xa6   : > { %v325_v41 = vpop.f32.mrf.mxu1 }
  0xa8   : > { %v299_v23 = vpop.f32.mrf.mxu0 }
  0xa9   : > { %v319_v24 = vadd.f32 %v318_v21, %v299_v23 }
  0xab   : > { %v328_v25 = vpack.c.bf16 %v319_v24, %v319_v24  ;;  %v350_v30 = vmul.f32 %v319_v24, %v319_v24  ;;  %v337_v33 = vsel %vm283_vm0, %v319_v24, 0.0 }
  0xad   : > { %333 = vst.msk [vmem:[%s633_s15] sm:$0xf] %vm332_vm1, %v328_v25  ;;  %v354_v38 = vsel %vm283_vm0, %v350_v30, 0.0 }
  0xae   : > { %v304_v27 = vpop.f32.mrf.mxu2 }
  0xaf   : > { %v324_v28 = vadd.f32 %v323_v26, %v304_v27 }
  0xb0   : > { %v301_v29 = vpop.f32.mrf.mxu0 }
  0xb1   : > { %v330_v31 = vpack.c.bf16 %v324_v28, %v324_v28  ;;  %v321_v32 = vadd.f32 %v320_v22, %v301_v29  ;;  %v352_v39 = vmul.f32 %v324_v28, %v324_v28  ;;  %v340_v44 = vsel %vm283_vm0, %v324_v28, 0.0 }
  0xb3   : > { %335 = vst.msk [vmem:[%s633_s15 + $0x8] sm:$0xf] %vm332_vm1, %v330_v31  ;;  %v329_v34 = vpack.c.bf16 %v321_v32, %v321_v32  ;;  %v338_v35 = vsel %vm283_vm0, %v321_v32, 0.0  ;;  %v351_v36 = vmul.f32 %v321_v32, %v321_v32  ;;  %v357_v47 = vsel %vm283_vm0, %v352_v39, 0.0 }
  0xb4   : > { %v339_v37 = vadd.f32 %v338_v35, %v337_v33 }
  0xb5   : > { %334 = vst.msk [vmem:[%s633_s15 + $0x4] sm:$0xf] %vm332_vm1, %v329_v34  ;;  %v355_v40 = vsel %vm283_vm0, %v351_v36, 0.0 }
  0xb6   : > { %v356_v42 = vadd.f32 %v355_v40, %v354_v38  ;;  %v306_v43 = vpop.f32.mrf.mxu2  ;;  %v341_v46 = vadd.f32 %v340_v44, %v339_v37 }
  0xb7   : > { %v326_v45 = vadd.f32 %v325_v41, %v306_v43 }
  0xb8   : > { %v358_v52 = vadd.f32 %v357_v47, %v356_v42 }
  0xb9   : > { %v331_v48 = vpack.c.bf16 %v326_v45, %v326_v45  ;;  %v342_v49 = vsel %vm283_vm0, %v326_v45, 0.0  ;;  %v353_v50 = vmul.f32 %v326_v45, %v326_v45 }
  0xba   : > { %v343_v51 = vadd.f32 %v342_v49, %v341_v46 }
  0xbb   : > { %336 = vst.msk [vmem:[%s633_s15 + $0xc] sm:$0xf] %vm332_vm1, %v331_v48  ;;  %v359_v53 = vsel %vm283_vm0, %v353_v50, 0.0 }
  0xbc   : > { %v344_v54 = vrot.slane %v343_v51, 4  ;;  %v360_v55 = vadd.f32 %v359_v53, %v358_v52 }
  0xbe   : > { %v345_v56 = vadd.f32 %v344_v54, %v343_v51  ;;  %v361_v57 = vrot.slane %v360_v55, 4 }
  0xc0   : > { %v346_v58 = vrot.slane %v345_v56, 2  ;;  %v362_v59 = vadd.f32 %v361_v57, %v360_v55 }
  0xc2   : > { %v347_v60 = vadd.f32 %v346_v58, %v345_v56  ;;  %v363_v61 = vrot.slane %v362_v59, 2 }
  0xc4   : > { %v348_v62 = vrot.slane %v347_v60, 1  ;;  %v364_v63 = vadd.f32 %v363_v61, %v362_v59 }
  0xc6   : > { %v365_v0 = vrot.slane %v364_v63, 1  ;;  %v349_v1 = vadd.f32 %v348_v62, %v347_v60 }
  0xc8   : > { %v366_v2 = vadd.f32 %v365_v0, %v364_v63 }
  0xca   : > { %v368_v3 = vsel %vm367_vm2, %v349_v1, %v366_v2 }
  0xcb   : > { %370 = vst.msk [vmem:[%s187_s19] sm:$0x3] %vm369_vm3, %v368_v3 }
  0xcc PF: > { %s14_s12 = sadd.s32 1, %s561_s12  }
  0xcd   : > { %p11_p5 = scmp.ge.s32.totalorder %s14_s12, 6  }
  0xcf   :  { %13 = sbr.rel (!%p11_p5) target bundleno = 1 (0x1), region = 70 }

// kernel: featextnet_forward.38
= control target key start
LH: loop header
LB: loop body
LE: loop exit
PB: predicated region body
PF: predicated region fallthrough
CT: control target
= control target key end

     0   :  { %s388_s18 = smov 0   ;;  %s420_s0 = inlined_call_operand.vmem [shape: bf16[32,32], index: 0, kind: input, shape index: {}]   ;;  %s421_s1 = inlined_call_operand.vmem [shape: f32[1,32], index: 1, kind: input, shape index: {}]   ;;  %s422_s2 = inlined_call_operand.vmem [shape: f32[1,32], index: 2, kind: input, shape index: {}]   ;;  %s423_s3 = inlined_call_operand.vmem [shape: f32[1,32], index: 3, kind: input, shape index: {}]   ;;  %s424_s4 = inlined_call_operand.vmem [shape: f32[1,32], index: 4, kind: input, shape index: {}]   ;;  %s425_s5 = inlined_call_operand.vmem [shape: bf16[32,32], index: 5, kind: output, shape index: {}]  }
   0x1 LB: > { %s325_s19 = sadd.s32 4294967295, %s356_s18   ;;  %p329_p0 = scmp.ge.s32.totalorder %s356_s18, 1  ;;  %s356_s18 = sphi %s388_s18, %s15_s18  }
   0x2   : > { %p188_p1 = scmp.lt.s32.totalorder %s356_s18, 3 }
   0x4   : > { %p189_p2 = pnand %p329_p0, %p188_p1 }
   0x5   : > { %s330_s24 = sshll.u32 (!%p189_p2), %s325_s19, 1 }
   0x6   : > { %192 = sbr.rel (%p189_p2) target bundleno = 52 (0x34), region = 40  ;;  %p217_p3 = scmp.lt.s32.totalorder (!%p189_p2), %s330_s24, 3 }
   0xb   : > { %v228_v0 = vld [vmem:[%s421_s1] sm:$0x1]  ;;  %s427_s24 = smov (!%p217_p3, %s330_s24), 3  ;;  %vm266_vm3 = vcmask 257024  }
   0xc   : > { %v229_v1 = vld [vmem:[%s422_s2] sm:$0x1]  ;;  %v230_v2 = vmul.f32 %v228_v0, %v228_v0  ;;  %s331_s25 = sshll.u32 %s427_s24, 2 }
   0xd   : > { %s220_s28 = scalar_lea.vmem %s420_s0, %s331_s25  ;;  %v232_v10 = vld [vmem:[%s423_s3] sm:$0x1]  ;;  %s226_s10 = scalar_lea.vmem %s425_s5, %s331_s25 }
   0xe   : > { %v231_v3 = vsub.f32 %v229_v1, %v230_v2  ;;  %v337_v12 = vld [vmem:[%s220_s28] sm:$0xff]  }
   0xf   : > { %v338_v15 = vunpack.c.l.bf16 %v337_v12  ;;  %v339_v16 = vunpack.c.h.bf16 %v337_v12  ;;  %v245_v17 = vld [vmem:[%s424_s4] sm:$0x1] }
  0x10   : > { %v233_v4 = vadd.f32 1e-05, %v231_v3 }
  0x12   : > { %348 = vrsqrt.f32 %v233_v4  ;;  %vm240_vm0 = vweird.f32 %v233_v4 }
  0x18   : > { %v349_v5 = vpop.eup %348 }
  0x19   : > { %v235_v6 = vmul.f32 %v349_v5, %v233_v4  ;;  %vm241_vm1 = vweird.f32 %v349_v5 }
  0x1a   : > { %vm242_vm2 = vmor %vm240_vm0, %vm241_vm1 }
  0x1b   : > { %v236_v7 = vmul.f32 %v349_v5, %v235_v6 }
  0x1d   : > { %v237_v8 = vmul.f32 0.5, %v236_v7 }
  0x1f   : > { %v238_v9 = vsub.f32 1.5, %v237_v8 }
  0x21   : > { %v239_v11 = vmul.f32 %v349_v5, %v238_v9 }
  0x23   : > { %v243_v13 = vsel %vm242_vm2, %v349_v5, %v239_v11 }
  0x24   : > { %v244_v14 = vmul.f32 %v243_v13, %v232_v10 }
  0x26   : > { %v246_v18 = vmul.f32 %v244_v14, %v228_v0  ;;  %v253_v19 = vperm.slane %v244_v14, 0 }
  0x28   : > { %v247_v20 = vsub.f32 %v245_v17, %v246_v18  ;;  %v255_v21 = vmul.f32 %v338_v15, %v253_v19  ;;  %v256_v22 = vmul.f32 %v339_v16, %v253_v19 }
  0x2a   : > { %v258_v23 = vperm.slane %v247_v20, 0 }
  0x2c   : > { %v260_v24 = vadd.f32 %v258_v23, %v255_v21  ;;  %v261_v25 = vadd.f32 %v258_v23, %v256_v22 }
  0x2e   : > { %v262_v26 = vmax.f32 %v260_v24, 0.0  ;;  %v263_v27 = vmax.f32 %v261_v25, 0.0 }
  0x30   : > { %v264_v28 = vpack.c.bf16 %v262_v26, %v262_v26  ;;  %v265_v29 = vpack.c.bf16 %v263_v27, %v263_v27 }
  0x32   : > { %267 = vst.msk [vmem:[%s226_s10] sm:$0xf] %vm266_vm3, %v264_v28 }
  0x33   : > { %268 = vst.msk [vmem:[%s226_s10 + $0x4] sm:$0xf] %vm266_vm3, %v265_v29 }
  0x34 PF: > { %s15_s18 = sadd.s32 1, %s356_s18  }
  0x35   : > { %p12_p4 = scmp.ge.s32.totalorder %s15_s18, 4  }
  0x37   :  { %14 = sbr.rel (!%p12_p4) target bundleno = 1 (0x1), region = 70 }

// kernel: featextnet_forward.37
= control target key start
LH: loop header
LB: loop body
LE: loop exit
PB: predicated region body
PF: predicated region fallthrough
CT: control target
= control target key end

     0   :  { %s785_s12 = smov 0   ;;  %s901_s0 = inlined_call_operand.vmem [shape: bf16[32,400], index: 0, kind: input, shape index: {}]   ;;  %s902_s1 = inlined_call_operand.vmem [shape: bf16[400,32], index: 1, kind: input, shape index: {}]   ;;  %s903_s2 = inlined_call_operand.vmem [shape: bf16[32,32], index: 2, kind: output, shape index: {0}]   ;;  %s904_s3 = inlined_call_operand.vmem [shape: f32[2,2,32], index: 3, kind: output, shape index: {1}]  }
   0x1 LB: > { %s791_s13 = sadd.s32 4294967295, %s763_s12   ;;  %p593_p0 = scmp.ge.s32.totalorder %s763_s12, 1  ;;  %s763_s12 = sphi %s785_s12, %s14_s12  }
   0x2   : > { %p142_p1 = scmp.lt.s32.totalorder %s763_s12, 3 }
   0x4   : > { %p143_p2 = pnand %p593_p0, %p142_p1 }
   0x5   : > { %s594_s20 = sshll.u32 (!%p143_p2), %s791_s13, 1  ;;  %p184_p4 = scmp.lt.s32.totalorder (!%p143_p2), %s791_s13, 1 }
   0x6   : > { %146 = sbr.rel (%p143_p2) target bundleno = 208 (0xd0), region = 28  ;;  %p172_p3 = scmp.lt.s32.totalorder (!%p143_p2), %s594_s20, 3 }
   0xb   : > { %v731_v0 = vld [vmem:[%s902_s1 + $0x38] sm:$0xff]  ;;  %v730_v3 = vld [vmem:[%s902_s1 + $0x30] sm:$0xff]  ;;  %s906_s20 = smov (!%p172_p3, %s594_s20), 3  ;;  %v729_v6 = vld [vmem:[%s902_s1 + $0x28] sm:$0xff]  ;;  %vm412_vm0 = vcmask 130048   ;;  %vm474_vm1 = vcmask 257024  }
   0xc   : > { %v739_v1 = vld [vmem:[%s902_s1 + $0x78] sm:$0xff]  ;;  %416 = vmatpush.bf16.msra.mxu0 %v731_v0  ;;  %v738_v4 = vld [vmem:[%s902_s1 + $0x70] sm:$0xff]  ;;  %s719_s27 = sshll.u32 %s906_s20, 4  ;;  %v737_v7 = vld [vmem:[%s902_s1 + $0x68] sm:$0xff]  ;;  %s598_s22 = sshll.u32 %s906_s20, 2  ;;  %vm477_vm2 = vcmask 261120  }
   0xd   : > { %v747_v2 = vld [vmem:[%s902_s1 + $0xb8] sm:$0xff]  ;;  %430 = vmatpush.bf16.msra.mxu1 %v739_v1  ;;  %v746_v5 = vld [vmem:[%s902_s1 + $0xb0] sm:$0xff]  ;;  %v748_v8 = vld [vmem:[%s902_s1 + $0xc0] sm:$0xff]  ;;  %s829_s9 = scalar_lea.vmem %s901_s0, %s719_s27  ;;  %s908_s13 = smov (!%p184_p4, %s791_s13), 1  ;;  %vm498_vm3 = vcmask 1040384   ;;  %vm500_vm4 = vcmask 254976  }
   0xe   : > { %444 = vmatpush.bf16.msra.mxu2 %v747_v2  ;;  %v745_v9 = vld [vmem:[%s902_s1 + $0xa8] sm:$0xff]  ;;  %v612_v11 = vld [vmem:[%s829_s9 + $0x18] sm:$0xf0]  ;;  %465 = vmatpush.bf16.msra.mxu3 %v748_v8  ;;  %v728_v13 = vld [vmem:[%s902_s1 + $0x20] sm:$0xff]  ;;  %s599_s20 = sshll.u32 %s908_s13, 1 }
   0xf   : > { %v721_v10 = vld [vmem:[%s829_s9 + $0xc] sm:$0xf]  ;;  %v736_v14 = vld [vmem:[%s902_s1 + $0x60] sm:$0xff]  ;;  %v727_v16 = vld [vmem:[%s902_s1 + $0x18] sm:$0xff]  ;;  %s187_s27 = scalar_lea.vmem %s904_s3, %s599_s20 }
  0x10   : > { %417 = vmatpush.bf16.msra.mxu0 %v730_v3  ;;  %v615_v12 = vor.u32 %v721_v10, %v612_v11  ;;  %v744_v15 = vld [vmem:[%s902_s1 + $0xa0] sm:$0xff]  ;;  %v735_v17 = vld [vmem:[%s902_s1 + $0x58] sm:$0xff]  ;;  %v726_v19 = vld [vmem:[%s902_s1 + $0x10] sm:$0xff] }
  0x11   : > { %431 = vmatpush.bf16.msra.mxu1 %v738_v4  ;;  %v743_v18 = vld [vmem:[%s902_s1 + $0x98] sm:$0xff]  ;;  %v734_v20 = vld [vmem:[%s902_s1 + $0x50] sm:$0xff]  ;;  %v725_v22 = vld [vmem:[%s902_s1 + $0x8] sm:$0xff] }
  0x12   : > { %445 = vmatpush.bf16.msra.mxu2 %v746_v5  ;;  %716 = vmatmul.msk.bf16.vlgmr.msra.gmra.mxu3 %vm412_vm0, %v615_v12  ;;  %v742_v21 = vld [vmem:[%s902_s1 + $0x90] sm:$0xff]  ;;  %v733_v23 = vld [vmem:[%s902_s1 + $0x48] sm:$0xff]  ;;  %v724_v25 = vld [vmem:[%s902_s1] sm:$0xff] }
  0x13   : > { %v741_v24 = vld [vmem:[%s902_s1 + $0x88] sm:$0xff]  ;;  %v732_v26 = vld [vmem:[%s902_s1 + $0x40] sm:$0xff]  ;;  %v722_v28 = vld [vmem:[%s829_s9 + $0xc] sm:$0xf0] }
  0x14   : > { %418 = vmatpush.bf16.msra.mxu0 %v729_v6  ;;  %v602_v27 = vld [vmem:[%s829_s9] sm:$0xf]  ;;  %v720_v29 = vld [vmem:[%s829_s9 + $0x4] sm:$0xf]  ;;  %v604_v30 = vld [vmem:[%s829_s9 + $0x10] sm:$0xf0] }
  0x15   : > { %432 = vmatpush.bf16.msra.mxu1 %v737_v7  ;;  %v740_v31 = vld [vmem:[%s902_s1 + $0x80] sm:$0xff]  ;;  %v610_v32 = vld [vmem:[%s829_s9 + $0x8] sm:$0xf]  ;;  %v723_v33 = vld [vmem:[%s829_s9 + $0x14] sm:$0xf0]  ;;  %v603_v34 = vor.u32 %v722_v28, %v602_v27  ;;  %v607_v35 = vor.u32 %v720_v29, %v604_v30  ;;  %s182_s9 = scalar_lea.vmem %s903_s2, %s598_s22 }
  0x16   : > { %446 = vmatpush.bf16.msra.mxu2 %v745_v9  ;;  %v611_v36 = vor.u32 %v723_v33, %v610_v32 }
  0x18   : > { %419 = vmatpush.bf16.msra.mxu0 %v728_v13 }
  0x19   : > { %433 = vmatpush.bf16.msra.mxu1 %v736_v14 }
  0x1a   : > { %447 = vmatpush.bf16.msra.mxu2 %v744_v15 }
  0x1c   : > { %420 = vmatpush.bf16.msra.mxu0 %v727_v16 }
  0x1d   : > { %434 = vmatpush.bf16.msra.mxu1 %v735_v17 }
  0x1e   : > { %448 = vmatpush.bf16.msra.mxu2 %v743_v18 }
  0x20   : > { %421 = vmatpush.bf16.msra.mxu0 %v726_v19 }
  0x21   : > { %435 = vmatpush.bf16.msra.mxu1 %v734_v20 }
  0x22   : > { %449 = vmatpush.bf16.msra.mxu2 %v742_v21 }
  0x24   : > { %422 = vmatpush.bf16.msra.mxu0 %v725_v22 }
  0x25   : > { %436 = vmatpush.bf16.msra.mxu1 %v733_v23 }
  0x26   : > { %450 = vmatpush.bf16.msra.mxu2 %v741_v24 }
  0x28   : > { %423 = vmatpush.bf16.msra.mxu0 %v724_v25 }
  0x29   : > { %437 = vmatpush.bf16.msra.mxu1 %v732_v26 }
  0x2a   : > { %451 = vmatpush.bf16.msra.mxu2 %v740_v31 }
  0x2b   : > { %424 = vmatmul.bf16.vlgmr.msra.gmra.mxu0 %v603_v34 }
  0x2c   : > { %438 = vmatmul.bf16.vlgmr.msra.gmra.mxu1 %v607_v35 }
  0x2d   : > { %452 = vmatmul.bf16.vlgmr.msra.gmra.mxu2 %v611_v36 }
  0x95   : > { %v467_v40 = vpop.f32.mrf.mxu3 }
  0x9d   : > { %v469_v50 = vpop.f32.mrf.mxu3 }
  0xa8   : > { %v425_v37 = vpop.f32.mrf.mxu0 }
  0xa9   : > { %v439_v38 = vpop.f32.mrf.mxu1 }
  0xaa   : > { %v440_v39 = vadd.f32 %v439_v38, %v425_v37 }
  0xb0   : > { %v453_v41 = vpop.f32.mrf.mxu2  ;;  %v427_v44 = vpop.f32.mrf.mxu0 }
  0xb1   : > { %v454_v42 = vadd.f32 %v453_v41, %v440_v39  ;;  %v441_v45 = vpop.f32.mrf.mxu1 }
  0xb2   : > { %v442_v47 = vadd.f32 %v441_v45, %v427_v44 }
  0xb3   : > { %v468_v43 = vadd.f32 %v467_v40, %v454_v42 }
  0xb5   : > { %v472_v46 = vpack.c.bf16 %v468_v43, %v468_v43  ;;  %v487_v51 = vmul.f32 %v468_v43, %v468_v43  ;;  %v478_v53 = vsel %vm477_vm2, %v468_v43, 0.0 }
  0xb7   : > { %475 = vst.msk [vmem:[%s182_s9] sm:$0xf] %vm474_vm1, %v472_v46  ;;  %v489_v58 = vsel %vm477_vm2, %v487_v51, 0.0 }
  0xb8   : > { %v455_v48 = vpop.f32.mrf.mxu2 }
  0xb9   : > { %v456_v49 = vadd.f32 %v455_v48, %v442_v47 }
  0xbb   : > { %v470_v52 = vadd.f32 %v469_v50, %v456_v49 }
  0xbd   : > { %v473_v54 = vpack.c.bf16 %v470_v52, %v470_v52  ;;  %v479_v55 = vsel %vm477_vm2, %v470_v52, 0.0  ;;  %v488_v56 = vmul.f32 %v470_v52, %v470_v52 }
  0xbe   : > { %v480_v57 = vadd.f32 %v479_v55, %v478_v53 }
  0xbf   : > { %476 = vst.msk [vmem:[%s182_s9 + $0x4] sm:$0xf] %vm474_vm1, %v473_v54  ;;  %v490_v59 = vsel %vm477_vm2, %v488_v56, 0.0 }
  0xc0   : > { %v481_v60 = vrot.slane %v480_v57, 4  ;;  %v491_v61 = vadd.f32 %v490_v59, %v489_v58 }
  0xc2   : > { %v482_v62 = vadd.f32 %v481_v60, %v480_v57  ;;  %v492_v63 = vrot.slane %v491_v61, 4 }
  0xc4   : > { %v483_v0 = vrot.slane %v482_v62, 2  ;;  %v493_v1 = vadd.f32 %v492_v63, %v491_v61 }
  0xc6   : > { %v484_v2 = vadd.f32 %v483_v0, %v482_v62  ;;  %v494_v3 = vrot.slane %v493_v1, 2 }
  0xc8   : > { %v485_v4 = vrot.slane %v484_v2, 1  ;;  %v495_v5 = vadd.f32 %v494_v3, %v493_v1 }
  0xca   : > { %v496_v6 = vrot.slane %v495_v5, 1  ;;  %v486_v7 = vadd.f32 %v485_v4, %v484_v2 }
  0xcc   : > { %v497_v8 = vadd.f32 %v496_v6, %v495_v5 }
  0xce   : > { %v499_v9 = vsel %vm498_vm3, %v486_v7, %v497_v8 }
  0xcf   : > { %501 = vst.msk [vmem:[%s187_s27] sm:$0x3] %vm500_vm4, %v499_v9 }
  0xd0 PF: > { %s14_s12 = sadd.s32 1, %s763_s12  }
  0xd1   : > { %p11_p5 = scmp.ge.s32.totalorder %s14_s12, 4  }
  0xd3   :  { %13 = sbr.rel (!%p11_p5) target bundleno = 1 (0x1), region = 70 }

// kernel: featextnet_forward.39
= control target key start
LH: loop header
LB: loop body
LE: loop exit
PB: predicated region body
PF: predicated region fallthrough
CT: control target
= control target key end

     0   :  { %s669_s12 = smov 0   ;;  %s757_s0 = inlined_call_operand.vmem [shape: bf16[32,288], index: 0, kind: input, shape index: {}]   ;;  %s758_s1 = inlined_call_operand.vmem [shape: bf16[288,32], index: 1, kind: input, shape index: {}]   ;;  %s759_s2 = inlined_call_operand.vmem [shape: bf16[32,32], index: 2, kind: output, shape index: {0}]   ;;  %s760_s3 = inlined_call_operand.vmem [shape: f32[2,2,32], index: 3, kind: output, shape index: {1}]  }
   0x1 LB: > { %s675_s13 = sadd.s32 4294967295, %s647_s12   ;;  %p518_p0 = scmp.ge.s32.totalorder %s647_s12, 1  ;;  %s647_s12 = sphi %s669_s12, %s14_s12  }
   0x2   : > { %p142_p1 = scmp.lt.s32.totalorder %s647_s12, 3 }
   0x4   : > { %p143_p2 = pnand %p518_p0, %p142_p1 }
   0x5   : > { %s519_s18 = sshll.u32 (!%p143_p2), %s675_s13, 1  ;;  %p184_p4 = scmp.lt.s32.totalorder (!%p143_p2), %s675_s13, 1 }
   0x6   : > { %146 = sbr.rel (%p143_p2) target bundleno = 201 (0xc9), region = 28  ;;  %p172_p3 = scmp.lt.s32.totalorder (!%p143_p2), %s519_s18, 3 }
   0xb   : > { %v621_v0 = vld [vmem:[%s758_s1 + $0x38] sm:$0xff]  ;;  %v620_v2 = vld [vmem:[%s758_s1 + $0x30] sm:$0xff]  ;;  %v631_v4 = vld [vmem:[%s758_s1 + $0x88] sm:$0xff]  ;;  %s762_s18 = smov (!%p172_p3, %s519_s18), 3  ;;  %vm352_vm0 = vcmask 261120   ;;  %vm400_vm1 = vcmask 257024  }
   0xc   : > { %v629_v1 = vld [vmem:[%s758_s1 + $0x78] sm:$0xff]  ;;  %356 = vmatpush.bf16.msra.mxu0 %v621_v0  ;;  %v628_v3 = vld [vmem:[%s758_s1 + $0x70] sm:$0xff]  ;;  %390 = vmatpush.bf16.msra.mxu2 %v631_v4  ;;  %v630_v5 = vld [vmem:[%s758_s1 + $0x80] sm:$0xff]  ;;  %s632_s27 = smul.u32 12, %s762_s18  ;;  %s522_s4 = sshll.u32 %s762_s18, 2  ;;  %vm423_vm2 = vcmask 1040384  }
   0xd   : > { %370 = vmatpush.bf16.msra.mxu1 %v629_v1  ;;  %v619_v6 = vld [vmem:[%s758_s1 + $0x28] sm:$0xff]  ;;  %v618_v11 = vld [vmem:[%s758_s1 + $0x20] sm:$0xff]  ;;  %v617_v13 = vld [vmem:[%s758_s1 + $0x18] sm:$0xff]  ;;  %s182_s8 = scalar_lea.vmem %s759_s2, %s522_s4  ;;  %s764_s13 = smov (!%p184_p4, %s675_s13), 1  ;;  %vm425_vm3 = vcmask 254976  }
   0xe   : > { %v627_v7 = vld [vmem:[%s758_s1 + $0x68] sm:$0xff]  ;;  %s176_s7 = scalar_lea.vmem %s757_s0, %s632_s27  ;;  %v626_v12 = vld [vmem:[%s758_s1 + $0x60] sm:$0xff]  ;;  %v625_v14 = vld [vmem:[%s758_s1 + $0x58] sm:$0xff]  ;;  %s523_s18 = sshll.u32 %s764_s13, 1 }
   0xf   : > { %v534_v8 = vld [vmem:[%s176_s7 + $0x8] sm:$0xf]  ;;  %v613_v9 = vld [vmem:[%s176_s7 + $0x10] sm:$0xf0]  ;;  %v614_v19 = vld [vmem:[%s758_s1] sm:$0xff]  ;;  %s187_s10 = scalar_lea.vmem %s760_s3, %s523_s18 }
  0x10   : > { %357 = vmatpush.bf16.msra.mxu0 %v620_v2  ;;  %391 = vmatpush.bf16.msra.mxu2 %v630_v5  ;;  %v535_v10 = vor.u32 %v613_v9, %v534_v8  ;;  %v616_v15 = vld [vmem:[%s758_s1 + $0x10] sm:$0xff]  ;;  %v615_v17 = vld [vmem:[%s758_s1 + $0x8] sm:$0xff]  ;;  %v622_v20 = vld [vmem:[%s758_s1 + $0x40] sm:$0xff] }
  0x11   : > { %371 = vmatpush.bf16.msra.mxu1 %v628_v3  ;;  %v624_v16 = vld [vmem:[%s758_s1 + $0x50] sm:$0xff]  ;;  %v623_v18 = vld [vmem:[%s758_s1 + $0x48] sm:$0xff]  ;;  %v526_v21 = vld [vmem:[%s176_s7] sm:$0xf] }
  0x12   : > { %v612_v22 = vld [vmem:[%s176_s7 + $0x8] sm:$0xf0]  ;;  %v611_v23 = vld [vmem:[%s176_s7 + $0x4] sm:$0xf]  ;;  %v528_v24 = vld [vmem:[%s176_s7 + $0xc] sm:$0xf0] }
  0x13   : > { %608 = vmatmul.msk.bf16.vlgmr.msra.gmra.mxu2 %vm352_vm0, %v535_v10  ;;  %v527_v25 = vor.u32 %v612_v22, %v526_v21  ;;  %v531_v26 = vor.u32 %v611_v23, %v528_v24 }
  0x14   : > { %358 = vmatpush.bf16.msra.mxu0 %v619_v6 }
  0x15   : > { %372 = vmatpush.bf16.msra.mxu1 %v627_v7 }
  0x18   : > { %359 = vmatpush.bf16.msra.mxu0 %v618_v11 }
  0x19   : > { %373 = vmatpush.bf16.msra.mxu1 %v626_v12 }
  0x1c   : > { %360 = vmatpush.bf16.msra.mxu0 %v617_v13 }
  0x1d   : > { %374 = vmatpush.bf16.msra.mxu1 %v625_v14 }
  0x20   : > { %361 = vmatpush.bf16.msra.mxu0 %v616_v15 }
  0x21   : > { %375 = vmatpush.bf16.msra.mxu1 %v624_v16 }
  0x24   : > { %362 = vmatpush.bf16.msra.mxu0 %v615_v17 }
  0x25   : > { %376 = vmatpush.bf16.msra.mxu1 %v623_v18 }
  0x28   : > { %363 = vmatpush.bf16.msra.mxu0 %v614_v19 }
  0x29   : > { %377 = vmatpush.bf16.msra.mxu1 %v622_v20 }
  0x2b   : > { %364 = vmatmul.bf16.vlgmr.msra.gmra.mxu0 %v527_v25 }
  0x2c   : > { %378 = vmatmul.bf16.vlgmr.msra.gmra.mxu1 %v531_v26 }
  0x96   : > { %v393_v27 = vpop.f32.mrf.mxu2 }
  0x9e   : > { %v395_v36 = vpop.f32.mrf.mxu2 }
  0xa8   : > { %v365_v28 = vpop.f32.mrf.mxu0 }
  0xa9   : > { %v379_v29 = vpop.f32.mrf.mxu1 }
  0xaa   : > { %v380_v30 = vadd.f32 %v379_v29, %v365_v28 }
  0xac   : > { %v394_v31 = vadd.f32 %v393_v27, %v380_v30 }
  0xae   : > { %v398_v32 = vpack.c.bf16 %v394_v31, %v394_v31  ;;  %v412_v37 = vmul.f32 %v394_v31, %v394_v31  ;;  %v403_v39 = vsel %vm352_vm0, %v394_v31, 0.0 }
  0xb0   : > { %401 = vst.msk [vmem:[%s182_s8] sm:$0xf] %vm400_vm1, %v398_v32  ;;  %v367_v33 = vpop.f32.mrf.mxu0  ;;  %v414_v44 = vsel %vm352_vm0, %v412_v37, 0.0 }
  0xb1   : > { %v381_v34 = vpop.f32.mrf.mxu1 }
  0xb2   : > { %v382_v35 = vadd.f32 %v381_v34, %v367_v33 }
  0xb4   : > { %v396_v38 = vadd.f32 %v395_v36, %v382_v35 }
  0xb6   : > { %v399_v40 = vpack.c.bf16 %v396_v38, %v396_v38  ;;  %v404_v41 = vsel %vm352_vm0, %v396_v38, 0.0  ;;  %v413_v42 = vmul.f32 %v396_v38, %v396_v38 }
  0xb7   : > { %v405_v43 = vadd.f32 %v404_v41, %v403_v39 }
  0xb8   : > { %402 = vst.msk [vmem:[%s182_s8 + $0x4] sm:$0xf] %vm400_vm1, %v399_v40  ;;  %v415_v45 = vsel %vm352_vm0, %v413_v42, 0.0 }
  0xb9   : > { %v406_v46 = vrot.slane %v405_v43, 4  ;;  %v416_v47 = vadd.f32 %v415_v45, %v414_v44 }
  0xbb   : > { %v407_v48 = vadd.f32 %v406_v46, %v405_v43  ;;  %v417_v49 = vrot.slane %v416_v47, 4 }
  0xbd   : > { %v408_v50 = vrot.slane %v407_v48, 2  ;;  %v418_v51 = vadd.f32 %v417_v49, %v416_v47 }
  0xbf   : > { %v409_v52 = vadd.f32 %v408_v50, %v407_v48  ;;  %v419_v53 = vrot.slane %v418_v51, 2 }
  0xc1   : > { %v410_v54 = vrot.slane %v409_v52, 1  ;;  %v420_v55 = vadd.f32 %v419_v53, %v418_v51 }
  0xc3   : > { %v421_v56 = vrot.slane %v420_v55, 1  ;;  %v411_v57 = vadd.f32 %v410_v54, %v409_v52 }
  0xc5   : > { %v422_v58 = vadd.f32 %v421_v56, %v420_v55 }
  0xc7   : > { %v424_v59 = vsel %vm423_vm2, %v411_v57, %v422_v58 }
  0xc8   : > { %426 = vst.msk [vmem:[%s187_s10] sm:$0x3] %vm425_vm3, %v424_v59 }
  0xc9 PF: > { %s14_s12 = sadd.s32 1, %s647_s12  }
  0xca   : > { %p11_p5 = scmp.ge.s32.totalorder %s14_s12, 4  }
  0xcc   :  { %13 = sbr.rel (!%p11_p5) target bundleno = 1 (0x1), region = 70 }

// kernel: featextnet_forward.42
= control target key start
LH: loop header
LB: loop body
LE: loop exit
PB: predicated region body
PF: predicated region fallthrough
CT: control target
= control target key end

     0   :  { %s644_s27 = smov 0   ;;  %s693_s0 = inlined_call_operand.vmem [shape: bf16[32,32], index: 0, kind: input, shape index: {}]   ;;  %s694_s1 = inlined_call_operand.vmem [shape: f32[1,32], index: 1, kind: input, shape index: {}]   ;;  %s695_s2 = inlined_call_operand.vmem [shape: f32[1,32], index: 2, kind: input, shape index: {}]   ;;  %s696_s3 = inlined_call_operand.vmem [shape: f32[1,32], index: 3, kind: input, shape index: {}]   ;;  %s697_s4 = inlined_call_operand.vmem [shape: f32[1,32], index: 4, kind: input, shape index: {}]   ;;  %s698_s5 = inlined_call_operand.vmem [shape: bf16[32,2], index: 5, kind: input, shape index: {}]   ;;  %s699_s6 = inlined_call_operand.vmem [shape: f32[1,2], index: 6, kind: input, shape index: {}]   ;;  %s700_s7 = inlined_call_operand.vmem [shape: bf16[32,32], index: 7, kind: output, shape index: {0}]   ;;  %s701_s8 = inlined_call_operand.vmem [shape: f32[32,2], index: 8, kind: output, shape index: {1}]  }
   0x1 LB: > { %s544_s28 = sadd.s32 4294967295, %s597_s27   ;;  %p548_p0 = scmp.ge.s32.totalorder %s597_s27, 1  ;;  %s597_s27 = sphi %s644_s27, %s19_s27  }
   0x2   : > { %p266_p1 = scmp.lt.s32.totalorder %s597_s27, 3 }
   0x4   : > { %p267_p2 = pnand %p548_p0, %p266_p1 }
   0x5   : > { %s549_s15 = sshll.u32 (!%p267_p2), %s544_s28, 1 }
   0x6   : > { %270 = sbr.rel (%p267_p2) target bundleno = 222 (0xde), region = 48  ;;  %p306_p3 = scmp.lt.s32.totalorder (!%p267_p2), %s549_s15, 3 }
   0xb   : > { %v567_v0 = vld [vmem:[%s698_s5 + $0x8] sm:$0xff]  ;;  %v324_v1 = vld [vmem:[%s694_s1] sm:$0x1]  ;;  %s703_s15 = smov (!%p306_p3, %s549_s15), 3  ;;  %vm362_vm3 = vcmask 257024   ;;  %vm390_vm4 = vcmask 261120   ;;  %v408_v48 = vlaneseq }
   0xc   : > { %v325_v2 = vld [vmem:[%s695_s2] sm:$0x1]  ;;  %v326_v3 = vmul.f32 %v324_v1, %v324_v1  ;;  %400 = vmatpush.bf16.msra.mxu0 %v567_v0  ;;  %s550_s16 = sshll.u32 %s703_s15, 2  ;;  %s554_s30 = sshll.u32 %s703_s15, 3  ;;  %vm451_vm10 = vcmask 15360  }
   0xd   : > { %v566_v4 = vld [vmem:[%s698_s5] sm:$0xff]  ;;  %s309_s19 = scalar_lea.vmem %s693_s0, %s550_s16  ;;  %s315_s26 = scalar_lea.vmem %s700_s7, %s550_s16  ;;  %v409_v52 = vand.u32 127, %v408_v48 }
   0xe   : > { %v327_v5 = vsub.f32 %v325_v2, %v326_v3  ;;  %v328_v12 = vld [vmem:[%s696_s3] sm:$0x1]  ;;  %s321_s11 = scalar_lea.vmem %s701_s8, %s554_s30 }
   0xf   : > { %v569_v14 = vld [vmem:[%s309_s19] sm:$0xff]   ;;  %vm410_vm7 = vcmp.eq.s32.totalorder %v409_v52, 0 }
  0x10   : > { %v329_v6 = vadd.f32 1e-05, %v327_v5  ;;  %401 = vmatpush.bf16.msra.mxu0 %v566_v4  ;;  %v570_v17 = vunpack.c.l.bf16 %v569_v14  ;;  %v571_v18 = vunpack.c.h.bf16 %v569_v14  ;;  %v341_v19 = vld [vmem:[%s697_s4] sm:$0x1] }
  0x11   : > { %v580_v35 = vld [vmem:[%s699_s6] ss:$0 sm:$0xff] }
  0x12   : > { %581 = vrsqrt.f32 %v329_v6  ;;  %vm336_vm0 = vweird.f32 %v329_v6 }
  0x18   : > { %v582_v7 = vpop.eup %581 }
  0x19   : > { %v331_v8 = vmul.f32 %v582_v7, %v329_v6  ;;  %vm337_vm1 = vweird.f32 %v582_v7 }
  0x1a   : > { %vm338_vm2 = vmor %vm336_vm0, %vm337_vm1 }
  0x1b   : > { %v332_v9 = vmul.f32 %v582_v7, %v331_v8 }
  0x1d   : > { %v333_v10 = vmul.f32 0.5, %v332_v9 }
  0x1f   : > { %v334_v11 = vsub.f32 1.5, %v333_v10 }
  0x21   : > { %v335_v13 = vmul.f32 %v582_v7, %v334_v11 }
  0x23   : > { %v339_v15 = vsel %vm338_vm2, %v582_v7, %v335_v13 }
  0x24   : > { %v340_v16 = vmul.f32 %v339_v15, %v328_v12 }
  0x26   : > { %v342_v20 = vmul.f32 %v340_v16, %v324_v1  ;;  %v349_v21 = vperm.slane %v340_v16, 0 }
  0x28   : > { %v343_v22 = vsub.f32 %v341_v19, %v342_v20  ;;  %v351_v23 = vmul.f32 %v570_v17, %v349_v21  ;;  %v352_v24 = vmul.f32 %v571_v18, %v349_v21 }
  0x2a   : > { %v354_v25 = vperm.slane %v343_v22, 0 }
  0x2c   : > { %v356_v26 = vadd.f32 %v354_v25, %v351_v23  ;;  %v357_v27 = vadd.f32 %v354_v25, %v352_v24 }
  0x2e   : > { %v358_v28 = vmax.f32 %v356_v26, 0.0  ;;  %v359_v29 = vmax.f32 %v357_v27, 0.0 }
  0x30   : > { %v360_v30 = vpack.c.bf16 %v358_v28, %v358_v28  ;;  %v361_v31 = vpack.c.bf16 %v359_v29, %v359_v29 }
  0x32   : > { %363 = vst.msk [vmem:[%s315_s26] sm:$0xf] %vm362_vm3, %v360_v30  ;;  %v375_v32 = vunpack.c.l.b16 %v360_v30  ;;  %v376_v33 = vunpack.c.l.b16 %v361_v31 }
  0x33   : > { %364 = vst.msk [vmem:[%s315_s26 + $0x4] sm:$0xf] %vm362_vm3, %v361_v31 }
  0x34   : > { %v377_v34 = vpack.c.b16 %v376_v33, %v375_v32 }
  0x36   : > { %563 = vmatmul.msk.bf16.vlgmr.msra.gmra.mxu0 %vm390_vm4, %v377_v34 }
  0xb3   : > { %v403_v36 = vpop.f32.mrf.mxu0 }
  0xb4   : > { %v404_v37 = vadd.f32 %v580_v35, %v403_v36 }
  0xb6   : > { %v411_v38 = vsub.f32 0.0, %v404_v37 }
  0xb8   : > { %v413_v39 = vmul.f32 1.442695, %v411_v38 }
  0xba   : > { %583 = vpow2.f32 %v413_v39 }
  0xbb   : > { %v405_v40 = vpop.f32.mrf.mxu0 }
  0xbc   : > { %v406_v41 = vadd.f32 %v580_v35, %v405_v40 }
  0xbe   : > { %v412_v42 = vsub.f32 0.0, %v406_v41 }
  0xc0   : > { %v584_v43 = vpop.eup %583  ;;  %v415_v44 = vmul.f32 1.442695, %v412_v42 }
  0xc1   : > { %v417_v45 = vadd.f32 1.0, %v584_v43 }
  0xc2   : > { %585 = vpow2.f32 %v415_v44 }
  0xc3   : > { %587 = vrcp.f32 %v417_v45  ;;  %v430_v53 = vand.u32 2147483648, %v417_v45  ;;  %v428_v55 = vand.u32 2147483647, %v417_v45  ;;  %vm424_vm6 = vweird.f32 %v417_v45 }
  0xc5   : > { %v431_v58 = vor.u32 1.1754944e-38, %v430_v53  ;;  %vm429_vm9 = vcmp.eq.f32.partialorder %v428_v55, 8.507059e+37 }
  0xc8   : > { %v586_v46 = vpop.eup %585 }
  0xc9   : > { %v588_v47 = vpop.eup %587  ;;  %v418_v49 = vadd.f32 1.0, %v586_v46 }
  0xca   : > { %v420_v50 = vmul.f32 %v588_v47, %v417_v45  ;;  %vm425_vm5 = vweird.f32 %v588_v47 }
  0xcb   : > { %589 = vrcp.f32 %v418_v49  ;;  %vm426_vm8 = vmor %vm424_vm6, %vm425_vm5  ;;  %v445_v0 = vand.u32 2147483648, %v418_v49  ;;  %v443_v2 = vand.u32 2147483647, %v418_v49  ;;  %vm439_vm12 = vweird.f32 %v418_v49 }
  0xcc   : > { %v421_v51 = vsub.f32 1.0, %v420_v50 }
  0xcd   : > { %v446_v4 = vor.u32 1.1754944e-38, %v445_v0  ;;  %vm444_vm14 = vcmp.eq.f32.partialorder %v443_v2, 8.507059e+37 }
  0xce   : > { %v422_v54 = vmul.f32 %v588_v47, %v421_v51 }
  0xd0   : > { %v423_v56 = vadd.f32 %v588_v47, %v422_v54 }
  0xd1   : > { %v590_v57 = vpop.eup %589 }
  0xd2   : > { %v427_v59 = vsel %vm426_vm8, %v588_v47, %v423_v56  ;;  %v435_v60 = vmul.f32 %v590_v57, %v418_v49  ;;  %vm440_vm11 = vweird.f32 %v590_v57 }
  0xd3   : > { %v432_v61 = vsel %vm429_vm9, %v431_v58, %v427_v59  ;;  %vm441_vm13 = vmor %vm439_vm12, %vm440_vm11 }
  0xd4   : > { %v449_v62 = vsel %vm410_vm7, %v404_v37, %v432_v61  ;;  %v436_v63 = vsub.f32 1.0, %v435_v60 }
  0xd5   : > { %452 = vst.msk [vmem:[%s321_s11] sm:$0xff] %vm451_vm10, %v449_v62 }
  0xd6   : > { %v437_v1 = vmul.f32 %v590_v57, %v436_v63 }
  0xd8   : > { %v438_v3 = vadd.f32 %v590_v57, %v437_v1 }
  0xda   : > { %v442_v5 = vsel %vm441_vm13, %v590_v57, %v438_v3 }
  0xdb   : > { %v447_v6 = vsel %vm444_vm14, %v446_v4, %v442_v5 }
  0xdc   : > { %v450_v7 = vsel %vm410_vm7, %v406_v41, %v447_v6 }
  0xdd   : > { %453 = vst.msk [vmem:[%s321_s11 + $0x8] sm:$0xff] %vm451_vm10, %v450_v7 }
  0xde PF: > { %s19_s27 = sadd.s32 1, %s597_s27  }
  0xdf   : > { %p16_p4 = scmp.ge.s32.totalorder %s19_s27, 4  }
  0xe1   :  { %18 = sbr.rel (!%p16_p4) target bundleno = 1 (0x1), region = 90 }

// kernel: featextnet_forward.43
= control target key start
LH: loop header
LB: loop body
LE: loop exit
PB: predicated region body
PF: predicated region fallthrough
CT: control target
= control target key end

     0   :  { %s481_s12 = smov 0   ;;  %s530_s0 = inlined_call_operand.vmem [shape: bf16[32,128], index: 0, kind: input, shape index: {}]   ;;  %s531_s1 = inlined_call_operand.vmem [shape: bf16[128,64], index: 1, kind: input, shape index: {}]   ;;  %s532_s2 = inlined_call_operand.vmem [shape: bf16[32,64], index: 2, kind: output, shape index: {0}]   ;;  %s533_s3 = inlined_call_operand.vmem [shape: f32[2,2,64], index: 3, kind: output, shape index: {1}]  }
   0x1 LB: > { %s487_s13 = sadd.s32 4294967295, %s459_s12   ;;  %p392_p0 = scmp.ge.s32.totalorder %s459_s12, 1  ;;  %s459_s12 = sphi %s481_s12, %s14_s12  }
   0x2   : > { %p141_p1 = scmp.lt.s32.totalorder %s459_s12, 3 }
   0x4   : > { %p142_p2 = pnand %p392_p0, %p141_p1 }
   0x5   : > { %s393_s22 = sshll.u32 (!%p142_p2), %s487_s13, 1  ;;  %p181_p4 = scmp.lt.s32.totalorder (!%p142_p2), %s487_s13, 1 }
   0x6   : > { %145 = sbr.rel (%p142_p2) target bundleno = 196 (0xc4), region = 28  ;;  %p170_p3 = scmp.lt.s32.totalorder (!%p142_p2), %s393_s22, 3 }
   0xb   : > { %v444_v0 = vld [vmem:[%s531_s1 + $0x38] sm:$0xff]  ;;  %v443_v1 = vld [vmem:[%s531_s1 + $0x30] sm:$0xff]  ;;  %v442_v2 = vld [vmem:[%s531_s1 + $0x28] sm:$0xff]  ;;  %s535_s22 = smov (!%p170_p3, %s393_s22), 3  ;;  %vm273_vm0 = vcmask 519168   ;;  %vm276_vm1 = vcmask 523264  }
   0xc   : > { %257 = vmatpush.bf16.msra.mxu0 %v444_v0  ;;  %v441_v3 = vld [vmem:[%s531_s1 + $0x20] sm:$0xff]  ;;  %v440_v4 = vld [vmem:[%s531_s1 + $0x18] sm:$0xff]  ;;  %v439_v5 = vld [vmem:[%s531_s1 + $0x10] sm:$0xff]  ;;  %s394_s29 = sshll.u32 %s535_s22, 2  ;;  %s537_s13 = smov (!%p181_p4, %s487_s13), 1  ;;  %vm297_vm2 = vcmask 1040384  }
   0xd   : > { %v438_v6 = vld [vmem:[%s531_s1 + $0x8] sm:$0xff]  ;;  %v437_v7 = vld [vmem:[%s531_s1] sm:$0xff]  ;;  %s173_s7 = scalar_lea.vmem %s530_s0, %s394_s29  ;;  %s179_s10 = scalar_lea.vmem %s532_s2, %s394_s29  ;;  %vm299_vm3 = vcmask 517120  }
   0xe   : > { %v436_v8 = vld [vmem:[%s173_s7] sm:$0xff]  ;;  %s397_s11 = sshll.u32 %s537_s13, 1 }
   0xf   : > { %s184_s16 = scalar_lea.vmem %s533_s3, %s397_s11 }
  0x10   : > { %258 = vmatpush.bf16.msra.mxu0 %v443_v1 }
  0x14   : > { %259 = vmatpush.bf16.msra.mxu0 %v442_v2 }
  0x18   : > { %260 = vmatpush.bf16.msra.mxu0 %v441_v3 }
  0x1c   : > { %261 = vmatpush.bf16.msra.mxu0 %v440_v4 }
  0x20   : > { %262 = vmatpush.bf16.msra.mxu0 %v439_v5 }
  0x24   : > { %263 = vmatpush.bf16.msra.mxu0 %v438_v6 }
  0x28   : > { %264 = vmatpush.bf16.msra.mxu0 %v437_v7 }
  0x2b   : > { %265 = vmatmul.bf16.vlgmr.msra.gmra.mxu0 %v436_v8 }
  0xa8   : > { %v266_v9 = vpop.f32.mrf.mxu0 }
  0xa9   : > { %v271_v10 = vpack.c.bf16 %v266_v9, %v266_v9  ;;  %v286_v11 = vmul.f32 %v266_v9, %v266_v9  ;;  %v277_v13 = vsel %vm276_vm1, %v266_v9, 0.0 }
  0xab   : > { %274 = vst.msk [vmem:[%s179_s10] sm:$0xf] %vm273_vm0, %v271_v10  ;;  %v288_v18 = vsel %vm276_vm1, %v286_v11, 0.0 }
  0xb0   : > { %v268_v12 = vpop.f32.mrf.mxu0 }
  0xb1   : > { %v272_v14 = vpack.c.bf16 %v268_v12, %v268_v12  ;;  %v278_v15 = vsel %vm276_vm1, %v268_v12, 0.0  ;;  %v287_v16 = vmul.f32 %v268_v12, %v268_v12 }
  0xb2   : > { %v279_v17 = vadd.f32 %v278_v15, %v277_v13 }
  0xb3   : > { %275 = vst.msk [vmem:[%s179_s10 + $0x4] sm:$0xf] %vm273_vm0, %v272_v14  ;;  %v289_v19 = vsel %vm276_vm1, %v287_v16, 0.0 }
  0xb4   : > { %v280_v20 = vrot.slane %v279_v17, 4  ;;  %v290_v21 = vadd.f32 %v289_v19, %v288_v18 }
  0xb6   : > { %v281_v22 = vadd.f32 %v280_v20, %v279_v17  ;;  %v291_v23 = vrot.slane %v290_v21, 4 }
  0xb8   : > { %v282_v24 = vrot.slane %v281_v22, 2  ;;  %v292_v25 = vadd.f32 %v291_v23, %v290_v21 }
  0xba   : > { %v283_v26 = vadd.f32 %v282_v24, %v281_v22  ;;  %v293_v27 = vrot.slane %v292_v25, 2 }
  0xbc   : > { %v284_v28 = vrot.slane %v283_v26, 1  ;;  %v294_v29 = vadd.f32 %v293_v27, %v292_v25 }
  0xbe   : > { %v295_v30 = vrot.slane %v294_v29, 1  ;;  %v285_v31 = vadd.f32 %v284_v28, %v283_v26 }
  0xc0   : > { %v296_v32 = vadd.f32 %v295_v30, %v294_v29 }
  0xc2   : > { %v298_v33 = vsel %vm297_vm2, %v285_v31, %v296_v32 }
  0xc3   : > { %300 = vst.msk [vmem:[%s184_s16] sm:$0x3] %vm299_vm3, %v298_v33 }
  0xc4 PF: > { %s14_s12 = sadd.s32 1, %s459_s12  }
  0xc5   : > { %p11_p5 = scmp.ge.s32.totalorder %s14_s12, 4  }
  0xc7   :  { %13 = sbr.rel (!%p11_p5) target bundleno = 1 (0x1), region = 70 }

// kernel: featextnet_forward.44
= control target key start
LH: loop header
LB: loop body
LE: loop exit
PB: predicated region body
PF: predicated region fallthrough
CT: control target
= control target key end

     0   :  { %s388_s18 = smov 0   ;;  %s420_s0 = inlined_call_operand.vmem [shape: bf16[32,64], index: 0, kind: input, shape index: {}]   ;;  %s421_s1 = inlined_call_operand.vmem [shape: f32[1,64], index: 1, kind: input, shape index: {}]   ;;  %s422_s2 = inlined_call_operand.vmem [shape: f32[1,64], index: 2, kind: input, shape index: {}]   ;;  %s423_s3 = inlined_call_operand.vmem [shape: f32[1,64], index: 3, kind: input, shape index: {}]   ;;  %s424_s4 = inlined_call_operand.vmem [shape: f32[1,64], index: 4, kind: input, shape index: {}]   ;;  %s425_s5 = inlined_call_operand.vmem [shape: bf16[32,64], index: 5, kind: output, shape index: {}]  }
   0x1 LB: > { %s325_s19 = sadd.s32 4294967295, %s356_s18   ;;  %p329_p0 = scmp.ge.s32.totalorder %s356_s18, 1  ;;  %s356_s18 = sphi %s388_s18, %s15_s18  }
   0x2   : > { %p188_p1 = scmp.lt.s32.totalorder %s356_s18, 3 }
   0x4   : > { %p189_p2 = pnand %p329_p0, %p188_p1 }
   0x5   : > { %s330_s24 = sshll.u32 (!%p189_p2), %s325_s19, 1 }
   0x6   : > { %192 = sbr.rel (%p189_p2) target bundleno = 52 (0x34), region = 40  ;;  %p217_p3 = scmp.lt.s32.totalorder (!%p189_p2), %s330_s24, 3 }
   0xb   : > { %v228_v0 = vld [vmem:[%s421_s1] sm:$0x1]  ;;  %s427_s24 = smov (!%p217_p3, %s330_s24), 3  ;;  %vm266_vm3 = vcmask 519168  }
   0xc   : > { %v229_v1 = vld [vmem:[%s422_s2] sm:$0x1]  ;;  %v230_v2 = vmul.f32 %v228_v0, %v228_v0  ;;  %s331_s25 = sshll.u32 %s427_s24, 2 }
   0xd   : > { %s220_s28 = scalar_lea.vmem %s420_s0, %s331_s25  ;;  %v232_v10 = vld [vmem:[%s423_s3] sm:$0x1]  ;;  %s226_s10 = scalar_lea.vmem %s425_s5, %s331_s25 }
   0xe   : > { %v231_v3 = vsub.f32 %v229_v1, %v230_v2  ;;  %v337_v12 = vld [vmem:[%s220_s28] sm:$0xff]  }
   0xf   : > { %v338_v15 = vunpack.c.l.bf16 %v337_v12  ;;  %v339_v16 = vunpack.c.h.bf16 %v337_v12  ;;  %v245_v17 = vld [vmem:[%s424_s4] sm:$0x1] }
  0x10   : > { %v233_v4 = vadd.f32 1e-05, %v231_v3 }
  0x12   : > { %348 = vrsqrt.f32 %v233_v4  ;;  %vm240_vm0 = vweird.f32 %v233_v4 }
  0x18   : > { %v349_v5 = vpop.eup %348 }
  0x19   : > { %v235_v6 = vmul.f32 %v349_v5, %v233_v4  ;;  %vm241_vm1 = vweird.f32 %v349_v5 }
  0x1a   : > { %vm242_vm2 = vmor %vm240_vm0, %vm241_vm1 }
  0x1b   : > { %v236_v7 = vmul.f32 %v349_v5, %v235_v6 }
  0x1d   : > { %v237_v8 = vmul.f32 0.5, %v236_v7 }
  0x1f   : > { %v238_v9 = vsub.f32 1.5, %v237_v8 }
  0x21   : > { %v239_v11 = vmul.f32 %v349_v5, %v238_v9 }
  0x23   : > { %v243_v13 = vsel %vm242_vm2, %v349_v5, %v239_v11 }
  0x24   : > { %v244_v14 = vmul.f32 %v243_v13, %v232_v10 }
  0x26   : > { %v246_v18 = vmul.f32 %v244_v14, %v228_v0  ;;  %v253_v19 = vperm.slane %v244_v14, 0 }
  0x28   : > { %v247_v20 = vsub.f32 %v245_v17, %v246_v18  ;;  %v255_v21 = vmul.f32 %v338_v15, %v253_v19  ;;  %v256_v22 = vmul.f32 %v339_v16, %v253_v19 }
  0x2a   : > { %v258_v23 = vperm.slane %v247_v20, 0 }
  0x2c   : > { %v260_v24 = vadd.f32 %v258_v23, %v255_v21  ;;  %v261_v25 = vadd.f32 %v258_v23, %v256_v22 }
  0x2e   : > { %v262_v26 = vmax.f32 %v260_v24, 0.0  ;;  %v263_v27 = vmax.f32 %v261_v25, 0.0 }
  0x30   : > { %v264_v28 = vpack.c.bf16 %v262_v26, %v262_v26  ;;  %v265_v29 = vpack.c.bf16 %v263_v27, %v263_v27 }
  0x32   : > { %267 = vst.msk [vmem:[%s226_s10] sm:$0xf] %vm266_vm3, %v264_v28 }
  0x33   : > { %268 = vst.msk [vmem:[%s226_s10 + $0x4] sm:$0xf] %vm266_vm3, %v265_v29 }
  0x34 PF: > { %s15_s18 = sadd.s32 1, %s356_s18  }
  0x35   : > { %p12_p4 = scmp.ge.s32.totalorder %s15_s18, 4  }
  0x37   :  { %14 = sbr.rel (!%p12_p4) target bundleno = 1 (0x1), region = 70 }

// kernel: featextnet_forward.45
= control target key start
LH: loop header
LB: loop body
LE: loop exit
PB: predicated region body
PF: predicated region fallthrough
CT: control target
= control target key end

     0   :  { %s745_s12 = smov 0   ;;  %s862_s0 = inlined_call_operand.vmem [shape: bf16[128,288], index: 0, kind: input, shape index: {}]   ;;  %s863_s1 = inlined_call_operand.vmem [shape: bf16[288,16], index: 1, kind: input, shape index: {}]   ;;  %s864_s2 = inlined_call_operand.vmem [shape: bf16[128,16], index: 2, kind: output, shape index: {0}]   ;;  %s865_s3 = inlined_call_operand.vmem [shape: f32[4,2,16], index: 3, kind: output, shape index: {1}]  }
   0x1 LB: > { %s751_s13 = sadd.s32 4294967295, %s723_s12   ;;  %p570_p0 = scmp.ge.s32.totalorder %s723_s12, 1  ;;  %s723_s12 = sphi %s745_s12, %s14_s12  }
   0x2   : > { %p142_p1 = scmp.lt.s32.totalorder %s723_s12, 5 }
   0x4   : > { %p143_p2 = pnand %p570_p0, %p142_p1 }
   0x5   : > { %s571_s18 = sshll.u32 (!%p143_p2), %s751_s13, 2  ;;  %p184_p4 = scmp.lt.s32.totalorder (!%p143_p2), %s751_s13, 3 }
   0x6   : > { %146 = sbr.rel (%p143_p2) target bundleno = 217 (0xd9), region = 28  ;;  %p172_p3 = scmp.lt.s32.totalorder (!%p143_p2), %s571_s18, 15 }
   0xb   : > { %v689_v0 = vld [vmem:[%s863_s1 + $0x38] sm:$0xff]  ;;  %v688_v2 = vld [vmem:[%s863_s1 + $0x30] sm:$0xff]  ;;  %v699_v4 = vld [vmem:[%s863_s1 + $0x88] sm:$0xff]  ;;  %s867_s18 = smov (!%p172_p3, %s571_s18), 15  ;;  %vm371_vm0 = vcmask 261120   ;;  %vm439_vm1 = vcmask 125952  }
   0xc   : > { %v697_v1 = vld [vmem:[%s863_s1 + $0x78] sm:$0xff]  ;;  %378 = vmatpush.bf16.msra.mxu0 %v689_v0  ;;  %v696_v3 = vld [vmem:[%s863_s1 + $0x70] sm:$0xff]  ;;  %700 = vmatpush.bf16.msra.mxu3 %v689_v0  ;;  %v698_v5 = vld [vmem:[%s863_s1 + $0x80] sm:$0xff]  ;;  %s708_s27 = smul.u32 12, %s867_s18  ;;  %s574_s4 = sshll.u32 %s867_s18, 2  ;;  %vm444_vm2 = vcmask 130048  }
   0xd   : > { %397 = vmatpush.bf16.msra.mxu1 %v697_v1  ;;  %422 = vmatpush.bf16.msra.mxu2 %v699_v4  ;;  %v687_v6 = vld [vmem:[%s863_s1 + $0x28] sm:$0xff]  ;;  %v686_v11 = vld [vmem:[%s863_s1 + $0x20] sm:$0xff]  ;;  %v685_v13 = vld [vmem:[%s863_s1 + $0x18] sm:$0xff]  ;;  %s836_s8 = scalar_lea.vmem %s864_s2, %s574_s4  ;;  %s869_s13 = smov (!%p184_p4, %s751_s13), 3  ;;  %vm475_vm3 = vcmask 1040384   ;;  %vm477_vm4 = vcmask 123904  }
   0xe   : > { %v695_v7 = vld [vmem:[%s863_s1 + $0x68] sm:$0xff]  ;;  %s786_s7 = scalar_lea.vmem %s862_s0, %s708_s27  ;;  %v694_v12 = vld [vmem:[%s863_s1 + $0x60] sm:$0xff]  ;;  %v693_v14 = vld [vmem:[%s863_s1 + $0x58] sm:$0xff]  ;;  %s575_s18 = sshll.u32 %s869_s13, 1 }
   0xf   : > { %v586_v8 = vld [vmem:[%s786_s7 + $0x8] sm:$0xf]  ;;  %v678_v9 = vld [vmem:[%s786_s7 + $0x10] sm:$0xf0]  ;;  %v598_v17 = vld [vmem:[%s786_s7 + $0x20] sm:$0xf]  ;;  %s187_s10 = scalar_lea.vmem %s865_s3, %s575_s18 }
  0x10   : > { %379 = vmatpush.bf16.msra.mxu0 %v688_v2  ;;  %701 = vmatpush.bf16.msra.mxu3 %v688_v2  ;;  %v587_v10 = vor.u32 %v678_v9, %v586_v8  ;;  %v684_v15 = vld [vmem:[%s863_s1 + $0x10] sm:$0xff]  ;;  %v681_v18 = vld [vmem:[%s786_s7 + $0x28] sm:$0xf0]  ;;  %v682_v22 = vld [vmem:[%s863_s1] sm:$0xff] }
  0x11   : > { %398 = vmatpush.bf16.msra.mxu1 %v696_v3  ;;  %423 = vmatpush.bf16.msra.mxu2 %v698_v5  ;;  %v692_v16 = vld [vmem:[%s863_s1 + $0x50] sm:$0xff]  ;;  %v683_v19 = vld [vmem:[%s863_s1 + $0x8] sm:$0xff]  ;;  %v599_v21 = vor.u32 %v681_v18, %v598_v17  ;;  %v690_v23 = vld [vmem:[%s863_s1 + $0x40] sm:$0xff] }
  0x12   : > { %v691_v20 = vld [vmem:[%s863_s1 + $0x48] sm:$0xff]  ;;  %v578_v24 = vld [vmem:[%s786_s7] sm:$0xf]  ;;  %v676_v26 = vld [vmem:[%s786_s7 + $0x4] sm:$0xf] }
  0x13   : > { %v677_v25 = vld [vmem:[%s786_s7 + $0x8] sm:$0xf0]  ;;  %v580_v27 = vld [vmem:[%s786_s7 + $0xc] sm:$0xf0]  ;;  %v590_v28 = vld [vmem:[%s786_s7 + $0x18] sm:$0xf] }
  0x14   : > { %380 = vmatpush.bf16.msra.mxu0 %v687_v6  ;;  %702 = vmatpush.bf16.msra.mxu3 %v687_v6  ;;  %v680_v29 = vld [vmem:[%s786_s7 + $0x20] sm:$0xf0]  ;;  %v579_v30 = vor.u32 %v677_v25, %v578_v24  ;;  %v583_v31 = vor.u32 %v676_v26, %v580_v27  ;;  %v679_v33 = vld [vmem:[%s786_s7 + $0x1c] sm:$0xf]  ;;  %v592_v34 = vld [vmem:[%s786_s7 + $0x24] sm:$0xf0] }
  0x15   : > { %399 = vmatpush.bf16.msra.mxu1 %v695_v7  ;;  %672 = vmatmul.msk.bf16.vlgmr.msra.gmra.mxu2 %vm371_vm0, %v587_v10  ;;  %v591_v32 = vor.u32 %v680_v29, %v590_v28  ;;  %v595_v35 = vor.u32 %v679_v33, %v592_v34 }
  0x18   : > { %381 = vmatpush.bf16.msra.mxu0 %v686_v11  ;;  %703 = vmatpush.bf16.msra.mxu3 %v686_v11 }
  0x19   : > { %400 = vmatpush.bf16.msra.mxu1 %v694_v12 }
  0x1c   : > { %382 = vmatpush.bf16.msra.mxu0 %v685_v13  ;;  %704 = vmatpush.bf16.msra.mxu3 %v685_v13 }
  0x1d   : > { %401 = vmatpush.bf16.msra.mxu1 %v693_v14 }
  0x20   : > { %383 = vmatpush.bf16.msra.mxu0 %v684_v15  ;;  %705 = vmatpush.bf16.msra.mxu3 %v684_v15 }
  0x21   : > { %402 = vmatpush.bf16.msra.mxu1 %v692_v16 }
  0x24   : > { %384 = vmatpush.bf16.msra.mxu0 %v683_v19  ;;  %706 = vmatpush.bf16.msra.mxu3 %v683_v19 }
  0x25   : > { %403 = vmatpush.bf16.msra.mxu1 %v691_v20  ;;  %673 = vmatmul.msk.bf16.gmra.mxu2 %vm371_vm0, %v599_v21 }
  0x28   : > { %385 = vmatpush.bf16.msra.mxu0 %v682_v22  ;;  %707 = vmatpush.bf16.msra.mxu3 %v682_v22 }
  0x29   : > { %404 = vmatpush.bf16.msra.mxu1 %v690_v23 }
  0x2b   : > { %386 = vmatmul.bf16.vlgmr.msra.gmra.mxu0 %v579_v30  ;;  %391 = vmatmul.bf16.vlgmr.msra.gmra.mxu3 %v591_v32 }
  0x2c   : > { %405 = vmatmul.bf16.vlgmr.msra.gmra.mxu1 %v583_v31 }
  0x3c   : > { %410 = vmatmul.bf16.gmra.mxu1 %v595_v35 }
  0x98   : > { %v425_v36 = vpop.f32.mrf.mxu2 }
  0xa0   : > { %v427_v42 = vpop.f32.mrf.mxu2 }
  0xa8   : > { %v387_v37 = vpop.f32.mrf.mxu0  ;;  %v430_v49 = vpop.f32.mrf.mxu2 }
  0xa9   : > { %v406_v38 = vpop.f32.mrf.mxu1 }
  0xaa   : > { %v407_v39 = vadd.f32 %v406_v38, %v387_v37 }
  0xac   : > { %v426_v40 = vadd.f32 %v425_v36, %v407_v39 }
  0xae   : > { %v435_v41 = vpack.c.bf16 %v426_v40, %v426_v40  ;;  %v392_v48 = vpop.f32.mrf.mxu3  ;;  %v458_v55 = vmul.f32 %v426_v40, %v426_v40  ;;  %v445_v60 = vsel %vm444_vm2, %v426_v40, 0.0 }
  0xb0   : > { %440 = vst.msk [vmem:[%s836_s8] sm:$0xf] %vm439_vm1, %v435_v41  ;;  %v389_v43 = vpop.f32.mrf.mxu0  ;;  %v432_v1 = vpop.f32.mrf.mxu2  ;;  %v462_v2 = vsel %vm444_vm2, %v458_v55, 0.0 }
  0xb1   : > { %v408_v44 = vpop.f32.mrf.mxu1 }
  0xb2   : > { %v409_v45 = vadd.f32 %v408_v44, %v389_v43 }
  0xb4   : > { %v428_v46 = vadd.f32 %v427_v42, %v409_v45 }
  0xb6   : > { %v436_v47 = vpack.c.bf16 %v428_v46, %v428_v46  ;;  %v459_v53 = vmul.f32 %v428_v46, %v428_v46  ;;  %v446_v56 = vsel %vm444_vm2, %v428_v46, 0.0  ;;  %v394_v58 = vpop.f32.mrf.mxu3 }
  0xb7   : > { %v447_v0 = vadd.f32 %v446_v56, %v445_v60 }
  0xb8   : > { %441 = vst.msk [vmem:[%s836_s8 + $0x4] sm:$0xf] %vm439_vm1, %v436_v47  ;;  %v463_v61 = vsel %vm444_vm2, %v459_v53, 0.0 }
  0xb9   : > { %v411_v50 = vpop.f32.mrf.mxu1  ;;  %v464_v5 = vadd.f32 %v463_v61, %v462_v2 }
  0xba   : > { %v412_v51 = vadd.f32 %v411_v50, %v392_v48 }
  0xbc   : > { %v431_v52 = vadd.f32 %v430_v49, %v412_v51 }
  0xbe   : > { %v437_v54 = vpack.c.bf16 %v431_v52, %v431_v52  ;;  %v460_v57 = vmul.f32 %v431_v52, %v431_v52  ;;  %v448_v62 = vsel %vm444_vm2, %v431_v52, 0.0 }
  0xbf   : > { %v449_v6 = vadd.f32 %v448_v62, %v447_v0 }
  0xc0   : > { %442 = vst.msk [vmem:[%s836_s8 + $0x8] sm:$0xf] %vm439_vm1, %v437_v54  ;;  %v465_v3 = vsel %vm444_vm2, %v460_v57, 0.0 }
  0xc1   : > { %v413_v59 = vpop.f32.mrf.mxu1  ;;  %v466_v10 = vadd.f32 %v465_v3, %v464_v5 }
  0xc2   : > { %v414_v63 = vadd.f32 %v413_v59, %v394_v58 }
  0xc4   : > { %v433_v4 = vadd.f32 %v432_v1, %v414_v63 }
  0xc6   : > { %v438_v7 = vpack.c.bf16 %v433_v4, %v433_v4  ;;  %v450_v8 = vsel %vm444_vm2, %v433_v4, 0.0  ;;  %v461_v9 = vmul.f32 %v433_v4, %v433_v4 }
  0xc7   : > { %v451_v11 = vadd.f32 %v450_v8, %v449_v6 }
  0xc8   : > { %443 = vst.msk [vmem:[%s836_s8 + $0xc] sm:$0xf] %vm439_vm1, %v438_v7  ;;  %v467_v12 = vsel %vm444_vm2, %v461_v9, 0.0 }
  0xc9   : > { %v452_v13 = vrot.slane %v451_v11, 4  ;;  %v468_v14 = vadd.f32 %v467_v12, %v466_v10 }
  0xcb   : > { %v453_v15 = vadd.f32 %v452_v13, %v451_v11  ;;  %v469_v16 = vrot.slane %v468_v14, 4 }
  0xcd   : > { %v454_v17 = vrot.slane %v453_v15, 2  ;;  %v470_v18 = vadd.f32 %v469_v16, %v468_v14 }
  0xcf   : > { %v455_v19 = vadd.f32 %v454_v17, %v453_v15  ;;  %v471_v20 = vrot.slane %v470_v18, 2 }
  0xd1   : > { %v456_v21 = vrot.slane %v455_v19, 1  ;;  %v472_v22 = vadd.f32 %v471_v20, %v470_v18 }
  0xd3   : > { %v473_v23 = vrot.slane %v472_v22, 1  ;;  %v457_v24 = vadd.f32 %v456_v21, %v455_v19 }
  0xd5   : > { %v474_v25 = vadd.f32 %v473_v23, %v472_v22 }
  0xd7   : > { %v476_v26 = vsel %vm475_vm3, %v457_v24, %v474_v25 }
  0xd8   : > { %478 = vst.msk [vmem:[%s187_s10] sm:$0x3] %vm477_vm4, %v476_v26 }
  0xd9 PF: > { %s14_s12 = sadd.s32 1, %s723_s12  }
  0xda   : > { %p11_p5 = scmp.ge.s32.totalorder %s14_s12, 6  }
  0xdc   :  { %13 = sbr.rel (!%p11_p5) target bundleno = 1 (0x1), region = 70 }

// kernel: featextnet_forward.46
= control target key start
LH: loop header
LB: loop body
LE: loop exit
PB: predicated region body
PF: predicated region fallthrough
CT: control target
= control target key end

     0   :  { %s715_s27 = smov 0   ;;  %s798_s0 = inlined_call_operand.vmem [shape: bf16[128,16], index: 0, kind: input, shape index: {}]   ;;  %s799_s1 = inlined_call_operand.vmem [shape: f32[1,16], index: 1, kind: input, shape index: {}]   ;;  %s800_s2 = inlined_call_operand.vmem [shape: f32[1,16], index: 2, kind: input, shape index: {}]   ;;  %s801_s3 = inlined_call_operand.vmem [shape: f32[1,16], index: 3, kind: input, shape index: {}]   ;;  %s802_s4 = inlined_call_operand.vmem [shape: f32[1,16], index: 4, kind: input, shape index: {}]   ;;  %s803_s5 = inlined_call_operand.vmem [shape: bf16[16,2], index: 5, kind: input, shape index: {}]   ;;  %s804_s6 = inlined_call_operand.vmem [shape: f32[1,2], index: 6, kind: input, shape index: {}]   ;;  %s805_s7 = inlined_call_operand.vmem [shape: bf16[128,16], index: 7, kind: output, shape index: {0}]   ;;  %s806_s8 = inlined_call_operand.vmem [shape: f32[128,2], index: 8, kind: output, shape index: {1}]  }
   0x1 LB: > { %s605_s28 = sadd.s32 4294967295, %s668_s27   ;;  %p609_p0 = scmp.ge.s32.totalorder %s668_s27, 1  ;;  %s668_s27 = sphi %s715_s27, %s19_s27  }
   0x2   : > { %p266_p1 = scmp.lt.s32.totalorder %s668_s27, 5 }
   0x4   : > { %p267_p2 = pnand %p609_p0, %p266_p1 }
   0x5   : > { %s610_s13 = sshll.u32 (!%p267_p2), %s605_s28, 2 }
   0x6   : > { %270 = sbr.rel (%p267_p2) target bundleno = 226 (0xe2), region = 48  ;;  %p306_p3 = scmp.lt.s32.totalorder (!%p267_p2), %s610_s13, 15 }
   0xb   : > { %v624_v0 = vld [vmem:[%s803_s5] sm:$0xff]  ;;  %s808_s13 = smov (!%p306_p3, %s610_s13), 15  ;;  %vm374_vm3 = vcmask 125952   ;;  %vm401_vm4 = vcmask 130048   ;;  %vm510_vm10 = vcmask 15360  }
   0xc   : > { %v324_v1 = vld [vmem:[%s799_s1] sm:$0x1]  ;;  %415 = vmatpush.bf16.msra.mxu0 %v624_v0  ;;  %634 = vmatpush.bf16.msra.mxu1 %v624_v0  ;;  %s611_s14 = sshll.u32 %s808_s13, 2  ;;  %s615_s28 = sshll.u32 %s808_s13, 3 }
   0xd   : > { %v325_v2 = vld [vmem:[%s800_s2] sm:$0x1]  ;;  %v326_v3 = vmul.f32 %v324_v1, %v324_v1  ;;  %s309_s17 = scalar_lea.vmem %s798_s0, %s611_s14  ;;  %s315_s24 = scalar_lea.vmem %s805_s7, %s611_s14 }
   0xe   : > { %v328_v11 = vld [vmem:[%s801_s3] sm:$0x1]  ;;  %v633_v14 = vld [vmem:[%s309_s17 + $0x8] sm:$0xff]   ;;  %s773_s9 = scalar_lea.vmem %s806_s8, %s615_s28 }
   0xf   : > { %v327_v4 = vsub.f32 %v325_v2, %v326_v3  ;;  %v626_v13 = vld [vmem:[%s309_s17] sm:$0xff]   ;;  %v631_v19 = vunpack.c.l.bf16 %v633_v14  ;;  %v632_v21 = vunpack.c.h.bf16 %v633_v14 }
  0x10   : > { %v627_v17 = vunpack.c.l.bf16 %v626_v13  ;;  %v628_v18 = vunpack.c.h.bf16 %v626_v13  ;;  %v341_v20 = vld [vmem:[%s802_s4] sm:$0x1] }
  0x11   : > { %v329_v5 = vadd.f32 1e-05, %v327_v4  ;;  %v643_v48 = vld [vmem:[%s804_s6] ss:$0 sm:$0xff] }
  0x13   : > { %644 = vrsqrt.f32 %v329_v5  ;;  %vm336_vm0 = vweird.f32 %v329_v5 }
  0x19   : > { %v645_v6 = vpop.eup %644 }
  0x1a   : > { %v331_v7 = vmul.f32 %v645_v6, %v329_v5  ;;  %vm337_vm1 = vweird.f32 %v645_v6 }
  0x1b   : > { %vm338_vm2 = vmor %vm336_vm0, %vm337_vm1 }
  0x1c   : > { %v332_v8 = vmul.f32 %v645_v6, %v331_v7 }
  0x1e   : > { %v333_v9 = vmul.f32 0.5, %v332_v8 }
  0x20   : > { %v334_v10 = vsub.f32 1.5, %v333_v9 }
  0x22   : > { %v335_v12 = vmul.f32 %v645_v6, %v334_v10 }
  0x24   : > { %v339_v15 = vsel %vm338_vm2, %v645_v6, %v335_v12  ;;  %v427_v6 = vlaneseq }
  0x25   : > { %v340_v16 = vmul.f32 %v339_v15, %v328_v11 }
  0x26   : > { %v766_v13 = vand.u32 127, %v427_v6 }
  0x27   : > { %v342_v22 = vmul.f32 %v340_v16, %v324_v1  ;;  %v353_v23 = vperm.slane %v340_v16, 0 }
  0x28   : > { %vm429_vm7 = vcmp.eq.s32.totalorder %v766_v13, 0 }
  0x29   : > { %v343_v24 = vsub.f32 %v341_v20, %v342_v22  ;;  %v355_v25 = vmul.f32 %v627_v17, %v353_v23  ;;  %v356_v26 = vmul.f32 %v628_v18, %v353_v23  ;;  %v357_v27 = vmul.f32 %v631_v19, %v353_v23 }
  0x2a   : > { %v358_v28 = vmul.f32 %v632_v21, %v353_v23 }
  0x2b   : > { %v360_v29 = vperm.slane %v343_v24, 0 }
  0x2d   : > { %v362_v30 = vadd.f32 %v360_v29, %v355_v25  ;;  %v363_v31 = vadd.f32 %v360_v29, %v356_v26  ;;  %v364_v32 = vadd.f32 %v360_v29, %v357_v27  ;;  %v365_v33 = vadd.f32 %v360_v29, %v358_v28 }
  0x2f   : > { %v366_v34 = vmax.f32 %v362_v30, 0.0  ;;  %v367_v35 = vmax.f32 %v363_v31, 0.0  ;;  %v368_v36 = vmax.f32 %v364_v32, 0.0  ;;  %v369_v37 = vmax.f32 %v365_v33, 0.0 }
  0x31   : > { %v370_v38 = vpack.c.bf16 %v366_v34, %v366_v34  ;;  %v371_v39 = vpack.c.bf16 %v367_v35, %v367_v35  ;;  %v372_v40 = vpack.c.bf16 %v368_v36, %v368_v36  ;;  %v373_v41 = vpack.c.bf16 %v369_v37, %v369_v37 }
  0x33   : > { %375 = vst.msk [vmem:[%s315_s24] sm:$0xf] %vm374_vm3, %v370_v38  ;;  %v389_v42 = vunpack.c.l.b16 %v370_v38  ;;  %v390_v43 = vunpack.c.l.b16 %v371_v39  ;;  %v391_v44 = vunpack.c.l.b16 %v372_v40  ;;  %v392_v45 = vunpack.c.l.b16 %v373_v41 }
  0x34   : > { %376 = vst.msk [vmem:[%s315_s24 + $0x4] sm:$0xf] %vm374_vm3, %v371_v39 }
  0x35   : > { %v393_v46 = vpack.c.b16 %v390_v43, %v389_v42  ;;  %377 = vst.msk [vmem:[%s315_s24 + $0x8] sm:$0xf] %vm374_vm3, %v372_v40  ;;  %v394_v47 = vpack.c.b16 %v392_v45, %v391_v44 }
  0x36   : > { %378 = vst.msk [vmem:[%s315_s24 + $0xc] sm:$0xf] %vm374_vm3, %v373_v41 }
  0x37   : > { %620 = vmatmul.msk.bf16.vlgmr.msra.gmra.mxu0 %vm401_vm4, %v393_v46  ;;  %621 = vmatmul.msk.bf16.vlgmr.msra.gmra.mxu1 %vm401_vm4, %v394_v47 }
  0xb4   : > { %v417_v49 = vpop.f32.mrf.mxu0  ;;  %v422_v50 = vpop.f32.mrf.mxu1 }
  0xb5   : > { %v754_v51 = vadd.f32 %v643_v48, %v417_v49  ;;  %v756_v52 = vadd.f32 %v643_v48, %v422_v50 }
  0xb7   : > { %v430_v53 = vsub.f32 0.0, %v754_v51  ;;  %v432_v54 = vsub.f32 0.0, %v756_v52 }
  0xb9   : > { %v434_v55 = vmul.f32 1.442695, %v430_v53  ;;  %v438_v56 = vmul.f32 1.442695, %v432_v54 }
  0xbb   : > { %646 = vpow2.f32 %v434_v55 }
  0xbc   : > { %648 = vpow2.f32 %v438_v56  ;;  %v419_v57 = vpop.f32.mrf.mxu0  ;;  %v424_v58 = vpop.f32.mrf.mxu1 }
  0xbd   : > { %v760_v59 = vadd.f32 %v643_v48, %v419_v57  ;;  %v762_v60 = vadd.f32 %v643_v48, %v424_v58 }
  0xbf   : > { %v431_v61 = vsub.f32 0.0, %v760_v59  ;;  %v433_v62 = vsub.f32 0.0, %v762_v60 }
  0xc1   : > { %v647_v63 = vpop.eup %646  ;;  %v436_v0 = vmul.f32 1.442695, %v431_v61  ;;  %v440_v3 = vmul.f32 1.442695, %v433_v62 }
  0xc2   : > { %v649_v1 = vpop.eup %648  ;;  %v442_v2 = vadd.f32 1.0, %v647_v63 }
  0xc3   : > { %v444_v4 = vadd.f32 1.0, %v649_v1  ;;  %650 = vpow2.f32 %v436_v0 }
  0xc4   : > { %652 = vrcp.f32 %v442_v2  ;;  %v455_v16 = vand.u32 2147483647, %v442_v2  ;;  %v457_v17 = vand.u32 2147483648, %v442_v2  ;;  %vm451_vm8 = vweird.f32 %v442_v2 }
  0xc5   : > { %654 = vrcp.f32 %v444_v4  ;;  %v487_v20 = vand.u32 2147483648, %v444_v4  ;;  %v485_v22 = vand.u32 2147483647, %v444_v4  ;;  %vm481_vm11 = vweird.f32 %v444_v4 }
  0xc6   : > { %656 = vpow2.f32 %v440_v3  ;;  %v458_v25 = vor.u32 1.1754944e-38, %v457_v17  ;;  %vm456_vm12 = vcmp.eq.f32.partialorder %v455_v16, 8.507059e+37 }
  0xc7   : > { %v488_v28 = vor.u32 1.1754944e-38, %v487_v20  ;;  %vm486_vm14 = vcmp.eq.f32.partialorder %v485_v22, 8.507059e+37 }
  0xc9   : > { %v651_v5 = vpop.eup %650 }
  0xca   : > { %v653_v7 = vpop.eup %652  ;;  %v443_v8 = vadd.f32 1.0, %v651_v5 }
  0xcb   : > { %v655_v9 = vpop.eup %654  ;;  %v447_v10 = vmul.f32 %v653_v7, %v442_v2  ;;  %vm452_vm5 = vweird.f32 %v653_v7 }
  0xcc   : > { %v657_v11 = vpop.eup %656  ;;  %v477_v12 = vmul.f32 %v655_v9, %v444_v4  ;;  %658 = vrcp.f32 %v443_v8  ;;  %vm482_vm6 = vweird.f32 %v655_v9  ;;  %vm453_vm9 = vmor %vm451_vm8, %vm452_vm5  ;;  %v472_v37 = vand.u32 2147483648, %v443_v8 }
  0xcd   : > { %v448_v14 = vsub.f32 1.0, %v447_v10  ;;  %v445_v15 = vadd.f32 1.0, %v657_v11  ;;  %vm483_vm13 = vmor %vm481_vm11, %vm482_vm6  ;;  %v470_v40 = vand.u32 2147483647, %v443_v8  ;;  %vm466_vm0 = vweird.f32 %v443_v8 }
  0xce   : > { %v478_v18 = vsub.f32 1.0, %v477_v12  ;;  %v473_v44 = vor.u32 1.1754944e-38, %v472_v37 }
  0xcf   : > { %v449_v19 = vmul.f32 %v653_v7, %v448_v14  ;;  %660 = vrcp.f32 %v445_v15  ;;  %v502_v43 = vand.u32 2147483648, %v445_v15  ;;  %v500_v46 = vand.u32 2147483647, %v445_v15 }
  0xd0   : > { %v479_v21 = vmul.f32 %v655_v9, %v478_v18  ;;  %vm471_vm3 = vcmp.eq.f32.partialorder %v470_v40, 8.507059e+37  ;;  %vm496_vm4 = vweird.f32 %v445_v15 }
  0xd1   : > { %v450_v23 = vadd.f32 %v653_v7, %v449_v19  ;;  %vm501_vm6 = vcmp.eq.f32.partialorder %v500_v46, 8.507059e+37 }
  0xd2   : > { %v659_v24 = vpop.eup %658  ;;  %v480_v26 = vadd.f32 %v655_v9, %v479_v21 }
  0xd3   : > { %v454_v27 = vsel %vm453_vm9, %v653_v7, %v450_v23  ;;  %v462_v29 = vmul.f32 %v659_v24, %v443_v8  ;;  %vm467_vm15 = vweird.f32 %v659_v24 }
  0xd4   : > { %v459_v30 = vsel %vm456_vm12, %v458_v25, %v454_v27  ;;  %v484_v31 = vsel %vm483_vm13, %v655_v9, %v480_v26  ;;  %vm468_vm1 = vmor %vm466_vm0, %vm467_vm15 }
  0xd5   : > { %v661_v32 = vpop.eup %660  ;;  %v506_v33 = vsel %vm429_vm7, %v754_v51, %v459_v30  ;;  %v489_v34 = vsel %vm486_vm14, %v488_v28, %v484_v31  ;;  %v463_v35 = vsub.f32 1.0, %v462_v29  ;;  %v503_v51 = vor.u32 1.1754944e-38, %v502_v43 }
  0xd6   : > { %511 = vst.msk [vmem:[%s773_s9] sm:$0xff] %vm510_vm10, %v506_v33  ;;  %v508_v36 = vsel %vm429_vm7, %v756_v52, %v489_v34  ;;  %v492_v38 = vmul.f32 %v661_v32, %v445_v15  ;;  %vm497_vm2 = vweird.f32 %v661_v32 }
  0xd7   : > { %513 = vst.msk [vmem:[%s773_s9 + $0x10] sm:$0xff] %vm510_vm10, %v508_v36  ;;  %v464_v39 = vmul.f32 %v659_v24, %v463_v35  ;;  %vm498_vm5 = vmor %vm496_vm4, %vm497_vm2 }
  0xd8   : > { %v493_v41 = vsub.f32 1.0, %v492_v38 }
  0xd9   : > { %v465_v42 = vadd.f32 %v659_v24, %v464_v39 }
  0xda   : > { %v494_v45 = vmul.f32 %v661_v32, %v493_v41 }
  0xdb   : > { %v469_v47 = vsel %vm468_vm1, %v659_v24, %v465_v42 }
  0xdc   : > { %v474_v48 = vsel %vm471_vm3, %v473_v44, %v469_v47  ;;  %v495_v49 = vadd.f32 %v661_v32, %v494_v45 }
  0xdd   : > { %v507_v50 = vsel %vm429_vm7, %v760_v59, %v474_v48 }
  0xde   : > { %512 = vst.msk [vmem:[%s773_s9 + $0x8] sm:$0xff] %vm510_vm10, %v507_v50  ;;  %v499_v52 = vsel %vm498_vm5, %v661_v32, %v495_v49 }
  0xdf   : > { %v504_v53 = vsel %vm501_vm6, %v503_v51, %v499_v52 }
  0xe0   : > { %v509_v54 = vsel %vm429_vm7, %v762_v60, %v504_v53 }
  0xe1   : > { %514 = vst.msk [vmem:[%s773_s9 + $0x18] sm:$0xff] %vm510_vm10, %v509_v54 }
  0xe2 PF: > { %s19_s27 = sadd.s32 1, %s668_s27  }
  0xe3   : > { %p16_p4 = scmp.ge.s32.totalorder %s19_s27, 6  }
  0xe5   :  { %18 = sbr.rel (!%p16_p4) target bundleno = 1 (0x1), region = 90 }

// kernel: featextnet_forward.47
= control target key start
LH: loop header
LB: loop body
LE: loop exit
PB: predicated region body
PF: predicated region fallthrough
CT: control target
= control target key end

     0   :  { %s473_s12 = smov 0   ;;  %s522_s0 = inlined_call_operand.vmem [shape: bf16[128,64], index: 0, kind: input, shape index: {}]   ;;  %s523_s1 = inlined_call_operand.vmem [shape: bf16[64,32], index: 1, kind: input, shape index: {}]   ;;  %s524_s2 = inlined_call_operand.vmem [shape: bf16[128,32], index: 2, kind: output, shape index: {0}]   ;;  %s525_s3 = inlined_call_operand.vmem [shape: f32[4,2,32], index: 3, kind: output, shape index: {1}]  }
   0x1 LB: > { %s479_s13 = sadd.s32 4294967295, %s451_s12   ;;  %p393_p0 = scmp.ge.s32.totalorder %s451_s12, 1  ;;  %s451_s12 = sphi %s473_s12, %s14_s12  }
   0x2   : > { %p141_p1 = scmp.lt.s32.totalorder %s451_s12, 5 }
   0x4   : > { %p142_p2 = pnand %p393_p0, %p141_p1 }
   0x5   : > { %s394_s16 = sshll.u32 (!%p142_p2), %s479_s13, 2  ;;  %p181_p4 = scmp.lt.s32.totalorder (!%p142_p2), %s479_s13, 3 }
   0x6   : > { %145 = sbr.rel (%p142_p2) target bundleno = 184 (0xb8), region = 28  ;;  %p170_p3 = scmp.lt.s32.totalorder (!%p142_p2), %s394_s16, 15 }
   0xb   : > { %v432_v0 = vld [vmem:[%s523_s1 + $0x18] sm:$0xff]  ;;  %v431_v1 = vld [vmem:[%s523_s1 + $0x10] sm:$0xff]  ;;  %s527_s16 = smov (!%p170_p3, %s394_s16), 15  ;;  %v430_v2 = vld [vmem:[%s523_s1 + $0x8] sm:$0xff]  ;;  %vm232_vm0 = vcmask 523264   ;;  %vm262_vm1 = vcmask 257024  }
   0xc   : > { %243 = vmatpush.bf16.msra.mxu0 %v432_v0  ;;  %433 = vmatpush.bf16.msra.mxu1 %v432_v0  ;;  %s395_s21 = sshll.u32 %s527_s16, 2  ;;  %v429_v3 = vld [vmem:[%s523_s1] sm:$0xff]  ;;  %vm267_vm2 = vcmask 261120   ;;  %s529_s13 = smov (!%p181_p4, %s479_s13), 3  ;;  %vm298_vm3 = vcmask 1040384   ;;  %vm300_vm4 = vcmask 254976  }
   0xd   : > { %s173_s26 = scalar_lea.vmem %s522_s0, %s395_s21  ;;  %s179_s29 = scalar_lea.vmem %s524_s2, %s395_s21 }
   0xe   : > { %v427_v4 = vld [vmem:[%s173_s26] sm:$0xff]  ;;  %v428_v5 = vld [vmem:[%s173_s26 + $0x8] sm:$0xff]  ;;  %s398_s30 = sshll.u32 %s529_s13, 1 }
   0xf   : > { %s184_s6 = scalar_lea.vmem %s525_s3, %s398_s30 }
  0x10   : > { %244 = vmatpush.bf16.msra.mxu0 %v431_v1  ;;  %434 = vmatpush.bf16.msra.mxu1 %v431_v1 }
  0x14   : > { %245 = vmatpush.bf16.msra.mxu0 %v430_v2  ;;  %435 = vmatpush.bf16.msra.mxu1 %v430_v2 }
  0x18   : > { %246 = vmatpush.bf16.msra.mxu0 %v429_v3  ;;  %436 = vmatpush.bf16.msra.mxu1 %v429_v3 }
  0x1b   : > { %423 = vmatmul.msk.bf16.vlgmr.msra.gmra.mxu0 %vm232_vm0, %v427_v4  ;;  %424 = vmatmul.msk.bf16.vlgmr.msra.gmra.mxu1 %vm232_vm0, %v428_v5 }
  0x98   : > { %v248_v6 = vpop.f32.mrf.mxu0  ;;  %v253_v7 = vpop.f32.mrf.mxu1 }
  0x99   : > { %v258_v8 = vpack.c.bf16 %v248_v6, %v248_v6  ;;  %v260_v9 = vpack.c.bf16 %v253_v7, %v253_v7  ;;  %v281_v10 = vmul.f32 %v248_v6, %v248_v6  ;;  %v268_v11 = vsel %vm267_vm2, %v248_v6, 0.0 }
  0x9a   : > { %v283_v12 = vmul.f32 %v253_v7, %v253_v7  ;;  %v271_v21 = vsel %vm267_vm2, %v253_v7, 0.0 }
  0x9b   : > { %263 = vst.msk [vmem:[%s179_s29] sm:$0xf] %vm262_vm1, %v258_v8  ;;  %v285_v20 = vsel %vm267_vm2, %v281_v10, 0.0 }
  0x9c   : > { %265 = vst.msk [vmem:[%s179_s29 + $0x8] sm:$0xf] %vm262_vm1, %v260_v9  ;;  %v288_v26 = vsel %vm267_vm2, %v283_v12, 0.0 }
  0xa0   : > { %v250_v13 = vpop.f32.mrf.mxu0  ;;  %v255_v14 = vpop.f32.mrf.mxu1 }
  0xa1   : > { %v259_v15 = vpack.c.bf16 %v250_v13, %v250_v13  ;;  %v269_v16 = vsel %vm267_vm2, %v250_v13, 0.0  ;;  %v282_v17 = vmul.f32 %v250_v13, %v250_v13  ;;  %v261_v18 = vpack.c.bf16 %v255_v14, %v255_v14 }
  0xa2   : > { %v270_v19 = vadd.f32 %v269_v16, %v268_v11  ;;  %v284_v23 = vmul.f32 %v255_v14, %v255_v14  ;;  %v273_v27 = vsel %vm267_vm2, %v255_v14, 0.0 }
  0xa3   : > { %264 = vst.msk [vmem:[%s179_s29 + $0x4] sm:$0xf] %vm262_vm1, %v259_v15  ;;  %v286_v22 = vsel %vm267_vm2, %v282_v17, 0.0 }
  0xa4   : > { %v287_v24 = vadd.f32 %v286_v22, %v285_v20  ;;  %266 = vst.msk [vmem:[%s179_s29 + $0xc] sm:$0xf] %vm262_vm1, %v261_v18  ;;  %v272_v25 = vadd.f32 %v271_v21, %v270_v19  ;;  %v290_v30 = vsel %vm267_vm2, %v284_v23, 0.0 }
  0xa6   : > { %v274_v28 = vadd.f32 %v273_v27, %v272_v25  ;;  %v289_v29 = vadd.f32 %v288_v26, %v287_v24 }
  0xa8   : > { %v275_v31 = vrot.slane %v274_v28, 4  ;;  %v291_v32 = vadd.f32 %v290_v30, %v289_v29 }
  0xaa   : > { %v276_v33 = vadd.f32 %v275_v31, %v274_v28  ;;  %v292_v34 = vrot.slane %v291_v32, 4 }
  0xac   : > { %v277_v35 = vrot.slane %v276_v33, 2  ;;  %v293_v36 = vadd.f32 %v292_v34, %v291_v32 }
  0xae   : > { %v278_v37 = vadd.f32 %v277_v35, %v276_v33  ;;  %v294_v38 = vrot.slane %v293_v36, 2 }
  0xb0   : > { %v279_v39 = vrot.slane %v278_v37, 1  ;;  %v295_v40 = vadd.f32 %v294_v38, %v293_v36 }
  0xb2   : > { %v296_v41 = vrot.slane %v295_v40, 1  ;;  %v280_v42 = vadd.f32 %v279_v39, %v278_v37 }
  0xb4   : > { %v297_v43 = vadd.f32 %v296_v41, %v295_v40 }
  0xb6   : > { %v299_v44 = vsel %vm298_vm3, %v280_v42, %v297_v43 }
  0xb7   : > { %301 = vst.msk [vmem:[%s184_s6] sm:$0x3] %vm300_vm4, %v299_v44 }
  0xb8 PF: > { %s14_s12 = sadd.s32 1, %s451_s12  }
  0xb9   : > { %p11_p5 = scmp.ge.s32.totalorder %s14_s12, 6  }
  0xbb   :  { %13 = sbr.rel (!%p11_p5) target bundleno = 1 (0x1), region = 70 }

// kernel: featextnet_forward.48
= control target key start
LH: loop header
LB: loop body
LE: loop exit
PB: predicated region body
PF: predicated region fallthrough
CT: control target
= control target key end

     0   :  { %s407_s18 = smov 0   ;;  %s443_s0 = inlined_call_operand.vmem [shape: bf16[128,32], index: 0, kind: input, shape index: {}]   ;;  %s444_s1 = inlined_call_operand.vmem [shape: f32[1,32], index: 1, kind: input, shape index: {}]   ;;  %s445_s2 = inlined_call_operand.vmem [shape: f32[1,32], index: 2, kind: input, shape index: {}]   ;;  %s446_s3 = inlined_call_operand.vmem [shape: f32[1,32], index: 3, kind: input, shape index: {}]   ;;  %s447_s4 = inlined_call_operand.vmem [shape: f32[1,32], index: 4, kind: input, shape index: {}]   ;;  %s448_s5 = inlined_call_operand.vmem [shape: bf16[128,32], index: 5, kind: output, shape index: {}]  }
   0x1 LB: > { %s339_s19 = sadd.s32 4294967295, %s375_s18   ;;  %p343_p0 = scmp.ge.s32.totalorder %s375_s18, 1  ;;  %s375_s18 = sphi %s407_s18, %s15_s18  }
   0x2   : > { %p188_p1 = scmp.lt.s32.totalorder %s375_s18, 5 }
   0x4   : > { %p189_p2 = pnand %p343_p0, %p188_p1 }
   0x5   : > { %s344_s24 = sshll.u32 (!%p189_p2), %s339_s19, 2 }
   0x6   : > { %192 = sbr.rel (%p189_p2) target bundleno = 54 (0x36), region = 40  ;;  %p217_p3 = scmp.lt.s32.totalorder (!%p189_p2), %s344_s24, 15 }
   0xb   : > { %v228_v0 = vld [vmem:[%s444_s1] sm:$0x1]  ;;  %s450_s24 = smov (!%p217_p3, %s344_s24), 15  ;;  %vm278_vm3 = vcmask 257024  }
   0xc   : > { %v229_v1 = vld [vmem:[%s445_s2] sm:$0x1]  ;;  %v230_v2 = vmul.f32 %v228_v0, %v228_v0  ;;  %s345_s25 = sshll.u32 %s450_s24, 2 }
   0xd   : > { %s220_s28 = scalar_lea.vmem %s443_s0, %s345_s25  ;;  %v232_v10 = vld [vmem:[%s446_s3] sm:$0x1]  ;;  %s226_s10 = scalar_lea.vmem %s448_s5, %s345_s25 }
   0xe   : > { %v231_v3 = vsub.f32 %v229_v1, %v230_v2  ;;  %v351_v12 = vld [vmem:[%s220_s28] sm:$0xff]   ;;  %v358_v13 = vld [vmem:[%s220_s28 + $0x8] sm:$0xff]  }
   0xf   : > { %v352_v16 = vunpack.c.l.bf16 %v351_v12  ;;  %v353_v17 = vunpack.c.h.bf16 %v351_v12  ;;  %v356_v18 = vunpack.c.l.bf16 %v358_v13  ;;  %v245_v19 = vld [vmem:[%s447_s4] sm:$0x1]  ;;  %v357_v20 = vunpack.c.h.bf16 %v358_v13 }
  0x10   : > { %v233_v4 = vadd.f32 1e-05, %v231_v3 }
  0x12   : > { %367 = vrsqrt.f32 %v233_v4  ;;  %vm240_vm0 = vweird.f32 %v233_v4 }
  0x18   : > { %v368_v5 = vpop.eup %367 }
  0x19   : > { %v235_v6 = vmul.f32 %v368_v5, %v233_v4  ;;  %vm241_vm1 = vweird.f32 %v368_v5 }
  0x1a   : > { %vm242_vm2 = vmor %vm240_vm0, %vm241_vm1 }
  0x1b   : > { %v236_v7 = vmul.f32 %v368_v5, %v235_v6 }
  0x1d   : > { %v237_v8 = vmul.f32 0.5, %v236_v7 }
  0x1f   : > { %v238_v9 = vsub.f32 1.5, %v237_v8 }
  0x21   : > { %v239_v11 = vmul.f32 %v368_v5, %v238_v9 }
  0x23   : > { %v243_v14 = vsel %vm242_vm2, %v368_v5, %v239_v11 }
  0x24   : > { %v244_v15 = vmul.f32 %v243_v14, %v232_v10 }
  0x26   : > { %v246_v21 = vmul.f32 %v244_v15, %v228_v0  ;;  %v257_v22 = vperm.slane %v244_v15, 0 }
  0x28   : > { %v247_v23 = vsub.f32 %v245_v19, %v246_v21  ;;  %v259_v24 = vmul.f32 %v352_v16, %v257_v22  ;;  %v260_v25 = vmul.f32 %v353_v17, %v257_v22  ;;  %v261_v26 = vmul.f32 %v356_v18, %v257_v22 }
  0x29   : > { %v262_v27 = vmul.f32 %v357_v20, %v257_v22 }
  0x2a   : > { %v264_v28 = vperm.slane %v247_v23, 0 }
  0x2c   : > { %v266_v29 = vadd.f32 %v264_v28, %v259_v24  ;;  %v267_v30 = vadd.f32 %v264_v28, %v260_v25  ;;  %v268_v31 = vadd.f32 %v264_v28, %v261_v26  ;;  %v269_v32 = vadd.f32 %v264_v28, %v262_v27 }
  0x2e   : > { %v270_v33 = vmax.f32 %v266_v29, 0.0  ;;  %v271_v34 = vmax.f32 %v267_v30, 0.0  ;;  %v272_v35 = vmax.f32 %v268_v31, 0.0  ;;  %v273_v36 = vmax.f32 %v269_v32, 0.0 }
  0x30   : > { %v274_v37 = vpack.c.bf16 %v270_v33, %v270_v33  ;;  %v275_v38 = vpack.c.bf16 %v271_v34, %v271_v34  ;;  %v276_v39 = vpack.c.bf16 %v272_v35, %v272_v35  ;;  %v277_v40 = vpack.c.bf16 %v273_v36, %v273_v36 }
  0x32   : > { %279 = vst.msk [vmem:[%s226_s10] sm:$0xf] %vm278_vm3, %v274_v37 }
  0x33   : > { %280 = vst.msk [vmem:[%s226_s10 + $0x4] sm:$0xf] %vm278_vm3, %v275_v38 }
  0x34   : > { %281 = vst.msk [vmem:[%s226_s10 + $0x8] sm:$0xf] %vm278_vm3, %v276_v39 }
  0x35   : > { %282 = vst.msk [vmem:[%s226_s10 + $0xc] sm:$0xf] %vm278_vm3, %v277_v40 }
  0x36 PF: > { %s15_s18 = sadd.s32 1, %s375_s18  }
  0x37   : > { %p12_p4 = scmp.ge.s32.totalorder %s15_s18, 6  }
  0x39   :  { %14 = sbr.rel (!%p12_p4) target bundleno = 1 (0x1), region = 70 }

// kernel: featextnet_forward.49
= control target key start
LH: loop header
LB: loop body
LE: loop exit
PB: predicated region body
PF: predicated region fallthrough
CT: control target
= control target key end

     0   :  { %s879_s12 = smov 0   ;;  %s1081_s0 = inlined_call_operand.vmem [shape: bf16[512,144], index: 0, kind: input, shape index: {}]   ;;  %s1082_s1 = inlined_call_operand.vmem [shape: bf16[144,8], index: 1, kind: input, shape index: {}]   ;;  %s1083_s2 = inlined_call_operand.vmem [shape: bf16[512,8], index: 2, kind: output, shape index: {0}]   ;;  %s1084_s3 = inlined_call_operand.vmem [shape: f32[4,2,8], index: 3, kind: output, shape index: {1}]  }
   0x1 LB: > { %s885_s13 = sadd.s32 4294967295, %s857_s12   ;;  %p691_p0 = scmp.ge.s32.totalorder %s857_s12, 1  ;;  %s857_s12 = sphi %s879_s12, %s14_s12  }
   0x2   : > { %p142_p1 = scmp.lt.s32.totalorder %s857_s12, 5 }
   0x4   : > { %p143_p2 = pnand %p691_p0, %p142_p1 }
   0x5   : > { %s692_s18 = sshll.u32 (!%p143_p2), %s885_s13, 4  ;;  %p184_p4 = scmp.lt.s32.totalorder (!%p143_p2), %s885_s13, 3 }
   0x6   : > { %146 = sbr.rel (%p143_p2) target bundleno = 262 (0x106), region = 28  ;;  %p172_p3 = scmp.lt.s32.totalorder (!%p143_p2), %s692_s18, 63 }
   0xb   : > { %v832_v0 = vld [vmem:[%s1082_s1 + $0x38] sm:$0xff]  ;;  %v833_v1 = vld [vmem:[%s1082_s1 + $0x40] sm:$0xff]  ;;  %v831_v2 = vld [vmem:[%s1082_s1 + $0x30] sm:$0xff]  ;;  %s1086_s18 = smov (!%p172_p3, %s692_s18), 63  ;;  %vm349_vm0 = vcmask 130048   ;;  %vm488_vm1 = vcmask 60416  }
   0xc   : > { %374 = vmatpush.bf16.msra.mxu0 %v832_v0  ;;  %834 = vmatpush.bf16.msra.mxu2 %v832_v0  ;;  %s808_s21 = sshll.u32 %s1086_s18, 3  ;;  %v830_v3 = vld [vmem:[%s1082_s1 + $0x28] sm:$0xff]  ;;  %v829_v7 = vld [vmem:[%s1082_s1 + $0x20] sm:$0xff]  ;;  %v828_v8 = vld [vmem:[%s1082_s1 + $0x18] sm:$0xff]  ;;  %s696_s10 = sshll.u32 %s1086_s18, 2  ;;  %vm505_vm2 = vcmask 64512  }
   0xd   : > { %430 = vmatpush.bf16.msra.mxu1 %v833_v1  ;;  %842 = vmatpush.bf16.msra.mxu3 %v833_v1  ;;  %s905_s24 = scalar_lea.vmem %s1081_s0, %s808_s21  ;;  %v827_v11 = vld [vmem:[%s1082_s1 + $0x10] sm:$0xff]  ;;  %v826_v16 = vld [vmem:[%s1082_s1 + $0x8] sm:$0xff]  ;;  %v825_v17 = vld [vmem:[%s1082_s1] sm:$0xff]  ;;  %s969_s15 = scalar_lea.vmem %s1083_s2, %s696_s10  ;;  %vm596_vm3 = vcmask 1040384   ;;  %vm598_vm4 = vcmask 58368  }
   0xe   : > { %v809_v4 = vld [vmem:[%s905_s24 + $0x4] sm:$0xf]  ;;  %v702_v5 = vld [vmem:[%s905_s24 + $0x8] sm:$0xf0]  ;;  %v819_v9 = vld [vmem:[%s905_s24 + $0x54] sm:$0xf] }
   0xf   : > { %v705_v6 = vor.u32 %v809_v4, %v702_v5  ;;  %v742_v10 = vld [vmem:[%s905_s24 + $0x58] sm:$0xf0]  ;;  %v811_v13 = vld [vmem:[%s905_s24 + $0x14] sm:$0xf]  ;;  %v700_v18 = vld [vmem:[%s905_s24] sm:$0xf] }
  0x10   : > { %375 = vmatpush.bf16.msra.mxu0 %v831_v2  ;;  %835 = vmatpush.bf16.msra.mxu2 %v831_v2  ;;  %v745_v12 = vor.u32 %v819_v9, %v742_v10  ;;  %v710_v14 = vld [vmem:[%s905_s24 + $0x18] sm:$0xf0]  ;;  %v810_v19 = vld [vmem:[%s905_s24 + $0x4] sm:$0xf0]  ;;  %v732_v20 = vld [vmem:[%s905_s24 + $0x40] sm:$0xf] }
  0x11   : > { %798 = vmatmul.msk.bf16.vlgmr.msra.gmra.mxu1 %vm349_vm0, %v705_v6  ;;  %v713_v15 = vor.u32 %v811_v13, %v710_v14  ;;  %v818_v21 = vld [vmem:[%s905_s24 + $0x44] sm:$0xf0]  ;;  %v701_v22 = vor.u32 %v810_v19, %v700_v18  ;;  %v821_v24 = vld [vmem:[%s905_s24 + $0x64] sm:$0xf]  ;;  %v750_v25 = vld [vmem:[%s905_s24 + $0x68] sm:$0xf0] }
  0x12   : > { %803 = vmatmul.msk.bf16.vlgmr.msra.gmra.mxu3 %vm349_vm0, %v745_v12  ;;  %v733_v23 = vor.u32 %v818_v21, %v732_v20  ;;  %v753_v26 = vor.u32 %v821_v24, %v750_v25  ;;  %v813_v27 = vld [vmem:[%s905_s24 + $0x24] sm:$0xf]  ;;  %v718_v28 = vld [vmem:[%s905_s24 + $0x28] sm:$0xf0]  ;;  %v708_v30 = vld [vmem:[%s905_s24 + $0x10] sm:$0xf] }
  0x13   : > { %v721_v29 = vor.u32 %v813_v27, %v718_v28  ;;  %v812_v31 = vld [vmem:[%s905_s24 + $0x14] sm:$0xf0]  ;;  %v740_v32 = vld [vmem:[%s905_s24 + $0x50] sm:$0xf]  ;;  %v823_v36 = vld [vmem:[%s905_s24 + $0x74] sm:$0xf] }
  0x14   : > { %376 = vmatpush.bf16.msra.mxu0 %v830_v3  ;;  %836 = vmatpush.bf16.msra.mxu2 %v830_v3  ;;  %v820_v33 = vld [vmem:[%s905_s24 + $0x54] sm:$0xf0]  ;;  %v709_v34 = vor.u32 %v812_v31, %v708_v30  ;;  %v758_v37 = vld [vmem:[%s905_s24 + $0x78] sm:$0xf0]  ;;  %v815_v39 = vld [vmem:[%s905_s24 + $0x34] sm:$0xf] }
  0x15   : > { %v741_v35 = vor.u32 %v820_v33, %v740_v32  ;;  %v761_v38 = vor.u32 %v823_v36, %v758_v37  ;;  %v726_v40 = vld [vmem:[%s905_s24 + $0x38] sm:$0xf0]  ;;  %v716_v42 = vld [vmem:[%s905_s24 + $0x20] sm:$0xf]  ;;  %v814_v43 = vld [vmem:[%s905_s24 + $0x24] sm:$0xf0] }
  0x16   : > { %v729_v41 = vor.u32 %v815_v39, %v726_v40  ;;  %v748_v44 = vld [vmem:[%s905_s24 + $0x60] sm:$0xf]  ;;  %v822_v45 = vld [vmem:[%s905_s24 + $0x64] sm:$0xf0]  ;;  %v717_v46 = vor.u32 %v814_v43, %v716_v42  ;;  %v817_v48 = vld [vmem:[%s905_s24 + $0x44] sm:$0xf] }
  0x17   : > { %v749_v47 = vor.u32 %v822_v45, %v748_v44  ;;  %v734_v49 = vld [vmem:[%s905_s24 + $0x48] sm:$0xf0]  ;;  %v724_v51 = vld [vmem:[%s905_s24 + $0x30] sm:$0xf]  ;;  %v816_v52 = vld [vmem:[%s905_s24 + $0x34] sm:$0xf0] }
  0x18   : > { %377 = vmatpush.bf16.msra.mxu0 %v829_v7  ;;  %837 = vmatpush.bf16.msra.mxu2 %v829_v7  ;;  %v737_v50 = vor.u32 %v817_v48, %v734_v49  ;;  %v756_v53 = vld [vmem:[%s905_s24 + $0x70] sm:$0xf]  ;;  %v824_v54 = vld [vmem:[%s905_s24 + $0x74] sm:$0xf0]  ;;  %v725_v55 = vor.u32 %v816_v52, %v724_v51  ;;  %s1088_s13 = smov (!%p184_p4, %s885_s13), 3 }
  0x19   : > { %v757_v56 = vor.u32 %v824_v54, %v756_v53  ;;  %s697_s16 = sshll.u32 %s1088_s13, 1 }
  0x1a   : > { %s187_s19 = scalar_lea.vmem %s1084_s3, %s697_s16 }
  0x1c   : > { %378 = vmatpush.bf16.msra.mxu0 %v828_v8  ;;  %838 = vmatpush.bf16.msra.mxu2 %v828_v8 }
  0x20   : > { %379 = vmatpush.bf16.msra.mxu0 %v827_v11  ;;  %839 = vmatpush.bf16.msra.mxu2 %v827_v11 }
  0x21   : > { %799 = vmatmul.msk.bf16.gmra.mxu1 %vm349_vm0, %v713_v15 }
  0x22   : > { %804 = vmatmul.msk.bf16.gmra.mxu3 %vm349_vm0, %v753_v26 }
  0x24   : > { %380 = vmatpush.bf16.msra.mxu0 %v826_v16  ;;  %840 = vmatpush.bf16.msra.mxu2 %v826_v16 }
  0x28   : > { %381 = vmatpush.bf16.msra.mxu0 %v825_v17  ;;  %841 = vmatpush.bf16.msra.mxu2 %v825_v17 }
  0x2b   : > { %382 = vmatmul.bf16.vlgmr.msra.gmra.mxu0 %v701_v22  ;;  %402 = vmatmul.bf16.vlgmr.msra.gmra.mxu2 %v733_v23 }
  0x31   : > { %800 = vmatmul.msk.bf16.gmra.mxu1 %vm349_vm0, %v721_v29 }
  0x32   : > { %805 = vmatmul.msk.bf16.gmra.mxu3 %vm349_vm0, %v761_v38 }
  0x3b   : > { %387 = vmatmul.bf16.gmra.mxu0 %v709_v34  ;;  %407 = vmatmul.bf16.gmra.mxu2 %v741_v35 }
  0x41   : > { %801 = vmatmul.msk.bf16.gmra.mxu1 %vm349_vm0, %v729_v41 }
  0x4b   : > { %392 = vmatmul.bf16.gmra.mxu0 %v717_v46  ;;  %412 = vmatmul.bf16.gmra.mxu2 %v749_v47 }
  0x51   : > { %802 = vmatmul.msk.bf16.gmra.mxu1 %vm349_vm0, %v737_v50 }
  0x5b   : > { %397 = vmatmul.bf16.gmra.mxu0 %v725_v55  ;;  %417 = vmatmul.bf16.gmra.mxu2 %v757_v56 }
  0x8e   : > { %v432_v57 = vpop.f32.mrf.mxu1 }
  0x95   : > { %v457_v5 = vpop.f32.mrf.mxu3 }
  0x96   : > { %v434_v58 = vpop.f32.mrf.mxu1 }
  0x9d   : > { %v459_v11 = vpop.f32.mrf.mxu3 }
  0x9e   : > { %v437_v59 = vpop.f32.mrf.mxu1 }
  0xa5   : > { %v462_v20 = vpop.f32.mrf.mxu3 }
  0xa6   : > { %v439_v62 = vpop.f32.mrf.mxu1 }
  0xa8   : > { %v383_v60 = vpop.f32.mrf.mxu0 }
  0xa9   : > { %v433_v61 = vadd.f32 %v432_v57, %v383_v60 }
  0xab   : > { %v472_v63 = vpack.c.bf16 %v433_v61, %v433_v61  ;;  %v543_v37 = vmul.f32 %v433_v61, %v433_v61  ;;  %v506_v41 = vsel %vm505_vm2, %v433_v61, 0.0 }
  0xad   : > { %489 = vst.msk [vmem:[%s969_s15] sm:$0xf] %vm488_vm1, %v472_v63  ;;  %v464_v32 = vpop.f32.mrf.mxu3  ;;  %v559_v46 = vsel %vm505_vm2, %v543_v37, 0.0 }
  0xae   : > { %v403_v0 = vpop.f32.mrf.mxu2  ;;  %v442_v3 = vpop.f32.mrf.mxu1 }
  0xb0   : > { %v385_v1 = vpop.f32.mrf.mxu0 }
  0xb1   : > { %v435_v2 = vadd.f32 %v434_v58, %v385_v1 }
  0xb3   : > { %v473_v4 = vpack.c.bf16 %v435_v2, %v435_v2  ;;  %v544_v35 = vmul.f32 %v435_v2, %v435_v2  ;;  %v507_v39 = vsel %vm505_vm2, %v435_v2, 0.0 }
  0xb4   : > { %v508_v47 = vadd.f32 %v507_v39, %v506_v41 }
  0xb5   : > { %490 = vst.msk [vmem:[%s969_s15 + $0x4] sm:$0xf] %vm488_vm1, %v473_v4  ;;  %v560_v42 = vsel %vm505_vm2, %v544_v35, 0.0  ;;  %v467_v63 = vpop.f32.mrf.mxu3 }
  0xb6   : > { %v405_v6 = vpop.f32.mrf.mxu2  ;;  %v444_v9 = vpop.f32.mrf.mxu1  ;;  %v561_v55 = vadd.f32 %v560_v42, %v559_v46 }
  0xb8   : > { %v388_v7 = vpop.f32.mrf.mxu0 }
  0xb9   : > { %v438_v8 = vadd.f32 %v437_v59, %v388_v7 }
  0xbb   : > { %v474_v10 = vpack.c.bf16 %v438_v8, %v438_v8  ;;  %v545_v40 = vmul.f32 %v438_v8, %v438_v8  ;;  %v509_v43 = vsel %vm505_vm2, %v438_v8, 0.0 }
  0xbc   : > { %v510_v56 = vadd.f32 %v509_v43, %v508_v47 }
  0xbd   : > { %491 = vst.msk [vmem:[%s969_s15 + $0x8] sm:$0xf] %vm488_vm1, %v474_v10  ;;  %v562_v50 = vsel %vm505_vm2, %v545_v40, 0.0 }
  0xbe   : > { %v408_v12 = vpop.f32.mrf.mxu2  ;;  %v447_v16 = vpop.f32.mrf.mxu1 }
  0xbf   : > { %v977_v14 = vadd.f32 %v457_v5, %v408_v12 }
  0xc0   : > { %v390_v13 = vpop.f32.mrf.mxu0 }
  0xc1   : > { %v440_v15 = vadd.f32 %v439_v62, %v390_v13  ;;  %v482_v17 = vpack.c.bf16 %v977_v14, %v977_v14  ;;  %v525_v42 = vsel %vm505_vm2, %v977_v14, 0.0 }
  0xc3   : > { %v475_v18 = vpack.c.bf16 %v440_v15, %v440_v15  ;;  %499 = vst.msk [vmem:[%s969_s15 + $0x28] sm:$0xf] %vm488_vm1, %v482_v17  ;;  %v546_v44 = vmul.f32 %v440_v15, %v440_v15  ;;  %v511_v51 = vsel %vm505_vm2, %v440_v15, 0.0 }
  0xc4   : > { %v512_v1 = vadd.f32 %v511_v51, %v510_v56 }
  0xc5   : > { %492 = vst.msk [vmem:[%s969_s15 + $0xc] sm:$0xf] %vm488_vm1, %v475_v18  ;;  %v564_v59 = vsel %vm505_vm2, %v546_v44, 0.0 }
  0xc6   : > { %v410_v19 = vpop.f32.mrf.mxu2  ;;  %v987_v24 = vpop.f32.mrf.mxu1 }
  0xc7   : > { %v985_v22 = vadd.f32 %v459_v11, %v410_v19 }
  0xc8   : > { %v393_v21 = vpop.f32.mrf.mxu0 }
  0xc9   : > { %v443_v23 = vadd.f32 %v442_v3, %v393_v21  ;;  %v483_v25 = vpack.c.bf16 %v985_v22, %v985_v22  ;;  %v554_v43 = vmul.f32 %v985_v22, %v985_v22 }
  0xcb   : > { %v476_v26 = vpack.c.bf16 %v443_v23, %v443_v23  ;;  %500 = vst.msk [vmem:[%s969_s15 + $0x2c] sm:$0xf] %vm488_vm1, %v483_v25  ;;  %v547_v52 = vmul.f32 %v443_v23, %v443_v23  ;;  %v513_v60 = vsel %vm505_vm2, %v443_v23, 0.0 }
  0xcc   : > { %v514_v7 = vadd.f32 %v513_v60, %v512_v1 }
  0xcd   : > { %493 = vst.msk [vmem:[%s969_s15 + $0x10] sm:$0xf] %vm488_vm1, %v476_v26  ;;  %v566_v3 = vsel %vm505_vm2, %v547_v52, 0.0 }
  0xce   : > { %v413_v27 = vpop.f32.mrf.mxu2  ;;  %v452_v31 = vpop.f32.mrf.mxu1 }
  0xcf   : > { %v995_v29 = vadd.f32 %v462_v20, %v413_v27  ;;  %v997_v33 = vadd.f32 %v452_v31, %v403_v0  ;;  %v563_v0 = vadd.f32 %v562_v50, %v561_v55  ;;  %v527_v50 = vsel %vm505_vm2, %v985_v22, 0.0 }
  0xd0   : > { %v395_v28 = vpop.f32.mrf.mxu0 }
  0xd1   : > { %v445_v30 = vadd.f32 %v444_v9, %v395_v28  ;;  %v484_v34 = vpack.c.bf16 %v995_v29, %v995_v29  ;;  %v480_v38 = vpack.c.bf16 %v997_v33, %v997_v33  ;;  %v551_v21 = vmul.f32 %v997_v33, %v997_v33 }
  0xd2   : > { %v555_v51 = vmul.f32 %v995_v29, %v995_v29 }
  0xd3   : > { %v477_v36 = vpack.c.bf16 %v445_v30, %v445_v30  ;;  %501 = vst.msk [vmem:[%s969_s15 + $0x30] sm:$0xf] %vm488_vm1, %v484_v34  ;;  %v548_v61 = vmul.f32 %v445_v30, %v445_v30  ;;  %v515_v4 = vsel %vm505_vm2, %v445_v30, 0.0  ;;  %v521_v30 = vsel %vm505_vm2, %v997_v33, 0.0 }
  0xd4   : > { %497 = vst.msk [vmem:[%s969_s15 + $0x20] sm:$0xf] %vm488_vm1, %v480_v38  ;;  %v516_v12 = vadd.f32 %v515_v4, %v514_v7  ;;  %v574_v37 = vsel %vm505_vm2, %v551_v21, 0.0 }
  0xd5   : > { %494 = vst.msk [vmem:[%s969_s15 + $0x14] sm:$0xf] %vm488_vm1, %v477_v36  ;;  %v568_v8 = vsel %vm505_vm2, %v548_v61, 0.0  ;;  %v553_v36 = vmul.f32 %v977_v14, %v977_v14  ;;  %v580_v14 = vsel %vm505_vm2, %v554_v43, 0.0 }
  0xd6   : > { %v415_v45 = vpop.f32.mrf.mxu2  ;;  %v454_v54 = vpop.f32.mrf.mxu1 }
  0xd7   : > { %v1014_v49 = vadd.f32 %v464_v32, %v415_v45  ;;  %v455_v57 = vadd.f32 %v454_v54, %v405_v6  ;;  %v565_v6 = vadd.f32 %v564_v59, %v563_v0  ;;  %v469_v32 = vpop.f32.mrf.mxu3  ;;  %v529_v54 = vsel %vm505_vm2, %v995_v29, 0.0 }
  0xd8   : > { %v398_v48 = vpop.f32.mrf.mxu0 }
  0xd9   : > { %v448_v53 = vadd.f32 %v447_v16, %v398_v48  ;;  %v485_v58 = vpack.c.bf16 %v1014_v49, %v1014_v49  ;;  %v481_v2 = vpack.c.bf16 %v455_v57, %v455_v57  ;;  %v567_v11 = vadd.f32 %v566_v3, %v565_v6 }
  0xda   : > { %v552_v31 = vmul.f32 %v455_v57, %v455_v57  ;;  %v523_v38 = vsel %vm505_vm2, %v455_v57, 0.0  ;;  %v578_v48 = vsel %vm505_vm2, %v553_v36, 0.0  ;;  %v556_v55 = vmul.f32 %v1014_v49, %v1014_v49 }
  0xdb   : > { %v478_v62 = vpack.c.bf16 %v448_v53, %v448_v53  ;;  %502 = vst.msk [vmem:[%s969_s15 + $0x34] sm:$0xf] %vm488_vm1, %v485_v58  ;;  %v549_v5 = vmul.f32 %v448_v53, %v448_v53  ;;  %v517_v9 = vsel %vm505_vm2, %v448_v53, 0.0  ;;  %v569_v18 = vadd.f32 %v568_v8, %v567_v11 }
  0xdc   : > { %498 = vst.msk [vmem:[%s969_s15 + $0x24] sm:$0xf] %vm488_vm1, %v481_v2  ;;  %v518_v19 = vadd.f32 %v517_v9, %v516_v12  ;;  %v576_v44 = vsel %vm505_vm2, %v552_v31, 0.0  ;;  %v582_v58 = vsel %vm505_vm2, %v555_v51, 0.0  ;;  %v531_v22 = vsel %vm505_vm2, %v1014_v49, 0.0 }
  0xdd   : > { %495 = vst.msk [vmem:[%s969_s15 + $0x18] sm:$0xf] %vm488_vm1, %v478_v62  ;;  %v570_v16 = vsel %vm505_vm2, %v549_v5, 0.0  ;;  %v584_v62 = vsel %vm505_vm2, %v556_v55, 0.0 }
  0xde   : > { %v418_v10 = vpop.f32.mrf.mxu2  ;;  %v571_v27 = vadd.f32 %v570_v16, %v569_v18 }
  0xdf   : > { %v468_v15 = vadd.f32 %v467_v63, %v418_v10 }
  0xe0   : > { %v400_v13 = vpop.f32.mrf.mxu0 }
  0xe1   : > { %v450_v17 = vadd.f32 %v987_v24, %v400_v13  ;;  %v486_v20 = vpack.c.bf16 %v468_v15, %v468_v15  ;;  %v557_v59 = vmul.f32 %v468_v15, %v468_v15  ;;  %v533_v63 = vsel %vm505_vm2, %v468_v15, 0.0 }
  0xe3   : > { %v479_v23 = vpack.c.bf16 %v450_v17, %v450_v17  ;;  %v519_v25 = vsel %vm505_vm2, %v450_v17, 0.0  ;;  %v550_v26 = vmul.f32 %v450_v17, %v450_v17  ;;  %503 = vst.msk [vmem:[%s969_s15 + $0x38] sm:$0xf] %vm488_vm1, %v486_v20  ;;  %v586_v2 = vsel %vm505_vm2, %v557_v59, 0.0 }
  0xe4   : > { %v520_v28 = vadd.f32 %v519_v25, %v518_v19 }
  0xe5   : > { %496 = vst.msk [vmem:[%s969_s15 + $0x1c] sm:$0xf] %vm488_vm1, %v479_v23  ;;  %v572_v24 = vsel %vm505_vm2, %v550_v26, 0.0 }
  0xe6   : > { %v522_v34 = vadd.f32 %v521_v30, %v520_v28  ;;  %v573_v35 = vadd.f32 %v572_v24, %v571_v27  ;;  %v420_v39 = vpop.f32.mrf.mxu2 }
  0xe7   : > { %v470_v33 = vadd.f32 %v469_v32, %v420_v39 }
  0xe8   : > { %v524_v40 = vadd.f32 %v523_v38, %v522_v34  ;;  %v575_v41 = vadd.f32 %v574_v37, %v573_v35 }
  0xe9   : > { %v487_v47 = vpack.c.bf16 %v470_v33, %v470_v33  ;;  %v558_v29 = vmul.f32 %v470_v33, %v470_v33  ;;  %v535_v3 = vsel %vm505_vm2, %v470_v33, 0.0 }
  0xea   : > { %v526_v45 = vadd.f32 %v525_v42, %v524_v40  ;;  %v577_v46 = vadd.f32 %v576_v44, %v575_v41 }
  0xeb   : > { %504 = vst.msk [vmem:[%s969_s15 + $0x3c] sm:$0xf] %vm488_vm1, %v487_v47  ;;  %v588_v49 = vsel %vm505_vm2, %v558_v29, 0.0 }
  0xec   : > { %v579_v52 = vadd.f32 %v578_v48, %v577_v46  ;;  %v528_v53 = vadd.f32 %v527_v50, %v526_v45 }
  0xee   : > { %v530_v56 = vadd.f32 %v529_v54, %v528_v53  ;;  %v581_v57 = vadd.f32 %v580_v14, %v579_v52 }
  0xf0   : > { %v532_v60 = vadd.f32 %v531_v22, %v530_v56  ;;  %v583_v61 = vadd.f32 %v582_v58, %v581_v57 }
  0xf2   : > { %v534_v0 = vadd.f32 %v533_v63, %v532_v60  ;;  %v585_v1 = vadd.f32 %v584_v62, %v583_v61 }
  0xf4   : > { %v587_v4 = vadd.f32 %v586_v2, %v585_v1  ;;  %v536_v5 = vadd.f32 %v535_v3, %v534_v0 }
  0xf6   : > { %v537_v6 = vrot.slane %v536_v5, 4  ;;  %v589_v7 = vadd.f32 %v588_v49, %v587_v4 }
  0xf8   : > { %v538_v8 = vadd.f32 %v537_v6, %v536_v5  ;;  %v590_v9 = vrot.slane %v589_v7, 4 }
  0xfa   : > { %v539_v10 = vrot.slane %v538_v8, 2  ;;  %v591_v11 = vadd.f32 %v590_v9, %v589_v7 }
  0xfc   : > { %v540_v12 = vadd.f32 %v539_v10, %v538_v8  ;;  %v592_v13 = vrot.slane %v591_v11, 2 }
  0xfe   : > { %v541_v15 = vrot.slane %v540_v12, 1  ;;  %v593_v16 = vadd.f32 %v592_v13, %v591_v11 }
 0x100   : > { %v594_v17 = vrot.slane %v593_v16, 1  ;;  %v542_v18 = vadd.f32 %v541_v15, %v540_v12 }
 0x102   : > { %v595_v19 = vadd.f32 %v594_v17, %v593_v16 }
 0x104   : > { %v597_v20 = vsel %vm596_vm3, %v542_v18, %v595_v19 }
 0x105   : > { %599 = vst.msk [vmem:[%s187_s19] sm:$0x3] %vm598_vm4, %v597_v20 }
 0x106 PF: > { %s14_s12 = sadd.s32 1, %s857_s12  }
 0x107   : > { %p11_p5 = scmp.ge.s32.totalorder %s14_s12, 6  }
 0x109   :  { %13 = sbr.rel (!%p11_p5) target bundleno = 1 (0x1), region = 70 }

// kernel: featextnet_forward.50
= control target key start
LH: loop header
LB: loop body
LE: loop exit
PB: predicated region body
PF: predicated region fallthrough
CT: control target
= control target key end

     0   :  { %s1207_s27 = smov 0   ;;  %s1653_s0 = inlined_call_operand.vmem [shape: bf16[512,8], index: 0, kind: input, shape index: {}]   ;;  %s1654_s1 = inlined_call_operand.vmem [shape: f32[1,8], index: 1, kind: input, shape index: {}]   ;;  %s1655_s2 = inlined_call_operand.vmem [shape: f32[1,8], index: 2, kind: input, shape index: {}]   ;;  %s1656_s3 = inlined_call_operand.vmem [shape: f32[1,8], index: 3, kind: input, shape index: {}]   ;;  %s1657_s4 = inlined_call_operand.vmem [shape: f32[1,8], index: 4, kind: input, shape index: {}]   ;;  %s1658_s5 = inlined_call_operand.vmem [shape: bf16[8,2], index: 5, kind: input, shape index: {}]   ;;  %s1659_s6 = inlined_call_operand.vmem [shape: f32[1,2], index: 6, kind: input, shape index: {}]   ;;  %s1660_s7 = inlined_call_operand.vmem [shape: bf16[512,8], index: 7, kind: output, shape index: {0}]   ;;  %s1661_s8 = inlined_call_operand.vmem [shape: f32[512,2], index: 8, kind: output, shape index: {1}]  }
   0x1 LB: > { %s1016_s28 = sadd.s32 4294967295, %s1160_s27   ;;  %p1020_p0 = scmp.ge.s32.totalorder %s1160_s27, 1  ;;  %s1160_s27 = sphi %s1207_s27, %s19_s27  }
   0x2   : > { %p266_p1 = scmp.lt.s32.totalorder %s1160_s27, 5 }
   0x4   : > { %p267_p2 = pnand %p1020_p0, %p266_p1 }
   0x5   : > { %s1021_s13 = sshll.u32 (!%p267_p2), %s1016_s28, 4 }
   0x6   : > { %270 = sbr.rel (%p267_p2) target bundleno = 278 (0x116), region = 48  ;;  %p306_p3 = scmp.lt.s32.totalorder (!%p267_p2), %s1021_s13, 63 }
   0xb   : > { %v463_v0 = vld [vmem:[%s1658_s5] sm:$0xf]  ;;  %vm533_vm0 = vcmask 1043456   ;;  %s1677_s13 = smov (!%p306_p3, %s1021_s13), 63  ;;  %vm446_vm4 = vcmask 60416   ;;  %vm508_vm5 = vcmask 64512  }
   0xc   : > { %v324_v1 = vld [vmem:[%s1654_s1] sm:$0x1]  ;;  %v535_v2 = vsel %vm533_vm0, %v463_v0, 0  ;;  %s1022_s14 = sshll.u32 %s1677_s13, 2  ;;  %vm909_vm10 = vcmask 15360   ;;  %s1026_s28 = sshll.u32 %s1677_s13, 3 }
   0xd   : > { %v325_v3 = vld [vmem:[%s1655_s2] sm:$0x1]  ;;  %v326_v4 = vmul.f32 %v324_v1, %v324_v1  ;;  %544 = vmatpush.bf16.msra.mxu0 %v535_v2  ;;  %1076 = vmatpush.bf16.msra.mxu1 %v535_v2  ;;  %s309_s17 = scalar_lea.vmem %s1653_s0, %s1022_s14  ;;  %s1273_s24 = scalar_lea.vmem %s1660_s7, %s1022_s14 }
   0xe   : > { %1077 = vmatpush.bf16.msra.mxu2 %v535_v2  ;;  %1078 = vmatpush.bf16.msra.mxu3 %v535_v2  ;;  %v1038_v12 = vld [vmem:[%s309_s17] sm:$0xff]   ;;  %v1070_v13 = vld [vmem:[%s309_s17 + $0x10] sm:$0xff]   ;;  %v1069_v18 = vld [vmem:[%s309_s17 + $0x8] sm:$0xff]   ;;  %s1426_s9 = scalar_lea.vmem %s1661_s8, %s1026_s28 }
   0xf   : > { %v327_v5 = vsub.f32 %v325_v3, %v326_v4  ;;  %v328_v14 = vld [vmem:[%s1656_s3] sm:$0x1]  ;;  %v1074_v17 = vld [vmem:[%s309_s17 + $0x30] sm:$0xff]   ;;  %v1039_v20 = vunpack.c.l.bf16 %v1038_v12  ;;  %v1040_v21 = vunpack.c.h.bf16 %v1038_v12  ;;  %v1047_v22 = vunpack.c.l.bf16 %v1070_v13  ;;  %v1071_v23 = vld [vmem:[%s309_s17 + $0x18] sm:$0xff]  }
  0x10   : > { %v1072_v16 = vld [vmem:[%s309_s17 + $0x20] sm:$0xff]   ;;  %v1048_v25 = vunpack.c.h.bf16 %v1070_v13  ;;  %v1073_v28 = vld [vmem:[%s309_s17 + $0x28] sm:$0xff]   ;;  %v1235_v29 = vld [vmem:[%s309_s17 + $0x38] sm:$0xff]   ;;  %v1063_v31 = vunpack.c.l.bf16 %v1074_v17  ;;  %v1064_v32 = vunpack.c.h.bf16 %v1074_v17  ;;  %v1043_v33 = vunpack.c.l.bf16 %v1069_v18 }
  0x11   : > { %v329_v6 = vadd.f32 1e-05, %v327_v5  ;;  %v1055_v26 = vunpack.c.l.bf16 %v1072_v16  ;;  %v1056_v27 = vunpack.c.h.bf16 %v1072_v16  ;;  %v341_v30 = vld [vmem:[%s1657_s4] sm:$0x1]  ;;  %v1044_v34 = vunpack.c.h.bf16 %v1069_v18 }
  0x12   : > { %v1051_v37 = vunpack.c.l.bf16 %v1071_v23  ;;  %v1052_v38 = vunpack.c.h.bf16 %v1071_v23  ;;  %v1059_v39 = vunpack.c.l.bf16 %v1073_v28  ;;  %v1060_v40 = vunpack.c.h.bf16 %v1073_v28 }
  0x13   : > { %1088 = vrsqrt.f32 %v329_v6  ;;  %vm336_vm1 = vweird.f32 %v329_v6  ;;  %v1067_v41 = vunpack.c.l.bf16 %v1235_v29  ;;  %v1068_v42 = vunpack.c.h.bf16 %v1235_v29 }
  0x19   : > { %v1089_v7 = vpop.eup %1088 }
  0x1a   : > { %v331_v8 = vmul.f32 %v1089_v7, %v329_v6  ;;  %vm337_vm2 = vweird.f32 %v1089_v7 }
  0x1b   : > { %vm338_vm3 = vmor %vm336_vm1, %vm337_vm2 }
  0x1c   : > { %v332_v9 = vmul.f32 %v1089_v7, %v331_v8 }
  0x1e   : > { %v333_v10 = vmul.f32 0.5, %v332_v9 }
  0x20   : > { %v334_v11 = vsub.f32 1.5, %v333_v10 }
  0x22   : > { %v335_v15 = vmul.f32 %v1089_v7, %v334_v11 }
  0x24   : > { %v339_v19 = vsel %vm338_vm3, %v1089_v7, %v335_v15 }
  0x25   : > { %v340_v24 = vmul.f32 %v339_v19, %v328_v14 }
  0x27   : > { %v342_v35 = vmul.f32 %v340_v24, %v324_v1  ;;  %v1240_v36 = vperm.slane %v340_v24, 0 }
  0x29   : > { %v343_v43 = vsub.f32 %v341_v30, %v342_v35  ;;  %v379_v44 = vmul.f32 %v1039_v20, %v1240_v36  ;;  %v380_v45 = vmul.f32 %v1040_v21, %v1240_v36  ;;  %v383_v46 = vmul.f32 %v1047_v22, %v1240_v36 }
  0x2a   : > { %v384_v47 = vmul.f32 %v1048_v25, %v1240_v36  ;;  %v387_v48 = vmul.f32 %v1055_v26, %v1240_v36  ;;  %v388_v49 = vmul.f32 %v1056_v27, %v1240_v36  ;;  %v391_v50 = vmul.f32 %v1063_v31, %v1240_v36 }
  0x2b   : > { %v1251_v51 = vperm.slane %v343_v43, 0  ;;  %v392_v52 = vmul.f32 %v1064_v32, %v1240_v36  ;;  %v381_v53 = vmul.f32 %v1043_v33, %v1240_v36  ;;  %v382_v54 = vmul.f32 %v1044_v34, %v1240_v36 }
  0x2c   : > { %v385_v55 = vmul.f32 %v1051_v37, %v1240_v36  ;;  %v386_v56 = vmul.f32 %v1052_v38, %v1240_v36  ;;  %v389_v57 = vmul.f32 %v1059_v39, %v1240_v36  ;;  %v390_v58 = vmul.f32 %v1060_v40, %v1240_v36 }
  0x2d   : > { %v398_v59 = vadd.f32 %v1251_v51, %v379_v44  ;;  %v399_v60 = vadd.f32 %v1251_v51, %v380_v45  ;;  %v402_v61 = vadd.f32 %v1251_v51, %v383_v46  ;;  %v403_v62 = vadd.f32 %v1251_v51, %v384_v47 }
  0x2e   : > { %v406_v63 = vadd.f32 %v1251_v51, %v387_v48  ;;  %v407_v0 = vadd.f32 %v1251_v51, %v388_v49  ;;  %v410_v1 = vadd.f32 %v1251_v51, %v391_v50  ;;  %v411_v2 = vadd.f32 %v1251_v51, %v392_v52 }
  0x2f   : > { %v414_v3 = vmax.f32 %v398_v59, 0.0  ;;  %v415_v4 = vmax.f32 %v399_v60, 0.0  ;;  %v418_v5 = vmax.f32 %v402_v61, 0.0  ;;  %v419_v6 = vmax.f32 %v403_v62, 0.0 }
  0x30   : > { %v422_v7 = vmax.f32 %v406_v63, 0.0  ;;  %v423_v8 = vmax.f32 %v407_v0, 0.0  ;;  %v426_v9 = vmax.f32 %v410_v1, 0.0  ;;  %v427_v10 = vmax.f32 %v411_v2, 0.0 }
  0x31   : > { %v430_v11 = vpack.c.bf16 %v414_v3, %v414_v3  ;;  %v431_v12 = vpack.c.bf16 %v415_v4, %v415_v4  ;;  %v434_v13 = vpack.c.bf16 %v418_v5, %v418_v5  ;;  %v435_v14 = vpack.c.bf16 %v419_v6, %v419_v6  ;;  %v1332_v5 = vld [vmem:[%s1659_s6] ss:$0 sm:$0xff] }
  0x32   : > { %v438_v15 = vpack.c.bf16 %v422_v7, %v422_v7  ;;  %v439_v16 = vpack.c.bf16 %v423_v8, %v423_v8  ;;  %v442_v17 = vpack.c.bf16 %v426_v9, %v426_v9  ;;  %v443_v18 = vpack.c.bf16 %v427_v10, %v427_v10 }
  0x33   : > { %447 = vst.msk [vmem:[%s1273_s24] sm:$0xf] %vm446_vm4, %v430_v11  ;;  %v484_v19 = vunpack.c.l.b16 %v430_v11  ;;  %v485_v20 = vunpack.c.l.b16 %v431_v12  ;;  %v488_v21 = vunpack.c.l.b16 %v434_v13  ;;  %v489_v22 = vunpack.c.l.b16 %v435_v14 }
  0x34   : > { %448 = vst.msk [vmem:[%s1273_s24 + $0x4] sm:$0xf] %vm446_vm4, %v431_v12  ;;  %v492_v23 = vunpack.c.l.b16 %v438_v15  ;;  %v493_v24 = vunpack.c.l.b16 %v439_v16  ;;  %v496_v25 = vunpack.c.l.b16 %v442_v17  ;;  %v497_v26 = vunpack.c.l.b16 %v443_v18 }
  0x35   : > { %v500_v27 = vpack.c.b16 %v485_v20, %v484_v19  ;;  %451 = vst.msk [vmem:[%s1273_s24 + $0x10] sm:$0xf] %vm446_vm4, %v434_v13  ;;  %v502_v28 = vpack.c.b16 %v489_v22, %v488_v21  ;;  %v400_v30 = vadd.f32 %v1251_v51, %v381_v53  ;;  %v401_v31 = vadd.f32 %v1251_v51, %v382_v54 }
  0x36   : > { %452 = vst.msk [vmem:[%s1273_s24 + $0x14] sm:$0xf] %vm446_vm4, %v435_v14  ;;  %v504_v32 = vpack.c.b16 %v493_v24, %v492_v23  ;;  %v506_v33 = vpack.c.b16 %v497_v26, %v496_v25  ;;  %v404_v34 = vadd.f32 %v1251_v51, %v385_v55  ;;  %v405_v35 = vadd.f32 %v1251_v51, %v386_v56 }
  0x37   : > { %1027 = vmatmul.msk.bf16.vlgmr.msra.gmra.mxu0 %vm508_vm5, %v500_v27  ;;  %1029 = vmatmul.msk.bf16.vlgmr.msra.gmra.mxu1 %vm508_vm5, %v502_v28  ;;  %455 = vst.msk [vmem:[%s1273_s24 + $0x20] sm:$0xf] %vm446_vm4, %v438_v15  ;;  %v416_v37 = vmax.f32 %v400_v30, 0.0  ;;  %v417_v38 = vmax.f32 %v401_v31, 0.0  ;;  %v408_v39 = vadd.f32 %v1251_v51, %v389_v57  ;;  %v409_v40 = vadd.f32 %v1251_v51, %v390_v58 }
  0x38   : > { %456 = vst.msk [vmem:[%s1273_s24 + $0x24] sm:$0xf] %vm446_vm4, %v439_v16  ;;  %1031 = vmatmul.msk.bf16.vlgmr.msra.gmra.mxu2 %vm508_vm5, %v504_v32  ;;  %1033 = vmatmul.msk.bf16.vlgmr.msra.gmra.mxu3 %vm508_vm5, %v506_v33  ;;  %v420_v43 = vmax.f32 %v404_v34, 0.0  ;;  %v421_v44 = vmax.f32 %v405_v35, 0.0  ;;  %v393_v45 = vmul.f32 %v1067_v41, %v1240_v36  ;;  %v394_v46 = vmul.f32 %v1068_v42, %v1240_v36 }
  0x39   : > { %459 = vst.msk [vmem:[%s1273_s24 + $0x30] sm:$0xf] %vm446_vm4, %v442_v17  ;;  %v432_v47 = vpack.c.bf16 %v416_v37, %v416_v37  ;;  %v424_v48 = vmax.f32 %v408_v39, 0.0  ;;  %v425_v49 = vmax.f32 %v409_v40, 0.0  ;;  %v433_v50 = vpack.c.bf16 %v417_v38, %v417_v38 }
  0x3a   : > { %460 = vst.msk [vmem:[%s1273_s24 + $0x34] sm:$0xf] %vm446_vm4, %v443_v18  ;;  %v412_v52 = vadd.f32 %v1251_v51, %v393_v45  ;;  %v413_v53 = vadd.f32 %v1251_v51, %v394_v46  ;;  %v436_v41 = vpack.c.bf16 %v420_v43, %v420_v43  ;;  %v437_v29 = vpack.c.bf16 %v421_v44, %v421_v44 }
  0x3b   : > { %449 = vst.msk [vmem:[%s1273_s24 + $0x8] sm:$0xf] %vm446_vm4, %v432_v47  ;;  %v440_v36 = vpack.c.bf16 %v424_v48, %v424_v48  ;;  %v441_v42 = vpack.c.bf16 %v425_v49, %v425_v49  ;;  %v486_v57 = vunpack.c.l.b16 %v432_v47  ;;  %v487_v58 = vunpack.c.l.b16 %v433_v50 }
  0x3c   : > { %450 = vst.msk [vmem:[%s1273_s24 + $0xc] sm:$0xf] %vm446_vm4, %v433_v50  ;;  %v428_v54 = vmax.f32 %v412_v52, 0.0  ;;  %v429_v55 = vmax.f32 %v413_v53, 0.0  ;;  %v490_v59 = vunpack.c.l.b16 %v436_v41  ;;  %v491_v60 = vunpack.c.l.b16 %v437_v29 }
  0x3d   : > { %453 = vst.msk [vmem:[%s1273_s24 + $0x18] sm:$0xf] %vm446_vm4, %v436_v41  ;;  %v494_v61 = vunpack.c.l.b16 %v440_v36  ;;  %v495_v62 = vunpack.c.l.b16 %v441_v42  ;;  %v501_v1 = vpack.c.b16 %v487_v58, %v486_v57  ;;  %v586_v31 = vlaneseq }
  0x3e   : > { %454 = vst.msk [vmem:[%s1273_s24 + $0x1c] sm:$0xf] %vm446_vm4, %v437_v29  ;;  %v444_v56 = vpack.c.bf16 %v428_v54, %v428_v54  ;;  %v445_v51 = vpack.c.bf16 %v429_v55, %v429_v55  ;;  %v503_v2 = vpack.c.b16 %v491_v60, %v490_v59 }
  0x3f   : > { %457 = vst.msk [vmem:[%s1273_s24 + $0x28] sm:$0xf] %vm446_vm4, %v440_v36  ;;  %v505_v3 = vpack.c.b16 %v495_v62, %v494_v61  ;;  %v1364_v38 = vand.u32 127, %v586_v31 }
  0x40   : > { %458 = vst.msk [vmem:[%s1273_s24 + $0x2c] sm:$0xf] %vm446_vm4, %v441_v42  ;;  %v498_v63 = vunpack.c.l.b16 %v444_v56  ;;  %v499_v0 = vunpack.c.l.b16 %v445_v51 }
  0x41   : > { %461 = vst.msk [vmem:[%s1273_s24 + $0x38] sm:$0xf] %vm446_vm4, %v444_v56  ;;  %vm588_vm6 = vcmp.eq.s32.totalorder %v1364_v38, 0 }
  0x42   : > { %462 = vst.msk [vmem:[%s1273_s24 + $0x3c] sm:$0xf] %vm446_vm4, %v445_v51  ;;  %v507_v4 = vpack.c.b16 %v499_v0, %v498_v63 }
  0x47   : > { %1028 = vmatmul.msk.bf16.gmra.mxu0 %vm508_vm5, %v501_v1  ;;  %1030 = vmatmul.msk.bf16.gmra.mxu1 %vm508_vm5, %v503_v2 }
  0x48   : > { %1032 = vmatmul.msk.bf16.gmra.mxu2 %vm508_vm5, %v505_v3  ;;  %1034 = vmatmul.msk.bf16.gmra.mxu3 %vm508_vm5, %v507_v4 }
  0xb4   : > { %v546_v6 = vpop.f32.mrf.mxu0  ;;  %v556_v7 = vpop.f32.mrf.mxu1 }
  0xb5   : > { %v1335_v8 = vadd.f32 %v1332_v5, %v546_v6  ;;  %v1338_v9 = vadd.f32 %v1332_v5, %v556_v7 }
  0xb7   : > { %v589_v10 = vsub.f32 0.0, %v1335_v8  ;;  %v593_v11 = vsub.f32 0.0, %v1338_v9 }
  0xb9   : > { %v605_v12 = vmul.f32 1.442695, %v589_v10  ;;  %v613_v13 = vmul.f32 1.442695, %v593_v11 }
  0xbb   : > { %1090 = vpow2.f32 %v605_v12  ;;  %v566_v14 = vpop.f32.mrf.mxu2  ;;  %v576_v15 = vpop.f32.mrf.mxu3 }
  0xbc   : > { %1092 = vpow2.f32 %v613_v13  ;;  %v1343_v16 = vadd.f32 %v1332_v5, %v566_v14  ;;  %v1346_v17 = vadd.f32 %v1332_v5, %v576_v15  ;;  %v548_v18 = vpop.f32.mrf.mxu0  ;;  %v558_v19 = vpop.f32.mrf.mxu1 }
  0xbd   : > { %v1349_v20 = vadd.f32 %v1332_v5, %v548_v18  ;;  %v1352_v21 = vadd.f32 %v1332_v5, %v558_v19 }
  0xbe   : > { %v597_v22 = vsub.f32 0.0, %v1343_v16  ;;  %v601_v23 = vsub.f32 0.0, %v1346_v17 }
  0xbf   : > { %v590_v24 = vsub.f32 0.0, %v1349_v20  ;;  %v594_v25 = vsub.f32 0.0, %v1352_v21 }
  0xc0   : > { %v621_v26 = vmul.f32 1.442695, %v597_v22  ;;  %v629_v27 = vmul.f32 1.442695, %v601_v23 }
  0xc1   : > { %v1091_v28 = vpop.eup %1090  ;;  %v607_v33 = vmul.f32 1.442695, %v590_v24  ;;  %v615_v35 = vmul.f32 1.442695, %v594_v25 }
  0xc2   : > { %v1093_v30 = vpop.eup %1092  ;;  %v1358_v32 = vadd.f32 1.0, %v1091_v28  ;;  %1094 = vpow2.f32 %v621_v26 }
  0xc3   : > { %v1360_v34 = vadd.f32 1.0, %v1093_v30  ;;  %1096 = vpow2.f32 %v629_v27  ;;  %v568_v37 = vpop.f32.mrf.mxu2  ;;  %v578_v40 = vpop.f32.mrf.mxu3 }
  0xc4   : > { %1098 = vrcp.f32 %v1358_v32  ;;  %v1367_v39 = vadd.f32 %v1332_v5, %v568_v37  ;;  %v662_v43 = vand.u32 2147483647, %v1358_v32  ;;  %v664_v44 = vand.u32 2147483648, %v1358_v32  ;;  %v551_v45 = vpop.f32.mrf.mxu0  ;;  %v561_v41 = vpop.f32.mrf.mxu1 }
  0xc5   : > { %1100 = vrcp.f32 %v1360_v34  ;;  %v722_v47 = vand.u32 2147483647, %v1360_v34  ;;  %v724_v50 = vand.u32 2147483648, %v1360_v34  ;;  %v1377_v53 = vadd.f32 %v1332_v5, %v578_v40 }
  0xc6   : > { %1102 = vpow2.f32 %v607_v33  ;;  %v598_v48 = vsub.f32 0.0, %v1367_v39  ;;  %vm658_vm7 = vweird.f32 %v1358_v32  ;;  %vm718_vm8 = vweird.f32 %v1360_v34 }
  0xc7   : > { %1104 = vpow2.f32 %v615_v35  ;;  %v1385_v42 = vadd.f32 %v1332_v5, %v551_v45  ;;  %vm1388_vm9 = vcmp.eq.f32.partialorder %v662_v43, 8.507059e+37  ;;  %v665_v51 = vor.u32 1.1754944e-38, %v664_v44 }
  0xc8   : > { %v1095_v46 = vpop.eup %1094  ;;  %vm1394_vm11 = vcmp.eq.f32.partialorder %v722_v47, 8.507059e+37  ;;  %v623_v60 = vmul.f32 1.442695, %v598_v48  ;;  %v1399_v61 = vadd.f32 %v1332_v5, %v561_v41  ;;  %v725_v0 = vor.u32 1.1754944e-38, %v724_v50 }
  0xc9   : > { %v1097_v49 = vpop.eup %1096  ;;  %v1374_v52 = vadd.f32 1.0, %v1095_v46  ;;  %v602_v1 = vsub.f32 0.0, %v1377_v53  ;;  %v591_v6 = vsub.f32 0.0, %v1385_v42 }
  0xca   : > { %v1099_v29 = vpop.eup %1098  ;;  %v1382_v36 = vadd.f32 1.0, %v1097_v49  ;;  %v595_v13 = vsub.f32 0.0, %v1399_v61 }
  0xcb   : > { %v1101_v54 = vpop.eup %1100  ;;  %v654_v55 = vmul.f32 %v1099_v29, %v1358_v32  ;;  %1106 = vrcp.f32 %v1374_v52  ;;  %v782_v3 = vand.u32 2147483647, %v1374_v52  ;;  %v784_v4 = vand.u32 2147483648, %v1374_v52 }
  0xcc   : > { %v1103_v57 = vpop.eup %1102  ;;  %v714_v58 = vmul.f32 %v1101_v54, %v1360_v34  ;;  %1108 = vrcp.f32 %v1382_v36  ;;  %vm659_vm12 = vweird.f32 %v1099_v29  ;;  %vm719_vm13 = vweird.f32 %v1101_v54 }
  0xcd   : > { %v1105_v62 = vpop.eup %1104  ;;  %v655_v63 = vsub.f32 1.0, %v654_v55  ;;  %v1406_v10 = vadd.f32 1.0, %v1103_v57  ;;  %1110 = vpow2.f32 %v623_v60  ;;  %vm778_vm14 = vweird.f32 %v1374_v52  ;;  %vm660_vm15 = vmor %vm658_vm7, %vm659_vm12 }
  0xce   : > { %v715_v2 = vsub.f32 1.0, %v714_v58  ;;  %v1408_v11 = vadd.f32 1.0, %v1105_v62  ;;  %v842_v18 = vand.u32 2147483647, %v1382_v36  ;;  %vm1418_vm0 = vcmp.eq.f32.partialorder %v782_v3, 8.507059e+37  ;;  %vm720_vm2 = vmor %vm718_vm8, %vm719_vm13 }
  0xcf   : > { %v656_v7 = vmul.f32 %v1099_v29, %v655_v63  ;;  %1112 = vrcp.f32 %v1406_v10  ;;  %v785_v24 = vor.u32 1.1754944e-38, %v784_v4  ;;  %vm838_vm1 = vweird.f32 %v1382_v36 }
  0xd0   : > { %v716_v12 = vmul.f32 %v1101_v54, %v715_v2  ;;  %v844_v27 = vand.u32 2147483648, %v1382_v36  ;;  %1114 = vrcp.f32 %v1408_v11  ;;  %v631_v28 = vmul.f32 1.442695, %v602_v1  ;;  %v571_v2 = vpop.f32.mrf.mxu2 }
  0xd1   : > { %v1107_v14 = vpop.eup %1106  ;;  %v657_v15 = vadd.f32 %v1099_v29, %v656_v7  ;;  %vm1441_vm3 = vcmp.eq.f32.partialorder %v842_v18, 8.507059e+37  ;;  %v677_v40 = vand.u32 2147483647, %v1406_v10  ;;  %vm673_vm5 = vweird.f32 %v1406_v10 }
  0xd2   : > { %v717_v19 = vadd.f32 %v1101_v54, %v716_v12  ;;  %v774_v22 = vmul.f32 %v1107_v14, %v1374_v52  ;;  %v1109_v25 = vpop.eup %1108  ;;  %vm779_vm4 = vweird.f32 %v1107_v14  ;;  %v845_v47 = vor.u32 1.1754944e-38, %v844_v27  ;;  %v581_v12 = vpop.f32.mrf.mxu3 }
  0xd3   : > { %v661_v26 = vsel %vm660_vm15, %v1099_v29, %v657_v15  ;;  %v834_v33 = vmul.f32 %v1109_v25, %v1382_v36  ;;  %v1111_v43 = vpop.eup %1110  ;;  %1116 = vpow2.f32 %v631_v28  ;;  %vm839_vm7 = vweird.f32 %v1109_v25  ;;  %vm780_vm8 = vmor %vm778_vm14, %vm779_vm4 }
  0xd4   : > { %v666_v30 = vsel %vm1388_vm9, %v665_v51, %v661_v26  ;;  %v721_v31 = vsel %vm720_vm2, %v1101_v54, %v717_v19  ;;  %v775_v32 = vsub.f32 1.0, %v774_v22  ;;  %v1454_v48 = vadd.f32 1.0, %v1111_v43 }
  0xd5   : > { %v893_v35 = vsel %vm588_vm6, %v1335_v8, %v666_v30  ;;  %v726_v34 = vsel %vm1394_vm11, %v725_v0, %v721_v31  ;;  %v835_v46 = vsub.f32 1.0, %v834_v33  ;;  %v1113_v8 = vpop.eup %1112  ;;  %vm1459_vm9 = vcmp.eq.f32.partialorder %v677_v40, 8.507059e+37  ;;  %vm840_vm11 = vmor %vm838_vm1, %vm839_vm7  ;;  %v563_v33 = vpop.f32.mrf.mxu1 }
  0xd6   : > { %910 = vst.msk [vmem:[%s1426_s9] sm:$0xff] %vm909_vm10, %v893_v35  ;;  %v897_v44 = vsel %vm588_vm6, %v1338_v9, %v726_v34  ;;  %v776_v45 = vmul.f32 %v1107_v14, %v775_v32  ;;  %v669_v41 = vmul.f32 %v1113_v8, %v1406_v10  ;;  %v1115_v29 = vpop.eup %1114  ;;  %v679_v54 = vand.u32 2147483648, %v1406_v10 }
  0xd7   : > { %914 = vst.msk [vmem:[%s1426_s9 + $0x20] sm:$0xff] %vm909_vm10, %v897_v44  ;;  %v836_v50 = vmul.f32 %v1109_v25, %v835_v46  ;;  %1118 = vrcp.f32 %v1454_v48  ;;  %v609_v55 = vmul.f32 1.442695, %v591_v6  ;;  %v729_v58 = vmul.f32 %v1115_v29, %v1408_v11 }
  0xd8   : > { %v777_v49 = vadd.f32 %v1107_v14, %v776_v45  ;;  %v670_v57 = vsub.f32 1.0, %v669_v41  ;;  %vm674_vm12 = vweird.f32 %v1113_v8  ;;  %v737_v52 = vand.u32 2147483647, %v1408_v11 }
  0xd9   : > { %v837_v51 = vadd.f32 %v1109_v25, %v836_v50  ;;  %v739_v60 = vand.u32 2147483648, %v1408_v11  ;;  %v730_v1 = vsub.f32 1.0, %v729_v58  ;;  %v1117_v3 = vpop.eup %1116  ;;  %vm733_vm13 = vweird.f32 %v1408_v11  ;;  %vm675_vm15 = vmor %vm673_vm5, %vm674_vm12 }
  0xda   : > { %v781_v56 = vsel %vm780_vm8, %v1107_v14, %v777_v49  ;;  %v671_v0 = vmul.f32 %v1113_v8, %v670_v57  ;;  %vm734_vm14 = vweird.f32 %v1115_v29  ;;  %1120 = vpow2.f32 %v609_v55  ;;  %v553_v14 = vpop.f32.mrf.mxu0  ;;  %v573_v57 = vpop.f32.mrf.mxu2 }
  0xdb   : > { %v786_v59 = vsel %vm1418_vm0, %v785_v24, %v781_v56  ;;  %v841_v63 = vsel %vm840_vm11, %v1109_v25, %v837_v51  ;;  %v731_v6 = vmul.f32 %v1115_v29, %v730_v1  ;;  %v1483_v7 = vadd.f32 1.0, %v1117_v3  ;;  %vm735_vm1 = vmor %vm733_vm13, %vm734_vm14 }
  0xdc   : > { %v901_v62 = vsel %vm588_vm6, %v1343_v16, %v786_v59  ;;  %v846_v36 = vsel %vm1441_vm3, %v845_v47, %v841_v63  ;;  %v672_v16 = vadd.f32 %v1113_v8, %v671_v0  ;;  %v680_v18 = vor.u32 1.1754944e-38, %v679_v54 }
  0xdd   : > { %918 = vst.msk [vmem:[%s1426_s9 + $0x40] sm:$0xff] %vm909_vm10, %v901_v62  ;;  %v905_v4 = vsel %vm588_vm6, %v1346_v17, %v846_v36  ;;  %v1119_v15 = vpop.eup %1118  ;;  %vm1490_vm0 = vcmp.eq.f32.partialorder %v737_v52, 8.507059e+37  ;;  %v617_v17 = vmul.f32 1.442695, %v595_v13  ;;  %v1497_v22 = vadd.f32 %v1332_v5, %v571_v2 }
  0xde   : > { %922 = vst.msk [vmem:[%s1426_s9 + $0x60] sm:$0xff] %vm909_vm10, %v905_v4  ;;  %v676_v23 = vsel %vm675_vm15, %v1113_v8, %v672_v16  ;;  %v732_v24 = vadd.f32 %v1115_v29, %v731_v6  ;;  %v740_v25 = vor.u32 1.1754944e-38, %v739_v60  ;;  %v789_v26 = vmul.f32 %v1119_v15, %v1454_v48 }
  0xdf   : > { %v681_v10 = vsel %vm1459_vm9, %v680_v18, %v676_v23  ;;  %1122 = vrcp.f32 %v1483_v7  ;;  %v1507_v13 = vadd.f32 %v1332_v5, %v581_v12  ;;  %v1510_v27 = vadd.f32 %v1332_v5, %v553_v14  ;;  %v583_v12 = vpop.f32.mrf.mxu3 }
  0xe0   : > { %v894_v28 = vsel %vm588_vm6, %v1349_v20, %v681_v10  ;;  %v736_v30 = vsel %vm735_vm1, %v1115_v29, %v732_v24  ;;  %v790_v31 = vsub.f32 1.0, %v789_v26  ;;  %v797_v32 = vand.u32 2147483647, %v1454_v48  ;;  %v1121_v11 = vpop.eup %1120 }
  0xe1   : > { %911 = vst.msk [vmem:[%s1426_s9 + $0x8] sm:$0xff] %vm909_vm10, %v894_v28  ;;  %v741_v35 = vsel %vm1490_vm0, %v740_v25, %v736_v30  ;;  %v799_v34 = vand.u32 2147483648, %v1454_v48  ;;  %1124 = vpow2.f32 %v617_v17  ;;  %v599_v37 = vsub.f32 0.0, %v1497_v22 }
  0xe2   : > { %v898_v20 = vsel %vm588_vm6, %v1352_v21, %v741_v35  ;;  %v791_v40 = vmul.f32 %v1119_v15, %v790_v31  ;;  %vm794_vm2 = vweird.f32 %v1119_v15  ;;  %v1525_v43 = vadd.f32 1.0, %v1121_v11 }
  0xe3   : > { %915 = vst.msk [vmem:[%s1426_s9 + $0x28] sm:$0xff] %vm909_vm10, %v898_v20  ;;  %v625_v44 = vmul.f32 1.442695, %v599_v37  ;;  %v603_v45 = vsub.f32 0.0, %v1507_v13  ;;  %v592_v46 = vsub.f32 0.0, %v1510_v27  ;;  %v1532_v8 = vadd.f32 %v1332_v5, %v563_v33 }
  0xe4   : > { %v792_v47 = vadd.f32 %v1119_v15, %v791_v40  ;;  %vm793_vm3 = vweird.f32 %v1454_v48  ;;  %1126 = vrcp.f32 %v1525_v43  ;;  %v800_v49 = vor.u32 1.1754944e-38, %v799_v34 }
  0xe5   : > { %v1123_v21 = vpop.eup %1122  ;;  %vm795_vm4 = vmor %vm793_vm3, %vm794_vm2  ;;  %1128 = vpow2.f32 %v625_v44  ;;  %v633_v50 = vmul.f32 1.442695, %v603_v45  ;;  %v611_v41 = vmul.f32 1.442695, %v592_v46  ;;  %vm798_vm5 = vcmp.eq.f32.partialorder %v797_v32, 8.507059e+37 }
  0xe6   : > { %v796_v29 = vsel %vm795_vm4, %v1119_v15, %v792_v47  ;;  %v849_v9 = vmul.f32 %v1123_v21, %v1483_v7  ;;  %v857_v54 = vand.u32 2147483647, %v1483_v7  ;;  %v859_v51 = vand.u32 2147483648, %v1483_v7 }
  0xe7   : > { %v1125_v55 = vpop.eup %1124  ;;  %v801_v56 = vsel %vm798_vm5, %v800_v49, %v796_v29  ;;  %1130 = vpow2.f32 %v633_v50  ;;  %v596_v48 = vsub.f32 0.0, %v1532_v8  ;;  %vm854_vm7 = vweird.f32 %v1123_v21 }
  0xe8   : > { %v902_v58 = vsel %vm588_vm6, %v1367_v39, %v801_v56  ;;  %v850_v59 = vsub.f32 1.0, %v849_v9  ;;  %v1543_v52 = vadd.f32 1.0, %v1125_v55  ;;  %1132 = vpow2.f32 %v611_v41 }
  0xe9   : > { %919 = vst.msk [vmem:[%s1426_s9 + $0x48] sm:$0xff] %vm909_vm10, %v902_v58  ;;  %v619_v60 = vmul.f32 1.442695, %v596_v48  ;;  %v1549_v0 = vadd.f32 %v1332_v5, %v573_v57  ;;  %vm853_vm8 = vweird.f32 %v1483_v7  ;;  %vm858_vm9 = vcmp.eq.f32.partialorder %v857_v54, 8.507059e+37 }
  0xea   : > { %v1127_v62 = vpop.eup %1126  ;;  %v851_v63 = vmul.f32 %v1123_v21, %v850_v59  ;;  %1134 = vrcp.f32 %v1543_v52  ;;  %v860_v3 = vor.u32 1.1754944e-38, %v859_v51  ;;  %vm855_vm11 = vmor %vm853_vm8, %vm854_vm7  ;;  %vm688_vm12 = vweird.f32 %v1525_v43 }
  0xeb   : > { %v1129_v1 = vpop.eup %1128  ;;  %v684_v39 = vmul.f32 %v1127_v62, %v1525_v43  ;;  %v692_v6 = vand.u32 2147483647, %v1525_v43  ;;  %1136 = vpow2.f32 %v619_v60  ;;  %v694_v7 = vand.u32 2147483648, %v1525_v43 }
  0xec   : > { %v852_v2 = vadd.f32 %v1123_v21, %v851_v63  ;;  %v1553_v36 = vadd.f32 1.0, %v1129_v1  ;;  %v600_v18 = vsub.f32 0.0, %v1549_v0  ;;  %vm689_vm13 = vweird.f32 %v1127_v62 }
  0xed   : > { %v1131_v4 = vpop.eup %1130  ;;  %v685_v16 = vsub.f32 1.0, %v684_v39  ;;  %v1568_v10 = vadd.f32 %v1332_v5, %v583_v12  ;;  %vm693_vm14 = vcmp.eq.f32.partialorder %v692_v6, 8.507059e+37  ;;  %vm690_vm15 = vmor %vm688_vm12, %vm689_vm13  ;;  %v695_v31 = vor.u32 1.1754944e-38, %v694_v7 }
  0xee   : > { %v1133_v14 = vpop.eup %1132  ;;  %v856_v15 = vsel %vm855_vm11, %v1123_v21, %v852_v2  ;;  %1138 = vrcp.f32 %v1553_v36  ;;  %v1560_v23 = vadd.f32 1.0, %v1131_v4  ;;  %v752_v32 = vand.u32 2147483647, %v1543_v52 }
  0xef   : > { %v861_v19 = vsel %vm858_vm9, %v860_v3, %v856_v15  ;;  %v686_v17 = vmul.f32 %v1127_v62, %v685_v16  ;;  %v1565_v26 = vadd.f32 1.0, %v1133_v14  ;;  %v754_v35 = vand.u32 2147483648, %v1543_v52 }
  0xf0   : > { %v1135_v24 = vpop.eup %1134  ;;  %v906_v25 = vsel %vm588_vm6, %v1377_v53, %v861_v19  ;;  %1140 = vrcp.f32 %v1560_v23  ;;  %v627_v53 = vmul.f32 1.442695, %v600_v18  ;;  %vm748_vm0 = vweird.f32 %v1543_v52 }
  0xf1   : > { %923 = vst.msk [vmem:[%s1426_s9 + $0x68] sm:$0xff] %vm909_vm10, %v906_v25  ;;  %v687_v28 = vadd.f32 %v1127_v62, %v686_v17  ;;  %v744_v30 = vmul.f32 %v1135_v24, %v1543_v52  ;;  %v1137_v33 = vpop.eup %1136  ;;  %1142 = vrcp.f32 %v1565_v26  ;;  %v812_v20 = vand.u32 2147483647, %v1553_v36 }
  0xf2   : > { %v604_v40 = vsub.f32 0.0, %v1568_v10  ;;  %vm749_vm1 = vweird.f32 %v1135_v24  ;;  %v814_v46 = vand.u32 2147483648, %v1553_v36  ;;  %v1589_v47 = vadd.f32 1.0, %v1137_v33 }
  0xf3   : > { %v691_v11 = vsel %vm690_vm15, %v1127_v62, %v687_v28  ;;  %v745_v5 = vsub.f32 1.0, %v744_v30  ;;  %1144 = vpow2.f32 %v627_v53  ;;  %vm753_vm2 = vcmp.eq.f32.partialorder %v752_v32, 8.507059e+37  ;;  %vm750_vm3 = vmor %vm748_vm0, %vm749_vm1 }
  0xf4   : > { %v1139_v34 = vpop.eup %1138  ;;  %v696_v37 = vsel %vm693_vm14, %v695_v31, %v691_v11  ;;  %v755_v49 = vor.u32 1.1754944e-38, %v754_v35  ;;  %vm808_vm4 = vweird.f32 %v1553_v36  ;;  %vm1594_vm5 = vcmp.eq.f32.partialorder %v812_v20, 8.507059e+37 }
  0xf5   : > { %v895_v43 = vsel %vm588_vm6, %v1385_v42, %v696_v37  ;;  %v746_v44 = vmul.f32 %v1135_v24, %v745_v5  ;;  %v804_v45 = vmul.f32 %v1139_v34, %v1553_v36  ;;  %1146 = vrcp.f32 %v1589_v47 }
  0xf6   : > { %912 = vst.msk [vmem:[%s1426_s9 + $0x10] sm:$0xff] %vm909_vm10, %v895_v43  ;;  %v1141_v41 = vpop.eup %1140  ;;  %v635_v29 = vmul.f32 1.442695, %v604_v40  ;;  %vm809_vm7 = vweird.f32 %v1139_v34  ;;  %v815_v48 = vor.u32 1.1754944e-38, %v814_v46  ;;  %v872_v57 = vand.u32 2147483647, %v1560_v23 }
  0xf7   : > { %v747_v21 = vadd.f32 %v1135_v24, %v746_v44  ;;  %v805_v50 = vsub.f32 1.0, %v804_v45  ;;  %v1143_v9 = vpop.eup %1142  ;;  %v864_v56 = vmul.f32 %v1141_v41, %v1560_v23  ;;  %v874_v62 = vand.u32 2147483648, %v1560_v23  ;;  %vm810_vm8 = vmor %vm808_vm4, %vm809_vm7 }
  0xf8   : > { %v699_v58 = vmul.f32 %v1143_v9, %v1565_v26  ;;  %v707_v39 = vand.u32 2147483647, %v1565_v26  ;;  %v709_v2 = vand.u32 2147483648, %v1565_v26  ;;  %1148 = vpow2.f32 %v635_v29 }
  0xf9   : > { %v751_v54 = vsel %vm750_vm3, %v1135_v24, %v747_v21  ;;  %v806_v55 = vmul.f32 %v1139_v34, %v805_v50  ;;  %v865_v60 = vsub.f32 1.0, %v864_v56  ;;  %v1145_v63 = vpop.eup %1144  ;;  %vm869_vm9 = vweird.f32 %v1141_v41 }
  0xfa   : > { %v756_v51 = vsel %vm753_vm2, %v755_v49, %v751_v54  ;;  %v700_v1 = vsub.f32 1.0, %v699_v58  ;;  %vm868_vm11 = vweird.f32 %v1560_v23  ;;  %vm704_vm12 = vweird.f32 %v1143_v9 }
  0xfb   : > { %v899_v59 = vsel %vm588_vm6, %v1399_v61, %v756_v51  ;;  %v807_v52 = vadd.f32 %v1139_v34, %v806_v55  ;;  %v866_v4 = vmul.f32 %v1141_v41, %v865_v60  ;;  %v648_v61 = vadd.f32 1.0, %v1145_v63  ;;  %v1147_v16 = vpop.eup %1146  ;;  %vm870_vm14 = vmor %vm868_vm11, %vm869_vm9 }
  0xfc   : > { %916 = vst.msk [vmem:[%s1426_s9 + $0x30] sm:$0xff] %vm909_vm10, %v899_v59  ;;  %v701_v12 = vmul.f32 %v1143_v9, %v700_v1  ;;  %vm703_vm13 = vweird.f32 %v1565_v26  ;;  %v759_v15 = vmul.f32 %v1147_v16, %v1589_v47  ;;  %vm873_vm15 = vcmp.eq.f32.partialorder %v872_v57, 8.507059e+37 }
  0xfd   : > { %v811_v3 = vsel %vm810_vm8, %v1139_v34, %v807_v52  ;;  %v867_v14 = vadd.f32 %v1141_v41, %v866_v4  ;;  %v875_v7 = vor.u32 1.1754944e-38, %v874_v62  ;;  %1150 = vrcp.f32 %v648_v61  ;;  %vm705_vm0 = vmor %vm703_vm13, %vm704_vm12 }
  0xfe   : > { %v816_v6 = vsel %vm1594_vm5, %v815_v48, %v811_v3  ;;  %v702_v18 = vadd.f32 %v1143_v9, %v701_v12  ;;  %vm708_vm1 = vcmp.eq.f32.partialorder %v707_v39, 8.507059e+37  ;;  %v710_v17 = vor.u32 1.1754944e-38, %v709_v2 }
  0xff   : > { %v903_v36 = vsel %vm588_vm6, %v1497_v22, %v816_v6  ;;  %v871_v19 = vsel %vm870_vm14, %v1141_v41, %v867_v14  ;;  %v760_v23 = vsub.f32 1.0, %v759_v15  ;;  %v1149_v22 = vpop.eup %1148  ;;  %v767_v26 = vand.u32 2147483647, %v1589_v47 }
 0x100   : > { %920 = vst.msk [vmem:[%s1426_s9 + $0x50] sm:$0xff] %vm909_vm10, %v903_v36  ;;  %v876_v24 = vsel %vm873_vm15, %v875_v7, %v871_v19  ;;  %v706_v25 = vsel %vm705_vm0, %v1143_v9, %v702_v18  ;;  %v769_v28 = vand.u32 2147483648, %v1589_v47  ;;  %vm764_vm2 = vweird.f32 %v1147_v16 }
 0x101   : > { %v907_v30 = vsel %vm588_vm6, %v1507_v13, %v876_v24  ;;  %v711_v31 = vsel %vm708_vm1, %v710_v17, %v706_v25  ;;  %v761_v32 = vmul.f32 %v1147_v16, %v760_v23  ;;  %v652_v33 = vadd.f32 1.0, %v1149_v22 }
 0x102   : > { %924 = vst.msk [vmem:[%s1426_s9 + $0x70] sm:$0xff] %vm909_vm10, %v907_v30  ;;  %v896_v53 = vsel %vm588_vm6, %v1510_v27, %v711_v31  ;;  %vm763_vm3 = vweird.f32 %v1589_v47  ;;  %v770_v35 = vor.u32 1.1754944e-38, %v769_v28  ;;  %vm768_vm5 = vcmp.eq.f32.partialorder %v767_v26, 8.507059e+37 }
 0x103   : > { %913 = vst.msk [vmem:[%s1426_s9 + $0x18] sm:$0xff] %vm909_vm10, %v896_v53  ;;  %v762_v11 = vadd.f32 %v1147_v16, %v761_v32  ;;  %v1151_v5 = vpop.eup %1150  ;;  %vm765_vm4 = vmor %vm763_vm3, %vm764_vm2  ;;  %1152 = vrcp.f32 %v652_v33  ;;  %v829_v27 = vand.u32 2147483648, %v648_v61  ;;  %v827_v44 = vand.u32 2147483647, %v648_v61 }
 0x104   : > { %v819_v34 = vmul.f32 %v1151_v5, %v648_v61  ;;  %vm824_vm7 = vweird.f32 %v1151_v5  ;;  %vm823_vm8 = vweird.f32 %v648_v61  ;;  %v887_v9 = vand.u32 2147483647, %v652_v33 }
 0x105   : > { %v766_v13 = vsel %vm765_vm4, %v1147_v16, %v762_v11  ;;  %vm825_vm9 = vmor %vm823_vm8, %vm824_vm7  ;;  %v830_v21 = vor.u32 1.1754944e-38, %v829_v27  ;;  %vm828_vm11 = vcmp.eq.f32.partialorder %v827_v44, 8.507059e+37  ;;  %vm883_vm13 = vweird.f32 %v652_v33 }
 0x106   : > { %v771_v37 = vsel %vm768_vm5, %v770_v35, %v766_v13  ;;  %v820_v40 = vsub.f32 1.0, %v819_v34  ;;  %vm888_vm15 = vcmp.eq.f32.partialorder %v887_v9, 8.507059e+37 }
 0x107   : > { %v900_v20 = vsel %vm588_vm6, %v1532_v8, %v771_v37  ;;  %v889_v8 = vand.u32 2147483648, %v652_v33 }
 0x108   : > { %917 = vst.msk [vmem:[%s1426_s9 + $0x38] sm:$0xff] %vm909_vm10, %v900_v20  ;;  %v821_v43 = vmul.f32 %v1151_v5, %v820_v40 }
 0x109   : > { %v1153_v45 = vpop.eup %1152  ;;  %v890_v55 = vor.u32 1.1754944e-38, %v889_v8 }
 0x10a   : > { %v822_v46 = vadd.f32 %v1151_v5, %v821_v43  ;;  %v879_v47 = vmul.f32 %v1153_v45, %v652_v33  ;;  %vm884_vm12 = vweird.f32 %v1153_v45 }
 0x10b   : > { %vm885_vm14 = vmor %vm883_vm13, %vm884_vm12 }
 0x10c   : > { %v826_v49 = vsel %vm825_vm9, %v1151_v5, %v822_v46  ;;  %v880_v50 = vsub.f32 1.0, %v879_v47 }
 0x10d   : > { %v831_v41 = vsel %vm828_vm11, %v830_v21, %v826_v49 }
 0x10e   : > { %v904_v42 = vsel %vm588_vm6, %v1549_v0, %v831_v41  ;;  %v881_v29 = vmul.f32 %v1153_v45, %v880_v50 }
 0x10f   : > { %921 = vst.msk [vmem:[%s1426_s9 + $0x58] sm:$0xff] %vm909_vm10, %v904_v42 }
 0x110   : > { %v882_v54 = vadd.f32 %v1153_v45, %v881_v29 }
 0x112   : > { %v886_v56 = vsel %vm885_vm14, %v1153_v45, %v882_v54 }
 0x113   : > { %v891_v51 = vsel %vm888_vm15, %v890_v55, %v886_v56 }
 0x114   : > { %v908_v48 = vsel %vm588_vm6, %v1568_v10, %v891_v51 }
 0x115   : > { %925 = vst.msk [vmem:[%s1426_s9 + $0x78] sm:$0xff] %vm909_vm10, %v908_v48 }
 0x116 PF: > { %s19_s27 = sadd.s32 1, %s1160_s27  }
 0x117   : > { %p16_p4 = scmp.ge.s32.totalorder %s19_s27, 6  }
 0x119   :  { %18 = sbr.rel (!%p16_p4) target bundleno = 1 (0x1), region = 90 }

// kernel: featextnet_forward.51
= control target key start
LH: loop header
LB: loop body
LE: loop exit
PB: predicated region body
PF: predicated region fallthrough
CT: control target
= control target key end

     0   :  { %s1041_s12 = smov 0   ;;  %s1267_s0 = inlined_call_operand.vmem [shape: bf16[512,300], index: 0, kind: input, shape index: {}]   ;;  %s1268_s1 = inlined_call_operand.vmem [shape: bf16[300,24], index: 1, kind: input, shape index: {}]   ;;  %s1269_s2 = inlined_call_operand.vmem [shape: f32[1,24], index: 2, kind: input, shape index: {}]   ;;  %s1270_s3 = inlined_call_operand.vmem [shape: bf16[512,24], index: 3, kind: output, shape index: {}]  }
   0x1 LB: > { %s750_s13 = sadd.s32 4294967295, %s1019_s12   ;;  %p754_p0 = scmp.ge.s32.totalorder %s1019_s12, 1  ;;  %s1019_s12 = sphi %s1041_s12, %s13_s12  }
   0x2   : > { %p139_p1 = scmp.lt.s32.totalorder %s1019_s12, 5 }
   0x4   : > { %p140_p2 = pnand %p754_p0, %p139_p1 }
   0x5   : > { %s755_s20 = sshll.u32 (!%p140_p2), %s750_s13, 4 }
   0x6   : > { %143 = sbr.rel (%p140_p2) target bundleno = 267 (0x10b), region = 32  ;;  %p165_p3 = scmp.lt.s32.totalorder (!%p140_p2), %s755_s20, 63 }
   0xb   : > { %v972_v0 = vld [vmem:[%s1268_s1 + $0x38] sm:$0xff]  ;;  %v929_v2 = vld [vmem:[%s1268_s1 + $0x90] sm:$0xf]  ;;  %v983_v3 = vld [vmem:[%s1268_s1 + $0x90] sm:$0x30]  ;;  %vm510_vm0 = vcmask 1045504  }
   0xc   : > { %v1055_v1 = vld [vmem:[%s1268_s1 + $0x78] sm:$0xff]  ;;  %514 = vmatpush.bf16.msra.mxu0 %v972_v0  ;;  %984 = vmatpush.bf16.msra.mxu3 %v972_v0  ;;  %v930_v4 = vor.u32 %v983_v3, %v929_v2  ;;  %v971_v5 = vld [vmem:[%s1268_s1 + $0x30] sm:$0xff]  ;;  %s1272_s20 = smov (!%p165_p3, %s755_s20), 63  ;;  %v1080_v8 = vld [vmem:[%s1268_s1 + $0x88] sm:$0xff]  ;;  %vm485_vm1 = vcmask 359424   ;;  %vm677_vm2 = vcmask 191488  }
   0xd   : > { %563 = vmatpush.bf16.msra.mxu1 %v1055_v1  ;;  %v1070_v6 = vld [vmem:[%s1268_s1 + $0x70] sm:$0xff]  ;;  %s1003_s29 = smul.u32 12, %s1272_s20  ;;  %v970_v9 = vld [vmem:[%s1268_s1 + $0x28] sm:$0xff]  ;;  %v1099_v11 = vld [vmem:[%s1268_s1 + $0x80] sm:$0xff]  ;;  %s758_s10 = sshll.u32 %s1272_s20, 2 }
   0xe   : > { %v1074_v7 = vsel %vm510_vm0, %v930_v4, 0  ;;  %v978_v10 = vld [vmem:[%s1268_s1 + $0x68] sm:$0xff]  ;;  %v969_v14 = vld [vmem:[%s1268_s1 + $0x20] sm:$0xff]  ;;  %v968_v17 = vld [vmem:[%s1268_s1 + $0x18] sm:$0xff]  ;;  %s1203_s13 = scalar_lea.vmem %s1270_s3, %s758_s10 }
   0xf   : > { %617 = vmatpush.bf16.msra.mxu2 %v1074_v7  ;;  %s1093_s9 = scalar_lea.vmem %s1267_s0, %s1003_s29  ;;  %v977_v15 = vld [vmem:[%s1268_s1 + $0x60] sm:$0xff]  ;;  %v976_v18 = vld [vmem:[%s1268_s1 + $0x58] sm:$0xff]  ;;  %v967_v19 = vld [vmem:[%s1268_s1 + $0x10] sm:$0xff] }
  0x10   : > { %515 = vmatpush.bf16.msra.mxu0 %v971_v5  ;;  %985 = vmatpush.bf16.msra.mxu3 %v971_v5  ;;  %v769_v12 = vld [vmem:[%s1093_s9 + $0x8] sm:$0xf]  ;;  %v943_v13 = vld [vmem:[%s1093_s9 + $0x10] sm:$0xf0]  ;;  %v965_v23 = vld [vmem:[%s1268_s1] sm:$0xff] }
  0x11   : > { %564 = vmatpush.bf16.msra.mxu1 %v1070_v6  ;;  %v770_v16 = vor.u32 %v943_v13, %v769_v12  ;;  %v975_v20 = vld [vmem:[%s1268_s1 + $0x50] sm:$0xff]  ;;  %v966_v21 = vld [vmem:[%s1268_s1 + $0x8] sm:$0xff]  ;;  %v781_v24 = vld [vmem:[%s1093_s9 + $0x20] sm:$0xf] }
  0x12   : > { %v974_v22 = vld [vmem:[%s1268_s1 + $0x48] sm:$0xff]  ;;  %v761_v26 = vld [vmem:[%s1093_s9] sm:$0xf]  ;;  %v833_v28 = vld [vmem:[%s1093_s9 + $0x90] sm:$0xf] }
  0x13   : > { %618 = vmatpush.bf16.msra.mxu2 %v1080_v8  ;;  %v946_v25 = vld [vmem:[%s1093_s9 + $0x28] sm:$0xf0]  ;;  %v960_v29 = vld [vmem:[%s1093_s9 + $0x98] sm:$0xf0]  ;;  %v973_v30 = vld [vmem:[%s1268_s1 + $0x40] sm:$0xff] }
  0x14   : > { %516 = vmatpush.bf16.msra.mxu0 %v970_v9  ;;  %986 = vmatpush.bf16.msra.mxu3 %v970_v9  ;;  %v942_v27 = vld [vmem:[%s1093_s9 + $0x8] sm:$0xf0]  ;;  %v941_v31 = vld [vmem:[%s1093_s9 + $0x4] sm:$0xf]  ;;  %v763_v32 = vld [vmem:[%s1093_s9 + $0xc] sm:$0xf0]  ;;  %v782_v33 = vor.u32 %v946_v25, %v781_v24  ;;  %v834_v35 = vor.u32 %v960_v29, %v833_v28 }
  0x15   : > { %565 = vmatpush.bf16.msra.mxu1 %v978_v10  ;;  %v762_v34 = vor.u32 %v942_v27, %v761_v26  ;;  %v766_v36 = vor.u32 %v941_v31, %v763_v32  ;;  %v793_v37 = vld [vmem:[%s1093_s9 + $0x38] sm:$0xf]  ;;  %v949_v38 = vld [vmem:[%s1093_s9 + $0x40] sm:$0xf0]  ;;  %v845_v41 = vld [vmem:[%s1093_s9 + $0xa8] sm:$0xf] }
  0x16   : > { %v773_v39 = vld [vmem:[%s1093_s9 + $0x18] sm:$0xf]  ;;  %v945_v40 = vld [vmem:[%s1093_s9 + $0x20] sm:$0xf0]  ;;  %v963_v42 = vld [vmem:[%s1093_s9 + $0xb0] sm:$0xf0]  ;;  %v794_v45 = vor.u32 %v949_v38, %v793_v37 }
  0x17   : > { %619 = vmatpush.bf16.msra.mxu2 %v1099_v11  ;;  %v944_v43 = vld [vmem:[%s1093_s9 + $0x1c] sm:$0xf]  ;;  %v775_v44 = vld [vmem:[%s1093_s9 + $0x24] sm:$0xf0]  ;;  %v774_v46 = vor.u32 %v945_v40, %v773_v39  ;;  %v846_v47 = vor.u32 %v963_v42, %v845_v41  ;;  %v805_v49 = vld [vmem:[%s1093_s9 + $0x50] sm:$0xf] }
  0x18   : > { %517 = vmatpush.bf16.msra.mxu0 %v969_v14  ;;  %987 = vmatpush.bf16.msra.mxu3 %v969_v14  ;;  %v778_v48 = vor.u32 %v944_v43, %v775_v44  ;;  %v952_v50 = vld [vmem:[%s1093_s9 + $0x58] sm:$0xf0]  ;;  %v785_v51 = vld [vmem:[%s1093_s9 + $0x30] sm:$0xf]  ;;  %v959_v53 = vld [vmem:[%s1093_s9 + $0x94] sm:$0xf] }
  0x19   : > { %566 = vmatpush.bf16.msra.mxu1 %v977_v15  ;;  %v948_v52 = vld [vmem:[%s1093_s9 + $0x38] sm:$0xf0]  ;;  %v835_v54 = vld [vmem:[%s1093_s9 + $0x9c] sm:$0xf0]  ;;  %v947_v55 = vld [vmem:[%s1093_s9 + $0x34] sm:$0xf]  ;;  %v806_v57 = vor.u32 %v952_v50, %v805_v49 }
  0x1a   : > { %931 = vmatmul.msk.bf16.vlgmr.msra.gmra.mxu2 %vm485_vm1, %v770_v16  ;;  %v787_v56 = vld [vmem:[%s1093_s9 + $0x3c] sm:$0xf0]  ;;  %v786_v58 = vor.u32 %v948_v52, %v785_v51  ;;  %v838_v59 = vor.u32 %v959_v53, %v835_v54  ;;  %v817_v61 = vld [vmem:[%s1093_s9 + $0x68] sm:$0xf]  ;;  %v955_v62 = vld [vmem:[%s1093_s9 + $0x70] sm:$0xf0] }
  0x1b   : > { %v790_v60 = vor.u32 %v947_v55, %v787_v56  ;;  %v797_v63 = vld [vmem:[%s1093_s9 + $0x48] sm:$0xf]  ;;  %v951_v0 = vld [vmem:[%s1093_s9 + $0x50] sm:$0xf0]  ;;  %v847_v2 = vld [vmem:[%s1093_s9 + $0xb4] sm:$0xf0]  ;;  %v818_v5 = vor.u32 %v955_v62, %v817_v61 }
  0x1c   : > { %518 = vmatpush.bf16.msra.mxu0 %v968_v17  ;;  %988 = vmatpush.bf16.msra.mxu3 %v968_v17  ;;  %v950_v3 = vld [vmem:[%s1093_s9 + $0x4c] sm:$0xf]  ;;  %v799_v4 = vld [vmem:[%s1093_s9 + $0x54] sm:$0xf0]  ;;  %v829_v9 = vld [vmem:[%s1093_s9 + $0x80] sm:$0xf] }
  0x1d   : > { %567 = vmatpush.bf16.msra.mxu1 %v976_v18  ;;  %v954_v12 = vld [vmem:[%s1093_s9 + $0x68] sm:$0xf0]  ;;  %v853_v13 = vld [vmem:[%s1093_s9 + $0xb0] sm:$0xf]  ;;  %v964_v14 = vld [vmem:[%s1093_s9 + $0xb8] sm:$0xf0] }
  0x1e   : > { %v811_v16 = vld [vmem:[%s1093_s9 + $0x6c] sm:$0xf0]  ;;  %v957_v24 = vld [vmem:[%s1093_s9 + $0x80] sm:$0xf0]  ;;  %v956_v25 = vld [vmem:[%s1093_s9 + $0x7c] sm:$0xf] }
  0x1f   : > { %v823_v26 = vld [vmem:[%s1093_s9 + $0x84] sm:$0xf0]  ;;  %v1196_v32 = vld [vmem:[%s1269_s2] ss:$0 sm:$0xff] }
  0x20   : > { %519 = vmatpush.bf16.msra.mxu0 %v967_v19  ;;  %989 = vmatpush.bf16.msra.mxu3 %v967_v19  ;;  %v854_v19 = vor.u32 %v964_v14, %v853_v13  ;;  %v826_v29 = vor.u32 %v956_v25, %v823_v26 }
  0x21   : > { %568 = vmatpush.bf16.msra.mxu1 %v975_v20 }
  0x24   : > { %520 = vmatpush.bf16.msra.mxu0 %v966_v21  ;;  %990 = vmatpush.bf16.msra.mxu3 %v966_v21  ;;  %v841_v21 = vld [vmem:[%s1093_s9 + $0x98] sm:$0xf] }
  0x25   : > { %569 = vmatpush.bf16.msra.mxu1 %v974_v22 }
  0x28   : > { %521 = vmatpush.bf16.msra.mxu0 %v965_v23  ;;  %991 = vmatpush.bf16.msra.mxu3 %v965_v23  ;;  %v821_v23 = vld [vmem:[%s1093_s9 + $0x78] sm:$0xf] }
  0x29   : > { %570 = vmatpush.bf16.msra.mxu1 %v973_v30  ;;  %v822_v28 = vor.u32 %v957_v24, %v821_v23 }
  0x2a   : > { %932 = vmatmul.msk.bf16.gmra.mxu2 %vm485_vm1, %v782_v33 }
  0x2b   : > { %522 = vmatmul.bf16.vlgmr.msra.gmra.mxu0 %v762_v34  ;;  %552 = vmatmul.bf16.vlgmr.msra.gmra.mxu3 %v834_v35 }
  0x2c   : > { %992 = vmatpush.bf16.msrb.mxu3 %v1055_v1  ;;  %571 = vmatmul.bf16.vlgmr.msra.gmra.mxu1 %v766_v36  ;;  %v962_v1 = vld [vmem:[%s1093_s9 + $0xac] sm:$0xf] }
  0x30   : > { %993 = vmatpush.bf16.msrb.mxu3 %v1070_v6  ;;  %v798_v6 = vor.u32 %v951_v0, %v797_v63 }
  0x34   : > { %994 = vmatpush.bf16.msrb.mxu3 %v978_v10  ;;  %v958_v10 = vld [vmem:[%s1093_s9 + $0x88] sm:$0xf0] }
  0x35   : > { %v830_v17 = vor.u32 %v958_v10, %v829_v9 }
  0x38   : > { %995 = vmatpush.bf16.msrb.mxu3 %v977_v15  ;;  %v953_v15 = vld [vmem:[%s1093_s9 + $0x64] sm:$0xf] }
  0x3a   : > { %933 = vmatmul.msk.bf16.gmra.mxu2 %vm485_vm1, %v794_v45 }
  0x3b   : > { %527 = vmatmul.bf16.gmra.mxu0 %v774_v46  ;;  %557 = vmatmul.bf16.gmra.mxu3 %v846_v47 }
  0x3c   : > { %996 = vmatpush.bf16.msrb.mxu3 %v976_v18  ;;  %576 = vmatmul.bf16.gmra.mxu1 %v778_v48 }
  0x40   : > { %997 = vmatpush.bf16.msrb.mxu3 %v975_v20  ;;  %v814_v20 = vor.u32 %v953_v15, %v811_v16 }
  0x44   : > { %998 = vmatpush.bf16.msrb.mxu3 %v974_v22  ;;  %v961_v22 = vld [vmem:[%s1093_s9 + $0xa0] sm:$0xf0] }
  0x45   : > { %v842_v27 = vor.u32 %v961_v22, %v841_v21 }
  0x48   : > { %999 = vmatpush.bf16.msrb.mxu3 %v973_v30 }
  0x4a   : > { %934 = vmatmul.msk.bf16.gmra.mxu2 %vm485_vm1, %v806_v57 }
  0x4b   : > { %532 = vmatmul.bf16.gmra.mxu0 %v786_v58  ;;  %601 = vmatmul.bf16.vlgmr.msrb.gmra.mxu3 %v838_v59 }
  0x4c   : > { %1000 = vmatpush.bf16.msra.mxu3 %v1074_v7  ;;  %581 = vmatmul.bf16.gmra.mxu1 %v790_v60  ;;  %v850_v7 = vor.u32 %v962_v1, %v847_v2 }
  0x50   : > { %1001 = vmatpush.bf16.msra.mxu3 %v1080_v8  ;;  %v802_v8 = vor.u32 %v950_v3, %v799_v4 }
  0x54   : > { %1002 = vmatpush.bf16.msra.mxu3 %v1099_v11  ;;  %v809_v11 = vld [vmem:[%s1093_s9 + $0x60] sm:$0xf] }
  0x55   : > { %v810_v18 = vor.u32 %v954_v12, %v809_v11 }
  0x5a   : > { %935 = vmatmul.msk.bf16.gmra.mxu2 %vm485_vm1, %v818_v5 }
  0x5b   : > { %537 = vmatmul.bf16.gmra.mxu0 %v798_v6  ;;  %606 = vmatmul.bf16.gmra.mxu3 %v850_v7 }
  0x5c   : > { %586 = vmatmul.bf16.gmra.mxu1 %v802_v8 }
  0x6a   : > { %936 = vmatmul.msk.bf16.gmra.mxu2 %vm485_vm1, %v830_v17 }
  0x6b   : > { %542 = vmatmul.bf16.gmra.mxu0 %v810_v18  ;;  %938 = vmatmul.msk.bf16.vlgmr.msra.gmra.mxu3 %vm485_vm1, %v854_v19 }
  0x6c   : > { %591 = vmatmul.bf16.gmra.mxu1 %v814_v20 }
  0x7a   : > { %937 = vmatmul.msk.bf16.gmra.mxu2 %vm485_vm1, %v842_v27 }
  0x7b   : > { %547 = vmatmul.bf16.gmra.mxu0 %v822_v28 }
  0x7c   : > { %596 = vmatmul.bf16.gmra.mxu1 %v826_v29 }
  0x9d   : > { %v621_v30 = vpop.f32.mrf.mxu2 }
  0xa5   : > { %v623_v31 = vpop.f32.mrf.mxu2 }
  0xa8   : > { %v523_v33 = vpop.f32.mrf.mxu0 }
  0xa9   : > { %v524_v34 = vadd.f32 %v1196_v32, %v523_v33  ;;  %v572_v35 = vpop.f32.mrf.mxu1 }
  0xab   : > { %v573_v36 = vadd.f32 %v572_v35, %v524_v34 }
  0xad   : > { %v622_v37 = vadd.f32 %v621_v30, %v573_v36  ;;  %v626_v38 = vpop.f32.mrf.mxu2 }
  0xae   : > { %v1205_v39 = vpop.f32.mrf.mxu3 }
  0xaf   : > { %v661_v40 = vpack.c.bf16 %v622_v37, %v622_v37 }
  0xb0   : > { %v525_v41 = vpop.f32.mrf.mxu0 }
  0xb1   : > { %678 = vst.msk [vmem:[%s1203_s13] sm:$0xf] %vm677_vm2, %v661_v40  ;;  %v526_v42 = vadd.f32 %v1196_v32, %v525_v41  ;;  %v574_v43 = vpop.f32.mrf.mxu1 }
  0xb3   : > { %v575_v44 = vadd.f32 %v574_v43, %v526_v42 }
  0xb5   : > { %v624_v45 = vadd.f32 %v623_v31, %v575_v44  ;;  %v628_v46 = vpop.f32.mrf.mxu2 }
  0xb6   : > { %v1210_v47 = vpop.f32.mrf.mxu3 }
  0xb7   : > { %v662_v48 = vpack.c.bf16 %v624_v45, %v624_v45 }
  0xb8   : > { %v528_v49 = vpop.f32.mrf.mxu0 }
  0xb9   : > { %679 = vst.msk [vmem:[%s1203_s13 + $0x4] sm:$0xf] %vm677_vm2, %v662_v48  ;;  %v529_v50 = vadd.f32 %v1196_v32, %v528_v49  ;;  %v577_v51 = vpop.f32.mrf.mxu1 }
  0xbb   : > { %v578_v52 = vadd.f32 %v577_v51, %v529_v50 }
  0xbd   : > { %v627_v53 = vadd.f32 %v626_v38, %v578_v52  ;;  %v631_v54 = vpop.f32.mrf.mxu2 }
  0xbe   : > { %v558_v55 = vpop.f32.mrf.mxu3 }
  0xbf   : > { %v663_v56 = vpack.c.bf16 %v627_v53, %v627_v53  ;;  %v559_v37 = vadd.f32 %v1196_v32, %v558_v55 }
  0xc0   : > { %v530_v57 = vpop.f32.mrf.mxu0 }
  0xc1   : > { %680 = vst.msk [vmem:[%s1203_s13 + $0x8] sm:$0xf] %vm677_vm2, %v663_v56  ;;  %v531_v58 = vadd.f32 %v1196_v32, %v530_v57  ;;  %v579_v59 = vpop.f32.mrf.mxu1 }
  0xc3   : > { %v580_v60 = vadd.f32 %v579_v59, %v531_v58 }
  0xc5   : > { %v629_v61 = vadd.f32 %v628_v46, %v580_v60  ;;  %v633_v62 = vpop.f32.mrf.mxu2 }
  0xc6   : > { %v560_v63 = vpop.f32.mrf.mxu3 }
  0xc7   : > { %v664_v0 = vpack.c.bf16 %v629_v61, %v629_v61  ;;  %v561_v51 = vadd.f32 %v1196_v32, %v560_v63  ;;  %v554_v63 = vadd.f32 %v1196_v32, %v1205_v39  ;;  %v556_v39 = vadd.f32 %v1196_v32, %v1210_v47 }
  0xc8   : > { %v533_v1 = vpop.f32.mrf.mxu0 }
  0xc9   : > { %681 = vst.msk [vmem:[%s1203_s13 + $0xc] sm:$0xf] %vm677_vm2, %v664_v0  ;;  %v534_v2 = vadd.f32 %v1196_v32, %v533_v1  ;;  %v582_v3 = vpop.f32.mrf.mxu1 }
  0xcb   : > { %v583_v4 = vadd.f32 %v582_v3, %v534_v2 }
  0xcd   : > { %v632_v5 = vadd.f32 %v631_v54, %v583_v4  ;;  %v636_v6 = vpop.f32.mrf.mxu2 }
  0xce   : > { %v1221_v7 = vpop.f32.mrf.mxu3 }
  0xcf   : > { %v665_v8 = vpack.c.bf16 %v632_v5, %v632_v5  ;;  %v603_v1 = vadd.f32 %v1221_v7, %v554_v63 }
  0xd0   : > { %v535_v9 = vpop.f32.mrf.mxu0 }
  0xd1   : > { %682 = vst.msk [vmem:[%s1203_s13 + $0x10] sm:$0xf] %vm677_vm2, %v665_v8  ;;  %v536_v10 = vadd.f32 %v1196_v32, %v535_v9  ;;  %v584_v11 = vpop.f32.mrf.mxu1 }
  0xd3   : > { %v585_v12 = vadd.f32 %v584_v11, %v536_v10 }
  0xd5   : > { %v634_v13 = vadd.f32 %v633_v62, %v585_v12  ;;  %v638_v14 = vpop.f32.mrf.mxu2 }
  0xd6   : > { %v1226_v15 = vpop.f32.mrf.mxu3 }
  0xd7   : > { %v666_v16 = vpack.c.bf16 %v634_v13, %v634_v13  ;;  %v605_v7 = vadd.f32 %v1226_v15, %v556_v39 }
  0xd8   : > { %v538_v17 = vpop.f32.mrf.mxu0 }
  0xd9   : > { %683 = vst.msk [vmem:[%s1203_s13 + $0x14] sm:$0xf] %vm677_vm2, %v666_v16  ;;  %v539_v18 = vadd.f32 %v1196_v32, %v538_v17  ;;  %v587_v19 = vpop.f32.mrf.mxu1 }
  0xdb   : > { %v588_v20 = vadd.f32 %v587_v19, %v539_v18 }
  0xdd   : > { %v637_v21 = vadd.f32 %v636_v6, %v588_v20  ;;  %v641_v22 = vpop.f32.mrf.mxu2 }
  0xde   : > { %v607_v23 = vpop.f32.mrf.mxu3 }
  0xdf   : > { %v667_v24 = vpack.c.bf16 %v637_v21, %v637_v21  ;;  %v608_v40 = vadd.f32 %v607_v23, %v559_v37 }
  0xe0   : > { %v540_v25 = vpop.f32.mrf.mxu0 }
  0xe1   : > { %684 = vst.msk [vmem:[%s1203_s13 + $0x18] sm:$0xf] %vm677_vm2, %v667_v24  ;;  %v541_v26 = vadd.f32 %v1196_v32, %v540_v25  ;;  %v589_v27 = vpop.f32.mrf.mxu1 }
  0xe3   : > { %v590_v28 = vadd.f32 %v589_v27, %v541_v26 }
  0xe5   : > { %v639_v29 = vadd.f32 %v638_v14, %v590_v28  ;;  %v643_v30 = vpop.f32.mrf.mxu2 }
  0xe6   : > { %v609_v31 = vpop.f32.mrf.mxu3 }
  0xe7   : > { %v668_v33 = vpack.c.bf16 %v639_v29, %v639_v29  ;;  %v610_v53 = vadd.f32 %v609_v31, %v561_v51 }
  0xe8   : > { %v543_v34 = vpop.f32.mrf.mxu0 }
  0xe9   : > { %685 = vst.msk [vmem:[%s1203_s13 + $0x1c] sm:$0xf] %vm677_vm2, %v668_v33  ;;  %v544_v35 = vadd.f32 %v1196_v32, %v543_v34  ;;  %v592_v36 = vpop.f32.mrf.mxu1 }
  0xeb   : > { %v593_v38 = vadd.f32 %v592_v36, %v544_v35 }
  0xed   : > { %v642_v41 = vadd.f32 %v641_v22, %v593_v38  ;;  %v646_v42 = vpop.f32.mrf.mxu2 }
  0xee   : > { %v656_v43 = vpop.f32.mrf.mxu3 }
  0xef   : > { %v669_v44 = vpack.c.bf16 %v642_v41, %v642_v41  ;;  %v657_v45 = vadd.f32 %v656_v43, %v608_v40 }
  0xf0   : > { %v545_v46 = vpop.f32.mrf.mxu0 }
  0xf1   : > { %686 = vst.msk [vmem:[%s1203_s13 + $0x20] sm:$0xf] %vm677_vm2, %v669_v44  ;;  %v675_v48 = vpack.c.bf16 %v657_v45, %v657_v45  ;;  %v546_v49 = vadd.f32 %v1196_v32, %v545_v46  ;;  %v594_v50 = vpop.f32.mrf.mxu1 }
  0xf3   : > { %692 = vst.msk [vmem:[%s1203_s13 + $0x38] sm:$0xf] %vm677_vm2, %v675_v48  ;;  %v595_v52 = vadd.f32 %v594_v50, %v546_v49 }
  0xf5   : > { %v644_v54 = vadd.f32 %v643_v30, %v595_v52  ;;  %v648_v55 = vpop.f32.mrf.mxu2 }
  0xf6   : > { %v658_v56 = vpop.f32.mrf.mxu3 }
  0xf7   : > { %v670_v57 = vpack.c.bf16 %v644_v54, %v644_v54  ;;  %v659_v58 = vadd.f32 %v658_v56, %v610_v53 }
  0xf8   : > { %v548_v59 = vpop.f32.mrf.mxu0 }
  0xf9   : > { %687 = vst.msk [vmem:[%s1203_s13 + $0x24] sm:$0xf] %vm677_vm2, %v670_v57  ;;  %v676_v60 = vpack.c.bf16 %v659_v58, %v659_v58  ;;  %v549_v61 = vadd.f32 %v1196_v32, %v548_v59  ;;  %v597_v62 = vpop.f32.mrf.mxu1 }
  0xfb   : > { %693 = vst.msk [vmem:[%s1203_s13 + $0x3c] sm:$0xf] %vm677_vm2, %v676_v60  ;;  %v598_v0 = vadd.f32 %v597_v62, %v549_v61 }
  0xfd   : > { %v647_v2 = vadd.f32 %v646_v42, %v598_v0  ;;  %v651_v3 = vpop.f32.mrf.mxu2 }
  0xfe   : > { %v652_v4 = vadd.f32 %v651_v3, %v603_v1 }
  0xff   : > { %v671_v5 = vpack.c.bf16 %v647_v2, %v647_v2 }
 0x100   : > { %v673_v6 = vpack.c.bf16 %v652_v4, %v652_v4  ;;  %v550_v8 = vpop.f32.mrf.mxu0 }
 0x101   : > { %688 = vst.msk [vmem:[%s1203_s13 + $0x28] sm:$0xf] %vm677_vm2, %v671_v5  ;;  %v551_v9 = vadd.f32 %v1196_v32, %v550_v8  ;;  %v599_v10 = vpop.f32.mrf.mxu1 }
 0x102   : > { %690 = vst.msk [vmem:[%s1203_s13 + $0x30] sm:$0xf] %vm677_vm2, %v673_v6 }
 0x103   : > { %v600_v11 = vadd.f32 %v599_v10, %v551_v9 }
 0x105   : > { %v649_v12 = vadd.f32 %v648_v55, %v600_v11  ;;  %v653_v13 = vpop.f32.mrf.mxu2 }
 0x106   : > { %v654_v14 = vadd.f32 %v653_v13, %v605_v7 }
 0x107   : > { %v672_v16 = vpack.c.bf16 %v649_v12, %v649_v12 }
 0x108   : > { %v674_v17 = vpack.c.bf16 %v654_v14, %v654_v14 }
 0x109   : > { %689 = vst.msk [vmem:[%s1203_s13 + $0x2c] sm:$0xf] %vm677_vm2, %v672_v16 }
 0x10a   : > { %691 = vst.msk [vmem:[%s1203_s13 + $0x34] sm:$0xf] %vm677_vm2, %v674_v17 }
 0x10b PF: > { %s13_s12 = sadd.s32 1, %s1019_s12  }
 0x10c   : > { %p10_p4 = scmp.ge.s32.totalorder %s13_s12, 6  }
 0x10e   :  { %12 = sbr.rel (!%p10_p4) target bundleno = 1 (0x1), region = 62 }

// kernel: featextnet_forward.52
= control target key start
LH: loop header
LB: loop body
LE: loop exit
PB: predicated region body
PF: predicated region fallthrough
CT: control target
= control target key end

     0   :  { %s1559_s12 = smov 0   ;;  %s1875_s0 = inlined_call_operand.vmem [shape: bf16[512,600], index: 0, kind: input, shape index: {}]   ;;  %s1876_s1 = inlined_call_operand.vmem [shape: bf16[600,12], index: 1, kind: input, shape index: {}]   ;;  %s1877_s2 = inlined_call_operand.vmem [shape: f32[1,12], index: 2, kind: input, shape index: {}]   ;;  %s1878_s3 = inlined_call_operand.vmem [shape: bf16[512,12], index: 3, kind: output, shape index: {}]  }
   0x1 LB: > { %s1093_s13 = sadd.s32 4294967295, %s1537_s12   ;;  %p1097_p0 = scmp.ge.s32.totalorder %s1537_s12, 1  ;;  %s1537_s12 = sphi %s1559_s12, %s13_s12  }
   0x2   : > { %p139_p1 = scmp.lt.s32.totalorder %s1537_s12, 5 }
   0x4   : > { %p140_p2 = pnand %p1097_p0, %p139_p1 }
   0x5   : > { %s1098_s20 = sshll.u32 (!%p140_p2), %s1093_s13, 4 }
   0x6   : > { %143 = sbr.rel (%p140_p2) target bundleno = 336 (0x150), region = 32  ;;  %p165_p3 = scmp.lt.s32.totalorder (!%p140_p2), %s1098_s20, 63 }
   0xb   : > { %v1467_v0 = vld [vmem:[%s1876_s1 + $0x38] sm:$0xff]  ;;  %v1466_v1 = vld [vmem:[%s1876_s1 + $0x30] sm:$0xff]  ;;  %v1465_v2 = vld [vmem:[%s1876_s1 + $0x28] sm:$0xff]  ;;  %s1880_s20 = smov (!%p165_p3, %s1098_s20), 63  ;;  %vm755_vm0 = vcmask 1043456   ;;  %vm730_vm1 = vcmask 719872  }
   0xc   : > { %1497 = vmatpush.bf16.msra.mxu1 %v1467_v0  ;;  %1498 = vmatpush.bf16.msra.mxu2 %v1467_v0  ;;  %v1464_v3 = vld [vmem:[%s1876_s1 + $0x20] sm:$0xff]  ;;  %v1463_v4 = vld [vmem:[%s1876_s1 + $0x18] sm:$0xff]  ;;  %v1462_v5 = vld [vmem:[%s1876_s1 + $0x10] sm:$0xff]  ;;  %s1521_s27 = smul.u32 20, %s1880_s20  ;;  %vm1020_vm2 = vcmask 93184  }
   0xd   : > { %1499 = vmatpush.bf16.msra.mxu3 %v1467_v0  ;;  %759 = vmatpush.bf16.msra.mxu0 %v1467_v0  ;;  %v300_v6 = vld [vmem:[%s1876_s1 + $0x128] sm:$0xf]  ;;  %v1460_v9 = vld [vmem:[%s1876_s1] sm:$0xff]  ;;  %v1483_v18 = vld [vmem:[%s1876_s1 + $0xb8] sm:$0xff] }
   0xe   : > { %v1461_v7 = vld [vmem:[%s1876_s1 + $0x8] sm:$0xff]  ;;  %s1597_s7 = scalar_lea.vmem %s1875_s0, %s1521_s27  ;;  %v654_v8 = vunpack.c.l.b16 %v300_v6  ;;  %v1475_v19 = vld [vmem:[%s1876_s1 + $0x78] sm:$0xff]  ;;  %v1482_v26 = vld [vmem:[%s1876_s1 + $0xb0] sm:$0xff] }
   0xf   : > { %v1144_v10 = vld [vmem:[%s1597_s7 + $0x50] sm:$0xf]  ;;  %v1432_v11 = vld [vmem:[%s1597_s7 + $0x60] sm:$0xf0]  ;;  %v1184_v12 = vld [vmem:[%s1597_s7 + $0xa0] sm:$0xf] }
  0x10   : > { %1500 = vmatpush.bf16.msra.mxu1 %v1466_v1  ;;  %1501 = vmatpush.bf16.msra.mxu2 %v1466_v1  ;;  %v1442_v13 = vld [vmem:[%s1597_s7 + $0xb0] sm:$0xf0]  ;;  %v1224_v14 = vld [vmem:[%s1597_s7 + $0xf0] sm:$0xf]  ;;  %v1452_v15 = vld [vmem:[%s1597_s7 + $0x100] sm:$0xf0]  ;;  %v692_v20 = vpack.c.b16 %v654_v8, %v654_v8  ;;  %v1145_v21 = vor.u32 %v1432_v11, %v1144_v10 }
  0x11   : > { %1502 = vmatpush.bf16.msra.mxu3 %v1466_v1  ;;  %760 = vmatpush.bf16.msra.mxu0 %v1466_v1  ;;  %v1104_v16 = vld [vmem:[%s1597_s7] sm:$0xf]  ;;  %v1422_v17 = vld [vmem:[%s1597_s7 + $0x10] sm:$0xf0]  ;;  %v1185_v22 = vor.u32 %v1442_v13, %v1184_v12  ;;  %v1225_v23 = vor.u32 %v1452_v15, %v1224_v14  ;;  %v1491_v25 = vld [vmem:[%s1876_s1 + $0xf8] sm:$0xff] }
  0x12   : > { %v1105_v24 = vor.u32 %v1422_v17, %v1104_v16  ;;  %v1474_v27 = vld [vmem:[%s1876_s1 + $0x70] sm:$0xff]  ;;  %v757_v28 = vsel %vm755_vm0, %v692_v20, 0  ;;  %v1496_v30 = vld [vmem:[%s1876_s1 + $0x120] sm:$0xff]  ;;  %v1481_v31 = vld [vmem:[%s1876_s1 + $0xa8] sm:$0xff] }
  0x13   : > { %v1490_v29 = vld [vmem:[%s1876_s1 + $0xf0] sm:$0xff]  ;;  %v1473_v32 = vld [vmem:[%s1876_s1 + $0x68] sm:$0xff]  ;;  %v1495_v34 = vld [vmem:[%s1876_s1 + $0x118] sm:$0xff] }
  0x14   : > { %1503 = vmatpush.bf16.msra.mxu1 %v1465_v2  ;;  %1504 = vmatpush.bf16.msra.mxu2 %v1465_v2  ;;  %v1489_v33 = vld [vmem:[%s1876_s1 + $0xe8] sm:$0xff]  ;;  %v1480_v35 = vld [vmem:[%s1876_s1 + $0xa0] sm:$0xff]  ;;  %v1164_v38 = vld [vmem:[%s1597_s7 + $0x78] sm:$0xf] }
  0x15   : > { %1505 = vmatpush.bf16.msra.mxu3 %v1465_v2  ;;  %761 = vmatpush.bf16.msra.mxu0 %v1465_v2  ;;  %v1472_v36 = vld [vmem:[%s1876_s1 + $0x60] sm:$0xff]  ;;  %v1437_v39 = vld [vmem:[%s1597_s7 + $0x88] sm:$0xf0]  ;;  %v1204_v40 = vld [vmem:[%s1597_s7 + $0xc8] sm:$0xf] }
  0x16   : > { %v1488_v37 = vld [vmem:[%s1876_s1 + $0xe0] sm:$0xff]  ;;  %v1447_v41 = vld [vmem:[%s1597_s7 + $0xd8] sm:$0xf0]  ;;  %v1244_v42 = vld [vmem:[%s1597_s7 + $0x118] sm:$0xf]  ;;  %v1165_v49 = vor.u32 %v1437_v39, %v1164_v38 }
  0x17   : > { %v1457_v43 = vld [vmem:[%s1597_s7 + $0x128] sm:$0xf0]  ;;  %v1124_v44 = vld [vmem:[%s1597_s7 + $0x28] sm:$0xf]  ;;  %v1427_v45 = vld [vmem:[%s1597_s7 + $0x38] sm:$0xf0]  ;;  %v1205_v50 = vor.u32 %v1447_v41, %v1204_v40 }
  0x18   : > { %1506 = vmatpush.bf16.msra.mxu1 %v1464_v3  ;;  %1507 = vmatpush.bf16.msra.mxu2 %v1464_v3  ;;  %v1494_v46 = vld [vmem:[%s1876_s1 + $0x110] sm:$0xff]  ;;  %v1479_v47 = vld [vmem:[%s1876_s1 + $0x98] sm:$0xff]  ;;  %v1245_v51 = vor.u32 %v1457_v43, %v1244_v42  ;;  %v1125_v52 = vor.u32 %v1427_v45, %v1124_v44  ;;  %v1493_v54 = vld [vmem:[%s1876_s1 + $0x108] sm:$0xff] }
  0x19   : > { %1508 = vmatpush.bf16.msra.mxu3 %v1464_v3  ;;  %762 = vmatpush.bf16.msra.mxu0 %v1464_v3  ;;  %v1471_v48 = vld [vmem:[%s1876_s1 + $0x58] sm:$0xff]  ;;  %v1478_v55 = vld [vmem:[%s1876_s1 + $0x90] sm:$0xff]  ;;  %v1492_v58 = vld [vmem:[%s1876_s1 + $0x100] sm:$0xff] }
  0x1a   : > { %v1487_v53 = vld [vmem:[%s1876_s1 + $0xd8] sm:$0xff]  ;;  %v1470_v56 = vld [vmem:[%s1876_s1 + $0x50] sm:$0xff]  ;;  %v1477_v59 = vld [vmem:[%s1876_s1 + $0x88] sm:$0xff] }
  0x1b   : > { %v1486_v57 = vld [vmem:[%s1876_s1 + $0xd0] sm:$0xff]  ;;  %v1469_v60 = vld [vmem:[%s1876_s1 + $0x48] sm:$0xff]  ;;  %v1476_v62 = vld [vmem:[%s1876_s1 + $0x80] sm:$0xff] }
  0x1c   : > { %1509 = vmatpush.bf16.msra.mxu1 %v1463_v4  ;;  %1510 = vmatpush.bf16.msra.mxu2 %v1463_v4  ;;  %v1485_v61 = vld [vmem:[%s1876_s1 + $0xc8] sm:$0xff]  ;;  %v1468_v63 = vld [vmem:[%s1876_s1 + $0x40] sm:$0xff]  ;;  %v1106_v2 = vld [vmem:[%s1597_s7 + $0x14] sm:$0xf0] }
  0x1d   : > { %1511 = vmatpush.bf16.msra.mxu3 %v1463_v4  ;;  %763 = vmatpush.bf16.msra.mxu0 %v1463_v4  ;;  %v1484_v0 = vld [vmem:[%s1876_s1 + $0xc0] sm:$0xff]  ;;  %v1112_v3 = vld [vmem:[%s1597_s7 + $0x8] sm:$0xf]  ;;  %v1423_v4 = vld [vmem:[%s1597_s7 + $0x18] sm:$0xf0] }
  0x1e   : > { %v1420_v1 = vld [vmem:[%s1597_s7 + $0x4] sm:$0xf]  ;;  %v1114_v6 = vld [vmem:[%s1597_s7 + $0x1c] sm:$0xf0]  ;;  %v1113_v10 = vor.u32 %v1423_v4, %v1112_v3  ;;  %v1425_v13 = vld [vmem:[%s1597_s7 + $0x2c] sm:$0xf] }
  0x1f   : > { %v1424_v8 = vld [vmem:[%s1597_s7 + $0x20] sm:$0xf0]  ;;  %v1126_v14 = vld [vmem:[%s1597_s7 + $0x3c] sm:$0xf0]  ;;  %v1132_v15 = vld [vmem:[%s1597_s7 + $0x30] sm:$0xf] }
  0x20   : > { %1512 = vmatpush.bf16.msra.mxu1 %v1462_v5  ;;  %1513 = vmatpush.bf16.msra.mxu2 %v1462_v5  ;;  %v1428_v16 = vld [vmem:[%s1597_s7 + $0x40] sm:$0xf0]  ;;  %v1426_v17 = vld [vmem:[%s1597_s7 + $0x34] sm:$0xf]  ;;  %v1429_v20 = vld [vmem:[%s1597_s7 + $0x48] sm:$0xf0] }
  0x21   : > { %1514 = vmatpush.bf16.msra.mxu3 %v1462_v5  ;;  %764 = vmatpush.bf16.msra.mxu0 %v1462_v5  ;;  %v1421_v5 = vld [vmem:[%s1597_s7 + $0xc] sm:$0xf]  ;;  %v1166_v38 = vld [vmem:[%s1597_s7 + $0x8c] sm:$0xf0]  ;;  %v1172_v39 = vld [vmem:[%s1597_s7 + $0x80] sm:$0xf] }
  0x22   : > { %v1117_v11 = vor.u32 %v1421_v5, %v1114_v6  ;;  %v1438_v40 = vld [vmem:[%s1597_s7 + $0x90] sm:$0xf0]  ;;  %v1436_v41 = vld [vmem:[%s1597_s7 + $0x84] sm:$0xf]  ;;  %v1174_v42 = vld [vmem:[%s1597_s7 + $0x94] sm:$0xf0] }
  0x23   : > { %v1180_v43 = vld [vmem:[%s1597_s7 + $0x88] sm:$0xf]  ;;  %v1439_v44 = vld [vmem:[%s1597_s7 + $0x98] sm:$0xf0]  ;;  %v1220_v3 = vld [vmem:[%s1597_s7 + $0xd8] sm:$0xf] }
  0x24   : > { %1515 = vmatpush.bf16.msra.mxu1 %v1461_v7  ;;  %1516 = vmatpush.bf16.msra.mxu2 %v1461_v7  ;;  %v1449_v4 = vld [vmem:[%s1597_s7 + $0xe8] sm:$0xf0] }
  0x25   : > { %1517 = vmatpush.bf16.msra.mxu3 %v1461_v7  ;;  %765 = vmatpush.bf16.msra.mxu0 %v1461_v7  ;;  %v1120_v7 = vld [vmem:[%s1597_s7 + $0x10] sm:$0xf] }
  0x26   : > { %v1121_v12 = vor.u32 %v1424_v8, %v1120_v7  ;;  %v1221_v8 = vor.u32 %v1449_v4, %v1220_v3 }
  0x28   : > { %1518 = vmatpush.bf16.msra.mxu1 %v1460_v9  ;;  %1519 = vmatpush.bf16.msra.mxu2 %v1460_v9 }
  0x29   : > { %1520 = vmatpush.bf16.msra.mxu3 %v1460_v9  ;;  %766 = vmatpush.bf16.msra.mxu0 %v1460_v9  ;;  %v1109_v9 = vor.u32 %v1420_v1, %v1106_v2  ;;  %v1446_v1 = vld [vmem:[%s1597_s7 + $0xd4] sm:$0xf]  ;;  %v1214_v2 = vld [vmem:[%s1597_s7 + $0xe4] sm:$0xf0] }
  0x2a   : > { %v1217_v7 = vor.u32 %v1446_v1, %v1214_v2 }
  0x2b   : > { %777 = vmatmul.bf16.vlgmr.msra.gmra.mxu1 %v1145_v21  ;;  %787 = vmatmul.bf16.vlgmr.msra.gmra.mxu2 %v1185_v22  ;;  %v1129_v21 = vor.u32 %v1425_v13, %v1126_v14  ;;  %v1133_v22 = vor.u32 %v1428_v16, %v1132_v15  ;;  %v1451_v13 = vld [vmem:[%s1597_s7 + $0xfc] sm:$0xf]  ;;  %v1234_v14 = vld [vmem:[%s1597_s7 + $0x10c] sm:$0xf0]  ;;  %v1240_v15 = vld [vmem:[%s1597_s7 + $0x100] sm:$0xf] }
  0x2c   : > { %857 = vmatpush.bf16.msrb.mxu2 %v1483_v18  ;;  %808 = vmatpush.bf16.msrb.mxu1 %v1475_v19  ;;  %v1134_v18 = vld [vmem:[%s1597_s7 + $0x44] sm:$0xf0]  ;;  %v1140_v19 = vld [vmem:[%s1597_s7 + $0x38] sm:$0xf]  ;;  %v1454_v16 = vld [vmem:[%s1597_s7 + $0x110] sm:$0xf0] }
  0x2d   : > { %797 = vmatmul.bf16.vlgmr.msra.gmra.mxu3 %v1225_v23  ;;  %767 = vmatmul.bf16.vlgmr.msra.gmra.mxu0 %v1105_v24  ;;  %v1137_v23 = vor.u32 %v1426_v17, %v1134_v18  ;;  %v1141_v24 = vor.u32 %v1429_v20, %v1140_v19  ;;  %v1237_v20 = vor.u32 %v1451_v13, %v1234_v14 }
  0x2e   : > { %906 = vmatpush.bf16.msrb.mxu3 %v1491_v25  ;;  %957 = vmatpush.bf16.msrb.mxu0 %v757_v28  ;;  %v1430_v25 = vld [vmem:[%s1597_s7 + $0x54] sm:$0xf]  ;;  %v1433_v28 = vld [vmem:[%s1597_s7 + $0x68] sm:$0xf0] }
  0x30   : > { %858 = vmatpush.bf16.msrb.mxu2 %v1482_v26  ;;  %809 = vmatpush.bf16.msrb.mxu1 %v1474_v27  ;;  %v1146_v26 = vld [vmem:[%s1597_s7 + $0x64] sm:$0xf0]  ;;  %v1152_v27 = vld [vmem:[%s1597_s7 + $0x58] sm:$0xf] }
  0x32   : > { %907 = vmatpush.bf16.msrb.mxu3 %v1490_v29  ;;  %958 = vmatpush.bf16.msrb.mxu0 %v1496_v30  ;;  %v1431_v29 = vld [vmem:[%s1597_s7 + $0x5c] sm:$0xf]  ;;  %v1154_v30 = vld [vmem:[%s1597_s7 + $0x6c] sm:$0xf0] }
  0x34   : > { %859 = vmatpush.bf16.msrb.mxu2 %v1481_v31  ;;  %810 = vmatpush.bf16.msrb.mxu1 %v1473_v32  ;;  %v1160_v31 = vld [vmem:[%s1597_s7 + $0x60] sm:$0xf]  ;;  %v1434_v32 = vld [vmem:[%s1597_s7 + $0x70] sm:$0xf0] }
  0x36   : > { %908 = vmatpush.bf16.msrb.mxu3 %v1489_v33  ;;  %959 = vmatpush.bf16.msrb.mxu0 %v1495_v34  ;;  %v1149_v33 = vor.u32 %v1430_v25, %v1146_v26  ;;  %v1153_v34 = vor.u32 %v1433_v28, %v1152_v27 }
  0x38   : > { %860 = vmatpush.bf16.msrb.mxu2 %v1480_v35  ;;  %811 = vmatpush.bf16.msrb.mxu1 %v1472_v36  ;;  %v1157_v35 = vor.u32 %v1431_v29, %v1154_v30  ;;  %v1161_v36 = vor.u32 %v1434_v32, %v1160_v31  ;;  %v1455_v30 = vld [vmem:[%s1597_s7 + $0x11c] sm:$0xf]  ;;  %v1246_v31 = vld [vmem:[%s1597_s7 + $0x12c] sm:$0xf0]  ;;  %v1252_v32 = vld [vmem:[%s1597_s7 + $0x120] sm:$0xf] }
  0x3a   : > { %909 = vmatpush.bf16.msrb.mxu3 %v1488_v37  ;;  %960 = vmatpush.bf16.msrb.mxu0 %v1494_v46  ;;  %v1435_v37 = vld [vmem:[%s1597_s7 + $0x7c] sm:$0xf]  ;;  %v1173_v46 = vor.u32 %v1438_v40, %v1172_v39 }
  0x3b   : > { %782 = vmatmul.bf16.gmra.mxu1 %v1165_v49  ;;  %792 = vmatmul.bf16.gmra.mxu2 %v1205_v50  ;;  %v1169_v45 = vor.u32 %v1435_v37, %v1166_v38  ;;  %v1440_v49 = vld [vmem:[%s1597_s7 + $0xa4] sm:$0xf]  ;;  %v1186_v50 = vld [vmem:[%s1597_s7 + $0xb4] sm:$0xf0]  ;;  %v1459_v37 = vld [vmem:[%s1597_s7 + $0x138] sm:$0xf0] }
  0x3c   : > { %861 = vmatpush.bf16.msrb.mxu2 %v1479_v47  ;;  %812 = vmatpush.bf16.msrb.mxu1 %v1471_v48  ;;  %v1177_v47 = vor.u32 %v1436_v41, %v1174_v42  ;;  %v1181_v48 = vor.u32 %v1439_v44, %v1180_v43  ;;  %v1249_v41 = vor.u32 %v1455_v30, %v1246_v31 }
  0x3d   : > { %802 = vmatmul.bf16.gmra.mxu3 %v1245_v51  ;;  %772 = vmatmul.bf16.gmra.mxu0 %v1125_v52  ;;  %v1192_v51 = vld [vmem:[%s1597_s7 + $0xa8] sm:$0xf]  ;;  %v1443_v52 = vld [vmem:[%s1597_s7 + $0xb8] sm:$0xf0] }
  0x3e   : > { %910 = vmatpush.bf16.msrb.mxu3 %v1487_v53  ;;  %961 = vmatpush.bf16.msrb.mxu0 %v1493_v54  ;;  %v1441_v53 = vld [vmem:[%s1597_s7 + $0xac] sm:$0xf]  ;;  %v1194_v54 = vld [vmem:[%s1597_s7 + $0xbc] sm:$0xf0] }
  0x40   : > { %862 = vmatpush.bf16.msrb.mxu2 %v1478_v55  ;;  %813 = vmatpush.bf16.msrb.mxu1 %v1470_v56  ;;  %v1200_v55 = vld [vmem:[%s1597_s7 + $0xb0] sm:$0xf]  ;;  %v1444_v56 = vld [vmem:[%s1597_s7 + $0xc0] sm:$0xf0] }
  0x42   : > { %911 = vmatpush.bf16.msrb.mxu3 %v1486_v57  ;;  %962 = vmatpush.bf16.msrb.mxu0 %v1492_v58  ;;  %v1189_v57 = vor.u32 %v1440_v49, %v1186_v50  ;;  %v1193_v58 = vor.u32 %v1443_v52, %v1192_v51 }
  0x44   : > { %863 = vmatpush.bf16.msrb.mxu2 %v1477_v59  ;;  %814 = vmatpush.bf16.msrb.mxu1 %v1469_v60  ;;  %v1197_v59 = vor.u32 %v1441_v53, %v1194_v54  ;;  %v1201_v60 = vor.u32 %v1444_v56, %v1200_v55 }
  0x46   : > { %912 = vmatpush.bf16.msrb.mxu3 %v1485_v61  ;;  %v1445_v61 = vld [vmem:[%s1597_s7 + $0xcc] sm:$0xf] }
  0x48   : > { %864 = vmatpush.bf16.msrb.mxu2 %v1476_v62  ;;  %815 = vmatpush.bf16.msrb.mxu1 %v1468_v63  ;;  %v1206_v62 = vld [vmem:[%s1597_s7 + $0xdc] sm:$0xf0]  ;;  %v1212_v63 = vld [vmem:[%s1597_s7 + $0xd0] sm:$0xf] }
  0x49   : > { %v1209_v5 = vor.u32 %v1445_v61, %v1206_v62 }
  0x4a   : > { %913 = vmatpush.bf16.msrb.mxu3 %v1484_v0  ;;  %v1448_v0 = vld [vmem:[%s1597_s7 + $0xe0] sm:$0xf0] }
  0x4b   : > { %816 = vmatmul.bf16.vlgmr.msrb.gmra.mxu1 %v1109_v9  ;;  %865 = vmatmul.bf16.vlgmr.msrb.gmra.mxu2 %v1113_v10  ;;  %v1213_v6 = vor.u32 %v1448_v0, %v1212_v63  ;;  %v1450_v9 = vld [vmem:[%s1597_s7 + $0xf4] sm:$0xf]  ;;  %v1226_v10 = vld [vmem:[%s1597_s7 + $0x104] sm:$0xf0] }
  0x4c   : > { %v1229_v17 = vor.u32 %v1450_v9, %v1226_v10 }
  0x4d   : > { %914 = vmatmul.bf16.vlgmr.msrb.gmra.mxu3 %v1117_v11  ;;  %1410 = vmatmul.msk.bf16.vlgmr.msrb.gmra.mxu0 %vm730_vm1, %v1121_v12  ;;  %v1232_v11 = vld [vmem:[%s1597_s7 + $0xf8] sm:$0xf]  ;;  %v1453_v12 = vld [vmem:[%s1597_s7 + $0x108] sm:$0xf0] }
  0x4e   : > { %v1233_v18 = vor.u32 %v1453_v12, %v1232_v11 }
  0x5b   : > { %821 = vmatmul.bf16.gmra.mxu1 %v1129_v21  ;;  %870 = vmatmul.bf16.gmra.mxu2 %v1133_v22  ;;  %v1241_v21 = vor.u32 %v1454_v16, %v1240_v15 }
  0x5d   : > { %919 = vmatmul.bf16.gmra.mxu3 %v1137_v23  ;;  %1411 = vmatmul.msk.bf16.gmra.mxu0 %vm730_vm1, %v1141_v24  ;;  %v1773_v23 = vld [vmem:[%s1877_s2] ss:$0 sm:$0xff] }
  0x6b   : > { %826 = vmatmul.bf16.gmra.mxu1 %v1149_v33  ;;  %875 = vmatmul.bf16.gmra.mxu2 %v1153_v34  ;;  %v1458_v33 = vld [vmem:[%s1597_s7 + $0x130] sm:$0xf0]  ;;  %v1456_v34 = vld [vmem:[%s1597_s7 + $0x124] sm:$0xf] }
  0x6c   : > { %v1253_v42 = vor.u32 %v1458_v33, %v1252_v32 }
  0x6d   : > { %924 = vmatmul.bf16.gmra.mxu3 %v1157_v35  ;;  %1412 = vmatmul.msk.bf16.gmra.mxu0 %vm730_vm1, %v1161_v36  ;;  %v1254_v35 = vld [vmem:[%s1597_s7 + $0x134] sm:$0xf0]  ;;  %v1260_v36 = vld [vmem:[%s1597_s7 + $0x128] sm:$0xf]  ;;  %s1101_s7 = sshll.u32 %s1880_s20, 2 }
  0x6e   : > { %s1820_s26 = scalar_lea.vmem %s1878_s3, %s1101_s7 }
  0x7b   : > { %831 = vmatmul.bf16.gmra.mxu1 %v1169_v45  ;;  %880 = vmatmul.bf16.gmra.mxu2 %v1173_v46  ;;  %v1257_v45 = vor.u32 %v1456_v34, %v1254_v35  ;;  %v1261_v46 = vor.u32 %v1459_v37, %v1260_v36 }
  0x7d   : > { %929 = vmatmul.bf16.gmra.mxu3 %v1177_v47  ;;  %1413 = vmatmul.msk.bf16.gmra.mxu0 %vm730_vm1, %v1181_v48 }
  0x8b   : > { %836 = vmatmul.bf16.gmra.mxu1 %v1189_v57  ;;  %885 = vmatmul.bf16.gmra.mxu2 %v1193_v58 }
  0x8d   : > { %934 = vmatmul.bf16.gmra.mxu3 %v1197_v59  ;;  %1414 = vmatmul.msk.bf16.gmra.mxu0 %vm730_vm1, %v1201_v60 }
  0x9b   : > { %841 = vmatmul.bf16.gmra.mxu1 %v1209_v5  ;;  %890 = vmatmul.bf16.gmra.mxu2 %v1213_v6 }
  0x9d   : > { %939 = vmatmul.bf16.gmra.mxu3 %v1217_v7  ;;  %1415 = vmatmul.msk.bf16.gmra.mxu0 %vm730_vm1, %v1221_v8 }
  0xa8   : > { %v1767_v19 = vpop.f32.mrf.mxu1 }
  0xaa   : > { %v768_v22 = vpop.f32.mrf.mxu0 }
  0xab   : > { %846 = vmatmul.bf16.gmra.mxu1 %v1229_v17  ;;  %895 = vmatmul.bf16.gmra.mxu2 %v1233_v18  ;;  %v769_v60 = vadd.f32 %v1773_v23, %v768_v22 }
  0xad   : > { %944 = vmatmul.bf16.gmra.mxu3 %v1237_v20  ;;  %1416 = vmatmul.msk.bf16.gmra.mxu0 %vm730_vm1, %v1241_v21 }
  0xae   : > { %v788_v24 = vpop.f32.mrf.mxu2 }
  0xaf   : > { %v1776_v25 = vadd.f32 %v1773_v23, %v788_v24 }
  0xb0   : > { %v798_v26 = vpop.f32.mrf.mxu3  ;;  %v1781_v28 = vpop.f32.mrf.mxu1 }
  0xb1   : > { %v1779_v27 = vadd.f32 %v1773_v23, %v798_v26 }
  0xb2   : > { %v770_v29 = vpop.f32.mrf.mxu0 }
  0xb3   : > { %v771_v4 = vadd.f32 %v1773_v23, %v770_v29 }
  0xb6   : > { %v790_v38 = vpop.f32.mrf.mxu2 }
  0xb7   : > { %v1792_v39 = vadd.f32 %v1773_v23, %v790_v38 }
  0xb8   : > { %v800_v40 = vpop.f32.mrf.mxu3  ;;  %v1797_v44 = vpop.f32.mrf.mxu1 }
  0xb9   : > { %v1795_v43 = vadd.f32 %v1773_v23, %v800_v40  ;;  %v779_v40 = vadd.f32 %v1773_v23, %v1767_v19 }
  0xba   : > { %v773_v47 = vpop.f32.mrf.mxu0 }
  0xbb   : > { %851 = vmatmul.bf16.gmra.mxu1 %v1249_v41  ;;  %900 = vmatmul.bf16.gmra.mxu2 %v1253_v42  ;;  %v774_v14 = vadd.f32 %v1773_v23, %v773_v47 }
  0xbd   : > { %949 = vmatmul.bf16.gmra.mxu3 %v1257_v45  ;;  %1417 = vmatmul.msk.bf16.gmra.mxu0 %vm730_vm1, %v1261_v46 }
  0xbe   : > { %v793_v48 = vpop.f32.mrf.mxu2 }
  0xbf   : > { %v1801_v49 = vadd.f32 %v1773_v23, %v793_v48 }
  0xc0   : > { %v803_v50 = vpop.f32.mrf.mxu3  ;;  %v1806_v52 = vpop.f32.mrf.mxu1 }
  0xc1   : > { %v1804_v51 = vadd.f32 %v1773_v23, %v803_v50 }
  0xc2   : > { %v775_v53 = vpop.f32.mrf.mxu0 }
  0xc3   : > { %v776_v29 = vadd.f32 %v1773_v23, %v775_v53 }
  0xc6   : > { %v795_v54 = vpop.f32.mrf.mxu2 }
  0xc7   : > { %v1809_v55 = vadd.f32 %v1773_v23, %v795_v54 }
  0xc8   : > { %v805_v56 = vpop.f32.mrf.mxu3  ;;  %v817_v58 = vpop.f32.mrf.mxu1 }
  0xc9   : > { %v1812_v57 = vadd.f32 %v1773_v23, %v805_v56  ;;  %v818_v61 = vadd.f32 %v817_v58, %v769_v60  ;;  %v781_v56 = vadd.f32 %v1773_v23, %v1781_v28 }
  0xca   : > { %v964_v59 = vpop.f32.mrf.mxu0 }
  0xce   : > { %v866_v62 = vpop.f32.mrf.mxu2 }
  0xcf   : > { %v867_v63 = vadd.f32 %v866_v62, %v818_v61 }
  0xd0   : > { %v915_v0 = vpop.f32.mrf.mxu3  ;;  %v819_v1 = vpop.f32.mrf.mxu1 }
  0xd1   : > { %v916_v2 = vadd.f32 %v915_v0, %v867_v63  ;;  %v820_v7 = vadd.f32 %v819_v1, %v771_v4 }
  0xd2   : > { %v966_v3 = vpop.f32.mrf.mxu0 }
  0xd3   : > { %v965_v5 = vadd.f32 %v964_v59, %v916_v2  ;;  %v784_v2 = vadd.f32 %v1773_v23, %v1797_v44 }
  0xd5   : > { %v1004_v6 = vpack.c.bf16 %v965_v5, %v965_v5 }
  0xd6   : > { %v868_v8 = vpop.f32.mrf.mxu2 }
  0xd7   : > { %1021 = vst.msk [vmem:[%s1820_s26] sm:$0xf] %vm1020_vm2, %v1004_v6  ;;  %v869_v9 = vadd.f32 %v868_v8, %v820_v7 }
  0xd8   : > { %v917_v10 = vpop.f32.mrf.mxu3  ;;  %v822_v11 = vpop.f32.mrf.mxu1 }
  0xd9   : > { %v918_v12 = vadd.f32 %v917_v10, %v869_v9  ;;  %v823_v17 = vadd.f32 %v822_v11, %v774_v14  ;;  %v786_v11 = vadd.f32 %v1773_v23, %v1806_v52 }
  0xda   : > { %v969_v13 = vpop.f32.mrf.mxu0 }
  0xdb   : > { %v967_v15 = vadd.f32 %v966_v3, %v918_v12 }
  0xdd   : > { %v1005_v16 = vpack.c.bf16 %v967_v15, %v967_v15 }
  0xde   : > { %v871_v18 = vpop.f32.mrf.mxu2 }
  0xdf   : > { %1022 = vst.msk [vmem:[%s1820_s26 + $0x4] sm:$0xf] %vm1020_vm2, %v1005_v16  ;;  %v872_v20 = vadd.f32 %v871_v18, %v823_v17 }
  0xe0   : > { %v920_v21 = vpop.f32.mrf.mxu3  ;;  %v824_v22 = vpop.f32.mrf.mxu1 }
  0xe1   : > { %v921_v24 = vadd.f32 %v920_v21, %v872_v20  ;;  %v825_v32 = vadd.f32 %v824_v22, %v776_v29 }
  0xe2   : > { %v971_v26 = vpop.f32.mrf.mxu0 }
  0xe3   : > { %v970_v30 = vadd.f32 %v969_v13, %v921_v24 }
  0xe5   : > { %v1006_v31 = vpack.c.bf16 %v970_v30, %v970_v30 }
  0xe6   : > { %v873_v33 = vpop.f32.mrf.mxu2 }
  0xe7   : > { %1023 = vst.msk [vmem:[%s1820_s26 + $0x8] sm:$0xf] %vm1020_vm2, %v1006_v31  ;;  %v874_v34 = vadd.f32 %v873_v33, %v825_v32 }
  0xe8   : > { %v922_v35 = vpop.f32.mrf.mxu3  ;;  %v827_v36 = vpop.f32.mrf.mxu1 }
  0xe9   : > { %v923_v37 = vadd.f32 %v922_v35, %v874_v34  ;;  %v828_v45 = vadd.f32 %v827_v36, %v779_v40 }
  0xea   : > { %v974_v38 = vpop.f32.mrf.mxu0 }
  0xeb   : > { %v972_v41 = vadd.f32 %v971_v26, %v923_v37 }
  0xed   : > { %v1007_v42 = vpack.c.bf16 %v972_v41, %v972_v41 }
  0xee   : > { %v876_v46 = vpop.f32.mrf.mxu2 }
  0xef   : > { %1024 = vst.msk [vmem:[%s1820_s26 + $0xc] sm:$0xf] %vm1020_vm2, %v1007_v42  ;;  %v877_v47 = vadd.f32 %v876_v46, %v828_v45 }
  0xf0   : > { %v925_v48 = vpop.f32.mrf.mxu3  ;;  %v829_v50 = vpop.f32.mrf.mxu1 }
  0xf1   : > { %v926_v53 = vadd.f32 %v925_v48, %v877_v47  ;;  %v830_v60 = vadd.f32 %v829_v50, %v781_v56 }
  0xf2   : > { %v976_v54 = vpop.f32.mrf.mxu0 }
  0xf3   : > { %v975_v58 = vadd.f32 %v974_v38, %v926_v53 }
  0xf5   : > { %v1008_v59 = vpack.c.bf16 %v975_v58, %v975_v58 }
  0xf6   : > { %v878_v19 = vpop.f32.mrf.mxu2 }
  0xf7   : > { %1025 = vst.msk [vmem:[%s1820_s26 + $0x10] sm:$0xf] %vm1020_vm2, %v1008_v59  ;;  %v879_v61 = vadd.f32 %v878_v19, %v830_v60 }
  0xf8   : > { %v927_v62 = vpop.f32.mrf.mxu3  ;;  %v832_v63 = vpop.f32.mrf.mxu1 }
  0xf9   : > { %v928_v0 = vadd.f32 %v927_v62, %v879_v61  ;;  %v833_v5 = vadd.f32 %v832_v63, %v784_v2 }
  0xfa   : > { %v979_v1 = vpop.f32.mrf.mxu0 }
  0xfb   : > { %v977_v3 = vadd.f32 %v976_v54, %v928_v0 }
  0xfd   : > { %v1009_v4 = vpack.c.bf16 %v977_v3, %v977_v3 }
  0xfe   : > { %v881_v28 = vpop.f32.mrf.mxu2 }
  0xff   : > { %1026 = vst.msk [vmem:[%s1820_s26 + $0x14] sm:$0xf] %vm1020_vm2, %v1009_v4  ;;  %v882_v6 = vadd.f32 %v881_v28, %v833_v5 }
 0x100   : > { %v930_v7 = vpop.f32.mrf.mxu3  ;;  %v834_v8 = vpop.f32.mrf.mxu1 }
 0x101   : > { %v931_v9 = vadd.f32 %v930_v7, %v882_v6  ;;  %v835_v14 = vadd.f32 %v834_v8, %v786_v11 }
 0x102   : > { %v981_v10 = vpop.f32.mrf.mxu0 }
 0x103   : > { %v980_v12 = vadd.f32 %v979_v1, %v931_v9 }
 0x105   : > { %v1010_v13 = vpack.c.bf16 %v980_v12, %v980_v12 }
 0x106   : > { %v883_v44 = vpop.f32.mrf.mxu2 }
 0x107   : > { %1027 = vst.msk [vmem:[%s1820_s26 + $0x18] sm:$0xf] %vm1020_vm2, %v1010_v13  ;;  %v884_v15 = vadd.f32 %v883_v44, %v835_v14 }
 0x108   : > { %v932_v16 = vpop.f32.mrf.mxu3  ;;  %v837_v17 = vpop.f32.mrf.mxu1 }
 0x109   : > { %v933_v18 = vadd.f32 %v932_v16, %v884_v15  ;;  %v838_v24 = vadd.f32 %v837_v17, %v1776_v25 }
 0x10a   : > { %v984_v20 = vpop.f32.mrf.mxu0 }
 0x10b   : > { %v982_v21 = vadd.f32 %v981_v10, %v933_v18 }
 0x10d   : > { %v1011_v22 = vpack.c.bf16 %v982_v21, %v982_v21 }
 0x10e   : > { %v886_v26 = vpop.f32.mrf.mxu2 }
 0x10f   : > { %1028 = vst.msk [vmem:[%s1820_s26 + $0x1c] sm:$0xf] %vm1020_vm2, %v1011_v22  ;;  %v887_v23 = vadd.f32 %v886_v26, %v838_v24 }
 0x110   : > { %v935_v52 = vpop.f32.mrf.mxu3  ;;  %v839_v29 = vpop.f32.mrf.mxu1 }
 0x111   : > { %v936_v30 = vadd.f32 %v935_v52, %v887_v23  ;;  %v840_v34 = vadd.f32 %v839_v29, %v1792_v39 }
 0x112   : > { %v986_v31 = vpop.f32.mrf.mxu0 }
 0x113   : > { %v985_v32 = vadd.f32 %v984_v20, %v936_v30 }
 0x115   : > { %v1012_v33 = vpack.c.bf16 %v985_v32, %v985_v32 }
 0x116   : > { %v888_v35 = vpop.f32.mrf.mxu2 }
 0x117   : > { %1029 = vst.msk [vmem:[%s1820_s26 + $0x20] sm:$0xf] %vm1020_vm2, %v1012_v33  ;;  %v889_v36 = vadd.f32 %v888_v35, %v840_v34 }
 0x118   : > { %v937_v37 = vpop.f32.mrf.mxu3  ;;  %v842_v38 = vpop.f32.mrf.mxu1 }
 0x119   : > { %v938_v25 = vadd.f32 %v937_v37, %v889_v36  ;;  %v843_v45 = vadd.f32 %v842_v38, %v1801_v49 }
 0x11a   : > { %v989_v40 = vpop.f32.mrf.mxu0 }
 0x11b   : > { %v987_v41 = vadd.f32 %v986_v31, %v938_v25 }
 0x11d   : > { %v1013_v42 = vpack.c.bf16 %v987_v41, %v987_v41 }
 0x11e   : > { %v891_v46 = vpop.f32.mrf.mxu2 }
 0x11f   : > { %1030 = vst.msk [vmem:[%s1820_s26 + $0x24] sm:$0xf] %vm1020_vm2, %v1013_v42  ;;  %v892_v47 = vadd.f32 %v891_v46, %v843_v45 }
 0x120   : > { %v940_v48 = vpop.f32.mrf.mxu3  ;;  %v844_v50 = vpop.f32.mrf.mxu1 }
 0x121   : > { %v941_v39 = vadd.f32 %v940_v48, %v892_v47  ;;  %v845_v58 = vadd.f32 %v844_v50, %v1809_v55 }
 0x122   : > { %v991_v53 = vpop.f32.mrf.mxu0 }
 0x123   : > { %v990_v54 = vadd.f32 %v989_v40, %v941_v39 }
 0x125   : > { %v1014_v56 = vpack.c.bf16 %v990_v54, %v990_v54 }
 0x126   : > { %v893_v59 = vpop.f32.mrf.mxu2 }
 0x127   : > { %1031 = vst.msk [vmem:[%s1820_s26 + $0x28] sm:$0xf] %vm1020_vm2, %v1014_v56  ;;  %v894_v60 = vadd.f32 %v893_v59, %v845_v58 }
 0x128   : > { %v942_v19 = vpop.f32.mrf.mxu3  ;;  %v847_v61 = vpop.f32.mrf.mxu1 }
 0x129   : > { %v943_v49 = vadd.f32 %v942_v19, %v894_v60  ;;  %v848_v1 = vadd.f32 %v847_v61, %v1779_v27 }
 0x12a   : > { %v994_v63 = vpop.f32.mrf.mxu0 }
 0x12b   : > { %v992_v62 = vadd.f32 %v991_v53, %v943_v49 }
 0x12d   : > { %v1015_v0 = vpack.c.bf16 %v992_v62, %v992_v62 }
 0x12e   : > { %v896_v2 = vpop.f32.mrf.mxu2 }
 0x12f   : > { %1032 = vst.msk [vmem:[%s1820_s26 + $0x2c] sm:$0xf] %vm1020_vm2, %v1015_v0  ;;  %v897_v3 = vadd.f32 %v896_v2, %v848_v1 }
 0x130   : > { %v945_v4 = vpop.f32.mrf.mxu3  ;;  %v849_v5 = vpop.f32.mrf.mxu1 }
 0x131   : > { %v946_v55 = vadd.f32 %v945_v4, %v897_v3  ;;  %v850_v7 = vadd.f32 %v849_v5, %v1795_v43 }
 0x132   : > { %v996_v8 = vpop.f32.mrf.mxu0 }
 0x133   : > { %v995_v28 = vadd.f32 %v994_v63, %v946_v55 }
 0x135   : > { %v1016_v6 = vpack.c.bf16 %v995_v28, %v995_v28 }
 0x136   : > { %v898_v9 = vpop.f32.mrf.mxu2 }
 0x137   : > { %1033 = vst.msk [vmem:[%s1820_s26 + $0x30] sm:$0xf] %vm1020_vm2, %v1016_v6  ;;  %v899_v10 = vadd.f32 %v898_v9, %v850_v7 }
 0x138   : > { %v947_v11 = vpop.f32.mrf.mxu3  ;;  %v852_v12 = vpop.f32.mrf.mxu1 }
 0x139   : > { %v948_v27 = vadd.f32 %v947_v11, %v899_v10  ;;  %v853_v44 = vadd.f32 %v852_v12, %v1804_v51 }
 0x13a   : > { %v999_v43 = vpop.f32.mrf.mxu0 }
 0x13b   : > { %v997_v13 = vadd.f32 %v996_v8, %v948_v27 }
 0x13d   : > { %v1017_v14 = vpack.c.bf16 %v997_v13, %v997_v13 }
 0x13e   : > { %v901_v15 = vpop.f32.mrf.mxu2 }
 0x13f   : > { %1034 = vst.msk [vmem:[%s1820_s26 + $0x34] sm:$0xf] %vm1020_vm2, %v1017_v14  ;;  %v902_v16 = vadd.f32 %v901_v15, %v853_v44 }
 0x140   : > { %v950_v17 = vpop.f32.mrf.mxu3  ;;  %v854_v20 = vpop.f32.mrf.mxu1 }
 0x141   : > { %v951_v18 = vadd.f32 %v950_v17, %v902_v16  ;;  %v855_v24 = vadd.f32 %v854_v20, %v1812_v57 }
 0x142   : > { %v1001_v51 = vpop.f32.mrf.mxu0 }
 0x143   : > { %v1000_v21 = vadd.f32 %v999_v43, %v951_v18 }
 0x145   : > { %v1018_v22 = vpack.c.bf16 %v1000_v21, %v1000_v21 }
 0x146   : > { %v903_v26 = vpop.f32.mrf.mxu2 }
 0x147   : > { %1035 = vst.msk [vmem:[%s1820_s26 + $0x38] sm:$0xf] %vm1020_vm2, %v1018_v22  ;;  %v904_v23 = vadd.f32 %v903_v26, %v855_v24 }
 0x148   : > { %v952_v52 = vpop.f32.mrf.mxu3 }
 0x149   : > { %v953_v29 = vadd.f32 %v952_v52, %v904_v23 }
 0x14b   : > { %v1002_v30 = vadd.f32 %v1001_v51, %v953_v29 }
 0x14d   : > { %v1019_v31 = vpack.c.bf16 %v1002_v30, %v1002_v30 }
 0x14f   : > { %1036 = vst.msk [vmem:[%s1820_s26 + $0x3c] sm:$0xf] %vm1020_vm2, %v1019_v31 }
 0x150 PF: > { %s13_s12 = sadd.s32 1, %s1537_s12  }
 0x151   : > { %p10_p4 = scmp.ge.s32.totalorder %s13_s12, 6  }
 0x153   :  { %12 = sbr.rel (!%p10_p4) target bundleno = 1 (0x1), region = 62 }

// kernel: featextnet_forward.53
= control target key start
LH: loop header
LB: loop body
LE: loop exit
PB: predicated region body
PF: predicated region fallthrough
CT: control target
= control target key end

     0   :  { %s502_s14 = smov 0   ;;  %s567_s0 = inlined_call_operand.vmem [shape: bf16[512,12], index: 0, kind: input, shape index: {}]   ;;  %s568_s1 = inlined_call_operand.vmem [shape: bf16[12,1], index: 1, kind: input, shape index: {}]   ;;  %s569_s2 = inlined_call_operand.<no memory space> [shape: f32[1,1], index: 2, kind: input, shape index: {}]   ;;  %s570_s3 = inlined_call_operand.vmem [shape: f32[512,1], index: 3, kind: output, shape index: {}]  }
   0x1   :  { %v8_v0 = vstv %s569_s2 }
   0x2   :  { %9 = vst [vmem:[#allocation2] sm:$0x1] %v8_v0 }
   0x3 LB: > { %s395_s15 = sadd.s32 4294967295, %s477_s14   ;;  %p399_p0 = scmp.ge.s32.totalorder %s477_s14, 1  ;;  %s477_s14 = sphi %s502_s14, %s15_s14  }
   0x4   : > { %p140_p1 = scmp.lt.s32.totalorder %s477_s14, 5 }
   0x6   : > { %p141_p2 = pnand %p399_p0, %p140_p1 }
   0x7   : > { %s400_s19 = sshll.u32 (!%p141_p2), %s395_s15, 4 }
   0x8   : > { %144 = sbr.rel (%p141_p2) target bundleno = 181 (0xb5), region = 32  ;;  %p165_p3 = scmp.lt.s32.totalorder (!%p141_p2), %s400_s19, 63 }
   0xd   : > { %v438_v1 = vld [vmem:[%s568_s1] sm:$0xf]  ;;  %v458_v2 = vld [vmem:[%s568_s1] sm:$0x30]  ;;  %vm269_vm0 = vcmask 1045504   ;;  %s572_s19 = smov (!%p165_p3, %s400_s19), 63 }
   0xe   : > { %v439_v3 = vor.u32 %v458_v2, %v438_v1  ;;  %s401_s20 = sshll.u32 %s572_s19, 2  ;;  %vm244_vm1 = vcmask 97280   ;;  %s403_s24 = sshll.u32 %s572_s19, 3  ;;  %v470_v13 = vld [vmem:[#allocation2] ss:$0 sm:$0xff]  ;;  %vm322_vm2 = vcmask 7168  }
   0xf   : > { %s168_s23 = scalar_lea.vmem %s567_s0, %s401_s20  ;;  %s530_s27 = scalar_lea.vmem %s570_s3, %s403_s24 }
  0x10   : > { %v271_v4 = vsel %vm269_vm0, %v439_v3, 0  ;;  %v450_v5 = vld [vmem:[%s168_s23] sm:$0xff]  ;;  %v452_v6 = vld [vmem:[%s168_s23 + $0x10] sm:$0xff]  ;;  %v451_v9 = vld [vmem:[%s168_s23 + $0x8] sm:$0xff] }
  0x11   : > { %280 = vmatpush.bf16.msra.mxu0 %v271_v4  ;;  %459 = vmatpush.bf16.msra.mxu1 %v271_v4  ;;  %v454_v7 = vld [vmem:[%s168_s23 + $0x20] sm:$0xff]  ;;  %v456_v8 = vld [vmem:[%s168_s23 + $0x30] sm:$0xff]  ;;  %v453_v10 = vld [vmem:[%s168_s23 + $0x18] sm:$0xff] }
  0x12   : > { %460 = vmatpush.bf16.msra.mxu2 %v271_v4  ;;  %461 = vmatpush.bf16.msra.mxu3 %v271_v4  ;;  %v455_v11 = vld [vmem:[%s168_s23 + $0x28] sm:$0xff]  ;;  %v457_v12 = vld [vmem:[%s168_s23 + $0x38] sm:$0xff] }
  0x14   : > { %440 = vmatmul.msk.bf16.vlgmr.msra.gmra.mxu0 %vm244_vm1, %v450_v5  ;;  %442 = vmatmul.msk.bf16.vlgmr.msra.gmra.mxu1 %vm244_vm1, %v452_v6 }
  0x15   : > { %444 = vmatmul.msk.bf16.vlgmr.msra.gmra.mxu2 %vm244_vm1, %v454_v7  ;;  %446 = vmatmul.msk.bf16.vlgmr.msra.gmra.mxu3 %vm244_vm1, %v456_v8 }
  0x24   : > { %441 = vmatmul.msk.bf16.gmra.mxu0 %vm244_vm1, %v451_v9  ;;  %443 = vmatmul.msk.bf16.gmra.mxu1 %vm244_vm1, %v453_v10 }
  0x25   : > { %445 = vmatmul.msk.bf16.gmra.mxu2 %vm244_vm1, %v455_v11  ;;  %447 = vmatmul.msk.bf16.gmra.mxu3 %vm244_vm1, %v457_v12 }
  0x91   : > { %v282_v14 = vpop.f32.mrf.mxu0  ;;  %v292_v15 = vpop.f32.mrf.mxu1 }
  0x92   : > { %v283_v16 = vadd.f32 %v470_v13, %v282_v14  ;;  %v293_v17 = vadd.f32 %v470_v13, %v292_v15 }
  0x94   : > { %323 = vst.msk [vmem:[%s530_s27] sm:$0xff] %vm322_vm2, %v283_v16 }
  0x95   : > { %327 = vst.msk [vmem:[%s530_s27 + $0x20] sm:$0xff] %vm322_vm2, %v293_v17 }
  0x98   : > { %v302_v18 = vpop.f32.mrf.mxu2  ;;  %v312_v19 = vpop.f32.mrf.mxu3 }
  0x99   : > { %v303_v20 = vadd.f32 %v470_v13, %v302_v18  ;;  %v313_v21 = vadd.f32 %v470_v13, %v312_v19  ;;  %v284_v22 = vpop.f32.mrf.mxu0  ;;  %v294_v23 = vpop.f32.mrf.mxu1 }
  0x9a   : > { %v285_v24 = vadd.f32 %v470_v13, %v284_v22  ;;  %v295_v25 = vadd.f32 %v470_v13, %v294_v23 }
  0x9b   : > { %331 = vst.msk [vmem:[%s530_s27 + $0x40] sm:$0xff] %vm322_vm2, %v303_v20 }
  0x9c   : > { %335 = vst.msk [vmem:[%s530_s27 + $0x60] sm:$0xff] %vm322_vm2, %v313_v21 }
  0x9d   : > { %324 = vst.msk [vmem:[%s530_s27 + $0x8] sm:$0xff] %vm322_vm2, %v285_v24 }
  0x9e   : > { %328 = vst.msk [vmem:[%s530_s27 + $0x28] sm:$0xff] %vm322_vm2, %v295_v25 }
  0xa0   : > { %v304_v26 = vpop.f32.mrf.mxu2  ;;  %v314_v27 = vpop.f32.mrf.mxu3 }
  0xa1   : > { %v305_v28 = vadd.f32 %v470_v13, %v304_v26  ;;  %v315_v29 = vadd.f32 %v470_v13, %v314_v27  ;;  %v287_v30 = vpop.f32.mrf.mxu0  ;;  %v297_v31 = vpop.f32.mrf.mxu1 }
  0xa2   : > { %v288_v32 = vadd.f32 %v470_v13, %v287_v30  ;;  %v298_v33 = vadd.f32 %v470_v13, %v297_v31 }
  0xa3   : > { %332 = vst.msk [vmem:[%s530_s27 + $0x48] sm:$0xff] %vm322_vm2, %v305_v28 }
  0xa4   : > { %336 = vst.msk [vmem:[%s530_s27 + $0x68] sm:$0xff] %vm322_vm2, %v315_v29 }
  0xa5   : > { %325 = vst.msk [vmem:[%s530_s27 + $0x10] sm:$0xff] %vm322_vm2, %v288_v32 }
  0xa6   : > { %329 = vst.msk [vmem:[%s530_s27 + $0x30] sm:$0xff] %vm322_vm2, %v298_v33 }
  0xa8   : > { %v307_v34 = vpop.f32.mrf.mxu2  ;;  %v317_v35 = vpop.f32.mrf.mxu3 }
  0xa9   : > { %v308_v36 = vadd.f32 %v470_v13, %v307_v34  ;;  %v318_v37 = vadd.f32 %v470_v13, %v317_v35  ;;  %v289_v38 = vpop.f32.mrf.mxu0  ;;  %v299_v39 = vpop.f32.mrf.mxu1 }
  0xaa   : > { %v290_v40 = vadd.f32 %v470_v13, %v289_v38  ;;  %v300_v41 = vadd.f32 %v470_v13, %v299_v39 }
  0xab   : > { %333 = vst.msk [vmem:[%s530_s27 + $0x50] sm:$0xff] %vm322_vm2, %v308_v36 }
  0xac   : > { %337 = vst.msk [vmem:[%s530_s27 + $0x70] sm:$0xff] %vm322_vm2, %v318_v37 }
  0xad   : > { %326 = vst.msk [vmem:[%s530_s27 + $0x18] sm:$0xff] %vm322_vm2, %v290_v40 }
  0xae   : > { %330 = vst.msk [vmem:[%s530_s27 + $0x38] sm:$0xff] %vm322_vm2, %v300_v41 }
  0xb0   : > { %v309_v42 = vpop.f32.mrf.mxu2  ;;  %v319_v43 = vpop.f32.mrf.mxu3 }
  0xb1   : > { %v310_v44 = vadd.f32 %v470_v13, %v309_v42  ;;  %v320_v45 = vadd.f32 %v470_v13, %v319_v43 }
  0xb3   : > { %334 = vst.msk [vmem:[%s530_s27 + $0x58] sm:$0xff] %vm322_vm2, %v310_v44 }
  0xb4   : > { %338 = vst.msk [vmem:[%s530_s27 + $0x78] sm:$0xff] %vm322_vm2, %v320_v45 }
  0xb5 PF: > { %s15_s14 = sadd.s32 1, %s477_s14  }
  0xb6   : > { %p12_p4 = scmp.ge.s32.totalorder %s15_s14, 6  }
  0xb8   :  { %14 = sbr.rel (!%p12_p4) target bundleno = 3 (0x3), region = 62 }

</bundles_post_ra>
